<compile_context>
chip_gen: v7x
topology: tpu7x:2x2x1
jax: 0.10.0
libtpu: 0.0.40
codegen_flags: <defaults>
</compile_context>

<pallas_src>
import functools

import numpy as np

import jax
import jax.numpy as jnp
from jax.experimental import pallas as pl
from jax.experimental.pallas import tpu as pltpu


def _default_vmem_limit():
    # Half of physical VMEM (64 MiB on v7x, 128 MiB on v5e/v6e), capped, with a safe
    # 32 MiB fallback if the hardware query is unavailable.
    try:
        info = pltpu.get_tpu_info()
        cap = getattr(info, "vmem_capacity_bytes", None)
        if cap:
            return int(min(cap // 2, 96 * 1024 * 1024))
    except Exception:
        pass
    return 32 * 1024 * 1024


VMEM_LIMIT = _default_vmem_limit()


def _compiler_params():
    return pltpu.CompilerParams(vmem_limit_bytes=VMEM_LIMIT)


def _vmem_specs(n):
    return [pl.BlockSpec(memory_space=pltpu.MemorySpace.VMEM) for _ in range(n)]


# ---------------------------------------------------------------------------
# channel bookkeeping (same logic as the PyTorch adapt_channel, prints removed)
# ---------------------------------------------------------------------------
def adapt_channel(sparsity, num_layers):
    if num_layers == 56:
        stage_repeat = [9, 9, 9]
        stage_out_channel = [16] + [16] * 9 + [32] * 9 + [64] * 9
    elif num_layers == 110:
        stage_repeat = [18, 18, 18]
        stage_out_channel = [16] + [16] * 18 + [32] * 18 + [64] * 18
    else:
        raise ValueError("num_layers must be 56 or 110")
    stage_oup_cprate = []
    stage_oup_cprate += [sparsity[0]]
    for i in range(len(stage_repeat) - 1):
        stage_oup_cprate += [sparsity[i + 1]] * stage_repeat[i]
    stage_oup_cprate += [0.0] * stage_repeat[-1]
    mid_cprate = sparsity[len(stage_repeat):]
    overall_channel = []
    mid_channel = []
    for i in range(len(stage_out_channel)):
        overall_channel += [int(stage_out_channel[i] * (1 - stage_oup_cprate[i]))]
        if i != 0:
            mid_channel += [int(stage_out_channel[i] * (1 - mid_cprate[i - 1]))]
    return overall_channel, mid_channel


# ---------------------------------------------------------------------------
# Pallas kernels
# ---------------------------------------------------------------------------
def _conv_frame_kernel(x_ref, w_ref, b_ref, *rest, ksize, wp, lf, relu, has_res):
    # Direct convolution on the flattened, zero-extended padded frame.
    #   x_ref: (Cin, lf + 2*pext) bf16; tap (dy,dx) = lane slice [dy*wp+dx : dy*wp+dx+lf]
    #   w_ref: (ksize*ksize, Cout, Cin) bf16 with the BN scale folded in
    #   b_ref: (Cout, 1) f32 BN bias;  rest = ([res (Cout,lf)], out (Cout,lf))
    # Output is in frame layout; only the interior (true HxW) positions are valid.
    if has_res:
        res_ref, o_ref = rest
    else:
        (o_ref,) = rest
    acc = None
    t = 0
    for dy in range(ksize):
        for dx in range(ksize):
            off = dy * wp + dx
            d = jnp.dot(w_ref[t], x_ref[:, off:off + lf],
                        preferred_element_type=jnp.float32)
            acc = d if acc is None else acc + d
            t += 1
    out = acc + b_ref[...]
    if has_res:
        out = out + res_ref[...].astype(jnp.float32)
    if relu:
        out = jnp.maximum(out, 0.0)
    o_ref[...] = out.astype(o_ref.dtype)


def _fused_block_kernel(x_ref, w1_ref, b1_ref, w2_ref, b2_ref, m_ref, *rest,
                        wp, lf, pext, identity):
    # Fused stride-1 BasicBlock: conv1+BN1+ReLU -> conv2+BN2 (+residual) + ReLU.
    #   x_ref : (Cin, lf + 2*pext) bf16 extended frame with ZERO border/extension
    #   w*    : (9, C_to, C_from) bf16 (BN scale folded);  b*: (C_to, 1) f32
    #   m_ref : (1, lf) f32 interior mask (1 on true HxW pixels, 0 on frame border)
    #   rest  : ([res (Cout, lf)], out (Cout, lf+2*pext), mid scratch (Cmid, lf+2*pext))
    # The output is again a zero-bordered extended frame, so stride-1 blocks chain
    # directly with no HBM-side re-padding.
    if identity:
        o_ref, mid_ref = rest
        res_ref = None
    else:
        res_ref, o_ref, mid_ref = rest

    mask = m_ref[...]

    # conv1 (+ folded BN1 scale) + bias + ReLU, computed over the padded frame
    acc = None
    t = 0
    for dy in range(3):
        for dx in range(3):
            off = dy * wp + dx
            d = jnp.dot(w1_ref[t], x_ref[:, off:off + lf],
                        preferred_element_type=jnp.float32)
            acc = d if acc is None else acc + d
            t += 1
    mid = jnp.maximum(acc + b1_ref[...], 0.0) * mask   # mask => conv2's zero padding

    mid_ref[...] = jnp.zeros_like(mid_ref)             # zero the extension regions
    mid_ref[:, pext:pext + lf] = mid.astype(mid_ref.dtype)

    # conv2 (+ folded BN2 scale) + bias + residual + ReLU
    acc2 = None
    t = 0
    for dy in range(3):
        for dx in range(3):
            off = dy * wp + dx
            d = jnp.dot(w2_ref[t], mid_ref[:, off:off + lf],
                        preferred_element_type=jnp.float32)
            acc2 = d if acc2 is None else acc2 + d
            t += 1
    out = acc2 + b2_ref[...]
    if identity:
        out = out + x_ref[:, pext:pext + lf].astype(jnp.float32)
    else:
        out = out + res_ref[...].astype(jnp.float32)
    out = jnp.maximum(out, 0.0) * mask                 # re-zero border for chaining

    o_ref[...] = jnp.zeros_like(o_ref)
    o_ref[:, pext:pext + lf] = out.astype(o_ref.dtype)


def _pool_fc_kernel(x_ref, w_ref, b_ref, o_ref):
    # x_ref: (C, N, H*W) bf16 -> global average pool (f32) then Linear.
    pooled = jnp.mean(x_ref[...].astype(jnp.float32), axis=2)                 # (C, N)
    out = jnp.dot(w_ref[...], pooled, preferred_element_type=jnp.float32) + b_ref[...]
    o_ref[...] = out                                                          # (classes, N)


# ---------------------------------------------------------------------------
# XLA glue (all of it lives inside the single whole-forward jit)
# ---------------------------------------------------------------------------
def _fold_bn_into_w(w, scale):
    # (Cout, Cin, kh, kw) f32 * per-output-channel BN scale -> (kh*kw, Cout, Cin) bf16.
    cout, cin, kh, kw = w.shape
    wf = w * scale[:, None, None, None]
    return jnp.transpose(wf, (2, 3, 0, 1)).reshape(kh * kw, cout, cin).astype(jnp.bfloat16)


def _to_ext_frame(x4, p):
    # (C, N, H, W) -> zero-padded frame flattened to (C, N*Hp*Wp), extended by
    # pext = p*Wp + p zeros on both lane ends (room for every tap shift).
    c, n, h, w = x4.shape
    hp, wp = h + 2 * p, w + 2 * p
    pext = p * wp + p
    xp = jnp.pad(x4, ((0, 0), (0, 0), (p, p), (p, p)))
    return jnp.pad(xp.reshape(c, n * hp * wp), ((0, 0), (pext, pext)))


def _frame_to_4d(frame, n, h, w, p):
    c = frame.shape[0]
    hp, wp = h + 2 * p, w + 2 * p
    return frame.reshape(c, n, hp, wp)[:, :, p:p + h, p:p + w]


def _interior_mask(n, h, w, p):
    # (1, N*Hp*Wp) f32 compile-time constant: 1 on true HxW pixels, 0 on frame border.
    hp, wp = h + 2 * p, w + 2 * p
    m = np.zeros((hp, wp), np.float32)
    m[p:p + h, p:p + w] = 1.0
    m = np.tile(m.reshape(1, hp * wp), (n, 1)).reshape(1, n * hp * wp)
    return jnp.asarray(m)


def _conv_bn_act(x4, w, scale, bias, *, ksize, relu=True, residual_frame=None):
    # 'same', stride-1 convolution (pad = (ksize-1)//2) + folded BN (+residual) (+ReLU).
    cin, n, h, w_sp = x4.shape
    p = (ksize - 1) // 2
    hp, wp = h + 2 * p, w_sp + 2 * p
    lf = n * hp * wp
    cout = w.shape[0]

    args = [_to_ext_frame(x4, p),
            _fold_bn_into_w(w, scale),
            bias.reshape(cout, 1).astype(jnp.float32)]
    if residual_frame is not None:
        args.append(residual_frame.astype(jnp.bfloat16))

    kernel = functools.partial(_conv_frame_kernel, ksize=ksize, wp=wp, lf=lf,
                               relu=relu, has_res=residual_frame is not None)
    frame = pl.pallas_call(
        kernel,
        out_shape=jax.ShapeDtypeStruct((cout, lf), jnp.bfloat16),
        in_specs=_vmem_specs(len(args)),
        out_specs=pl.BlockSpec(memory_space=pltpu.MemorySpace.VMEM),
        compiler_params=_compiler_params(),
    )(*args)
    return _frame_to_4d(frame, n, h, w_sp, p)


def _fused_block_call(x_ext, blk, inplanes, planes, mask, n, h, w):
    cmid = blk["conv1_w"].shape[0]
    cout = planes
    wp = w + 2
    lf = n * (h + 2) * wp
    pext = wp + 1
    l_ext = lf + 2 * pext
    identity = (inplanes == planes)

    args = [x_ext,
            _fold_bn_into_w(blk["conv1_w"], blk["bn1_scale"]),
            blk["bn1_bias"].reshape(cmid, 1).astype(jnp.float32),
            _fold_bn_into_w(blk["conv2_w"], blk["bn2_scale"]),
            blk["bn2_bias"].reshape(cout, 1).astype(jnp.float32),
            mask]
    if not identity:
        # stride-1 channel-pad shortcut (pruned configs); identity handled in-kernel.
        lo = (planes - inplanes) // 2
        hi = planes - inplanes - lo
        args.append(jnp.pad(x_ext[:, pext:pext + lf], ((lo, hi), (0, 0))))

    kernel = functools.partial(_fused_block_kernel, wp=wp, lf=lf, pext=pext,
                               identity=identity)
    return pl.pallas_call(
        kernel,
        out_shape=jax.ShapeDtypeStruct((cout, l_ext), jnp.bfloat16),
        in_specs=_vmem_specs(len(args)),
        out_specs=pl.BlockSpec(memory_space=pltpu.MemorySpace.VMEM),
        scratch_shapes=[pltpu.VMEM((cmid, l_ext), jnp.bfloat16)],
        compiler_params=_compiler_params(),
    )(*args)


def _stride1_run(x4, blks, archs):
    # Chain of stride-1 BasicBlocks, each fused into ONE pallas_call; the extended
    # frame layout is preserved end-to-end (no per-block XLA re-padding).
    c, n, h, w = x4.shape
    pext = (w + 2) + 1
    lf = n * (h + 2) * (w + 2)
    mask = _interior_mask(n, h, w, 1)
    x_ext = _to_ext_frame(x4, 1)
    for blk, (stride, inp, midp, outp) in zip(blks, archs):
        x_ext = _fused_block_call(x_ext, blk, inp, outp, mask, n, h, w)
    return _frame_to_4d(x_ext[:, pext:pext + lf], n, h, w, 1)


def _shortcut(x4, inplanes, planes, stride):
    # PyTorch LambdaLayer shortcut on channel-major x: ::2 spatial subsample (if
    # strided) + zero padding along the channel (leading) axis.
    s = x4
    if stride != 1:
        s = s[:, :, ::2, ::2]
    if planes != inplanes:
        lo = (planes - inplanes) // 2
        hi = planes - inplanes - lo
        s = jnp.pad(s, ((lo, hi), (0, 0), (0, 0), (0, 0)))
    return s


def _stride2_block(x4, blk, inplanes, planes):
    # Stride-2 BasicBlock as two frame-conv pallas_calls; the exact stride-2 result is
    # the stride-1 conv followed by a ::2 subsample (done in XLA, it fuses).
    n = x4.shape[1]
    s1 = _conv_bn_act(x4, blk["conv1_w"], blk["bn1_scale"], blk["bn1_bias"],
                      ksize=3, relu=True)
    mid4 = s1[:, :, ::2, ::2]
    res4 = _shortcut(x4, inplanes, planes, 2)
    ho, wo = mid4.shape[2], mid4.shape[3]
    res_frame = jnp.pad(res4, ((0, 0), (0, 0), (1, 1), (1, 1))
                        ).reshape(planes, n * (ho + 2) * (wo + 2))
    return _conv_bn_act(mid4, blk["conv2_w"], blk["bn2_scale"], blk["bn2_bias"],
                        ksize=3, relu=True, residual_frame=res_frame)


def _maxpool_3x3_s2(x4):
    # 3x3 / stride-2 / pad-1 maxpool in plain XLA (fuses inside the single jit; no
    # (9, C, M) tap stack is ever materialized in HBM).
    c, n, h, w = x4.shape
    ho = (h + 2 - 3) // 2 + 1
    wo = (w + 2 - 3) // 2 + 1
    xp = jnp.pad(x4, ((0, 0), (0, 0), (1, 1), (1, 1)), constant_values=-jnp.inf)
    out = None
    for dy in range(3):
        for dx in range(3):
            tap = xp[:, :, dy:dy + 2 * ho:2, dx:dx + 2 * wo:2]
            out = tap if out is None else jnp.maximum(out, tap)
    return out


def _avgpool_fc(x4, w_fc, b_fc):
    # TODO(synk): for large batch, tile this over N with a grid and emit an N-major
    #             lane-dense output; at these sizes a single VMEM-resident call is fine.
    c, n, h, w = x4.shape
    nc = w_fc.shape[0]
    out = pl.pallas_call(
        _pool_fc_kernel,
        out_shape=jax.ShapeDtypeStruct((nc, n), jnp.float32),
        in_specs=_vmem_specs(3),
        out_specs=pl.BlockSpec(memory_space=pltpu.MemorySpace.VMEM),
        compiler_params=_compiler_params(),
    )(x4.reshape(c, n, h * w), w_fc, b_fc.reshape(nc, 1))
    return jnp.transpose(out)


# ---------------------------------------------------------------------------
# forward pass (mirrors ResNet.forward); arch is static, params is a pytree
# ---------------------------------------------------------------------------
def resnet_forward(arch, params, x_nchw):
    # NCHW -> channel-major (C, N, H, W); bf16 activations for bandwidth.
    x4 = jnp.transpose(x_nchw, (1, 0, 2, 3)).astype(jnp.bfloat16)
    x4 = _conv_bn_act(x4, params["conv1_w"], params["bn1_scale"], params["bn1_bias"],
                      ksize=5, relu=True)
    x4 = _maxpool_3x3_s2(x4)

    blocks = params["blocks"]
    i, nb = 0, len(arch)
    while i < nb:
        if arch[i][0] != 1:
            stride, inp, midp, outp = arch[i]
            x4 = _stride2_block(x4, blocks[i], inp, outp)
            i += 1
        else:
            j = i
            while j < nb and arch[j][0] == 1:
                j += 1
            x4 = _stride1_run(x4, blocks[i:j], arch[i:j])
            i = j
    return _avgpool_fc(x4, params["fc_w"], params["fc_b"])


def make_forward(arch):
    # ONE jit for the whole network: a single dispatch, all glue fuses around the
    # 30-ish pallas_calls.
    return jax.jit(functools.partial(resnet_forward, arch))


# ---------------------------------------------------------------------------
# deterministic parameter / architecture construction
# ---------------------------------------------------------------------------
class _KeyGen:
    def __init__(self, key):
        self.key = key

    def __call__(self):
        self.key, sub = jax.random.split(self.key)
        return sub


def _init_conv(kg, cout, cin, kh, kw):
    std = (2.0 / (cin * kh * kw)) ** 0.5
    return std * jax.random.normal(kg(), (cout, cin, kh, kw), dtype=jnp.float32)


def _init_bn(kg, c, eps=1e-5):
    gamma = 1.0 + 0.1 * jax.random.normal(kg(), (c,), dtype=jnp.float32)
    beta = 0.1 * jax.random.normal(kg(), (c,), dtype=jnp.float32)
    mean = 0.1 * jax.random.normal(kg(), (c,), dtype=jnp.float32)
    var = 1.0 + 0.1 * jax.random.uniform(kg(), (c,), dtype=jnp.float32)
    scale = gamma / jnp.sqrt(var + eps)
    bias = beta - mean * scale
    return scale, bias


def build_arch(num_layers=56, sparsity=None):
    # static per-block (stride, inplanes, midplanes, planes), matching the PyTorch model
    if sparsity is None:
        sparsity = [0.0] * 30
    overall, mid = adapt_channel(sparsity, num_layers)
    n = (num_layers - 2) // 6
    arch = []
    layer_num = 1
    for stage_stride in (1, 2, 2):
        for b_i in range(n):
            stride = stage_stride if b_i == 0 else 1
            arch.append((stride, overall[layer_num - 1], mid[layer_num - 1],
                         overall[layer_num]))
            layer_num += 1
    return tuple(arch), overall


def init_params(key, arch, first_out, num_classes=10):
    kg = _KeyGen(key)
    params = {"conv1_w": _init_conv(kg, first_out, 3, 5, 5)}
    params["bn1_scale"], params["bn1_bias"] = _init_bn(kg, first_out)
    blocks = []
    for stride, inp, midp, outp in arch:
        blk = {"conv1_w": _init_conv(kg, midp, inp, 3, 3),
               "conv2_w": _init_conv(kg, outp, midp, 3, 3)}
        blk["bn1_scale"], blk["bn1_bias"] = _init_bn(kg, midp)
        blk["bn2_scale"], blk["bn2_bias"] = _init_bn(kg, outp)
        blocks.append(blk)
    params["blocks"] = blocks
    last_out = arch[-1][3]
    params["fc_w"] = (1.0 / last_out) ** 0.5 * jax.random.normal(
        kg(), (num_classes, last_out), dtype=jnp.float32)
    params["fc_b"] = 0.01 * jax.random.normal(kg(), (num_classes,), dtype=jnp.float32)
    return params


if __name__ == "__main__":
    key = jax.random.PRNGKey(0)
    pkey, xkey = jax.random.split(key)
    arch, overall = build_arch(num_layers=56, sparsity=[0.0] * 30)
    params = init_params(pkey, arch, overall[0], num_classes=10)
    forward = make_forward(arch)

    # small deterministic input, NCHW like PyTorch (3 input channels required)
    x = jax.random.normal(xkey, (2, 3, 16, 16), dtype=jnp.float32)
    out = jax.block_until_ready(forward(params, x))
    assert out.shape == (2, 10) and bool(jnp.all(jnp.isfinite(out)))
    print("KERNEL_OK")
</pallas_src>

<mosaic_0001>
module attributes {stable_mosaic.version = 11 : i64} {
  func.func @_conv_frame_kernel(%arg0: memref<3x884xbf16, #tpu.memory_space<vmem>>, %arg1: memref<25x16x3xbf16, #tpu.memory_space<vmem>>, %arg2: memref<16x1xf32, #tpu.memory_space<vmem>>, %arg3: memref<16x800xbf16, #tpu.memory_space<vmem>>) attributes {dimension_semantics = [], scalar_prefetch = 0 : i64, scratch_operands = 0 : i64, tpu.core_type = #tpu.core_type<tc>} {
    %c0 = arith.constant 0 : index
    %c0_0 = arith.constant 0 : index
    %c0_1 = arith.constant 0 : index
    %0 = vector.load %arg1[%c0, %c0_0, %c0_1] : memref<25x16x3xbf16, #tpu.memory_space<vmem>>, vector<1x16x3xbf16>
    %1 = vector.shape_cast %0 : vector<1x16x3xbf16> to vector<16x3xbf16>
    %c0_2 = arith.constant 0 : index
    %c0_3 = arith.constant 0 : index
    %2 = vector.load %arg0[%c0_2, %c0_3] : memref<3x884xbf16, #tpu.memory_space<vmem>>, vector<3x800xbf16>
    %cst = arith.constant dense<0.000000e+00> : vector<16x800xf32>
    %3 = tpu.matmul %1, %2, %cst {dimension_numbers = #tpu.dot_dimension_numbers<[1], [0], [0], [1], [0, 0, 1, 1], [], []>} : vector<16x3xbf16>, vector<3x800xbf16>, vector<16x800xf32> -> vector<16x800xf32>
    %c1 = arith.constant 1 : index
    %c0_4 = arith.constant 0 : index
    %c0_5 = arith.constant 0 : index
    %4 = vector.load %arg1[%c1, %c0_4, %c0_5] : memref<25x16x3xbf16, #tpu.memory_space<vmem>>, vector<1x16x3xbf16>
    %5 = vector.shape_cast %4 : vector<1x16x3xbf16> to vector<16x3xbf16>
    %c0_6 = arith.constant 0 : index
    %c1_7 = arith.constant 1 : index
    %6 = vector.load %arg0[%c0_6, %c1_7] : memref<3x884xbf16, #tpu.memory_space<vmem>>, vector<3x800xbf16>
    %cst_8 = arith.constant dense<0.000000e+00> : vector<16x800xf32>
    %7 = tpu.matmul %5, %6, %cst_8 {dimension_numbers = #tpu.dot_dimension_numbers<[1], [0], [0], [1], [0, 0, 1, 1], [], []>} : vector<16x3xbf16>, vector<3x800xbf16>, vector<16x800xf32> -> vector<16x800xf32>
    %8 = arith.addf %3, %7 : vector<16x800xf32>
    %c2 = arith.constant 2 : index
    %c0_9 = arith.constant 0 : index
    %c0_10 = arith.constant 0 : index
    %9 = vector.load %arg1[%c2, %c0_9, %c0_10] : memref<25x16x3xbf16, #tpu.memory_space<vmem>>, vector<1x16x3xbf16>
    %10 = vector.shape_cast %9 : vector<1x16x3xbf16> to vector<16x3xbf16>
    %c0_11 = arith.constant 0 : index
    %c2_12 = arith.constant 2 : index
    %11 = vector.load %arg0[%c0_11, %c2_12] : memref<3x884xbf16, #tpu.memory_space<vmem>>, vector<3x800xbf16>
    %cst_13 = arith.constant dense<0.000000e+00> : vector<16x800xf32>
    %12 = tpu.matmul %10, %11, %cst_13 {dimension_numbers = #tpu.dot_dimension_numbers<[1], [0], [0], [1], [0, 0, 1, 1], [], []>} : vector<16x3xbf16>, vector<3x800xbf16>, vector<16x800xf32> -> vector<16x800xf32>
    %13 = arith.addf %8, %12 : vector<16x800xf32>
    %c3 = arith.constant 3 : index
    %c0_14 = arith.constant 0 : index
    %c0_15 = arith.constant 0 : index
    %14 = vector.load %arg1[%c3, %c0_14, %c0_15] : memref<25x16x3xbf16, #tpu.memory_space<vmem>>, vector<1x16x3xbf16>
    %15 = vector.shape_cast %14 : vector<1x16x3xbf16> to vector<16x3xbf16>
    %c0_16 = arith.constant 0 : index
    %c3_17 = arith.constant 3 : index
    %16 = vector.load %arg0[%c0_16, %c3_17] : memref<3x884xbf16, #tpu.memory_space<vmem>>, vector<3x800xbf16>
    %cst_18 = arith.constant dense<0.000000e+00> : vector<16x800xf32>
    %17 = tpu.matmul %15, %16, %cst_18 {dimension_numbers = #tpu.dot_dimension_numbers<[1], [0], [0], [1], [0, 0, 1, 1], [], []>} : vector<16x3xbf16>, vector<3x800xbf16>, vector<16x800xf32> -> vector<16x800xf32>
    %18 = arith.addf %13, %17 : vector<16x800xf32>
    %c4 = arith.constant 4 : index
    %c0_19 = arith.constant 0 : index
    %c0_20 = arith.constant 0 : index
    %19 = vector.load %arg1[%c4, %c0_19, %c0_20] : memref<25x16x3xbf16, #tpu.memory_space<vmem>>, vector<1x16x3xbf16>
    %20 = vector.shape_cast %19 : vector<1x16x3xbf16> to vector<16x3xbf16>
    %c0_21 = arith.constant 0 : index
    %c4_22 = arith.constant 4 : index
    %21 = vector.load %arg0[%c0_21, %c4_22] : memref<3x884xbf16, #tpu.memory_space<vmem>>, vector<3x800xbf16>
    %cst_23 = arith.constant dense<0.000000e+00> : vector<16x800xf32>
    %22 = tpu.matmul %20, %21, %cst_23 {dimension_numbers = #tpu.dot_dimension_numbers<[1], [0], [0], [1], [0, 0, 1, 1], [], []>} : vector<16x3xbf16>, vector<3x800xbf16>, vector<16x800xf32> -> vector<16x800xf32>
    %23 = arith.addf %18, %22 : vector<16x800xf32>
    %c5 = arith.constant 5 : index
    %c0_24 = arith.constant 0 : index
    %c0_25 = arith.constant 0 : index
    %24 = vector.load %arg1[%c5, %c0_24, %c0_25] : memref<25x16x3xbf16, #tpu.memory_space<vmem>>, vector<1x16x3xbf16>
    %25 = vector.shape_cast %24 : vector<1x16x3xbf16> to vector<16x3xbf16>
    %c0_26 = arith.constant 0 : index
    %c20 = arith.constant 20 : index
    %26 = vector.load %arg0[%c0_26, %c20] : memref<3x884xbf16, #tpu.memory_space<vmem>>, vector<3x800xbf16>
    %cst_27 = arith.constant dense<0.000000e+00> : vector<16x800xf32>
    %27 = tpu.matmul %25, %26, %cst_27 {dimension_numbers = #tpu.dot_dimension_numbers<[1], [0], [0], [1], [0, 0, 1, 1], [], []>} : vector<16x3xbf16>, vector<3x800xbf16>, vector<16x800xf32> -> vector<16x800xf32>
    %28 = arith.addf %23, %27 : vector<16x800xf32>
    %c6 = arith.constant 6 : index
    %c0_28 = arith.constant 0 : index
    %c0_29 = arith.constant 0 : index
    %29 = vector.load %arg1[%c6, %c0_28, %c0_29] : memref<25x16x3xbf16, #tpu.memory_space<vmem>>, vector<1x16x3xbf16>
    %30 = vector.shape_cast %29 : vector<1x16x3xbf16> to vector<16x3xbf16>
    %c0_30 = arith.constant 0 : index
    %c21 = arith.constant 21 : index
    %31 = vector.load %arg0[%c0_30, %c21] : memref<3x884xbf16, #tpu.memory_space<vmem>>, vector<3x800xbf16>
    %cst_31 = arith.constant dense<0.000000e+00> : vector<16x800xf32>
    %32 = tpu.matmul %30, %31, %cst_31 {dimension_numbers = #tpu.dot_dimension_numbers<[1], [0], [0], [1], [0, 0, 1, 1], [], []>} : vector<16x3xbf16>, vector<3x800xbf16>, vector<16x800xf32> -> vector<16x800xf32>
    %33 = arith.addf %28, %32 : vector<16x800xf32>
    %c7 = arith.constant 7 : index
    %c0_32 = arith.constant 0 : index
    %c0_33 = arith.constant 0 : index
    %34 = vector.load %arg1[%c7, %c0_32, %c0_33] : memref<25x16x3xbf16, #tpu.memory_space<vmem>>, vector<1x16x3xbf16>
    %35 = vector.shape_cast %34 : vector<1x16x3xbf16> to vector<16x3xbf16>
    %c0_34 = arith.constant 0 : index
    %c22 = arith.constant 22 : index
    %36 = vector.load %arg0[%c0_34, %c22] : memref<3x884xbf16, #tpu.memory_space<vmem>>, vector<3x800xbf16>
    %cst_35 = arith.constant dense<0.000000e+00> : vector<16x800xf32>
    %37 = tpu.matmul %35, %36, %cst_35 {dimension_numbers = #tpu.dot_dimension_numbers<[1], [0], [0], [1], [0, 0, 1, 1], [], []>} : vector<16x3xbf16>, vector<3x800xbf16>, vector<16x800xf32> -> vector<16x800xf32>
    %38 = arith.addf %33, %37 : vector<16x800xf32>
    %c8 = arith.constant 8 : index
    %c0_36 = arith.constant 0 : index
    %c0_37 = arith.constant 0 : index
    %39 = vector.load %arg1[%c8, %c0_36, %c0_37] : memref<25x16x3xbf16, #tpu.memory_space<vmem>>, vector<1x16x3xbf16>
    %40 = vector.shape_cast %39 : vector<1x16x3xbf16> to vector<16x3xbf16>
    %c0_38 = arith.constant 0 : index
    %c23 = arith.constant 23 : index
    %41 = vector.load %arg0[%c0_38, %c23] : memref<3x884xbf16, #tpu.memory_space<vmem>>, vector<3x800xbf16>
    %cst_39 = arith.constant dense<0.000000e+00> : vector<16x800xf32>
    %42 = tpu.matmul %40, %41, %cst_39 {dimension_numbers = #tpu.dot_dimension_numbers<[1], [0], [0], [1], [0, 0, 1, 1], [], []>} : vector<16x3xbf16>, vector<3x800xbf16>, vector<16x800xf32> -> vector<16x800xf32>
    %43 = arith.addf %38, %42 : vector<16x800xf32>
    %c9 = arith.constant 9 : index
    %c0_40 = arith.constant 0 : index
    %c0_41 = arith.constant 0 : index
    %44 = vector.load %arg1[%c9, %c0_40, %c0_41] : memref<25x16x3xbf16, #tpu.memory_space<vmem>>, vector<1x16x3xbf16>
    %45 = vector.shape_cast %44 : vector<1x16x3xbf16> to vector<16x3xbf16>
    %c0_42 = arith.constant 0 : index
    %c24 = arith.constant 24 : index
    %46 = vector.load %arg0[%c0_42, %c24] : memref<3x884xbf16, #tpu.memory_space<vmem>>, vector<3x800xbf16>
    %cst_43 = arith.constant dense<0.000000e+00> : vector<16x800xf32>
    %47 = tpu.matmul %45, %46, %cst_43 {dimension_numbers = #tpu.dot_dimension_numbers<[1], [0], [0], [1], [0, 0, 1, 1], [], []>} : vector<16x3xbf16>, vector<3x800xbf16>, vector<16x800xf32> -> vector<16x800xf32>
    %48 = arith.addf %43, %47 : vector<16x800xf32>
    %c10 = arith.constant 10 : index
    %c0_44 = arith.constant 0 : index
    %c0_45 = arith.constant 0 : index
    %49 = vector.load %arg1[%c10, %c0_44, %c0_45] : memref<25x16x3xbf16, #tpu.memory_space<vmem>>, vector<1x16x3xbf16>
    %50 = vector.shape_cast %49 : vector<1x16x3xbf16> to vector<16x3xbf16>
    %c0_46 = arith.constant 0 : index
    %c40 = arith.constant 40 : index
    %51 = vector.load %arg0[%c0_46, %c40] : memref<3x884xbf16, #tpu.memory_space<vmem>>, vector<3x800xbf16>
    %cst_47 = arith.constant dense<0.000000e+00> : vector<16x800xf32>
    %52 = tpu.matmul %50, %51, %cst_47 {dimension_numbers = #tpu.dot_dimension_numbers<[1], [0], [0], [1], [0, 0, 1, 1], [], []>} : vector<16x3xbf16>, vector<3x800xbf16>, vector<16x800xf32> -> vector<16x800xf32>
    %53 = arith.addf %48, %52 : vector<16x800xf32>
    %c11 = arith.constant 11 : index
    %c0_48 = arith.constant 0 : index
    %c0_49 = arith.constant 0 : index
    %54 = vector.load %arg1[%c11, %c0_48, %c0_49] : memref<25x16x3xbf16, #tpu.memory_space<vmem>>, vector<1x16x3xbf16>
    %55 = vector.shape_cast %54 : vector<1x16x3xbf16> to vector<16x3xbf16>
    %c0_50 = arith.constant 0 : index
    %c41 = arith.constant 41 : index
    %56 = vector.load %arg0[%c0_50, %c41] : memref<3x884xbf16, #tpu.memory_space<vmem>>, vector<3x800xbf16>
    %cst_51 = arith.constant dense<0.000000e+00> : vector<16x800xf32>
    %57 = tpu.matmul %55, %56, %cst_51 {dimension_numbers = #tpu.dot_dimension_numbers<[1], [0], [0], [1], [0, 0, 1, 1], [], []>} : vector<16x3xbf16>, vector<3x800xbf16>, vector<16x800xf32> -> vector<16x800xf32>
    %58 = arith.addf %53, %57 : vector<16x800xf32>
    %c12 = arith.constant 12 : index
    %c0_52 = arith.constant 0 : index
    %c0_53 = arith.constant 0 : index
    %59 = vector.load %arg1[%c12, %c0_52, %c0_53] : memref<25x16x3xbf16, #tpu.memory_space<vmem>>, vector<1x16x3xbf16>
    %60 = vector.shape_cast %59 : vector<1x16x3xbf16> to vector<16x3xbf16>
    %c0_54 = arith.constant 0 : index
    %c42 = arith.constant 42 : index
    %61 = vector.load %arg0[%c0_54, %c42] : memref<3x884xbf16, #tpu.memory_space<vmem>>, vector<3x800xbf16>
    %cst_55 = arith.constant dense<0.000000e+00> : vector<16x800xf32>
    %62 = tpu.matmul %60, %61, %cst_55 {dimension_numbers = #tpu.dot_dimension_numbers<[1], [0], [0], [1], [0, 0, 1, 1], [], []>} : vector<16x3xbf16>, vector<3x800xbf16>, vector<16x800xf32> -> vector<16x800xf32>
    %63 = arith.addf %58, %62 : vector<16x800xf32>
    %c13 = arith.constant 13 : index
    %c0_56 = arith.constant 0 : index
    %c0_57 = arith.constant 0 : index
    %64 = vector.load %arg1[%c13, %c0_56, %c0_57] : memref<25x16x3xbf16, #tpu.memory_space<vmem>>, vector<1x16x3xbf16>
    %65 = vector.shape_cast %64 : vector<1x16x3xbf16> to vector<16x3xbf16>
    %c0_58 = arith.constant 0 : index
    %c43 = arith.constant 43 : index
    %66 = vector.load %arg0[%c0_58, %c43] : memref<3x884xbf16, #tpu.memory_space<vmem>>, vector<3x800xbf16>
    %cst_59 = arith.constant dense<0.000000e+00> : vector<16x800xf32>
    %67 = tpu.matmul %65, %66, %cst_59 {dimension_numbers = #tpu.dot_dimension_numbers<[1], [0], [0], [1], [0, 0, 1, 1], [], []>} : vector<16x3xbf16>, vector<3x800xbf16>, vector<16x800xf32> -> vector<16x800xf32>
    %68 = arith.addf %63, %67 : vector<16x800xf32>
    %c14 = arith.constant 14 : index
    %c0_60 = arith.constant 0 : index
    %c0_61 = arith.constant 0 : index
    %69 = vector.load %arg1[%c14, %c0_60, %c0_61] : memref<25x16x3xbf16, #tpu.memory_space<vmem>>, vector<1x16x3xbf16>
    %70 = vector.shape_cast %69 : vector<1x16x3xbf16> to vector<16x3xbf16>
    %c0_62 = arith.constant 0 : index
    %c44 = arith.constant 44 : index
    %71 = vector.load %arg0[%c0_62, %c44] : memref<3x884xbf16, #tpu.memory_space<vmem>>, vector<3x800xbf16>
    %cst_63 = arith.constant dense<0.000000e+00> : vector<16x800xf32>
    %72 = tpu.matmul %70, %71, %cst_63 {dimension_numbers = #tpu.dot_dimension_numbers<[1], [0], [0], [1], [0, 0, 1, 1], [], []>} : vector<16x3xbf16>, vector<3x800xbf16>, vector<16x800xf32> -> vector<16x800xf32>
    %73 = arith.addf %68, %72 : vector<16x800xf32>
    %c15 = arith.constant 15 : index
    %c0_64 = arith.constant 0 : index
    %c0_65 = arith.constant 0 : index
    %74 = vector.load %arg1[%c15, %c0_64, %c0_65] : memref<25x16x3xbf16, #tpu.memory_space<vmem>>, vector<1x16x3xbf16>
    %75 = vector.shape_cast %74 : vector<1x16x3xbf16> to vector<16x3xbf16>
    %c0_66 = arith.constant 0 : index
    %c60 = arith.constant 60 : index
    %76 = vector.load %arg0[%c0_66, %c60] : memref<3x884xbf16, #tpu.memory_space<vmem>>, vector<3x800xbf16>
    %cst_67 = arith.constant dense<0.000000e+00> : vector<16x800xf32>
    %77 = tpu.matmul %75, %76, %cst_67 {dimension_numbers = #tpu.dot_dimension_numbers<[1], [0], [0], [1], [0, 0, 1, 1], [], []>} : vector<16x3xbf16>, vector<3x800xbf16>, vector<16x800xf32> -> vector<16x800xf32>
    %78 = arith.addf %73, %77 : vector<16x800xf32>
    %c16 = arith.constant 16 : index
    %c0_68 = arith.constant 0 : index
    %c0_69 = arith.constant 0 : index
    %79 = vector.load %arg1[%c16, %c0_68, %c0_69] : memref<25x16x3xbf16, #tpu.memory_space<vmem>>, vector<1x16x3xbf16>
    %80 = vector.shape_cast %79 : vector<1x16x3xbf16> to vector<16x3xbf16>
    %c0_70 = arith.constant 0 : index
    %c61 = arith.constant 61 : index
    %81 = vector.load %arg0[%c0_70, %c61] : memref<3x884xbf16, #tpu.memory_space<vmem>>, vector<3x800xbf16>
    %cst_71 = arith.constant dense<0.000000e+00> : vector<16x800xf32>
    %82 = tpu.matmul %80, %81, %cst_71 {dimension_numbers = #tpu.dot_dimension_numbers<[1], [0], [0], [1], [0, 0, 1, 1], [], []>} : vector<16x3xbf16>, vector<3x800xbf16>, vector<16x800xf32> -> vector<16x800xf32>
    %83 = arith.addf %78, %82 : vector<16x800xf32>
    %c17 = arith.constant 17 : index
    %c0_72 = arith.constant 0 : index
    %c0_73 = arith.constant 0 : index
    %84 = vector.load %arg1[%c17, %c0_72, %c0_73] : memref<25x16x3xbf16, #tpu.memory_space<vmem>>, vector<1x16x3xbf16>
    %85 = vector.shape_cast %84 : vector<1x16x3xbf16> to vector<16x3xbf16>
    %c0_74 = arith.constant 0 : index
    %c62 = arith.constant 62 : index
    %86 = vector.load %arg0[%c0_74, %c62] : memref<3x884xbf16, #tpu.memory_space<vmem>>, vector<3x800xbf16>
    %cst_75 = arith.constant dense<0.000000e+00> : vector<16x800xf32>
    %87 = tpu.matmul %85, %86, %cst_75 {dimension_numbers = #tpu.dot_dimension_numbers<[1], [0], [0], [1], [0, 0, 1, 1], [], []>} : vector<16x3xbf16>, vector<3x800xbf16>, vector<16x800xf32> -> vector<16x800xf32>
    %88 = arith.addf %83, %87 : vector<16x800xf32>
    %c18 = arith.constant 18 : index
    %c0_76 = arith.constant 0 : index
    %c0_77 = arith.constant 0 : index
    %89 = vector.load %arg1[%c18, %c0_76, %c0_77] : memref<25x16x3xbf16, #tpu.memory_space<vmem>>, vector<1x16x3xbf16>
    %90 = vector.shape_cast %89 : vector<1x16x3xbf16> to vector<16x3xbf16>
    %c0_78 = arith.constant 0 : index
    %c63 = arith.constant 63 : index
    %91 = vector.load %arg0[%c0_78, %c63] : memref<3x884xbf16, #tpu.memory_space<vmem>>, vector<3x800xbf16>
    %cst_79 = arith.constant dense<0.000000e+00> : vector<16x800xf32>
    %92 = tpu.matmul %90, %91, %cst_79 {dimension_numbers = #tpu.dot_dimension_numbers<[1], [0], [0], [1], [0, 0, 1, 1], [], []>} : vector<16x3xbf16>, vector<3x800xbf16>, vector<16x800xf32> -> vector<16x800xf32>
    %93 = arith.addf %88, %92 : vector<16x800xf32>
    %c19 = arith.constant 19 : index
    %c0_80 = arith.constant 0 : index
    %c0_81 = arith.constant 0 : index
    %94 = vector.load %arg1[%c19, %c0_80, %c0_81] : memref<25x16x3xbf16, #tpu.memory_space<vmem>>, vector<1x16x3xbf16>
    %95 = vector.shape_cast %94 : vector<1x16x3xbf16> to vector<16x3xbf16>
    %c0_82 = arith.constant 0 : index
    %c64 = arith.constant 64 : index
    %96 = vector.load %arg0[%c0_82, %c64] : memref<3x884xbf16, #tpu.memory_space<vmem>>, vector<3x800xbf16>
    %cst_83 = arith.constant dense<0.000000e+00> : vector<16x800xf32>
    %97 = tpu.matmul %95, %96, %cst_83 {dimension_numbers = #tpu.dot_dimension_numbers<[1], [0], [0], [1], [0, 0, 1, 1], [], []>} : vector<16x3xbf16>, vector<3x800xbf16>, vector<16x800xf32> -> vector<16x800xf32>
    %98 = arith.addf %93, %97 : vector<16x800xf32>
    %c20_84 = arith.constant 20 : index
    %c0_85 = arith.constant 0 : index
    %c0_86 = arith.constant 0 : index
    %99 = vector.load %arg1[%c20_84, %c0_85, %c0_86] : memref<25x16x3xbf16, #tpu.memory_space<vmem>>, vector<1x16x3xbf16>
    %100 = vector.shape_cast %99 : vector<1x16x3xbf16> to vector<16x3xbf16>
    %c0_87 = arith.constant 0 : index
    %c80 = arith.constant 80 : index
    %101 = vector.load %arg0[%c0_87, %c80] : memref<3x884xbf16, #tpu.memory_space<vmem>>, vector<3x800xbf16>
    %cst_88 = arith.constant dense<0.000000e+00> : vector<16x800xf32>
    %102 = tpu.matmul %100, %101, %cst_88 {dimension_numbers = #tpu.dot_dimension_numbers<[1], [0], [0], [1], [0, 0, 1, 1], [], []>} : vector<16x3xbf16>, vector<3x800xbf16>, vector<16x800xf32> -> vector<16x800xf32>
    %103 = arith.addf %98, %102 : vector<16x800xf32>
    %c21_89 = arith.constant 21 : index
    %c0_90 = arith.constant 0 : index
    %c0_91 = arith.constant 0 : index
    %104 = vector.load %arg1[%c21_89, %c0_90, %c0_91] : memref<25x16x3xbf16, #tpu.memory_space<vmem>>, vector<1x16x3xbf16>
    %105 = vector.shape_cast %104 : vector<1x16x3xbf16> to vector<16x3xbf16>
    %c0_92 = arith.constant 0 : index
    %c81 = arith.constant 81 : index
    %106 = vector.load %arg0[%c0_92, %c81] : memref<3x884xbf16, #tpu.memory_space<vmem>>, vector<3x800xbf16>
    %cst_93 = arith.constant dense<0.000000e+00> : vector<16x800xf32>
    %107 = tpu.matmul %105, %106, %cst_93 {dimension_numbers = #tpu.dot_dimension_numbers<[1], [0], [0], [1], [0, 0, 1, 1], [], []>} : vector<16x3xbf16>, vector<3x800xbf16>, vector<16x800xf32> -> vector<16x800xf32>
    %108 = arith.addf %103, %107 : vector<16x800xf32>
    %c22_94 = arith.constant 22 : index
    %c0_95 = arith.constant 0 : index
    %c0_96 = arith.constant 0 : index
    %109 = vector.load %arg1[%c22_94, %c0_95, %c0_96] : memref<25x16x3xbf16, #tpu.memory_space<vmem>>, vector<1x16x3xbf16>
    %110 = vector.shape_cast %109 : vector<1x16x3xbf16> to vector<16x3xbf16>
    %c0_97 = arith.constant 0 : index
    %c82 = arith.constant 82 : index
    %111 = vector.load %arg0[%c0_97, %c82] : memref<3x884xbf16, #tpu.memory_space<vmem>>, vector<3x800xbf16>
    %cst_98 = arith.constant dense<0.000000e+00> : vector<16x800xf32>
    %112 = tpu.matmul %110, %111, %cst_98 {dimension_numbers = #tpu.dot_dimension_numbers<[1], [0], [0], [1], [0, 0, 1, 1], [], []>} : vector<16x3xbf16>, vector<3x800xbf16>, vector<16x800xf32> -> vector<16x800xf32>
    %113 = arith.addf %108, %112 : vector<16x800xf32>
    %c23_99 = arith.constant 23 : index
    %c0_100 = arith.constant 0 : index
    %c0_101 = arith.constant 0 : index
    %114 = vector.load %arg1[%c23_99, %c0_100, %c0_101] : memref<25x16x3xbf16, #tpu.memory_space<vmem>>, vector<1x16x3xbf16>
    %115 = vector.shape_cast %114 : vector<1x16x3xbf16> to vector<16x3xbf16>
    %c0_102 = arith.constant 0 : index
    %c83 = arith.constant 83 : index
    %116 = vector.load %arg0[%c0_102, %c83] : memref<3x884xbf16, #tpu.memory_space<vmem>>, vector<3x800xbf16>
    %cst_103 = arith.constant dense<0.000000e+00> : vector<16x800xf32>
    %117 = tpu.matmul %115, %116, %cst_103 {dimension_numbers = #tpu.dot_dimension_numbers<[1], [0], [0], [1], [0, 0, 1, 1], [], []>} : vector<16x3xbf16>, vector<3x800xbf16>, vector<16x800xf32> -> vector<16x800xf32>
    %118 = arith.addf %113, %117 : vector<16x800xf32>
    %c24_104 = arith.constant 24 : index
    %c0_105 = arith.constant 0 : index
    %c0_106 = arith.constant 0 : index
    %119 = vector.load %arg1[%c24_104, %c0_105, %c0_106] : memref<25x16x3xbf16, #tpu.memory_space<vmem>>, vector<1x16x3xbf16>
    %120 = vector.shape_cast %119 : vector<1x16x3xbf16> to vector<16x3xbf16>
    %c0_107 = arith.constant 0 : index
    %c84 = arith.constant 84 : index
    %121 = vector.load %arg0[%c0_107, %c84] : memref<3x884xbf16, #tpu.memory_space<vmem>>, vector<3x800xbf16>
    %cst_108 = arith.constant dense<0.000000e+00> : vector<16x800xf32>
    %122 = tpu.matmul %120, %121, %cst_108 {dimension_numbers = #tpu.dot_dimension_numbers<[1], [0], [0], [1], [0, 0, 1, 1], [], []>} : vector<16x3xbf16>, vector<3x800xbf16>, vector<16x800xf32> -> vector<16x800xf32>
    %123 = arith.addf %118, %122 : vector<16x800xf32>
    %c0_109 = arith.constant 0 : index
    %c0_110 = arith.constant 0 : index
    %124 = vector.load %arg2[%c0_109, %c0_110] : memref<16x1xf32, #tpu.memory_space<vmem>>, vector<16x1xf32>
    %125 = vector.broadcast %124 : vector<16x1xf32> to vector<16x800xf32>
    %126 = arith.addf %123, %125 : vector<16x800xf32>
    %cst_111 = arith.constant 0.000000e+00 : f32
    %127 = vector.broadcast %cst_111 : f32 to vector<16x800xf32>
    %128 = arith.maximumf %126, %127 : vector<16x800xf32>
    %129 = arith.truncf %128 : vector<16x800xf32> to vector<16x800xbf16>
    %c0_112 = arith.constant 0 : index
    %c0_113 = arith.constant 0 : index
    %130 = vector.load %arg3[%c0_112, %c0_113] : memref<16x800xbf16, #tpu.memory_space<vmem>>, vector<16x800xbf16>
    tpu.vector_store %arg3[%c0_112, %c0_113], %129 {strides = array<i32>} : memref<16x800xbf16, #tpu.memory_space<vmem>>, vector<16x800xbf16>,
    return
  }
}

module attributes {stable_mosaic.version = 11 : i64} {
  func.func @_fused_block_kernel(%arg0: memref<16x222xbf16, #tpu.memory_space<vmem>>, %arg1: memref<9x16x16xbf16, #tpu.memory_space<vmem>>, %arg2: memref<16x1xf32, #tpu.memory_space<vmem>>, %arg3: memref<9x16x16xbf16, #tpu.memory_space<vmem>>, %arg4: memref<16x1xf32, #tpu.memory_space<vmem>>, %arg5: memref<1x200xf32, #tpu.memory_space<vmem>>, %arg6: memref<16x222xbf16, #tpu.memory_space<vmem>>, %arg7: memref<16x222xbf16, #tpu.memory_space<vmem>>) attributes {dimension_semantics = [], scalar_prefetch = 0 : i64, scratch_operands = 1 : i64, tpu.core_type = #tpu.core_type<tc>} {
    %c0 = arith.constant 0 : index
    %c0_0 = arith.constant 0 : index
    %0 = vector.load %arg5[%c0, %c0_0] : memref<1x200xf32, #tpu.memory_space<vmem>>, vector<1x200xf32>
    %c0_1 = arith.constant 0 : index
    %c0_2 = arith.constant 0 : index
    %c0_3 = arith.constant 0 : index
    %1 = vector.load %arg1[%c0_1, %c0_2, %c0_3] : memref<9x16x16xbf16, #tpu.memory_space<vmem>>, vector<1x16x16xbf16>
    %2 = vector.shape_cast %1 : vector<1x16x16xbf16> to vector<16x16xbf16>
    %c0_4 = arith.constant 0 : index
    %c0_5 = arith.constant 0 : index
    %3 = vector.load %arg0[%c0_4, %c0_5] : memref<16x222xbf16, #tpu.memory_space<vmem>>, vector<16x200xbf16>
    %cst = arith.constant dense<0.000000e+00> : vector<16x200xf32>
    %4 = tpu.matmul %2, %3, %cst {dimension_numbers = #tpu.dot_dimension_numbers<[1], [0], [0], [1], [0, 0, 1, 1], [], []>} : vector<16x16xbf16>, vector<16x200xbf16>, vector<16x200xf32> -> vector<16x200xf32>
    %c1 = arith.constant 1 : index
    %c0_6 = arith.constant 0 : index
    %c0_7 = arith.constant 0 : index
    %5 = vector.load %arg1[%c1, %c0_6, %c0_7] : memref<9x16x16xbf16, #tpu.memory_space<vmem>>, vector<1x16x16xbf16>
    %6 = vector.shape_cast %5 : vector<1x16x16xbf16> to vector<16x16xbf16>
    %c0_8 = arith.constant 0 : index
    %c1_9 = arith.constant 1 : index
    %7 = vector.load %arg0[%c0_8, %c1_9] : memref<16x222xbf16, #tpu.memory_space<vmem>>, vector<16x200xbf16>
    %cst_10 = arith.constant dense<0.000000e+00> : vector<16x200xf32>
    %8 = tpu.matmul %6, %7, %cst_10 {dimension_numbers = #tpu.dot_dimension_numbers<[1], [0], [0], [1], [0, 0, 1, 1], [], []>} : vector<16x16xbf16>, vector<16x200xbf16>, vector<16x200xf32> -> vector<16x200xf32>
    %9 = arith.addf %4, %8 : vector<16x200xf32>
    %c2 = arith.constant 2 : index
    %c0_11 = arith.constant 0 : index
    %c0_12 = arith.constant 0 : index
    %10 = vector.load %arg1[%c2, %c0_11, %c0_12] : memref<9x16x16xbf16, #tpu.memory_space<vmem>>, vector<1x16x16xbf16>
    %11 = vector.shape_cast %10 : vector<1x16x16xbf16> to vector<16x16xbf16>
    %c0_13 = arith.constant 0 : index
    %c2_14 = arith.constant 2 : index
    %12 = vector.load %arg0[%c0_13, %c2_14] : memref<16x222xbf16, #tpu.memory_space<vmem>>, vector<16x200xbf16>
    %cst_15 = arith.constant dense<0.000000e+00> : vector<16x200xf32>
    %13 = tpu.matmul %11, %12, %cst_15 {dimension_numbers = #tpu.dot_dimension_numbers<[1], [0], [0], [1], [0, 0, 1, 1], [], []>} : vector<16x16xbf16>, vector<16x200xbf16>, vector<16x200xf32> -> vector<16x200xf32>
    %14 = arith.addf %9, %13 : vector<16x200xf32>
    %c3 = arith.constant 3 : index
    %c0_16 = arith.constant 0 : index
    %c0_17 = arith.constant 0 : index
    %15 = vector.load %arg1[%c3, %c0_16, %c0_17] : memref<9x16x16xbf16, #tpu.memory_space<vmem>>, vector<1x16x16xbf16>
    %16 = vector.shape_cast %15 : vector<1x16x16xbf16> to vector<16x16xbf16>
    %c0_18 = arith.constant 0 : index
    %c10 = arith.constant 10 : index
    %17 = vector.load %arg0[%c0_18, %c10] : memref<16x222xbf16, #tpu.memory_space<vmem>>, vector<16x200xbf16>
    %cst_19 = arith.constant dense<0.000000e+00> : vector<16x200xf32>
    %18 = tpu.matmul %16, %17, %cst_19 {dimension_numbers = #tpu.dot_dimension_numbers<[1], [0], [0], [1], [0, 0, 1, 1], [], []>} : vector<16x16xbf16>, vector<16x200xbf16>, vector<16x200xf32> -> vector<16x200xf32>
    %19 = arith.addf %14, %18 : vector<16x200xf32>
    %c4 = arith.constant 4 : index
    %c0_20 = arith.constant 0 : index
    %c0_21 = arith.constant 0 : index
    %20 = vector.load %arg1[%c4, %c0_20, %c0_21] : memref<9x16x16xbf16, #tpu.memory_space<vmem>>, vector<1x16x16xbf16>
    %21 = vector.shape_cast %20 : vector<1x16x16xbf16> to vector<16x16xbf16>
    %c0_22 = arith.constant 0 : index
    %c11 = arith.constant 11 : index
    %22 = vector.load %arg0[%c0_22, %c11] : memref<16x222xbf16, #tpu.memory_space<vmem>>, vector<16x200xbf16>
    %cst_23 = arith.constant dense<0.000000e+00> : vector<16x200xf32>
    %23 = tpu.matmul %21, %22, %cst_23 {dimension_numbers = #tpu.dot_dimension_numbers<[1], [0], [0], [1], [0, 0, 1, 1], [], []>} : vector<16x16xbf16>, vector<16x200xbf16>, vector<16x200xf32> -> vector<16x200xf32>
    %24 = arith.addf %19, %23 : vector<16x200xf32>
    %c5 = arith.constant 5 : index
    %c0_24 = arith.constant 0 : index
    %c0_25 = arith.constant 0 : index
    %25 = vector.load %arg1[%c5, %c0_24, %c0_25] : memref<9x16x16xbf16, #tpu.memory_space<vmem>>, vector<1x16x16xbf16>
    %26 = vector.shape_cast %25 : vector<1x16x16xbf16> to vector<16x16xbf16>
    %c0_26 = arith.constant 0 : index
    %c12 = arith.constant 12 : index
    %27 = vector.load %arg0[%c0_26, %c12] : memref<16x222xbf16, #tpu.memory_space<vmem>>, vector<16x200xbf16>
    %cst_27 = arith.constant dense<0.000000e+00> : vector<16x200xf32>
    %28 = tpu.matmul %26, %27, %cst_27 {dimension_numbers = #tpu.dot_dimension_numbers<[1], [0], [0], [1], [0, 0, 1, 1], [], []>} : vector<16x16xbf16>, vector<16x200xbf16>, vector<16x200xf32> -> vector<16x200xf32>
    %29 = arith.addf %24, %28 : vector<16x200xf32>
    %c6 = arith.constant 6 : index
    %c0_28 = arith.constant 0 : index
    %c0_29 = arith.constant 0 : index
    %30 = vector.load %arg1[%c6, %c0_28, %c0_29] : memref<9x16x16xbf16, #tpu.memory_space<vmem>>, vector<1x16x16xbf16>
    %31 = vector.shape_cast %30 : vector<1x16x16xbf16> to vector<16x16xbf16>
    %c0_30 = arith.constant 0 : index
    %c20 = arith.constant 20 : index
    %32 = vector.load %arg0[%c0_30, %c20] : memref<16x222xbf16, #tpu.memory_space<vmem>>, vector<16x200xbf16>
    %cst_31 = arith.constant dense<0.000000e+00> : vector<16x200xf32>
    %33 = tpu.matmul %31, %32, %cst_31 {dimension_numbers = #tpu.dot_dimension_numbers<[1], [0], [0], [1], [0, 0, 1, 1], [], []>} : vector<16x16xbf16>, vector<16x200xbf16>, vector<16x200xf32> -> vector<16x200xf32>
    %34 = arith.addf %29, %33 : vector<16x200xf32>
    %c7 = arith.constant 7 : index
    %c0_32 = arith.constant 0 : index
    %c0_33 = arith.constant 0 : index
    %35 = vector.load %arg1[%c7, %c0_32, %c0_33] : memref<9x16x16xbf16, #tpu.memory_space<vmem>>, vector<1x16x16xbf16>
    %36 = vector.shape_cast %35 : vector<1x16x16xbf16> to vector<16x16xbf16>
    %c0_34 = arith.constant 0 : index
    %c21 = arith.constant 21 : index
    %37 = vector.load %arg0[%c0_34, %c21] : memref<16x222xbf16, #tpu.memory_space<vmem>>, vector<16x200xbf16>
    %cst_35 = arith.constant dense<0.000000e+00> : vector<16x200xf32>
    %38 = tpu.matmul %36, %37, %cst_35 {dimension_numbers = #tpu.dot_dimension_numbers<[1], [0], [0], [1], [0, 0, 1, 1], [], []>} : vector<16x16xbf16>, vector<16x200xbf16>, vector<16x200xf32> -> vector<16x200xf32>
    %39 = arith.addf %34, %38 : vector<16x200xf32>
    %c8 = arith.constant 8 : index
    %c0_36 = arith.constant 0 : index
    %c0_37 = arith.constant 0 : index
    %40 = vector.load %arg1[%c8, %c0_36, %c0_37] : memref<9x16x16xbf16, #tpu.memory_space<vmem>>, vector<1x16x16xbf16>
    %41 = vector.shape_cast %40 : vector<1x16x16xbf16> to vector<16x16xbf16>
    %c0_38 = arith.constant 0 : index
    %c22 = arith.constant 22 : index
    %42 = vector.load %arg0[%c0_38, %c22] : memref<16x222xbf16, #tpu.memory_space<vmem>>, vector<16x200xbf16>
    %cst_39 = arith.constant dense<0.000000e+00> : vector<16x200xf32>
    %43 = tpu.matmul %41, %42, %cst_39 {dimension_numbers = #tpu.dot_dimension_numbers<[1], [0], [0], [1], [0, 0, 1, 1], [], []>} : vector<16x16xbf16>, vector<16x200xbf16>, vector<16x200xf32> -> vector<16x200xf32>
    %44 = arith.addf %39, %43 : vector<16x200xf32>
    %c0_40 = arith.constant 0 : index
    %c0_41 = arith.constant 0 : index
    %45 = vector.load %arg2[%c0_40, %c0_41] : memref<16x1xf32, #tpu.memory_space<vmem>>, vector<16x1xf32>
    %46 = vector.broadcast %45 : vector<16x1xf32> to vector<16x200xf32>
    %47 = arith.addf %44, %46 : vector<16x200xf32>
    %cst_42 = arith.constant 0.000000e+00 : f32
    %48 = vector.broadcast %cst_42 : f32 to vector<16x200xf32>
    %49 = arith.maximumf %47, %48 : vector<16x200xf32>
    %50 = vector.broadcast %0 : vector<1x200xf32> to vector<16x200xf32>
    %51 = arith.mulf %49, %50 : vector<16x200xf32>
    %cst_43 = arith.constant 0.000000e+00 : bf16
    %52 = vector.broadcast %cst_43 : bf16 to vector<16x222xbf16>
    %c0_44 = arith.constant 0 : index
    %c0_45 = arith.constant 0 : index
    %53 = vector.load %arg7[%c0_44, %c0_45] : memref<16x222xbf16, #tpu.memory_space<vmem>>, vector<16x222xbf16>
    tpu.vector_store %arg7[%c0_44, %c0_45], %52 {strides = array<i32>} : memref<16x222xbf16, #tpu.memory_space<vmem>>, vector<16x222xbf16>,
    %54 = arith.truncf %51 : vector<16x200xf32> to vector<16x200xbf16>
    %c0_46 = arith.constant 0 : index
    %c11_47 = arith.constant 11 : index
    %55 = vector.load %arg7[%c0_46, %c11_47] : memref<16x222xbf16, #tpu.memory_space<vmem>>, vector<16x200xbf16>
    tpu.vector_store %arg7[%c0_46, %c11_47], %54 {strides = array<i32>} : memref<16x222xbf16, #tpu.memory_space<vmem>>, vector<16x200xbf16>,
    %c0_48 = arith.constant 0 : index
    %c0_49 = arith.constant 0 : index
    %c0_50 = arith.constant 0 : index
    %56 = vector.load %arg3[%c0_48, %c0_49, %c0_50] : memref<9x16x16xbf16, #tpu.memory_space<vmem>>, vector<1x16x16xbf16>
    %57 = vector.shape_cast %56 : vector<1x16x16xbf16> to vector<16x16xbf16>
    %c0_51 = arith.constant 0 : index
    %c0_52 = arith.constant 0 : index
    %58 = vector.load %arg7[%c0_51, %c0_52] : memref<16x222xbf16, #tpu.memory_space<vmem>>, vector<16x200xbf16>
    %cst_53 = arith.constant dense<0.000000e+00> : vector<16x200xf32>
    %59 = tpu.matmul %57, %58, %cst_53 {dimension_numbers = #tpu.dot_dimension_numbers<[1], [0], [0], [1], [0, 0, 1, 1], [], []>} : vector<16x16xbf16>, vector<16x200xbf16>, vector<16x200xf32> -> vector<16x200xf32>
    %c1_54 = arith.constant 1 : index
    %c0_55 = arith.constant 0 : index
    %c0_56 = arith.constant 0 : index
    %60 = vector.load %arg3[%c1_54, %c0_55, %c0_56] : memref<9x16x16xbf16, #tpu.memory_space<vmem>>, vector<1x16x16xbf16>
    %61 = vector.shape_cast %60 : vector<1x16x16xbf16> to vector<16x16xbf16>
    %c0_57 = arith.constant 0 : index
    %c1_58 = arith.constant 1 : index
    %62 = vector.load %arg7[%c0_57, %c1_58] : memref<16x222xbf16, #tpu.memory_space<vmem>>, vector<16x200xbf16>
    %cst_59 = arith.constant dense<0.000000e+00> : vector<16x200xf32>
    %63 = tpu.matmul %61, %62, %cst_59 {dimension_numbers = #tpu.dot_dimension_numbers<[1], [0], [0], [1], [0, 0, 1, 1], [], []>} : vector<16x16xbf16>, vector<16x200xbf16>, vector<16x200xf32> -> vector<16x200xf32>
    %64 = arith.addf %59, %63 : vector<16x200xf32>
    %c2_60 = arith.constant 2 : index
    %c0_61 = arith.constant 0 : index
    %c0_62 = arith.constant 0 : index
    %65 = vector.load %arg3[%c2_60, %c0_61, %c0_62] : memref<9x16x16xbf16, #tpu.memory_space<vmem>>, vector<1x16x16xbf16>
    %66 = vector.shape_cast %65 : vector<1x16x16xbf16> to vector<16x16xbf16>
    %c0_63 = arith.constant 0 : index
    %c2_64 = arith.constant 2 : index
    %67 = vector.load %arg7[%c0_63, %c2_64] : memref<16x222xbf16, #tpu.memory_space<vmem>>, vector<16x200xbf16>
    %cst_65 = arith.constant dense<0.000000e+00> : vector<16x200xf32>
    %68 = tpu.matmul %66, %67, %cst_65 {dimension_numbers = #tpu.dot_dimension_numbers<[1], [0], [0], [1], [0, 0, 1, 1], [], []>} : vector<16x16xbf16>, vector<16x200xbf16>, vector<16x200xf32> -> vector<16x200xf32>
    %69 = arith.addf %64, %68 : vector<16x200xf32>
    %c3_66 = arith.constant 3 : index
    %c0_67 = arith.constant 0 : index
    %c0_68 = arith.constant 0 : index
    %70 = vector.load %arg3[%c3_66, %c0_67, %c0_68] : memref<9x16x16xbf16, #tpu.memory_space<vmem>>, vector<1x16x16xbf16>
    %71 = vector.shape_cast %70 : vector<1x16x16xbf16> to vector<16x16xbf16>
    %c0_69 = arith.constant 0 : index
    %c10_70 = arith.constant 10 : index
    %72 = vector.load %arg7[%c0_69, %c10_70] : memref<16x222xbf16, #tpu.memory_space<vmem>>, vector<16x200xbf16>
    %cst_71 = arith.constant dense<0.000000e+00> : vector<16x200xf32>
    %73 = tpu.matmul %71, %72, %cst_71 {dimension_numbers = #tpu.dot_dimension_numbers<[1], [0], [0], [1], [0, 0, 1, 1], [], []>} : vector<16x16xbf16>, vector<16x200xbf16>, vector<16x200xf32> -> vector<16x200xf32>
    %74 = arith.addf %69, %73 : vector<16x200xf32>
    %c4_72 = arith.constant 4 : index
    %c0_73 = arith.constant 0 : index
    %c0_74 = arith.constant 0 : index
    %75 = vector.load %arg3[%c4_72, %c0_73, %c0_74] : memref<9x16x16xbf16, #tpu.memory_space<vmem>>, vector<1x16x16xbf16>
    %76 = vector.shape_cast %75 : vector<1x16x16xbf16> to vector<16x16xbf16>
    %c0_75 = arith.constant 0 : index
    %c11_76 = arith.constant 11 : index
    %77 = vector.load %arg7[%c0_75, %c11_76] : memref<16x222xbf16, #tpu.memory_space<vmem>>, vector<16x200xbf16>
    %cst_77 = arith.constant dense<0.000000e+00> : vector<16x200xf32>
    %78 = tpu.matmul %76, %77, %cst_77 {dimension_numbers = #tpu.dot_dimension_numbers<[1], [0], [0], [1], [0, 0, 1, 1], [], []>} : vector<16x16xbf16>, vector<16x200xbf16>, vector<16x200xf32> -> vector<16x200xf32>
    %79 = arith.addf %74, %78 : vector<16x200xf32>
    %c5_78 = arith.constant 5 : index
    %c0_79 = arith.constant 0 : index
    %c0_80 = arith.constant 0 : index
    %80 = vector.load %arg3[%c5_78, %c0_79, %c0_80] : memref<9x16x16xbf16, #tpu.memory_space<vmem>>, vector<1x16x16xbf16>
    %81 = vector.shape_cast %80 : vector<1x16x16xbf16> to vector<16x16xbf16>
    %c0_81 = arith.constant 0 : index
    %c12_82 = arith.constant 12 : index
    %82 = vector.load %arg7[%c0_81, %c12_82] : memref<16x222xbf16, #tpu.memory_space<vmem>>, vector<16x200xbf16>
    %cst_83 = arith.constant dense<0.000000e+00> : vector<16x200xf32>
    %83 = tpu.matmul %81, %82, %cst_83 {dimension_numbers = #tpu.dot_dimension_numbers<[1], [0], [0], [1], [0, 0, 1, 1], [], []>} : vector<16x16xbf16>, vector<16x200xbf16>, vector<16x200xf32> -> vector<16x200xf32>
    %84 = arith.addf %79, %83 : vector<16x200xf32>
    %c6_84 = arith.constant 6 : index
    %c0_85 = arith.constant 0 : index
    %c0_86 = arith.constant 0 : index
    %85 = vector.load %arg3[%c6_84, %c0_85, %c0_86] : memref<9x16x16xbf16, #tpu.memory_space<vmem>>, vector<1x16x16xbf16>
    %86 = vector.shape_cast %85 : vector<1x16x16xbf16> to vector<16x16xbf16>
    %c0_87 = arith.constant 0 : index
    %c20_88 = arith.constant 20 : index
    %87 = vector.load %arg7[%c0_87, %c20_88] : memref<16x222xbf16, #tpu.memory_space<vmem>>, vector<16x200xbf16>
    %cst_89 = arith.constant dense<0.000000e+00> : vector<16x200xf32>
    %88 = tpu.matmul %86, %87, %cst_89 {dimension_numbers = #tpu.dot_dimension_numbers<[1], [0], [0], [1], [0, 0, 1, 1], [], []>} : vector<16x16xbf16>, vector<16x200xbf16>, vector<16x200xf32> -> vector<16x200xf32>
    %89 = arith.addf %84, %88 : vector<16x200xf32>
    %c7_90 = arith.constant 7 : index
    %c0_91 = arith.constant 0 : index
    %c0_92 = arith.constant 0 : index
    %90 = vector.load %arg3[%c7_90, %c0_91, %c0_92] : memref<9x16x16xbf16, #tpu.memory_space<vmem>>, vector<1x16x16xbf16>
    %91 = vector.shape_cast %90 : vector<1x16x16xbf16> to vector<16x16xbf16>
    %c0_93 = arith.constant 0 : index
    %c21_94 = arith.constant 21 : index
    %92 = vector.load %arg7[%c0_93, %c21_94] : memref<16x222xbf16, #tpu.memory_space<vmem>>, vector<16x200xbf16>
    %cst_95 = arith.constant dense<0.000000e+00> : vector<16x200xf32>
    %93 = tpu.matmul %91, %92, %cst_95 {dimension_numbers = #tpu.dot_dimension_numbers<[1], [0], [0], [1], [0, 0, 1, 1], [], []>} : vector<16x16xbf16>, vector<16x200xbf16>, vector<16x200xf32> -> vector<16x200xf32>
    %94 = arith.addf %89, %93 : vector<16x200xf32>
    %c8_96 = arith.constant 8 : index
    %c0_97 = arith.constant 0 : index
    %c0_98 = arith.constant 0 : index
    %95 = vector.load %arg3[%c8_96, %c0_97, %c0_98] : memref<9x16x16xbf16, #tpu.memory_space<vmem>>, vector<1x16x16xbf16>
    %96 = vector.shape_cast %95 : vector<1x16x16xbf16> to vector<16x16xbf16>
    %c0_99 = arith.constant 0 : index
    %c22_100 = arith.constant 22 : index
    %97 = vector.load %arg7[%c0_99, %c22_100] : memref<16x222xbf16, #tpu.memory_space<vmem>>, vector<16x200xbf16>
    %cst_101 = arith.constant dense<0.000000e+00> : vector<16x200xf32>
    %98 = tpu.matmul %96, %97, %cst_101 {dimension_numbers = #tpu.dot_dimension_numbers<[1], [0], [0], [1], [0, 0, 1, 1], [], []>} : vector<16x16xbf16>, vector<16x200xbf16>, vector<16x200xf32> -> vector<16x200xf32>
    %99 = arith.addf %94, %98 : vector<16x200xf32>
    %c0_102 = arith.constant 0 : index
    %c0_103 = arith.constant 0 : index
    %100 = vector.load %arg4[%c0_102, %c0_103] : memref<16x1xf32, #tpu.memory_space<vmem>>, vector<16x1xf32>
    %101 = vector.broadcast %100 : vector<16x1xf32> to vector<16x200xf32>
    %102 = arith.addf %99, %101 : vector<16x200xf32>
    %c0_104 = arith.constant 0 : index
    %c11_105 = arith.constant 11 : index
    %103 = vector.load %arg0[%c0_104, %c11_105] : memref<16x222xbf16, #tpu.memory_space<vmem>>, vector<16x200xbf16>
    %104 = arith.extf %103 : vector<16x200xbf16> to vector<16x200xf32>
    %105 = arith.addf %102, %104 : vector<16x200xf32>
    %cst_106 = arith.constant 0.000000e+00 : f32
    %106 = vector.broadcast %cst_106 : f32 to vector<16x200xf32>
    %107 = arith.maximumf %105, %106 : vector<16x200xf32>
    %108 = vector.broadcast %0 : vector<1x200xf32> to vector<16x200xf32>
    %109 = arith.mulf %107, %108 : vector<16x200xf32>
    %cst_107 = arith.constant 0.000000e+00 : bf16
    %110 = vector.broadcast %cst_107 : bf16 to vector<16x222xbf16>
    %c0_108 = arith.constant 0 : index
    %c0_109 = arith.constant 0 : index
    %111 = vector.load %arg6[%c0_108, %c0_109] : memref<16x222xbf16, #tpu.memory_space<vmem>>, vector<16x222xbf16>
    tpu.vector_store %arg6[%c0_108, %c0_109], %110 {strides = array<i32>} : memref<16x222xbf16, #tpu.memory_space<vmem>>, vector<16x222xbf16>,
    %112 = arith.truncf %109 : vector<16x200xf32> to vector<16x200xbf16>
    %c0_110 = arith.constant 0 : index
    %c11_111 = arith.constant 11 : index
    %113 = vector.load %arg6[%c0_110, %c11_111] : memref<16x222xbf16, #tpu.memory_space<vmem>>, vector<16x200xbf16>
    tpu.vector_store %arg6[%c0_110, %c11_111], %112 {strides = array<i32>} : memref<16x222xbf16, #tpu.memory_space<vmem>>, vector<16x200xbf16>,
    return
  }
}

module attributes {stable_mosaic.version = 11 : i64} {
  func.func @_conv_frame_kernel(%arg0: memref<16x222xbf16, #tpu.memory_space<vmem>>, %arg1: memref<9x32x16xbf16, #tpu.memory_space<vmem>>, %arg2: memref<32x1xf32, #tpu.memory_space<vmem>>, %arg3: memref<32x200xbf16, #tpu.memory_space<vmem>>) attributes {dimension_semantics = [], scalar_prefetch = 0 : i64, scratch_operands = 0 : i64, tpu.core_type = #tpu.core_type<tc>} {
    %c0 = arith.constant 0 : index
    %c0_0 = arith.constant 0 : index
    %c0_1 = arith.constant 0 : index
    %0 = vector.load %arg1[%c0, %c0_0, %c0_1] : memref<9x32x16xbf16, #tpu.memory_space<vmem>>, vector<1x32x16xbf16>
    %1 = vector.shape_cast %0 : vector<1x32x16xbf16> to vector<32x16xbf16>
    %c0_2 = arith.constant 0 : index
    %c0_3 = arith.constant 0 : index
    %2 = vector.load %arg0[%c0_2, %c0_3] : memref<16x222xbf16, #tpu.memory_space<vmem>>, vector<16x200xbf16>
    %cst = arith.constant dense<0.000000e+00> : vector<32x200xf32>
    %3 = tpu.matmul %1, %2, %cst {dimension_numbers = #tpu.dot_dimension_numbers<[1], [0], [0], [1], [0, 0, 1, 1], [], []>} : vector<32x16xbf16>, vector<16x200xbf16>, vector<32x200xf32> -> vector<32x200xf32>
    %c1 = arith.constant 1 : index
    %c0_4 = arith.constant 0 : index
    %c0_5 = arith.constant 0 : index
    %4 = vector.load %arg1[%c1, %c0_4, %c0_5] : memref<9x32x16xbf16, #tpu.memory_space<vmem>>, vector<1x32x16xbf16>
    %5 = vector.shape_cast %4 : vector<1x32x16xbf16> to vector<32x16xbf16>
    %c0_6 = arith.constant 0 : index
    %c1_7 = arith.constant 1 : index
    %6 = vector.load %arg0[%c0_6, %c1_7] : memref<16x222xbf16, #tpu.memory_space<vmem>>, vector<16x200xbf16>
    %cst_8 = arith.constant dense<0.000000e+00> : vector<32x200xf32>
    %7 = tpu.matmul %5, %6, %cst_8 {dimension_numbers = #tpu.dot_dimension_numbers<[1], [0], [0], [1], [0, 0, 1, 1], [], []>} : vector<32x16xbf16>, vector<16x200xbf16>, vector<32x200xf32> -> vector<32x200xf32>
    %8 = arith.addf %3, %7 : vector<32x200xf32>
    %c2 = arith.constant 2 : index
    %c0_9 = arith.constant 0 : index
    %c0_10 = arith.constant 0 : index
    %9 = vector.load %arg1[%c2, %c0_9, %c0_10] : memref<9x32x16xbf16, #tpu.memory_space<vmem>>, vector<1x32x16xbf16>
    %10 = vector.shape_cast %9 : vector<1x32x16xbf16> to vector<32x16xbf16>
    %c0_11 = arith.constant 0 : index
    %c2_12 = arith.constant 2 : index
    %11 = vector.load %arg0[%c0_11, %c2_12] : memref<16x222xbf16, #tpu.memory_space<vmem>>, vector<16x200xbf16>
    %cst_13 = arith.constant dense<0.000000e+00> : vector<32x200xf32>
    %12 = tpu.matmul %10, %11, %cst_13 {dimension_numbers = #tpu.dot_dimension_numbers<[1], [0], [0], [1], [0, 0, 1, 1], [], []>} : vector<32x16xbf16>, vector<16x200xbf16>, vector<32x200xf32> -> vector<32x200xf32>
    %13 = arith.addf %8, %12 : vector<32x200xf32>
    %c3 = arith.constant 3 : index
    %c0_14 = arith.constant 0 : index
    %c0_15 = arith.constant 0 : index
    %14 = vector.load %arg1[%c3, %c0_14, %c0_15] : memref<9x32x16xbf16, #tpu.memory_space<vmem>>, vector<1x32x16xbf16>
    %15 = vector.shape_cast %14 : vector<1x32x16xbf16> to vector<32x16xbf16>
    %c0_16 = arith.constant 0 : index
    %c10 = arith.constant 10 : index
    %16 = vector.load %arg0[%c0_16, %c10] : memref<16x222xbf16, #tpu.memory_space<vmem>>, vector<16x200xbf16>
    %cst_17 = arith.constant dense<0.000000e+00> : vector<32x200xf32>
    %17 = tpu.matmul %15, %16, %cst_17 {dimension_numbers = #tpu.dot_dimension_numbers<[1], [0], [0], [1], [0, 0, 1, 1], [], []>} : vector<32x16xbf16>, vector<16x200xbf16>, vector<32x200xf32> -> vector<32x200xf32>
    %18 = arith.addf %13, %17 : vector<32x200xf32>
    %c4 = arith.constant 4 : index
    %c0_18 = arith.constant 0 : index
    %c0_19 = arith.constant 0 : index
    %19 = vector.load %arg1[%c4, %c0_18, %c0_19] : memref<9x32x16xbf16, #tpu.memory_space<vmem>>, vector<1x32x16xbf16>
    %20 = vector.shape_cast %19 : vector<1x32x16xbf16> to vector<32x16xbf16>
    %c0_20 = arith.constant 0 : index
    %c11 = arith.constant 11 : index
    %21 = vector.load %arg0[%c0_20, %c11] : memref<16x222xbf16, #tpu.memory_space<vmem>>, vector<16x200xbf16>
    %cst_21 = arith.constant dense<0.000000e+00> : vector<32x200xf32>
    %22 = tpu.matmul %20, %21, %cst_21 {dimension_numbers = #tpu.dot_dimension_numbers<[1], [0], [0], [1], [0, 0, 1, 1], [], []>} : vector<32x16xbf16>, vector<16x200xbf16>, vector<32x200xf32> -> vector<32x200xf32>
    %23 = arith.addf %18, %22 : vector<32x200xf32>
    %c5 = arith.constant 5 : index
    %c0_22 = arith.constant 0 : index
    %c0_23 = arith.constant 0 : index
    %24 = vector.load %arg1[%c5, %c0_22, %c0_23] : memref<9x32x16xbf16, #tpu.memory_space<vmem>>, vector<1x32x16xbf16>
    %25 = vector.shape_cast %24 : vector<1x32x16xbf16> to vector<32x16xbf16>
    %c0_24 = arith.constant 0 : index
    %c12 = arith.constant 12 : index
    %26 = vector.load %arg0[%c0_24, %c12] : memref<16x222xbf16, #tpu.memory_space<vmem>>, vector<16x200xbf16>
    %cst_25 = arith.constant dense<0.000000e+00> : vector<32x200xf32>
    %27 = tpu.matmul %25, %26, %cst_25 {dimension_numbers = #tpu.dot_dimension_numbers<[1], [0], [0], [1], [0, 0, 1, 1], [], []>} : vector<32x16xbf16>, vector<16x200xbf16>, vector<32x200xf32> -> vector<32x200xf32>
    %28 = arith.addf %23, %27 : vector<32x200xf32>
    %c6 = arith.constant 6 : index
    %c0_26 = arith.constant 0 : index
    %c0_27 = arith.constant 0 : index
    %29 = vector.load %arg1[%c6, %c0_26, %c0_27] : memref<9x32x16xbf16, #tpu.memory_space<vmem>>, vector<1x32x16xbf16>
    %30 = vector.shape_cast %29 : vector<1x32x16xbf16> to vector<32x16xbf16>
    %c0_28 = arith.constant 0 : index
    %c20 = arith.constant 20 : index
    %31 = vector.load %arg0[%c0_28, %c20] : memref<16x222xbf16, #tpu.memory_space<vmem>>, vector<16x200xbf16>
    %cst_29 = arith.constant dense<0.000000e+00> : vector<32x200xf32>
    %32 = tpu.matmul %30, %31, %cst_29 {dimension_numbers = #tpu.dot_dimension_numbers<[1], [0], [0], [1], [0, 0, 1, 1], [], []>} : vector<32x16xbf16>, vector<16x200xbf16>, vector<32x200xf32> -> vector<32x200xf32>
    %33 = arith.addf %28, %32 : vector<32x200xf32>
    %c7 = arith.constant 7 : index
    %c0_30 = arith.constant 0 : index
    %c0_31 = arith.constant 0 : index
    %34 = vector.load %arg1[%c7, %c0_30, %c0_31] : memref<9x32x16xbf16, #tpu.memory_space<vmem>>, vector<1x32x16xbf16>
    %35 = vector.shape_cast %34 : vector<1x32x16xbf16> to vector<32x16xbf16>
    %c0_32 = arith.constant 0 : index
    %c21 = arith.constant 21 : index
    %36 = vector.load %arg0[%c0_32, %c21] : memref<16x222xbf16, #tpu.memory_space<vmem>>, vector<16x200xbf16>
    %cst_33 = arith.constant dense<0.000000e+00> : vector<32x200xf32>
    %37 = tpu.matmul %35, %36, %cst_33 {dimension_numbers = #tpu.dot_dimension_numbers<[1], [0], [0], [1], [0, 0, 1, 1], [], []>} : vector<32x16xbf16>, vector<16x200xbf16>, vector<32x200xf32> -> vector<32x200xf32>
    %38 = arith.addf %33, %37 : vector<32x200xf32>
    %c8 = arith.constant 8 : index
    %c0_34 = arith.constant 0 : index
    %c0_35 = arith.constant 0 : index
    %39 = vector.load %arg1[%c8, %c0_34, %c0_35] : memref<9x32x16xbf16, #tpu.memory_space<vmem>>, vector<1x32x16xbf16>
    %40 = vector.shape_cast %39 : vector<1x32x16xbf16> to vector<32x16xbf16>
    %c0_36 = arith.constant 0 : index
    %c22 = arith.constant 22 : index
    %41 = vector.load %arg0[%c0_36, %c22] : memref<16x222xbf16, #tpu.memory_space<vmem>>, vector<16x200xbf16>
    %cst_37 = arith.constant dense<0.000000e+00> : vector<32x200xf32>
    %42 = tpu.matmul %40, %41, %cst_37 {dimension_numbers = #tpu.dot_dimension_numbers<[1], [0], [0], [1], [0, 0, 1, 1], [], []>} : vector<32x16xbf16>, vector<16x200xbf16>, vector<32x200xf32> -> vector<32x200xf32>
    %43 = arith.addf %38, %42 : vector<32x200xf32>
    %c0_38 = arith.constant 0 : index
    %c0_39 = arith.constant 0 : index
    %44 = vector.load %arg2[%c0_38, %c0_39] : memref<32x1xf32, #tpu.memory_space<vmem>>, vector<32x1xf32>
    %45 = vector.broadcast %44 : vector<32x1xf32> to vector<32x200xf32>
    %46 = arith.addf %43, %45 : vector<32x200xf32>
    %cst_40 = arith.constant 0.000000e+00 : f32
    %47 = vector.broadcast %cst_40 : f32 to vector<32x200xf32>
    %48 = arith.maximumf %46, %47 : vector<32x200xf32>
    %49 = arith.truncf %48 : vector<32x200xf32> to vector<32x200xbf16>
    %c0_41 = arith.constant 0 : index
    %c0_42 = arith.constant 0 : index
    %50 = vector.load %arg3[%c0_41, %c0_42] : memref<32x200xbf16, #tpu.memory_space<vmem>>, vector<32x200xbf16>
    tpu.vector_store %arg3[%c0_41, %c0_42], %49 {strides = array<i32>} : memref<32x200xbf16, #tpu.memory_space<vmem>>, vector<32x200xbf16>,
    return
  }
}

module attributes {stable_mosaic.version = 11 : i64} {
  func.func @_conv_frame_kernel(%arg0: memref<32x86xbf16, #tpu.memory_space<vmem>>, %arg1: memref<9x32x32xbf16, #tpu.memory_space<vmem>>, %arg2: memref<32x1xf32, #tpu.memory_space<vmem>>, %arg3: memref<32x72xbf16, #tpu.memory_space<vmem>>, %arg4: memref<32x72xbf16, #tpu.memory_space<vmem>>) attributes {dimension_semantics = [], scalar_prefetch = 0 : i64, scratch_operands = 0 : i64, tpu.core_type = #tpu.core_type<tc>} {
    %c0 = arith.constant 0 : index
    %c0_0 = arith.constant 0 : index
    %c0_1 = arith.constant 0 : index
    %0 = vector.load %arg1[%c0, %c0_0, %c0_1] : memref<9x32x32xbf16, #tpu.memory_space<vmem>>, vector<1x32x32xbf16>
    %1 = vector.shape_cast %0 : vector<1x32x32xbf16> to vector<32x32xbf16>
    %c0_2 = arith.constant 0 : index
    %c0_3 = arith.constant 0 : index
    %2 = vector.load %arg0[%c0_2, %c0_3] : memref<32x86xbf16, #tpu.memory_space<vmem>>, vector<32x72xbf16>
    %cst = arith.constant dense<0.000000e+00> : vector<32x72xf32>
    %3 = tpu.matmul %1, %2, %cst {dimension_numbers = #tpu.dot_dimension_numbers<[1], [0], [0], [1], [0, 0, 1, 1], [], []>} : vector<32x32xbf16>, vector<32x72xbf16>, vector<32x72xf32> -> vector<32x72xf32>
    %c1 = arith.constant 1 : index
    %c0_4 = arith.constant 0 : index
    %c0_5 = arith.constant 0 : index
    %4 = vector.load %arg1[%c1, %c0_4, %c0_5] : memref<9x32x32xbf16, #tpu.memory_space<vmem>>, vector<1x32x32xbf16>
    %5 = vector.shape_cast %4 : vector<1x32x32xbf16> to vector<32x32xbf16>
    %c0_6 = arith.constant 0 : index
    %c1_7 = arith.constant 1 : index
    %6 = vector.load %arg0[%c0_6, %c1_7] : memref<32x86xbf16, #tpu.memory_space<vmem>>, vector<32x72xbf16>
    %cst_8 = arith.constant dense<0.000000e+00> : vector<32x72xf32>
    %7 = tpu.matmul %5, %6, %cst_8 {dimension_numbers = #tpu.dot_dimension_numbers<[1], [0], [0], [1], [0, 0, 1, 1], [], []>} : vector<32x32xbf16>, vector<32x72xbf16>, vector<32x72xf32> -> vector<32x72xf32>
    %8 = arith.addf %3, %7 : vector<32x72xf32>
    %c2 = arith.constant 2 : index
    %c0_9 = arith.constant 0 : index
    %c0_10 = arith.constant 0 : index
    %9 = vector.load %arg1[%c2, %c0_9, %c0_10] : memref<9x32x32xbf16, #tpu.memory_space<vmem>>, vector<1x32x32xbf16>
    %10 = vector.shape_cast %9 : vector<1x32x32xbf16> to vector<32x32xbf16>
    %c0_11 = arith.constant 0 : index
    %c2_12 = arith.constant 2 : index
    %11 = vector.load %arg0[%c0_11, %c2_12] : memref<32x86xbf16, #tpu.memory_space<vmem>>, vector<32x72xbf16>
    %cst_13 = arith.constant dense<0.000000e+00> : vector<32x72xf32>
    %12 = tpu.matmul %10, %11, %cst_13 {dimension_numbers = #tpu.dot_dimension_numbers<[1], [0], [0], [1], [0, 0, 1, 1], [], []>} : vector<32x32xbf16>, vector<32x72xbf16>, vector<32x72xf32> -> vector<32x72xf32>
    %13 = arith.addf %8, %12 : vector<32x72xf32>
    %c3 = arith.constant 3 : index
    %c0_14 = arith.constant 0 : index
    %c0_15 = arith.constant 0 : index
    %14 = vector.load %arg1[%c3, %c0_14, %c0_15] : memref<9x32x32xbf16, #tpu.memory_space<vmem>>, vector<1x32x32xbf16>
    %15 = vector.shape_cast %14 : vector<1x32x32xbf16> to vector<32x32xbf16>
    %c0_16 = arith.constant 0 : index
    %c6 = arith.constant 6 : index
    %16 = vector.load %arg0[%c0_16, %c6] : memref<32x86xbf16, #tpu.memory_space<vmem>>, vector<32x72xbf16>
    %cst_17 = arith.constant dense<0.000000e+00> : vector<32x72xf32>
    %17 = tpu.matmul %15, %16, %cst_17 {dimension_numbers = #tpu.dot_dimension_numbers<[1], [0], [0], [1], [0, 0, 1, 1], [], []>} : vector<32x32xbf16>, vector<32x72xbf16>, vector<32x72xf32> -> vector<32x72xf32>
    %18 = arith.addf %13, %17 : vector<32x72xf32>
    %c4 = arith.constant 4 : index
    %c0_18 = arith.constant 0 : index
    %c0_19 = arith.constant 0 : index
    %19 = vector.load %arg1[%c4, %c0_18, %c0_19] : memref<9x32x32xbf16, #tpu.memory_space<vmem>>, vector<1x32x32xbf16>
    %20 = vector.shape_cast %19 : vector<1x32x32xbf16> to vector<32x32xbf16>
    %c0_20 = arith.constant 0 : index
    %c7 = arith.constant 7 : index
    %21 = vector.load %arg0[%c0_20, %c7] : memref<32x86xbf16, #tpu.memory_space<vmem>>, vector<32x72xbf16>
    %cst_21 = arith.constant dense<0.000000e+00> : vector<32x72xf32>
    %22 = tpu.matmul %20, %21, %cst_21 {dimension_numbers = #tpu.dot_dimension_numbers<[1], [0], [0], [1], [0, 0, 1, 1], [], []>} : vector<32x32xbf16>, vector<32x72xbf16>, vector<32x72xf32> -> vector<32x72xf32>
    %23 = arith.addf %18, %22 : vector<32x72xf32>
    %c5 = arith.constant 5 : index
    %c0_22 = arith.constant 0 : index
    %c0_23 = arith.constant 0 : index
    %24 = vector.load %arg1[%c5, %c0_22, %c0_23] : memref<9x32x32xbf16, #tpu.memory_space<vmem>>, vector<1x32x32xbf16>
    %25 = vector.shape_cast %24 : vector<1x32x32xbf16> to vector<32x32xbf16>
    %c0_24 = arith.constant 0 : index
    %c8 = arith.constant 8 : index
    %26 = vector.load %arg0[%c0_24, %c8] : memref<32x86xbf16, #tpu.memory_space<vmem>>, vector<32x72xbf16>
    %cst_25 = arith.constant dense<0.000000e+00> : vector<32x72xf32>
    %27 = tpu.matmul %25, %26, %cst_25 {dimension_numbers = #tpu.dot_dimension_numbers<[1], [0], [0], [1], [0, 0, 1, 1], [], []>} : vector<32x32xbf16>, vector<32x72xbf16>, vector<32x72xf32> -> vector<32x72xf32>
    %28 = arith.addf %23, %27 : vector<32x72xf32>
    %c6_26 = arith.constant 6 : index
    %c0_27 = arith.constant 0 : index
    %c0_28 = arith.constant 0 : index
    %29 = vector.load %arg1[%c6_26, %c0_27, %c0_28] : memref<9x32x32xbf16, #tpu.memory_space<vmem>>, vector<1x32x32xbf16>
    %30 = vector.shape_cast %29 : vector<1x32x32xbf16> to vector<32x32xbf16>
    %c0_29 = arith.constant 0 : index
    %c12 = arith.constant 12 : index
    %31 = vector.load %arg0[%c0_29, %c12] : memref<32x86xbf16, #tpu.memory_space<vmem>>, vector<32x72xbf16>
    %cst_30 = arith.constant dense<0.000000e+00> : vector<32x72xf32>
    %32 = tpu.matmul %30, %31, %cst_30 {dimension_numbers = #tpu.dot_dimension_numbers<[1], [0], [0], [1], [0, 0, 1, 1], [], []>} : vector<32x32xbf16>, vector<32x72xbf16>, vector<32x72xf32> -> vector<32x72xf32>
    %33 = arith.addf %28, %32 : vector<32x72xf32>
    %c7_31 = arith.constant 7 : index
    %c0_32 = arith.constant 0 : index
    %c0_33 = arith.constant 0 : index
    %34 = vector.load %arg1[%c7_31, %c0_32, %c0_33] : memref<9x32x32xbf16, #tpu.memory_space<vmem>>, vector<1x32x32xbf16>
    %35 = vector.shape_cast %34 : vector<1x32x32xbf16> to vector<32x32xbf16>
    %c0_34 = arith.constant 0 : index
    %c13 = arith.constant 13 : index
    %36 = vector.load %arg0[%c0_34, %c13] : memref<32x86xbf16, #tpu.memory_space<vmem>>, vector<32x72xbf16>
    %cst_35 = arith.constant dense<0.000000e+00> : vector<32x72xf32>
    %37 = tpu.matmul %35, %36, %cst_35 {dimension_numbers = #tpu.dot_dimension_numbers<[1], [0], [0], [1], [0, 0, 1, 1], [], []>} : vector<32x32xbf16>, vector<32x72xbf16>, vector<32x72xf32> -> vector<32x72xf32>
    %38 = arith.addf %33, %37 : vector<32x72xf32>
    %c8_36 = arith.constant 8 : index
    %c0_37 = arith.constant 0 : index
    %c0_38 = arith.constant 0 : index
    %39 = vector.load %arg1[%c8_36, %c0_37, %c0_38] : memref<9x32x32xbf16, #tpu.memory_space<vmem>>, vector<1x32x32xbf16>
    %40 = vector.shape_cast %39 : vector<1x32x32xbf16> to vector<32x32xbf16>
    %c0_39 = arith.constant 0 : index
    %c14 = arith.constant 14 : index
    %41 = vector.load %arg0[%c0_39, %c14] : memref<32x86xbf16, #tpu.memory_space<vmem>>, vector<32x72xbf16>
    %cst_40 = arith.constant dense<0.000000e+00> : vector<32x72xf32>
    %42 = tpu.matmul %40, %41, %cst_40 {dimension_numbers = #tpu.dot_dimension_numbers<[1], [0], [0], [1], [0, 0, 1, 1], [], []>} : vector<32x32xbf16>, vector<32x72xbf16>, vector<32x72xf32> -> vector<32x72xf32>
    %43 = arith.addf %38, %42 : vector<32x72xf32>
    %c0_41 = arith.constant 0 : index
    %c0_42 = arith.constant 0 : index
    %44 = vector.load %arg2[%c0_41, %c0_42] : memref<32x1xf32, #tpu.memory_space<vmem>>, vector<32x1xf32>
    %45 = vector.broadcast %44 : vector<32x1xf32> to vector<32x72xf32>
    %46 = arith.addf %43, %45 : vector<32x72xf32>
    %c0_43 = arith.constant 0 : index
    %c0_44 = arith.constant 0 : index
    %47 = vector.load %arg3[%c0_43, %c0_44] : memref<32x72xbf16, #tpu.memory_space<vmem>>, vector<32x72xbf16>
    %48 = arith.extf %47 : vector<32x72xbf16> to vector<32x72xf32>
    %49 = arith.addf %46, %48 : vector<32x72xf32>
    %cst_45 = arith.constant 0.000000e+00 : f32
    %50 = vector.broadcast %cst_45 : f32 to vector<32x72xf32>
    %51 = arith.maximumf %49, %50 : vector<32x72xf32>
    %52 = arith.truncf %51 : vector<32x72xf32> to vector<32x72xbf16>
    %c0_46 = arith.constant 0 : index
    %c0_47 = arith.constant 0 : index
    %53 = vector.load %arg4[%c0_46, %c0_47] : memref<32x72xbf16, #tpu.memory_space<vmem>>, vector<32x72xbf16>
    tpu.vector_store %arg4[%c0_46, %c0_47], %52 {strides = array<i32>} : memref<32x72xbf16, #tpu.memory_space<vmem>>, vector<32x72xbf16>,
    return
  }
}

module attributes {stable_mosaic.version = 11 : i64} {
  func.func @_fused_block_kernel(%arg0: memref<32x86xbf16, #tpu.memory_space<vmem>>, %arg1: memref<9x32x32xbf16, #tpu.memory_space<vmem>>, %arg2: memref<32x1xf32, #tpu.memory_space<vmem>>, %arg3: memref<9x32x32xbf16, #tpu.memory_space<vmem>>, %arg4: memref<32x1xf32, #tpu.memory_space<vmem>>, %arg5: memref<1x72xf32, #tpu.memory_space<vmem>>, %arg6: memref<32x86xbf16, #tpu.memory_space<vmem>>, %arg7: memref<32x86xbf16, #tpu.memory_space<vmem>>) attributes {dimension_semantics = [], scalar_prefetch = 0 : i64, scratch_operands = 1 : i64, tpu.core_type = #tpu.core_type<tc>} {
    %c0 = arith.constant 0 : index
    %c0_0 = arith.constant 0 : index
    %0 = vector.load %arg5[%c0, %c0_0] : memref<1x72xf32, #tpu.memory_space<vmem>>, vector<1x72xf32>
    %c0_1 = arith.constant 0 : index
    %c0_2 = arith.constant 0 : index
    %c0_3 = arith.constant 0 : index
    %1 = vector.load %arg1[%c0_1, %c0_2, %c0_3] : memref<9x32x32xbf16, #tpu.memory_space<vmem>>, vector<1x32x32xbf16>
    %2 = vector.shape_cast %1 : vector<1x32x32xbf16> to vector<32x32xbf16>
    %c0_4 = arith.constant 0 : index
    %c0_5 = arith.constant 0 : index
    %3 = vector.load %arg0[%c0_4, %c0_5] : memref<32x86xbf16, #tpu.memory_space<vmem>>, vector<32x72xbf16>
    %cst = arith.constant dense<0.000000e+00> : vector<32x72xf32>
    %4 = tpu.matmul %2, %3, %cst {dimension_numbers = #tpu.dot_dimension_numbers<[1], [0], [0], [1], [0, 0, 1, 1], [], []>} : vector<32x32xbf16>, vector<32x72xbf16>, vector<32x72xf32> -> vector<32x72xf32>
    %c1 = arith.constant 1 : index
    %c0_6 = arith.constant 0 : index
    %c0_7 = arith.constant 0 : index
    %5 = vector.load %arg1[%c1, %c0_6, %c0_7] : memref<9x32x32xbf16, #tpu.memory_space<vmem>>, vector<1x32x32xbf16>
    %6 = vector.shape_cast %5 : vector<1x32x32xbf16> to vector<32x32xbf16>
    %c0_8 = arith.constant 0 : index
    %c1_9 = arith.constant 1 : index
    %7 = vector.load %arg0[%c0_8, %c1_9] : memref<32x86xbf16, #tpu.memory_space<vmem>>, vector<32x72xbf16>
    %cst_10 = arith.constant dense<0.000000e+00> : vector<32x72xf32>
    %8 = tpu.matmul %6, %7, %cst_10 {dimension_numbers = #tpu.dot_dimension_numbers<[1], [0], [0], [1], [0, 0, 1, 1], [], []>} : vector<32x32xbf16>, vector<32x72xbf16>, vector<32x72xf32> -> vector<32x72xf32>
    %9 = arith.addf %4, %8 : vector<32x72xf32>
    %c2 = arith.constant 2 : index
    %c0_11 = arith.constant 0 : index
    %c0_12 = arith.constant 0 : index
    %10 = vector.load %arg1[%c2, %c0_11, %c0_12] : memref<9x32x32xbf16, #tpu.memory_space<vmem>>, vector<1x32x32xbf16>
    %11 = vector.shape_cast %10 : vector<1x32x32xbf16> to vector<32x32xbf16>
    %c0_13 = arith.constant 0 : index
    %c2_14 = arith.constant 2 : index
    %12 = vector.load %arg0[%c0_13, %c2_14] : memref<32x86xbf16, #tpu.memory_space<vmem>>, vector<32x72xbf16>
    %cst_15 = arith.constant dense<0.000000e+00> : vector<32x72xf32>
    %13 = tpu.matmul %11, %12, %cst_15 {dimension_numbers = #tpu.dot_dimension_numbers<[1], [0], [0], [1], [0, 0, 1, 1], [], []>} : vector<32x32xbf16>, vector<32x72xbf16>, vector<32x72xf32> -> vector<32x72xf32>
    %14 = arith.addf %9, %13 : vector<32x72xf32>
    %c3 = arith.constant 3 : index
    %c0_16 = arith.constant 0 : index
    %c0_17 = arith.constant 0 : index
    %15 = vector.load %arg1[%c3, %c0_16, %c0_17] : memref<9x32x32xbf16, #tpu.memory_space<vmem>>, vector<1x32x32xbf16>
    %16 = vector.shape_cast %15 : vector<1x32x32xbf16> to vector<32x32xbf16>
    %c0_18 = arith.constant 0 : index
    %c6 = arith.constant 6 : index
    %17 = vector.load %arg0[%c0_18, %c6] : memref<32x86xbf16, #tpu.memory_space<vmem>>, vector<32x72xbf16>
    %cst_19 = arith.constant dense<0.000000e+00> : vector<32x72xf32>
    %18 = tpu.matmul %16, %17, %cst_19 {dimension_numbers = #tpu.dot_dimension_numbers<[1], [0], [0], [1], [0, 0, 1, 1], [], []>} : vector<32x32xbf16>, vector<32x72xbf16>, vector<32x72xf32> -> vector<32x72xf32>
    %19 = arith.addf %14, %18 : vector<32x72xf32>
    %c4 = arith.constant 4 : index
    %c0_20 = arith.constant 0 : index
    %c0_21 = arith.constant 0 : index
    %20 = vector.load %arg1[%c4, %c0_20, %c0_21] : memref<9x32x32xbf16, #tpu.memory_space<vmem>>, vector<1x32x32xbf16>
    %21 = vector.shape_cast %20 : vector<1x32x32xbf16> to vector<32x32xbf16>
    %c0_22 = arith.constant 0 : index
    %c7 = arith.constant 7 : index
    %22 = vector.load %arg0[%c0_22, %c7] : memref<32x86xbf16, #tpu.memory_space<vmem>>, vector<32x72xbf16>
    %cst_23 = arith.constant dense<0.000000e+00> : vector<32x72xf32>
    %23 = tpu.matmul %21, %22, %cst_23 {dimension_numbers = #tpu.dot_dimension_numbers<[1], [0], [0], [1], [0, 0, 1, 1], [], []>} : vector<32x32xbf16>, vector<32x72xbf16>, vector<32x72xf32> -> vector<32x72xf32>
    %24 = arith.addf %19, %23 : vector<32x72xf32>
    %c5 = arith.constant 5 : index
    %c0_24 = arith.constant 0 : index
    %c0_25 = arith.constant 0 : index
    %25 = vector.load %arg1[%c5, %c0_24, %c0_25] : memref<9x32x32xbf16, #tpu.memory_space<vmem>>, vector<1x32x32xbf16>
    %26 = vector.shape_cast %25 : vector<1x32x32xbf16> to vector<32x32xbf16>
    %c0_26 = arith.constant 0 : index
    %c8 = arith.constant 8 : index
    %27 = vector.load %arg0[%c0_26, %c8] : memref<32x86xbf16, #tpu.memory_space<vmem>>, vector<32x72xbf16>
    %cst_27 = arith.constant dense<0.000000e+00> : vector<32x72xf32>
    %28 = tpu.matmul %26, %27, %cst_27 {dimension_numbers = #tpu.dot_dimension_numbers<[1], [0], [0], [1], [0, 0, 1, 1], [], []>} : vector<32x32xbf16>, vector<32x72xbf16>, vector<32x72xf32> -> vector<32x72xf32>
    %29 = arith.addf %24, %28 : vector<32x72xf32>
    %c6_28 = arith.constant 6 : index
    %c0_29 = arith.constant 0 : index
    %c0_30 = arith.constant 0 : index
    %30 = vector.load %arg1[%c6_28, %c0_29, %c0_30] : memref<9x32x32xbf16, #tpu.memory_space<vmem>>, vector<1x32x32xbf16>
    %31 = vector.shape_cast %30 : vector<1x32x32xbf16> to vector<32x32xbf16>
    %c0_31 = arith.constant 0 : index
    %c12 = arith.constant 12 : index
    %32 = vector.load %arg0[%c0_31, %c12] : memref<32x86xbf16, #tpu.memory_space<vmem>>, vector<32x72xbf16>
    %cst_32 = arith.constant dense<0.000000e+00> : vector<32x72xf32>
    %33 = tpu.matmul %31, %32, %cst_32 {dimension_numbers = #tpu.dot_dimension_numbers<[1], [0], [0], [1], [0, 0, 1, 1], [], []>} : vector<32x32xbf16>, vector<32x72xbf16>, vector<32x72xf32> -> vector<32x72xf32>
    %34 = arith.addf %29, %33 : vector<32x72xf32>
    %c7_33 = arith.constant 7 : index
    %c0_34 = arith.constant 0 : index
    %c0_35 = arith.constant 0 : index
    %35 = vector.load %arg1[%c7_33, %c0_34, %c0_35] : memref<9x32x32xbf16, #tpu.memory_space<vmem>>, vector<1x32x32xbf16>
    %36 = vector.shape_cast %35 : vector<1x32x32xbf16> to vector<32x32xbf16>
    %c0_36 = arith.constant 0 : index
    %c13 = arith.constant 13 : index
    %37 = vector.load %arg0[%c0_36, %c13] : memref<32x86xbf16, #tpu.memory_space<vmem>>, vector<32x72xbf16>
    %cst_37 = arith.constant dense<0.000000e+00> : vector<32x72xf32>
    %38 = tpu.matmul %36, %37, %cst_37 {dimension_numbers = #tpu.dot_dimension_numbers<[1], [0], [0], [1], [0, 0, 1, 1], [], []>} : vector<32x32xbf16>, vector<32x72xbf16>, vector<32x72xf32> -> vector<32x72xf32>
    %39 = arith.addf %34, %38 : vector<32x72xf32>
    %c8_38 = arith.constant 8 : index
    %c0_39 = arith.constant 0 : index
    %c0_40 = arith.constant 0 : index
    %40 = vector.load %arg1[%c8_38, %c0_39, %c0_40] : memref<9x32x32xbf16, #tpu.memory_space<vmem>>, vector<1x32x32xbf16>
    %41 = vector.shape_cast %40 : vector<1x32x32xbf16> to vector<32x32xbf16>
    %c0_41 = arith.constant 0 : index
    %c14 = arith.constant 14 : index
    %42 = vector.load %arg0[%c0_41, %c14] : memref<32x86xbf16, #tpu.memory_space<vmem>>, vector<32x72xbf16>
    %cst_42 = arith.constant dense<0.000000e+00> : vector<32x72xf32>
    %43 = tpu.matmul %41, %42, %cst_42 {dimension_numbers = #tpu.dot_dimension_numbers<[1], [0], [0], [1], [0, 0, 1, 1], [], []>} : vector<32x32xbf16>, vector<32x72xbf16>, vector<32x72xf32> -> vector<32x72xf32>
    %44 = arith.addf %39, %43 : vector<32x72xf32>
    %c0_43 = arith.constant 0 : index
    %c0_44 = arith.constant 0 : index
    %45 = vector.load %arg2[%c0_43, %c0_44] : memref<32x1xf32, #tpu.memory_space<vmem>>, vector<32x1xf32>
    %46 = vector.broadcast %45 : vector<32x1xf32> to vector<32x72xf32>
    %47 = arith.addf %44, %46 : vector<32x72xf32>
    %cst_45 = arith.constant 0.000000e+00 : f32
    %48 = vector.broadcast %cst_45 : f32 to vector<32x72xf32>
    %49 = arith.maximumf %47, %48 : vector<32x72xf32>
    %50 = vector.broadcast %0 : vector<1x72xf32> to vector<32x72xf32>
    %51 = arith.mulf %49, %50 : vector<32x72xf32>
    %cst_46 = arith.constant 0.000000e+00 : bf16
    %52 = vector.broadcast %cst_46 : bf16 to vector<32x86xbf16>
    %c0_47 = arith.constant 0 : index
    %c0_48 = arith.constant 0 : index
    %53 = vector.load %arg7[%c0_47, %c0_48] : memref<32x86xbf16, #tpu.memory_space<vmem>>, vector<32x86xbf16>
    tpu.vector_store %arg7[%c0_47, %c0_48], %52 {strides = array<i32>} : memref<32x86xbf16, #tpu.memory_space<vmem>>, vector<32x86xbf16>,
    %54 = arith.truncf %51 : vector<32x72xf32> to vector<32x72xbf16>
    %c0_49 = arith.constant 0 : index
    %c7_50 = arith.constant 7 : index
    %55 = vector.load %arg7[%c0_49, %c7_50] : memref<32x86xbf16, #tpu.memory_space<vmem>>, vector<32x72xbf16>
    tpu.vector_store %arg7[%c0_49, %c7_50], %54 {strides = array<i32>} : memref<32x86xbf16, #tpu.memory_space<vmem>>, vector<32x72xbf16>,
    %c0_51 = arith.constant 0 : index
    %c0_52 = arith.constant 0 : index
    %c0_53 = arith.constant 0 : index
    %56 = vector.load %arg3[%c0_51, %c0_52, %c0_53] : memref<9x32x32xbf16, #tpu.memory_space<vmem>>, vector<1x32x32xbf16>
    %57 = vector.shape_cast %56 : vector<1x32x32xbf16> to vector<32x32xbf16>
    %c0_54 = arith.constant 0 : index
    %c0_55 = arith.constant 0 : index
    %58 = vector.load %arg7[%c0_54, %c0_55] : memref<32x86xbf16, #tpu.memory_space<vmem>>, vector<32x72xbf16>
    %cst_56 = arith.constant dense<0.000000e+00> : vector<32x72xf32>
    %59 = tpu.matmul %57, %58, %cst_56 {dimension_numbers = #tpu.dot_dimension_numbers<[1], [0], [0], [1], [0, 0, 1, 1], [], []>} : vector<32x32xbf16>, vector<32x72xbf16>, vector<32x72xf32> -> vector<32x72xf32>
    %c1_57 = arith.constant 1 : index
    %c0_58 = arith.constant 0 : index
    %c0_59 = arith.constant 0 : index
    %60 = vector.load %arg3[%c1_57, %c0_58, %c0_59] : memref<9x32x32xbf16, #tpu.memory_space<vmem>>, vector<1x32x32xbf16>
    %61 = vector.shape_cast %60 : vector<1x32x32xbf16> to vector<32x32xbf16>
    %c0_60 = arith.constant 0 : index
    %c1_61 = arith.constant 1 : index
    %62 = vector.load %arg7[%c0_60, %c1_61] : memref<32x86xbf16, #tpu.memory_space<vmem>>, vector<32x72xbf16>
    %cst_62 = arith.constant dense<0.000000e+00> : vector<32x72xf32>
    %63 = tpu.matmul %61, %62, %cst_62 {dimension_numbers = #tpu.dot_dimension_numbers<[1], [0], [0], [1], [0, 0, 1, 1], [], []>} : vector<32x32xbf16>, vector<32x72xbf16>, vector<32x72xf32> -> vector<32x72xf32>
    %64 = arith.addf %59, %63 : vector<32x72xf32>
    %c2_63 = arith.constant 2 : index
    %c0_64 = arith.constant 0 : index
    %c0_65 = arith.constant 0 : index
    %65 = vector.load %arg3[%c2_63, %c0_64, %c0_65] : memref<9x32x32xbf16, #tpu.memory_space<vmem>>, vector<1x32x32xbf16>
    %66 = vector.shape_cast %65 : vector<1x32x32xbf16> to vector<32x32xbf16>
    %c0_66 = arith.constant 0 : index
    %c2_67 = arith.constant 2 : index
    %67 = vector.load %arg7[%c0_66, %c2_67] : memref<32x86xbf16, #tpu.memory_space<vmem>>, vector<32x72xbf16>
    %cst_68 = arith.constant dense<0.000000e+00> : vector<32x72xf32>
    %68 = tpu.matmul %66, %67, %cst_68 {dimension_numbers = #tpu.dot_dimension_numbers<[1], [0], [0], [1], [0, 0, 1, 1], [], []>} : vector<32x32xbf16>, vector<32x72xbf16>, vector<32x72xf32> -> vector<32x72xf32>
    %69 = arith.addf %64, %68 : vector<32x72xf32>
    %c3_69 = arith.constant 3 : index
    %c0_70 = arith.constant 0 : index
    %c0_71 = arith.constant 0 : index
    %70 = vector.load %arg3[%c3_69, %c0_70, %c0_71] : memref<9x32x32xbf16, #tpu.memory_space<vmem>>, vector<1x32x32xbf16>
    %71 = vector.shape_cast %70 : vector<1x32x32xbf16> to vector<32x32xbf16>
    %c0_72 = arith.constant 0 : index
    %c6_73 = arith.constant 6 : index
    %72 = vector.load %arg7[%c0_72, %c6_73] : memref<32x86xbf16, #tpu.memory_space<vmem>>, vector<32x72xbf16>
    %cst_74 = arith.constant dense<0.000000e+00> : vector<32x72xf32>
    %73 = tpu.matmul %71, %72, %cst_74 {dimension_numbers = #tpu.dot_dimension_numbers<[1], [0], [0], [1], [0, 0, 1, 1], [], []>} : vector<32x32xbf16>, vector<32x72xbf16>, vector<32x72xf32> -> vector<32x72xf32>
    %74 = arith.addf %69, %73 : vector<32x72xf32>
    %c4_75 = arith.constant 4 : index
    %c0_76 = arith.constant 0 : index
    %c0_77 = arith.constant 0 : index
    %75 = vector.load %arg3[%c4_75, %c0_76, %c0_77] : memref<9x32x32xbf16, #tpu.memory_space<vmem>>, vector<1x32x32xbf16>
    %76 = vector.shape_cast %75 : vector<1x32x32xbf16> to vector<32x32xbf16>
    %c0_78 = arith.constant 0 : index
    %c7_79 = arith.constant 7 : index
    %77 = vector.load %arg7[%c0_78, %c7_79] : memref<32x86xbf16, #tpu.memory_space<vmem>>, vector<32x72xbf16>
    %cst_80 = arith.constant dense<0.000000e+00> : vector<32x72xf32>
    %78 = tpu.matmul %76, %77, %cst_80 {dimension_numbers = #tpu.dot_dimension_numbers<[1], [0], [0], [1], [0, 0, 1, 1], [], []>} : vector<32x32xbf16>, vector<32x72xbf16>, vector<32x72xf32> -> vector<32x72xf32>
    %79 = arith.addf %74, %78 : vector<32x72xf32>
    %c5_81 = arith.constant 5 : index
    %c0_82 = arith.constant 0 : index
    %c0_83 = arith.constant 0 : index
    %80 = vector.load %arg3[%c5_81, %c0_82, %c0_83] : memref<9x32x32xbf16, #tpu.memory_space<vmem>>, vector<1x32x32xbf16>
    %81 = vector.shape_cast %80 : vector<1x32x32xbf16> to vector<32x32xbf16>
    %c0_84 = arith.constant 0 : index
    %c8_85 = arith.constant 8 : index
    %82 = vector.load %arg7[%c0_84, %c8_85] : memref<32x86xbf16, #tpu.memory_space<vmem>>, vector<32x72xbf16>
    %cst_86 = arith.constant dense<0.000000e+00> : vector<32x72xf32>
    %83 = tpu.matmul %81, %82, %cst_86 {dimension_numbers = #tpu.dot_dimension_numbers<[1], [0], [0], [1], [0, 0, 1, 1], [], []>} : vector<32x32xbf16>, vector<32x72xbf16>, vector<32x72xf32> -> vector<32x72xf32>
    %84 = arith.addf %79, %83 : vector<32x72xf32>
    %c6_87 = arith.constant 6 : index
    %c0_88 = arith.constant 0 : index
    %c0_89 = arith.constant 0 : index
    %85 = vector.load %arg3[%c6_87, %c0_88, %c0_89] : memref<9x32x32xbf16, #tpu.memory_space<vmem>>, vector<1x32x32xbf16>
    %86 = vector.shape_cast %85 : vector<1x32x32xbf16> to vector<32x32xbf16>
    %c0_90 = arith.constant 0 : index
    %c12_91 = arith.constant 12 : index
    %87 = vector.load %arg7[%c0_90, %c12_91] : memref<32x86xbf16, #tpu.memory_space<vmem>>, vector<32x72xbf16>
    %cst_92 = arith.constant dense<0.000000e+00> : vector<32x72xf32>
    %88 = tpu.matmul %86, %87, %cst_92 {dimension_numbers = #tpu.dot_dimension_numbers<[1], [0], [0], [1], [0, 0, 1, 1], [], []>} : vector<32x32xbf16>, vector<32x72xbf16>, vector<32x72xf32> -> vector<32x72xf32>
    %89 = arith.addf %84, %88 : vector<32x72xf32>
    %c7_93 = arith.constant 7 : index
    %c0_94 = arith.constant 0 : index
    %c0_95 = arith.constant 0 : index
    %90 = vector.load %arg3[%c7_93, %c0_94, %c0_95] : memref<9x32x32xbf16, #tpu.memory_space<vmem>>, vector<1x32x32xbf16>
    %91 = vector.shape_cast %90 : vector<1x32x32xbf16> to vector<32x32xbf16>
    %c0_96 = arith.constant 0 : index
    %c13_97 = arith.constant 13 : index
    %92 = vector.load %arg7[%c0_96, %c13_97] : memref<32x86xbf16, #tpu.memory_space<vmem>>, vector<32x72xbf16>
    %cst_98 = arith.constant dense<0.000000e+00> : vector<32x72xf32>
    %93 = tpu.matmul %91, %92, %cst_98 {dimension_numbers = #tpu.dot_dimension_numbers<[1], [0], [0], [1], [0, 0, 1, 1], [], []>} : vector<32x32xbf16>, vector<32x72xbf16>, vector<32x72xf32> -> vector<32x72xf32>
    %94 = arith.addf %89, %93 : vector<32x72xf32>
    %c8_99 = arith.constant 8 : index
    %c0_100 = arith.constant 0 : index
    %c0_101 = arith.constant 0 : index
    %95 = vector.load %arg3[%c8_99, %c0_100, %c0_101] : memref<9x32x32xbf16, #tpu.memory_space<vmem>>, vector<1x32x32xbf16>
    %96 = vector.shape_cast %95 : vector<1x32x32xbf16> to vector<32x32xbf16>
    %c0_102 = arith.constant 0 : index
    %c14_103 = arith.constant 14 : index
    %97 = vector.load %arg7[%c0_102, %c14_103] : memref<32x86xbf16, #tpu.memory_space<vmem>>, vector<32x72xbf16>
    %cst_104 = arith.constant dense<0.000000e+00> : vector<32x72xf32>
    %98 = tpu.matmul %96, %97, %cst_104 {dimension_numbers = #tpu.dot_dimension_numbers<[1], [0], [0], [1], [0, 0, 1, 1], [], []>} : vector<32x32xbf16>, vector<32x72xbf16>, vector<32x72xf32> -> vector<32x72xf32>
    %99 = arith.addf %94, %98 : vector<32x72xf32>
    %c0_105 = arith.constant 0 : index
    %c0_106 = arith.constant 0 : index
    %100 = vector.load %arg4[%c0_105, %c0_106] : memref<32x1xf32, #tpu.memory_space<vmem>>, vector<32x1xf32>
    %101 = vector.broadcast %100 : vector<32x1xf32> to vector<32x72xf32>
    %102 = arith.addf %99, %101 : vector<32x72xf32>
    %c0_107 = arith.constant 0 : index
    %c7_108 = arith.constant 7 : index
    %103 = vector.load %arg0[%c0_107, %c7_108] : memref<32x86xbf16, #tpu.memory_space<vmem>>, vector<32x72xbf16>
    %104 = arith.extf %103 : vector<32x72xbf16> to vector<32x72xf32>
    %105 = arith.addf %102, %104 : vector<32x72xf32>
    %cst_109 = arith.constant 0.000000e+00 : f32
    %106 = vector.broadcast %cst_109 : f32 to vector<32x72xf32>
    %107 = arith.maximumf %105, %106 : vector<32x72xf32>
    %108 = vector.broadcast %0 : vector<1x72xf32> to vector<32x72xf32>
    %109 = arith.mulf %107, %108 : vector<32x72xf32>
    %cst_110 = arith.constant 0.000000e+00 : bf16
    %110 = vector.broadcast %cst_110 : bf16 to vector<32x86xbf16>
    %c0_111 = arith.constant 0 : index
    %c0_112 = arith.constant 0 : index
    %111 = vector.load %arg6[%c0_111, %c0_112] : memref<32x86xbf16, #tpu.memory_space<vmem>>, vector<32x86xbf16>
    tpu.vector_store %arg6[%c0_111, %c0_112], %110 {strides = array<i32>} : memref<32x86xbf16, #tpu.memory_space<vmem>>, vector<32x86xbf16>,
    %112 = arith.truncf %109 : vector<32x72xf32> to vector<32x72xbf16>
    %c0_113 = arith.constant 0 : index
    %c7_114 = arith.constant 7 : index
    %113 = vector.load %arg6[%c0_113, %c7_114] : memref<32x86xbf16, #tpu.memory_space<vmem>>, vector<32x72xbf16>
    tpu.vector_store %arg6[%c0_113, %c7_114], %112 {strides = array<i32>} : memref<32x86xbf16, #tpu.memory_space<vmem>>, vector<32x72xbf16>,
    return
  }
}

module attributes {stable_mosaic.version = 11 : i64} {
  func.func @_conv_frame_kernel(%arg0: memref<32x86xbf16, #tpu.memory_space<vmem>>, %arg1: memref<9x64x32xbf16, #tpu.memory_space<vmem>>, %arg2: memref<64x1xf32, #tpu.memory_space<vmem>>, %arg3: memref<64x72xbf16, #tpu.memory_space<vmem>>) attributes {dimension_semantics = [], scalar_prefetch = 0 : i64, scratch_operands = 0 : i64, tpu.core_type = #tpu.core_type<tc>} {
    %c0 = arith.constant 0 : index
    %c0_0 = arith.constant 0 : index
    %c0_1 = arith.constant 0 : index
    %0 = vector.load %arg1[%c0, %c0_0, %c0_1] : memref<9x64x32xbf16, #tpu.memory_space<vmem>>, vector<1x64x32xbf16>
    %1 = vector.shape_cast %0 : vector<1x64x32xbf16> to vector<64x32xbf16>
    %c0_2 = arith.constant 0 : index
    %c0_3 = arith.constant 0 : index
    %2 = vector.load %arg0[%c0_2, %c0_3] : memref<32x86xbf16, #tpu.memory_space<vmem>>, vector<32x72xbf16>
    %cst = arith.constant dense<0.000000e+00> : vector<64x72xf32>
    %3 = tpu.matmul %1, %2, %cst {dimension_numbers = #tpu.dot_dimension_numbers<[1], [0], [0], [1], [0, 0, 1, 1], [], []>} : vector<64x32xbf16>, vector<32x72xbf16>, vector<64x72xf32> -> vector<64x72xf32>
    %c1 = arith.constant 1 : index
    %c0_4 = arith.constant 0 : index
    %c0_5 = arith.constant 0 : index
    %4 = vector.load %arg1[%c1, %c0_4, %c0_5] : memref<9x64x32xbf16, #tpu.memory_space<vmem>>, vector<1x64x32xbf16>
    %5 = vector.shape_cast %4 : vector<1x64x32xbf16> to vector<64x32xbf16>
    %c0_6 = arith.constant 0 : index
    %c1_7 = arith.constant 1 : index
    %6 = vector.load %arg0[%c0_6, %c1_7] : memref<32x86xbf16, #tpu.memory_space<vmem>>, vector<32x72xbf16>
    %cst_8 = arith.constant dense<0.000000e+00> : vector<64x72xf32>
    %7 = tpu.matmul %5, %6, %cst_8 {dimension_numbers = #tpu.dot_dimension_numbers<[1], [0], [0], [1], [0, 0, 1, 1], [], []>} : vector<64x32xbf16>, vector<32x72xbf16>, vector<64x72xf32> -> vector<64x72xf32>
    %8 = arith.addf %3, %7 : vector<64x72xf32>
    %c2 = arith.constant 2 : index
    %c0_9 = arith.constant 0 : index
    %c0_10 = arith.constant 0 : index
    %9 = vector.load %arg1[%c2, %c0_9, %c0_10] : memref<9x64x32xbf16, #tpu.memory_space<vmem>>, vector<1x64x32xbf16>
    %10 = vector.shape_cast %9 : vector<1x64x32xbf16> to vector<64x32xbf16>
    %c0_11 = arith.constant 0 : index
    %c2_12 = arith.constant 2 : index
    %11 = vector.load %arg0[%c0_11, %c2_12] : memref<32x86xbf16, #tpu.memory_space<vmem>>, vector<32x72xbf16>
    %cst_13 = arith.constant dense<0.000000e+00> : vector<64x72xf32>
    %12 = tpu.matmul %10, %11, %cst_13 {dimension_numbers = #tpu.dot_dimension_numbers<[1], [0], [0], [1], [0, 0, 1, 1], [], []>} : vector<64x32xbf16>, vector<32x72xbf16>, vector<64x72xf32> -> vector<64x72xf32>
    %13 = arith.addf %8, %12 : vector<64x72xf32>
    %c3 = arith.constant 3 : index
    %c0_14 = arith.constant 0 : index
    %c0_15 = arith.constant 0 : index
    %14 = vector.load %arg1[%c3, %c0_14, %c0_15] : memref<9x64x32xbf16, #tpu.memory_space<vmem>>, vector<1x64x32xbf16>
    %15 = vector.shape_cast %14 : vector<1x64x32xbf16> to vector<64x32xbf16>
    %c0_16 = arith.constant 0 : index
    %c6 = arith.constant 6 : index
    %16 = vector.load %arg0[%c0_16, %c6] : memref<32x86xbf16, #tpu.memory_space<vmem>>, vector<32x72xbf16>
    %cst_17 = arith.constant dense<0.000000e+00> : vector<64x72xf32>
    %17 = tpu.matmul %15, %16, %cst_17 {dimension_numbers = #tpu.dot_dimension_numbers<[1], [0], [0], [1], [0, 0, 1, 1], [], []>} : vector<64x32xbf16>, vector<32x72xbf16>, vector<64x72xf32> -> vector<64x72xf32>
    %18 = arith.addf %13, %17 : vector<64x72xf32>
    %c4 = arith.constant 4 : index
    %c0_18 = arith.constant 0 : index
    %c0_19 = arith.constant 0 : index
    %19 = vector.load %arg1[%c4, %c0_18, %c0_19] : memref<9x64x32xbf16, #tpu.memory_space<vmem>>, vector<1x64x32xbf16>
    %20 = vector.shape_cast %19 : vector<1x64x32xbf16> to vector<64x32xbf16>
    %c0_20 = arith.constant 0 : index
    %c7 = arith.constant 7 : index
    %21 = vector.load %arg0[%c0_20, %c7] : memref<32x86xbf16, #tpu.memory_space<vmem>>, vector<32x72xbf16>
    %cst_21 = arith.constant dense<0.000000e+00> : vector<64x72xf32>
    %22 = tpu.matmul %20, %21, %cst_21 {dimension_numbers = #tpu.dot_dimension_numbers<[1], [0], [0], [1], [0, 0, 1, 1], [], []>} : vector<64x32xbf16>, vector<32x72xbf16>, vector<64x72xf32> -> vector<64x72xf32>
    %23 = arith.addf %18, %22 : vector<64x72xf32>
    %c5 = arith.constant 5 : index
    %c0_22 = arith.constant 0 : index
    %c0_23 = arith.constant 0 : index
    %24 = vector.load %arg1[%c5, %c0_22, %c0_23] : memref<9x64x32xbf16, #tpu.memory_space<vmem>>, vector<1x64x32xbf16>
    %25 = vector.shape_cast %24 : vector<1x64x32xbf16> to vector<64x32xbf16>
    %c0_24 = arith.constant 0 : index
    %c8 = arith.constant 8 : index
    %26 = vector.load %arg0[%c0_24, %c8] : memref<32x86xbf16, #tpu.memory_space<vmem>>, vector<32x72xbf16>
    %cst_25 = arith.constant dense<0.000000e+00> : vector<64x72xf32>
    %27 = tpu.matmul %25, %26, %cst_25 {dimension_numbers = #tpu.dot_dimension_numbers<[1], [0], [0], [1], [0, 0, 1, 1], [], []>} : vector<64x32xbf16>, vector<32x72xbf16>, vector<64x72xf32> -> vector<64x72xf32>
    %28 = arith.addf %23, %27 : vector<64x72xf32>
    %c6_26 = arith.constant 6 : index
    %c0_27 = arith.constant 0 : index
    %c0_28 = arith.constant 0 : index
    %29 = vector.load %arg1[%c6_26, %c0_27, %c0_28] : memref<9x64x32xbf16, #tpu.memory_space<vmem>>, vector<1x64x32xbf16>
    %30 = vector.shape_cast %29 : vector<1x64x32xbf16> to vector<64x32xbf16>
    %c0_29 = arith.constant 0 : index
    %c12 = arith.constant 12 : index
    %31 = vector.load %arg0[%c0_29, %c12] : memref<32x86xbf16, #tpu.memory_space<vmem>>, vector<32x72xbf16>
    %cst_30 = arith.constant dense<0.000000e+00> : vector<64x72xf32>
    %32 = tpu.matmul %30, %31, %cst_30 {dimension_numbers = #tpu.dot_dimension_numbers<[1], [0], [0], [1], [0, 0, 1, 1], [], []>} : vector<64x32xbf16>, vector<32x72xbf16>, vector<64x72xf32> -> vector<64x72xf32>
    %33 = arith.addf %28, %32 : vector<64x72xf32>
    %c7_31 = arith.constant 7 : index
    %c0_32 = arith.constant 0 : index
    %c0_33 = arith.constant 0 : index
    %34 = vector.load %arg1[%c7_31, %c0_32, %c0_33] : memref<9x64x32xbf16, #tpu.memory_space<vmem>>, vector<1x64x32xbf16>
    %35 = vector.shape_cast %34 : vector<1x64x32xbf16> to vector<64x32xbf16>
    %c0_34 = arith.constant 0 : index
    %c13 = arith.constant 13 : index
    %36 = vector.load %arg0[%c0_34, %c13] : memref<32x86xbf16, #tpu.memory_space<vmem>>, vector<32x72xbf16>
    %cst_35 = arith.constant dense<0.000000e+00> : vector<64x72xf32>
    %37 = tpu.matmul %35, %36, %cst_35 {dimension_numbers = #tpu.dot_dimension_numbers<[1], [0], [0], [1], [0, 0, 1, 1], [], []>} : vector<64x32xbf16>, vector<32x72xbf16>, vector<64x72xf32> -> vector<64x72xf32>
    %38 = arith.addf %33, %37 : vector<64x72xf32>
    %c8_36 = arith.constant 8 : index
    %c0_37 = arith.constant 0 : index
    %c0_38 = arith.constant 0 : index
    %39 = vector.load %arg1[%c8_36, %c0_37, %c0_38] : memref<9x64x32xbf16, #tpu.memory_space<vmem>>, vector<1x64x32xbf16>
    %40 = vector.shape_cast %39 : vector<1x64x32xbf16> to vector<64x32xbf16>
    %c0_39 = arith.constant 0 : index
    %c14 = arith.constant 14 : index
    %41 = vector.load %arg0[%c0_39, %c14] : memref<32x86xbf16, #tpu.memory_space<vmem>>, vector<32x72xbf16>
    %cst_40 = arith.constant dense<0.000000e+00> : vector<64x72xf32>
    %42 = tpu.matmul %40, %41, %cst_40 {dimension_numbers = #tpu.dot_dimension_numbers<[1], [0], [0], [1], [0, 0, 1, 1], [], []>} : vector<64x32xbf16>, vector<32x72xbf16>, vector<64x72xf32> -> vector<64x72xf32>
    %43 = arith.addf %38, %42 : vector<64x72xf32>
    %c0_41 = arith.constant 0 : index
    %c0_42 = arith.constant 0 : index
    %44 = vector.load %arg2[%c0_41, %c0_42] : memref<64x1xf32, #tpu.memory_space<vmem>>, vector<64x1xf32>
    %45 = vector.broadcast %44 : vector<64x1xf32> to vector<64x72xf32>
    %46 = arith.addf %43, %45 : vector<64x72xf32>
    %cst_43 = arith.constant 0.000000e+00 : f32
    %47 = vector.broadcast %cst_43 : f32 to vector<64x72xf32>
    %48 = arith.maximumf %46, %47 : vector<64x72xf32>
    %49 = arith.truncf %48 : vector<64x72xf32> to vector<64x72xbf16>
    %c0_44 = arith.constant 0 : index
    %c0_45 = arith.constant 0 : index
    %50 = vector.load %arg3[%c0_44, %c0_45] : memref<64x72xbf16, #tpu.memory_space<vmem>>, vector<64x72xbf16>
    tpu.vector_store %arg3[%c0_44, %c0_45], %49 {strides = array<i32>} : memref<64x72xbf16, #tpu.memory_space<vmem>>, vector<64x72xbf16>,
    return
  }
}

module attributes {stable_mosaic.version = 11 : i64} {
  func.func @_conv_frame_kernel(%arg0: memref<64x42xbf16, #tpu.memory_space<vmem>>, %arg1: memref<9x64x64xbf16, #tpu.memory_space<vmem>>, %arg2: memref<64x1xf32, #tpu.memory_space<vmem>>, %arg3: memref<64x32xbf16, #tpu.memory_space<vmem>>, %arg4: memref<64x32xbf16, #tpu.memory_space<vmem>>) attributes {dimension_semantics = [], scalar_prefetch = 0 : i64, scratch_operands = 0 : i64, tpu.core_type = #tpu.core_type<tc>} {
    %c0 = arith.constant 0 : index
    %c0_0 = arith.constant 0 : index
    %c0_1 = arith.constant 0 : index
    %0 = vector.load %arg1[%c0, %c0_0, %c0_1] : memref<9x64x64xbf16, #tpu.memory_space<vmem>>, vector<1x64x64xbf16>
    %1 = vector.shape_cast %0 : vector<1x64x64xbf16> to vector<64x64xbf16>
    %c0_2 = arith.constant 0 : index
    %c0_3 = arith.constant 0 : index
    %2 = vector.load %arg0[%c0_2, %c0_3] : memref<64x42xbf16, #tpu.memory_space<vmem>>, vector<64x32xbf16>
    %cst = arith.constant dense<0.000000e+00> : vector<64x32xf32>
    %3 = tpu.matmul %1, %2, %cst {dimension_numbers = #tpu.dot_dimension_numbers<[1], [0], [0], [1], [0, 0, 1, 1], [], []>} : vector<64x64xbf16>, vector<64x32xbf16>, vector<64x32xf32> -> vector<64x32xf32>
    %c1 = arith.constant 1 : index
    %c0_4 = arith.constant 0 : index
    %c0_5 = arith.constant 0 : index
    %4 = vector.load %arg1[%c1, %c0_4, %c0_5] : memref<9x64x64xbf16, #tpu.memory_space<vmem>>, vector<1x64x64xbf16>
    %5 = vector.shape_cast %4 : vector<1x64x64xbf16> to vector<64x64xbf16>
    %c0_6 = arith.constant 0 : index
    %c1_7 = arith.constant 1 : index
    %6 = vector.load %arg0[%c0_6, %c1_7] : memref<64x42xbf16, #tpu.memory_space<vmem>>, vector<64x32xbf16>
    %cst_8 = arith.constant dense<0.000000e+00> : vector<64x32xf32>
    %7 = tpu.matmul %5, %6, %cst_8 {dimension_numbers = #tpu.dot_dimension_numbers<[1], [0], [0], [1], [0, 0, 1, 1], [], []>} : vector<64x64xbf16>, vector<64x32xbf16>, vector<64x32xf32> -> vector<64x32xf32>
    %8 = arith.addf %3, %7 : vector<64x32xf32>
    %c2 = arith.constant 2 : index
    %c0_9 = arith.constant 0 : index
    %c0_10 = arith.constant 0 : index
    %9 = vector.load %arg1[%c2, %c0_9, %c0_10] : memref<9x64x64xbf16, #tpu.memory_space<vmem>>, vector<1x64x64xbf16>
    %10 = vector.shape_cast %9 : vector<1x64x64xbf16> to vector<64x64xbf16>
    %c0_11 = arith.constant 0 : index
    %c2_12 = arith.constant 2 : index
    %11 = vector.load %arg0[%c0_11, %c2_12] : memref<64x42xbf16, #tpu.memory_space<vmem>>, vector<64x32xbf16>
    %cst_13 = arith.constant dense<0.000000e+00> : vector<64x32xf32>
    %12 = tpu.matmul %10, %11, %cst_13 {dimension_numbers = #tpu.dot_dimension_numbers<[1], [0], [0], [1], [0, 0, 1, 1], [], []>} : vector<64x64xbf16>, vector<64x32xbf16>, vector<64x32xf32> -> vector<64x32xf32>
    %13 = arith.addf %8, %12 : vector<64x32xf32>
    %c3 = arith.constant 3 : index
    %c0_14 = arith.constant 0 : index
    %c0_15 = arith.constant 0 : index
    %14 = vector.load %arg1[%c3, %c0_14, %c0_15] : memref<9x64x64xbf16, #tpu.memory_space<vmem>>, vector<1x64x64xbf16>
    %15 = vector.shape_cast %14 : vector<1x64x64xbf16> to vector<64x64xbf16>
    %c0_16 = arith.constant 0 : index
    %c4 = arith.constant 4 : index
    %16 = vector.load %arg0[%c0_16, %c4] : memref<64x42xbf16, #tpu.memory_space<vmem>>, vector<64x32xbf16>
    %cst_17 = arith.constant dense<0.000000e+00> : vector<64x32xf32>
    %17 = tpu.matmul %15, %16, %cst_17 {dimension_numbers = #tpu.dot_dimension_numbers<[1], [0], [0], [1], [0, 0, 1, 1], [], []>} : vector<64x64xbf16>, vector<64x32xbf16>, vector<64x32xf32> -> vector<64x32xf32>
    %18 = arith.addf %13, %17 : vector<64x32xf32>
    %c4_18 = arith.constant 4 : index
    %c0_19 = arith.constant 0 : index
    %c0_20 = arith.constant 0 : index
    %19 = vector.load %arg1[%c4_18, %c0_19, %c0_20] : memref<9x64x64xbf16, #tpu.memory_space<vmem>>, vector<1x64x64xbf16>
    %20 = vector.shape_cast %19 : vector<1x64x64xbf16> to vector<64x64xbf16>
    %c0_21 = arith.constant 0 : index
    %c5 = arith.constant 5 : index
    %21 = vector.load %arg0[%c0_21, %c5] : memref<64x42xbf16, #tpu.memory_space<vmem>>, vector<64x32xbf16>
    %cst_22 = arith.constant dense<0.000000e+00> : vector<64x32xf32>
    %22 = tpu.matmul %20, %21, %cst_22 {dimension_numbers = #tpu.dot_dimension_numbers<[1], [0], [0], [1], [0, 0, 1, 1], [], []>} : vector<64x64xbf16>, vector<64x32xbf16>, vector<64x32xf32> -> vector<64x32xf32>
    %23 = arith.addf %18, %22 : vector<64x32xf32>
    %c5_23 = arith.constant 5 : index
    %c0_24 = arith.constant 0 : index
    %c0_25 = arith.constant 0 : index
    %24 = vector.load %arg1[%c5_23, %c0_24, %c0_25] : memref<9x64x64xbf16, #tpu.memory_space<vmem>>, vector<1x64x64xbf16>
    %25 = vector.shape_cast %24 : vector<1x64x64xbf16> to vector<64x64xbf16>
    %c0_26 = arith.constant 0 : index
    %c6 = arith.constant 6 : index
    %26 = vector.load %arg0[%c0_26, %c6] : memref<64x42xbf16, #tpu.memory_space<vmem>>, vector<64x32xbf16>
    %cst_27 = arith.constant dense<0.000000e+00> : vector<64x32xf32>
    %27 = tpu.matmul %25, %26, %cst_27 {dimension_numbers = #tpu.dot_dimension_numbers<[1], [0], [0], [1], [0, 0, 1, 1], [], []>} : vector<64x64xbf16>, vector<64x32xbf16>, vector<64x32xf32> -> vector<64x32xf32>
    %28 = arith.addf %23, %27 : vector<64x32xf32>
    %c6_28 = arith.constant 6 : index
    %c0_29 = arith.constant 0 : index
    %c0_30 = arith.constant 0 : index
    %29 = vector.load %arg1[%c6_28, %c0_29, %c0_30] : memref<9x64x64xbf16, #tpu.memory_space<vmem>>, vector<1x64x64xbf16>
    %30 = vector.shape_cast %29 : vector<1x64x64xbf16> to vector<64x64xbf16>
    %c0_31 = arith.constant 0 : index
    %c8 = arith.constant 8 : index
    %31 = vector.load %arg0[%c0_31, %c8] : memref<64x42xbf16, #tpu.memory_space<vmem>>, vector<64x32xbf16>
    %cst_32 = arith.constant dense<0.000000e+00> : vector<64x32xf32>
    %32 = tpu.matmul %30, %31, %cst_32 {dimension_numbers = #tpu.dot_dimension_numbers<[1], [0], [0], [1], [0, 0, 1, 1], [], []>} : vector<64x64xbf16>, vector<64x32xbf16>, vector<64x32xf32> -> vector<64x32xf32>
    %33 = arith.addf %28, %32 : vector<64x32xf32>
    %c7 = arith.constant 7 : index
    %c0_33 = arith.constant 0 : index
    %c0_34 = arith.constant 0 : index
    %34 = vector.load %arg1[%c7, %c0_33, %c0_34] : memref<9x64x64xbf16, #tpu.memory_space<vmem>>, vector<1x64x64xbf16>
    %35 = vector.shape_cast %34 : vector<1x64x64xbf16> to vector<64x64xbf16>
    %c0_35 = arith.constant 0 : index
    %c9 = arith.constant 9 : index
    %36 = vector.load %arg0[%c0_35, %c9] : memref<64x42xbf16, #tpu.memory_space<vmem>>, vector<64x32xbf16>
    %cst_36 = arith.constant dense<0.000000e+00> : vector<64x32xf32>
    %37 = tpu.matmul %35, %36, %cst_36 {dimension_numbers = #tpu.dot_dimension_numbers<[1], [0], [0], [1], [0, 0, 1, 1], [], []>} : vector<64x64xbf16>, vector<64x32xbf16>, vector<64x32xf32> -> vector<64x32xf32>
    %38 = arith.addf %33, %37 : vector<64x32xf32>
    %c8_37 = arith.constant 8 : index
    %c0_38 = arith.constant 0 : index
    %c0_39 = arith.constant 0 : index
    %39 = vector.load %arg1[%c8_37, %c0_38, %c0_39] : memref<9x64x64xbf16, #tpu.memory_space<vmem>>, vector<1x64x64xbf16>
    %40 = vector.shape_cast %39 : vector<1x64x64xbf16> to vector<64x64xbf16>
    %c0_40 = arith.constant 0 : index
    %c10 = arith.constant 10 : index
    %41 = vector.load %arg0[%c0_40, %c10] : memref<64x42xbf16, #tpu.memory_space<vmem>>, vector<64x32xbf16>
    %cst_41 = arith.constant dense<0.000000e+00> : vector<64x32xf32>
    %42 = tpu.matmul %40, %41, %cst_41 {dimension_numbers = #tpu.dot_dimension_numbers<[1], [0], [0], [1], [0, 0, 1, 1], [], []>} : vector<64x64xbf16>, vector<64x32xbf16>, vector<64x32xf32> -> vector<64x32xf32>
    %43 = arith.addf %38, %42 : vector<64x32xf32>
    %c0_42 = arith.constant 0 : index
    %c0_43 = arith.constant 0 : index
    %44 = vector.load %arg2[%c0_42, %c0_43] : memref<64x1xf32, #tpu.memory_space<vmem>>, vector<64x1xf32>
    %45 = vector.broadcast %44 : vector<64x1xf32> to vector<64x32xf32>
    %46 = arith.addf %43, %45 : vector<64x32xf32>
    %c0_44 = arith.constant 0 : index
    %c0_45 = arith.constant 0 : index
    %47 = vector.load %arg3[%c0_44, %c0_45] : memref<64x32xbf16, #tpu.memory_space<vmem>>, vector<64x32xbf16>
    %48 = arith.extf %47 : vector<64x32xbf16> to vector<64x32xf32>
    %49 = arith.addf %46, %48 : vector<64x32xf32>
    %cst_46 = arith.constant 0.000000e+00 : f32
    %50 = vector.broadcast %cst_46 : f32 to vector<64x32xf32>
    %51 = arith.maximumf %49, %50 : vector<64x32xf32>
    %52 = arith.truncf %51 : vector<64x32xf32> to vector<64x32xbf16>
    %c0_47 = arith.constant 0 : index
    %c0_48 = arith.constant 0 : index
    %53 = vector.load %arg4[%c0_47, %c0_48] : memref<64x32xbf16, #tpu.memory_space<vmem>>, vector<64x32xbf16>
    tpu.vector_store %arg4[%c0_47, %c0_48], %52 {strides = array<i32>} : memref<64x32xbf16, #tpu.memory_space<vmem>>, vector<64x32xbf16>,
    return
  }
}

module attributes {stable_mosaic.version = 11 : i64} {
  func.func @_fused_block_kernel(%arg0: memref<64x42xbf16, #tpu.memory_space<vmem>>, %arg1: memref<9x64x64xbf16, #tpu.memory_space<vmem>>, %arg2: memref<64x1xf32, #tpu.memory_space<vmem>>, %arg3: memref<9x64x64xbf16, #tpu.memory_space<vmem>>, %arg4: memref<64x1xf32, #tpu.memory_space<vmem>>, %arg5: memref<1x32xf32, #tpu.memory_space<vmem>>, %arg6: memref<64x42xbf16, #tpu.memory_space<vmem>>, %arg7: memref<64x42xbf16, #tpu.memory_space<vmem>>) attributes {dimension_semantics = [], scalar_prefetch = 0 : i64, scratch_operands = 1 : i64, tpu.core_type = #tpu.core_type<tc>} {
    %c0 = arith.constant 0 : index
    %c0_0 = arith.constant 0 : index
    %0 = vector.load %arg5[%c0, %c0_0] : memref<1x32xf32, #tpu.memory_space<vmem>>, vector<1x32xf32>
    %c0_1 = arith.constant 0 : index
    %c0_2 = arith.constant 0 : index
    %c0_3 = arith.constant 0 : index
    %1 = vector.load %arg1[%c0_1, %c0_2, %c0_3] : memref<9x64x64xbf16, #tpu.memory_space<vmem>>, vector<1x64x64xbf16>
    %2 = vector.shape_cast %1 : vector<1x64x64xbf16> to vector<64x64xbf16>
    %c0_4 = arith.constant 0 : index
    %c0_5 = arith.constant 0 : index
    %3 = vector.load %arg0[%c0_4, %c0_5] : memref<64x42xbf16, #tpu.memory_space<vmem>>, vector<64x32xbf16>
    %cst = arith.constant dense<0.000000e+00> : vector<64x32xf32>
    %4 = tpu.matmul %2, %3, %cst {dimension_numbers = #tpu.dot_dimension_numbers<[1], [0], [0], [1], [0, 0, 1, 1], [], []>} : vector<64x64xbf16>, vector<64x32xbf16>, vector<64x32xf32> -> vector<64x32xf32>
    %c1 = arith.constant 1 : index
    %c0_6 = arith.constant 0 : index
    %c0_7 = arith.constant 0 : index
    %5 = vector.load %arg1[%c1, %c0_6, %c0_7] : memref<9x64x64xbf16, #tpu.memory_space<vmem>>, vector<1x64x64xbf16>
    %6 = vector.shape_cast %5 : vector<1x64x64xbf16> to vector<64x64xbf16>
    %c0_8 = arith.constant 0 : index
    %c1_9 = arith.constant 1 : index
    %7 = vector.load %arg0[%c0_8, %c1_9] : memref<64x42xbf16, #tpu.memory_space<vmem>>, vector<64x32xbf16>
    %cst_10 = arith.constant dense<0.000000e+00> : vector<64x32xf32>
    %8 = tpu.matmul %6, %7, %cst_10 {dimension_numbers = #tpu.dot_dimension_numbers<[1], [0], [0], [1], [0, 0, 1, 1], [], []>} : vector<64x64xbf16>, vector<64x32xbf16>, vector<64x32xf32> -> vector<64x32xf32>
    %9 = arith.addf %4, %8 : vector<64x32xf32>
    %c2 = arith.constant 2 : index
    %c0_11 = arith.constant 0 : index
    %c0_12 = arith.constant 0 : index
    %10 = vector.load %arg1[%c2, %c0_11, %c0_12] : memref<9x64x64xbf16, #tpu.memory_space<vmem>>, vector<1x64x64xbf16>
    %11 = vector.shape_cast %10 : vector<1x64x64xbf16> to vector<64x64xbf16>
    %c0_13 = arith.constant 0 : index
    %c2_14 = arith.constant 2 : index
    %12 = vector.load %arg0[%c0_13, %c2_14] : memref<64x42xbf16, #tpu.memory_space<vmem>>, vector<64x32xbf16>
    %cst_15 = arith.constant dense<0.000000e+00> : vector<64x32xf32>
    %13 = tpu.matmul %11, %12, %cst_15 {dimension_numbers = #tpu.dot_dimension_numbers<[1], [0], [0], [1], [0, 0, 1, 1], [], []>} : vector<64x64xbf16>, vector<64x32xbf16>, vector<64x32xf32> -> vector<64x32xf32>
    %14 = arith.addf %9, %13 : vector<64x32xf32>
    %c3 = arith.constant 3 : index
    %c0_16 = arith.constant 0 : index
    %c0_17 = arith.constant 0 : index
    %15 = vector.load %arg1[%c3, %c0_16, %c0_17] : memref<9x64x64xbf16, #tpu.memory_space<vmem>>, vector<1x64x64xbf16>
    %16 = vector.shape_cast %15 : vector<1x64x64xbf16> to vector<64x64xbf16>
    %c0_18 = arith.constant 0 : index
    %c4 = arith.constant 4 : index
    %17 = vector.load %arg0[%c0_18, %c4] : memref<64x42xbf16, #tpu.memory_space<vmem>>, vector<64x32xbf16>
    %cst_19 = arith.constant dense<0.000000e+00> : vector<64x32xf32>
    %18 = tpu.matmul %16, %17, %cst_19 {dimension_numbers = #tpu.dot_dimension_numbers<[1], [0], [0], [1], [0, 0, 1, 1], [], []>} : vector<64x64xbf16>, vector<64x32xbf16>, vector<64x32xf32> -> vector<64x32xf32>
    %19 = arith.addf %14, %18 : vector<64x32xf32>
    %c4_20 = arith.constant 4 : index
    %c0_21 = arith.constant 0 : index
    %c0_22 = arith.constant 0 : index
    %20 = vector.load %arg1[%c4_20, %c0_21, %c0_22] : memref<9x64x64xbf16, #tpu.memory_space<vmem>>, vector<1x64x64xbf16>
    %21 = vector.shape_cast %20 : vector<1x64x64xbf16> to vector<64x64xbf16>
    %c0_23 = arith.constant 0 : index
    %c5 = arith.constant 5 : index
    %22 = vector.load %arg0[%c0_23, %c5] : memref<64x42xbf16, #tpu.memory_space<vmem>>, vector<64x32xbf16>
    %cst_24 = arith.constant dense<0.000000e+00> : vector<64x32xf32>
    %23 = tpu.matmul %21, %22, %cst_24 {dimension_numbers = #tpu.dot_dimension_numbers<[1], [0], [0], [1], [0, 0, 1, 1], [], []>} : vector<64x64xbf16>, vector<64x32xbf16>, vector<64x32xf32> -> vector<64x32xf32>
    %24 = arith.addf %19, %23 : vector<64x32xf32>
    %c5_25 = arith.constant 5 : index
    %c0_26 = arith.constant 0 : index
    %c0_27 = arith.constant 0 : index
    %25 = vector.load %arg1[%c5_25, %c0_26, %c0_27] : memref<9x64x64xbf16, #tpu.memory_space<vmem>>, vector<1x64x64xbf16>
    %26 = vector.shape_cast %25 : vector<1x64x64xbf16> to vector<64x64xbf16>
    %c0_28 = arith.constant 0 : index
    %c6 = arith.constant 6 : index
    %27 = vector.load %arg0[%c0_28, %c6] : memref<64x42xbf16, #tpu.memory_space<vmem>>, vector<64x32xbf16>
    %cst_29 = arith.constant dense<0.000000e+00> : vector<64x32xf32>
    %28 = tpu.matmul %26, %27, %cst_29 {dimension_numbers = #tpu.dot_dimension_numbers<[1], [0], [0], [1], [0, 0, 1, 1], [], []>} : vector<64x64xbf16>, vector<64x32xbf16>, vector<64x32xf32> -> vector<64x32xf32>
    %29 = arith.addf %24, %28 : vector<64x32xf32>
    %c6_30 = arith.constant 6 : index
    %c0_31 = arith.constant 0 : index
    %c0_32 = arith.constant 0 : index
    %30 = vector.load %arg1[%c6_30, %c0_31, %c0_32] : memref<9x64x64xbf16, #tpu.memory_space<vmem>>, vector<1x64x64xbf16>
    %31 = vector.shape_cast %30 : vector<1x64x64xbf16> to vector<64x64xbf16>
    %c0_33 = arith.constant 0 : index
    %c8 = arith.constant 8 : index
    %32 = vector.load %arg0[%c0_33, %c8] : memref<64x42xbf16, #tpu.memory_space<vmem>>, vector<64x32xbf16>
    %cst_34 = arith.constant dense<0.000000e+00> : vector<64x32xf32>
    %33 = tpu.matmul %31, %32, %cst_34 {dimension_numbers = #tpu.dot_dimension_numbers<[1], [0], [0], [1], [0, 0, 1, 1], [], []>} : vector<64x64xbf16>, vector<64x32xbf16>, vector<64x32xf32> -> vector<64x32xf32>
    %34 = arith.addf %29, %33 : vector<64x32xf32>
    %c7 = arith.constant 7 : index
    %c0_35 = arith.constant 0 : index
    %c0_36 = arith.constant 0 : index
    %35 = vector.load %arg1[%c7, %c0_35, %c0_36] : memref<9x64x64xbf16, #tpu.memory_space<vmem>>, vector<1x64x64xbf16>
    %36 = vector.shape_cast %35 : vector<1x64x64xbf16> to vector<64x64xbf16>
    %c0_37 = arith.constant 0 : index
    %c9 = arith.constant 9 : index
    %37 = vector.load %arg0[%c0_37, %c9] : memref<64x42xbf16, #tpu.memory_space<vmem>>, vector<64x32xbf16>
    %cst_38 = arith.constant dense<0.000000e+00> : vector<64x32xf32>
    %38 = tpu.matmul %36, %37, %cst_38 {dimension_numbers = #tpu.dot_dimension_numbers<[1], [0], [0], [1], [0, 0, 1, 1], [], []>} : vector<64x64xbf16>, vector<64x32xbf16>, vector<64x32xf32> -> vector<64x32xf32>
    %39 = arith.addf %34, %38 : vector<64x32xf32>
    %c8_39 = arith.constant 8 : index
    %c0_40 = arith.constant 0 : index
    %c0_41 = arith.constant 0 : index
    %40 = vector.load %arg1[%c8_39, %c0_40, %c0_41] : memref<9x64x64xbf16, #tpu.memory_space<vmem>>, vector<1x64x64xbf16>
    %41 = vector.shape_cast %40 : vector<1x64x64xbf16> to vector<64x64xbf16>
    %c0_42 = arith.constant 0 : index
    %c10 = arith.constant 10 : index
    %42 = vector.load %arg0[%c0_42, %c10] : memref<64x42xbf16, #tpu.memory_space<vmem>>, vector<64x32xbf16>
    %cst_43 = arith.constant dense<0.000000e+00> : vector<64x32xf32>
    %43 = tpu.matmul %41, %42, %cst_43 {dimension_numbers = #tpu.dot_dimension_numbers<[1], [0], [0], [1], [0, 0, 1, 1], [], []>} : vector<64x64xbf16>, vector<64x32xbf16>, vector<64x32xf32> -> vector<64x32xf32>
    %44 = arith.addf %39, %43 : vector<64x32xf32>
    %c0_44 = arith.constant 0 : index
    %c0_45 = arith.constant 0 : index
    %45 = vector.load %arg2[%c0_44, %c0_45] : memref<64x1xf32, #tpu.memory_space<vmem>>, vector<64x1xf32>
    %46 = vector.broadcast %45 : vector<64x1xf32> to vector<64x32xf32>
    %47 = arith.addf %44, %46 : vector<64x32xf32>
    %cst_46 = arith.constant 0.000000e+00 : f32
    %48 = vector.broadcast %cst_46 : f32 to vector<64x32xf32>
    %49 = arith.maximumf %47, %48 : vector<64x32xf32>
    %50 = vector.broadcast %0 : vector<1x32xf32> to vector<64x32xf32>
    %51 = arith.mulf %49, %50 : vector<64x32xf32>
    %cst_47 = arith.constant 0.000000e+00 : bf16
    %52 = vector.broadcast %cst_47 : bf16 to vector<64x42xbf16>
    %c0_48 = arith.constant 0 : index
    %c0_49 = arith.constant 0 : index
    %53 = vector.load %arg7[%c0_48, %c0_49] : memref<64x42xbf16, #tpu.memory_space<vmem>>, vector<64x42xbf16>
    tpu.vector_store %arg7[%c0_48, %c0_49], %52 {strides = array<i32>} : memref<64x42xbf16, #tpu.memory_space<vmem>>, vector<64x42xbf16>,
    %54 = arith.truncf %51 : vector<64x32xf32> to vector<64x32xbf16>
    %c0_50 = arith.constant 0 : index
    %c5_51 = arith.constant 5 : index
    %55 = vector.load %arg7[%c0_50, %c5_51] : memref<64x42xbf16, #tpu.memory_space<vmem>>, vector<64x32xbf16>
    tpu.vector_store %arg7[%c0_50, %c5_51], %54 {strides = array<i32>} : memref<64x42xbf16, #tpu.memory_space<vmem>>, vector<64x32xbf16>,
    %c0_52 = arith.constant 0 : index
    %c0_53 = arith.constant 0 : index
    %c0_54 = arith.constant 0 : index
    %56 = vector.load %arg3[%c0_52, %c0_53, %c0_54] : memref<9x64x64xbf16, #tpu.memory_space<vmem>>, vector<1x64x64xbf16>
    %57 = vector.shape_cast %56 : vector<1x64x64xbf16> to vector<64x64xbf16>
    %c0_55 = arith.constant 0 : index
    %c0_56 = arith.constant 0 : index
    %58 = vector.load %arg7[%c0_55, %c0_56] : memref<64x42xbf16, #tpu.memory_space<vmem>>, vector<64x32xbf16>
    %cst_57 = arith.constant dense<0.000000e+00> : vector<64x32xf32>
    %59 = tpu.matmul %57, %58, %cst_57 {dimension_numbers = #tpu.dot_dimension_numbers<[1], [0], [0], [1], [0, 0, 1, 1], [], []>} : vector<64x64xbf16>, vector<64x32xbf16>, vector<64x32xf32> -> vector<64x32xf32>
    %c1_58 = arith.constant 1 : index
    %c0_59 = arith.constant 0 : index
    %c0_60 = arith.constant 0 : index
    %60 = vector.load %arg3[%c1_58, %c0_59, %c0_60] : memref<9x64x64xbf16, #tpu.memory_space<vmem>>, vector<1x64x64xbf16>
    %61 = vector.shape_cast %60 : vector<1x64x64xbf16> to vector<64x64xbf16>
    %c0_61 = arith.constant 0 : index
    %c1_62 = arith.constant 1 : index
    %62 = vector.load %arg7[%c0_61, %c1_62] : memref<64x42xbf16, #tpu.memory_space<vmem>>, vector<64x32xbf16>
    %cst_63 = arith.constant dense<0.000000e+00> : vector<64x32xf32>
    %63 = tpu.matmul %61, %62, %cst_63 {dimension_numbers = #tpu.dot_dimension_numbers<[1], [0], [0], [1], [0, 0, 1, 1], [], []>} : vector<64x64xbf16>, vector<64x32xbf16>, vector<64x32xf32> -> vector<64x32xf32>
    %64 = arith.addf %59, %63 : vector<64x32xf32>
    %c2_64 = arith.constant 2 : index
    %c0_65 = arith.constant 0 : index
    %c0_66 = arith.constant 0 : index
    %65 = vector.load %arg3[%c2_64, %c0_65, %c0_66] : memref<9x64x64xbf16, #tpu.memory_space<vmem>>, vector<1x64x64xbf16>
    %66 = vector.shape_cast %65 : vector<1x64x64xbf16> to vector<64x64xbf16>
    %c0_67 = arith.constant 0 : index
    %c2_68 = arith.constant 2 : index
    %67 = vector.load %arg7[%c0_67, %c2_68] : memref<64x42xbf16, #tpu.memory_space<vmem>>, vector<64x32xbf16>
    %cst_69 = arith.constant dense<0.000000e+00> : vector<64x32xf32>
    %68 = tpu.matmul %66, %67, %cst_69 {dimension_numbers = #tpu.dot_dimension_numbers<[1], [0], [0], [1], [0, 0, 1, 1], [], []>} : vector<64x64xbf16>, vector<64x32xbf16>, vector<64x32xf32> -> vector<64x32xf32>
    %69 = arith.addf %64, %68 : vector<64x32xf32>
    %c3_70 = arith.constant 3 : index
    %c0_71 = arith.constant 0 : index
    %c0_72 = arith.constant 0 : index
    %70 = vector.load %arg3[%c3_70, %c0_71, %c0_72] : memref<9x64x64xbf16, #tpu.memory_space<vmem>>, vector<1x64x64xbf16>
    %71 = vector.shape_cast %70 : vector<1x64x64xbf16> to vector<64x64xbf16>
    %c0_73 = arith.constant 0 : index
    %c4_74 = arith.constant 4 : index
    %72 = vector.load %arg7[%c0_73, %c4_74] : memref<64x42xbf16, #tpu.memory_space<vmem>>, vector<64x32xbf16>
    %cst_75 = arith.constant dense<0.000000e+00> : vector<64x32xf32>
    %73 = tpu.matmul %71, %72, %cst_75 {dimension_numbers = #tpu.dot_dimension_numbers<[1], [0], [0], [1], [0, 0, 1, 1], [], []>} : vector<64x64xbf16>, vector<64x32xbf16>, vector<64x32xf32> -> vector<64x32xf32>
    %74 = arith.addf %69, %73 : vector<64x32xf32>
    %c4_76 = arith.constant 4 : index
    %c0_77 = arith.constant 0 : index
    %c0_78 = arith.constant 0 : index
    %75 = vector.load %arg3[%c4_76, %c0_77, %c0_78] : memref<9x64x64xbf16, #tpu.memory_space<vmem>>, vector<1x64x64xbf16>
    %76 = vector.shape_cast %75 : vector<1x64x64xbf16> to vector<64x64xbf16>
    %c0_79 = arith.constant 0 : index
    %c5_80 = arith.constant 5 : index
    %77 = vector.load %arg7[%c0_79, %c5_80] : memref<64x42xbf16, #tpu.memory_space<vmem>>, vector<64x32xbf16>
    %cst_81 = arith.constant dense<0.000000e+00> : vector<64x32xf32>
    %78 = tpu.matmul %76, %77, %cst_81 {dimension_numbers = #tpu.dot_dimension_numbers<[1], [0], [0], [1], [0, 0, 1, 1], [], []>} : vector<64x64xbf16>, vector<64x32xbf16>, vector<64x32xf32> -> vector<64x32xf32>
    %79 = arith.addf %74, %78 : vector<64x32xf32>
    %c5_82 = arith.constant 5 : index
    %c0_83 = arith.constant 0 : index
    %c0_84 = arith.constant 0 : index
    %80 = vector.load %arg3[%c5_82, %c0_83, %c0_84] : memref<9x64x64xbf16, #tpu.memory_space<vmem>>, vector<1x64x64xbf16>
    %81 = vector.shape_cast %80 : vector<1x64x64xbf16> to vector<64x64xbf16>
    %c0_85 = arith.constant 0 : index
    %c6_86 = arith.constant 6 : index
    %82 = vector.load %arg7[%c0_85, %c6_86] : memref<64x42xbf16, #tpu.memory_space<vmem>>, vector<64x32xbf16>
    %cst_87 = arith.constant dense<0.000000e+00> : vector<64x32xf32>
    %83 = tpu.matmul %81, %82, %cst_87 {dimension_numbers = #tpu.dot_dimension_numbers<[1], [0], [0], [1], [0, 0, 1, 1], [], []>} : vector<64x64xbf16>, vector<64x32xbf16>, vector<64x32xf32> -> vector<64x32xf32>
    %84 = arith.addf %79, %83 : vector<64x32xf32>
    %c6_88 = arith.constant 6 : index
    %c0_89 = arith.constant 0 : index
    %c0_90 = arith.constant 0 : index
    %85 = vector.load %arg3[%c6_88, %c0_89, %c0_90] : memref<9x64x64xbf16, #tpu.memory_space<vmem>>, vector<1x64x64xbf16>
    %86 = vector.shape_cast %85 : vector<1x64x64xbf16> to vector<64x64xbf16>
    %c0_91 = arith.constant 0 : index
    %c8_92 = arith.constant 8 : index
    %87 = vector.load %arg7[%c0_91, %c8_92] : memref<64x42xbf16, #tpu.memory_space<vmem>>, vector<64x32xbf16>
    %cst_93 = arith.constant dense<0.000000e+00> : vector<64x32xf32>
    %88 = tpu.matmul %86, %87, %cst_93 {dimension_numbers = #tpu.dot_dimension_numbers<[1], [0], [0], [1], [0, 0, 1, 1], [], []>} : vector<64x64xbf16>, vector<64x32xbf16>, vector<64x32xf32> -> vector<64x32xf32>
    %89 = arith.addf %84, %88 : vector<64x32xf32>
    %c7_94 = arith.constant 7 : index
    %c0_95 = arith.constant 0 : index
    %c0_96 = arith.constant 0 : index
    %90 = vector.load %arg3[%c7_94, %c0_95, %c0_96] : memref<9x64x64xbf16, #tpu.memory_space<vmem>>, vector<1x64x64xbf16>
    %91 = vector.shape_cast %90 : vector<1x64x64xbf16> to vector<64x64xbf16>
    %c0_97 = arith.constant 0 : index
    %c9_98 = arith.constant 9 : index
    %92 = vector.load %arg7[%c0_97, %c9_98] : memref<64x42xbf16, #tpu.memory_space<vmem>>, vector<64x32xbf16>
    %cst_99 = arith.constant dense<0.000000e+00> : vector<64x32xf32>
    %93 = tpu.matmul %91, %92, %cst_99 {dimension_numbers = #tpu.dot_dimension_numbers<[1], [0], [0], [1], [0, 0, 1, 1], [], []>} : vector<64x64xbf16>, vector<64x32xbf16>, vector<64x32xf32> -> vector<64x32xf32>
    %94 = arith.addf %89, %93 : vector<64x32xf32>
    %c8_100 = arith.constant 8 : index
    %c0_101 = arith.constant 0 : index
    %c0_102 = arith.constant 0 : index
    %95 = vector.load %arg3[%c8_100, %c0_101, %c0_102] : memref<9x64x64xbf16, #tpu.memory_space<vmem>>, vector<1x64x64xbf16>
    %96 = vector.shape_cast %95 : vector<1x64x64xbf16> to vector<64x64xbf16>
    %c0_103 = arith.constant 0 : index
    %c10_104 = arith.constant 10 : index
    %97 = vector.load %arg7[%c0_103, %c10_104] : memref<64x42xbf16, #tpu.memory_space<vmem>>, vector<64x32xbf16>
    %cst_105 = arith.constant dense<0.000000e+00> : vector<64x32xf32>
    %98 = tpu.matmul %96, %97, %cst_105 {dimension_numbers = #tpu.dot_dimension_numbers<[1], [0], [0], [1], [0, 0, 1, 1], [], []>} : vector<64x64xbf16>, vector<64x32xbf16>, vector<64x32xf32> -> vector<64x32xf32>
    %99 = arith.addf %94, %98 : vector<64x32xf32>
    %c0_106 = arith.constant 0 : index
    %c0_107 = arith.constant 0 : index
    %100 = vector.load %arg4[%c0_106, %c0_107] : memref<64x1xf32, #tpu.memory_space<vmem>>, vector<64x1xf32>
    %101 = vector.broadcast %100 : vector<64x1xf32> to vector<64x32xf32>
    %102 = arith.addf %99, %101 : vector<64x32xf32>
    %c0_108 = arith.constant 0 : index
    %c5_109 = arith.constant 5 : index
    %103 = vector.load %arg0[%c0_108, %c5_109] : memref<64x42xbf16, #tpu.memory_space<vmem>>, vector<64x32xbf16>
    %104 = arith.extf %103 : vector<64x32xbf16> to vector<64x32xf32>
    %105 = arith.addf %102, %104 : vector<64x32xf32>
    %cst_110 = arith.constant 0.000000e+00 : f32
    %106 = vector.broadcast %cst_110 : f32 to vector<64x32xf32>
    %107 = arith.maximumf %105, %106 : vector<64x32xf32>
    %108 = vector.broadcast %0 : vector<1x32xf32> to vector<64x32xf32>
    %109 = arith.mulf %107, %108 : vector<64x32xf32>
    %cst_111 = arith.constant 0.000000e+00 : bf16
    %110 = vector.broadcast %cst_111 : bf16 to vector<64x42xbf16>
    %c0_112 = arith.constant 0 : index
    %c0_113 = arith.constant 0 : index
    %111 = vector.load %arg6[%c0_112, %c0_113] : memref<64x42xbf16, #tpu.memory_space<vmem>>, vector<64x42xbf16>
    tpu.vector_store %arg6[%c0_112, %c0_113], %110 {strides = array<i32>} : memref<64x42xbf16, #tpu.memory_space<vmem>>, vector<64x42xbf16>,
    %112 = arith.truncf %109 : vector<64x32xf32> to vector<64x32xbf16>
    %c0_114 = arith.constant 0 : index
    %c5_115 = arith.constant 5 : index
    %113 = vector.load %arg6[%c0_114, %c5_115] : memref<64x42xbf16, #tpu.memory_space<vmem>>, vector<64x32xbf16>
    tpu.vector_store %arg6[%c0_114, %c5_115], %112 {strides = array<i32>} : memref<64x42xbf16, #tpu.memory_space<vmem>>, vector<64x32xbf16>,
    return
  }
}

module attributes {stable_mosaic.version = 11 : i64} {
  func.func @_pool_fc_kernel(%arg0: memref<64x2x4xbf16, #tpu.memory_space<vmem>>, %arg1: memref<10x64xf32, #tpu.memory_space<vmem>>, %arg2: memref<10x1xf32, #tpu.memory_space<vmem>>, %arg3: memref<10x2xf32, #tpu.memory_space<vmem>>) attributes {dimension_semantics = [], scalar_prefetch = 0 : i64, scratch_operands = 0 : i64, tpu.core_type = #tpu.core_type<tc>} {
    %c0 = arith.constant 0 : index
    %c0_0 = arith.constant 0 : index
    %c0_1 = arith.constant 0 : index
    %0 = vector.load %arg0[%c0, %c0_0, %c0_1] : memref<64x2x4xbf16, #tpu.memory_space<vmem>>, vector<64x2x4xbf16>
    %1 = arith.extf %0 : vector<64x2x4xbf16> to vector<64x2x4xf32>
    %cst = arith.constant dense<0.000000e+00> : vector<64x2xf32>
    %2 = vector.multi_reduction <add>, %1, %cst [2] : vector<64x2x4xf32> to vector<64x2xf32>
    %cst_2 = arith.constant 4.000000e+00 : f32
    %3 = vector.broadcast %cst_2 : f32 to vector<64x2xf32>
    %4 = arith.divf %2, %3 : vector<64x2xf32>
    %c0_3 = arith.constant 0 : index
    %c0_4 = arith.constant 0 : index
    %5 = vector.load %arg1[%c0_3, %c0_4] : memref<10x64xf32, #tpu.memory_space<vmem>>, vector<10x64xf32>
    %cst_5 = arith.constant dense<0.000000e+00> : vector<10x2xf32>
    %6 = tpu.matmul %5, %4, %cst_5 {dimension_numbers = #tpu.dot_dimension_numbers<[1], [0], [0], [1], [0, 0, 1, 1], [], []>} : vector<10x64xf32>, vector<64x2xf32>, vector<10x2xf32> -> vector<10x2xf32>
    %c0_6 = arith.constant 0 : index
    %c0_7 = arith.constant 0 : index
    %7 = vector.load %arg2[%c0_6, %c0_7] : memref<10x1xf32, #tpu.memory_space<vmem>>, vector<10x1xf32>
    %8 = vector.broadcast %7 : vector<10x1xf32> to vector<10x2xf32>
    %9 = arith.addf %6, %8 : vector<10x2xf32>
    %c0_8 = arith.constant 0 : index
    %c0_9 = arith.constant 0 : index
    %10 = vector.load %arg3[%c0_8, %c0_9] : memref<10x2xf32, #tpu.memory_space<vmem>>, vector<10x2xf32>
    tpu.vector_store %arg3[%c0_8, %c0_9], %9 {strides = array<i32>} : memref<10x2xf32, #tpu.memory_space<vmem>>, vector<10x2xf32>,
    return
  }
}

</mosaic_0001>

<bundles_post_ra>
// kernel: resnet_forward.32
= control target key start
LH: loop header
LB: loop body
LE: loop exit
PB: predicated region body
PF: predicated region fallthrough
CT: control target
= control target key end

     0   :  { %v1509_v2 = vmov 0   ;;  %s1510_s25 = smov 127   ;;  %s1512_s26 = smov 118   ;;  %vm49_vm0 = vcmask 1039360   ;;  %vm53_vm1 = vcmask 130048   ;;  %vm165_vm2 = vcmask 1031168   ;;  %s1766_s0 = inlined_call_operand.vmem [shape: bf16[16,222], index: 0, kind: input, shape index: {}]   ;;  %s1767_s1 = inlined_call_operand.vmem [shape: bf16[9,16,16], index: 1, kind: input, shape index: {}]   ;;  %s1768_s2 = inlined_call_operand.vmem [shape: f32[16,1], index: 2, kind: input, shape index: {}]   ;;  %s1769_s5 = inlined_call_operand.vmem [shape: f32[1,200], index: 5, kind: input, shape index: {}]   ;;  %s1770_s3 = inlined_call_operand.vmem [shape: bf16[9,16,16], index: 3, kind: input, shape index: {}]   ;;  %s1771_s4 = inlined_call_operand.vmem [shape: f32[16,1], index: 4, kind: input, shape index: {}]   ;;  %s1772_s6 = inlined_call_operand.vmem [shape: bf16[16,222], index: 6, kind: output, shape index: {}]  }
   0x1   :  { %v1557_v0 = vld [vmem:[%s1766_s0] sm:$0xff]  ;;  %v1562_v1 = vld [vmem:[%s1766_s0 + $0x8] sm:$0xff]  ;;  %89 = vmatprep.mubr.bf16.mxu0 %v1509_v2  ;;  %650 = vst [vmem:[#allocation2] sm:$0xff] %v1509_v2  ;;  %1477 = vset.pattern.permute.xlu0 %v1509_v2  ;;  %s1511_s0 = smov 126   ;;  %s1513_s27 = smov 117   ;;  %vm231_vm3 = vcmask 965632   ;;  %v636_v40 = vlaneseq }
   0x2   :  { %v1332_v3 = vcombine.low %v1557_v0, %v1562_v1  ;;  %1478 = vset.pattern.permute.xlu1 %v1509_v2  ;;  %725 = vmatprep.mubr.bf16.mxu1 %v1509_v2  ;;  %v1333_v4 = vcombine.high %v1557_v0, %v1562_v1  ;;  %s1514_s28 = smov 116   ;;  %s1515_s29 = smov 108   ;;  %v615_v5 = vld [vmem:[%s1768_s2] sm:$0xff]  ;;  %v616_v6 = vld [vmem:[%s1768_s2 + $0x8] sm:$0xff]  ;;  %v1493_v17 = vld [vmem:[%s1767_s1 + $0x10] sm:$0xff]   ;;  %vm297_vm4 = vcmask 957440  }
   0x3   :  { %s1516_s30 = smov 107   ;;  %s1517_s7 = smov 106   ;;  %v1491_v11 = vld [vmem:[%s1767_s1 + $0x8] sm:$0xff]   ;;  %v1492_v13 = vld [vmem:[%s1767_s1] sm:$0xff]   ;;  %v1494_v21 = vld [vmem:[%s1767_s1 + $0x18] sm:$0xff]   ;;  %vm363_vm5 = vcmask 949248  }
   0x4   :  { %45 = vrot.lane.b32.xlu0 %v1332_v3, %s1510_s25  ;;  %161 = vrot.lane.b32.xlu1 %v1332_v3, %s1511_s0  ;;  %v1495_v25 = vld [vmem:[%s1767_s1 + $0x20] sm:$0xff]   ;;  %vm429_vm6 = vcmask 883712   ;;  %v1496_v29 = vld [vmem:[%s1767_s1 + $0x28] sm:$0xff]   ;;  %vm495_vm7 = vcmask 875520   ;;  %vm561_vm8 = vcmask 867328   ;;  %v637_v41 = vshrl.u32 %v636_v40, 7 }
   0x5   :  { %v1497_v33 = vld [vmem:[%s1767_s1 + $0x30] sm:$0xff]   ;;  %v1498_v37 = vld [vmem:[%s1767_s1 + $0x38] sm:$0xff]   ;;  %v1499_v39 = vld [vmem:[%s1767_s1 + $0x40] sm:$0xff]   ;;  %vm651_vm9 = vcmask 769024   ;;  %s1518_s1 = smov 11   ;;  %vm665_vm10 = vcmask 1047640  }
   0x6   :  { %v638_v43 = vsub.s32 0, %v637_v41  ;;  %652 = vst.msk [vmem:[#allocation2 + $0x8] sm:$0xff] %vm651_vm9, %v1509_v2  ;;  %v24_v45 = vld [vmem:[%s1769_s5] sm:$0x3]  ;;  %v642_v46 = vsub.s32 1, %v637_v41  ;;  %vm661_vm11 = vcmask 89088  }
   0x7   :  { %vm667_vm12 = vcmask 678912   ;;  %vm1295_vm13 = vcmask 1043456   ;;  %vm1296_vm14 = vcmask 769028  }
   0x8   :  { %47 = vrot.lane.b32.xlu0 %v1333_v4, %s1510_s25  ;;  %163 = vrot.lane.b32.xlu1 %v1333_v4, %s1511_s0  ;;  %v1651_v52 = vrot.slane %v24_v45, %v638_v43  ;;  %v1653_v57 = vrot.slane %v24_v45, %v642_v46  ;;  %v1507_v46 = vld [vmem:[%s1770_s3 + $0x38] sm:$0xff]   ;;  %vm1297_vm15 = vmor %vm1296_vm14, %vm1295_vm13 }
   0x9   :  { %1298 = vst.msk [vmem:[%s1772_s6] sm:$0xff] %vm1297_vm15, %v1509_v2  ;;  %1299 = vst.msk [vmem:[%s1772_s6 + $0x8] sm:$0xff] %vm1297_vm15, %v1509_v2 }
   0xc   :  { %229 = vrot.lane.b32.xlu1 %v1333_v4, %s1512_s26  ;;  %227 = vrot.lane.b32.xlu0 %v1332_v3, %s1512_s26 }
  0x10   :  { %295 = vrot.lane.b32.xlu1 %v1333_v4, %s1513_s27  ;;  %293 = vrot.lane.b32.xlu0 %v1332_v3, %s1513_s27 }
  0x14   :  { %361 = vrot.lane.b32.xlu1 %v1333_v4, %s1514_s28  ;;  %359 = vrot.lane.b32.xlu0 %v1332_v3, %s1514_s28 }
  0x18   :  { %427 = vrot.lane.b32.xlu1 %v1333_v4, %s1515_s29  ;;  %425 = vrot.lane.b32.xlu0 %v1332_v3, %s1515_s29 }
  0x1c   :  { %493 = vrot.lane.b32.xlu1 %v1333_v4, %s1516_s30  ;;  %491 = vrot.lane.b32.xlu0 %v1332_v3, %s1516_s30 }
  0x20   :  { %559 = vrot.lane.b32.xlu1 %v1333_v4, %s1517_s7  ;;  %557 = vrot.lane.b32.xlu0 %v1332_v3, %s1517_s7 }
  0x24   :  { %619 = vperm.xlu0 %1477, %v615_v5   ;;  %624 = vperm.xlu1 %1478, %v616_v6  }
  0x76   :  { %v46_v7 = vpop.permute.xlu0 %45  ;;  %v162_v8 = vpop.permute.xlu1 %161 }
  0x7a   :  { %v48_v9 = vpop.permute.xlu0 %47  ;;  %v164_v12 = vpop.permute.xlu1 %163 }
  0x7b   :  { %57 = vmatprep.subr.bf16.mxu0 %v48_v9  ;;  %v50_v10 = vsel %vm49_vm0, %v46_v7, %v48_v9  ;;  %v166_v14 = vsel %vm165_vm2, %v162_v8, %v164_v12 }
  0x7c   :  { %58 = vmatpush1.bf16.msra.mxu0 %v50_v10 }
  0x7d   :  { %110 = vmatprep.subr.bf16.mxu0 %v1333_v4 }
  0x7e   :  { %v230_v15 = vpop.permute.xlu1 %229  ;;  %v228_v16 = vpop.permute.xlu0 %227 }
  0x7f   :  { %1334 = vmatmul.mubr.msk.bf16.vlgmr.msra.gmra.mrb[0].mxu0 %vm53_vm1, %v1491_v11  ;;  %v232_v18 = vsel %vm231_vm3, %v228_v16, %v230_v15  ;;  %v1242_v11 = vld [vmem:[%s1771_s4] sm:$0xff]  ;;  %v1263_v16 = vunpack.c.h.bf16 %v1562_v1 }
  0x80   :  { %111 = vmatpush1.bf16.msra.mxu0 %v1332_v3  ;;  %142 = vmatprep.mubr.bf16.mxu0 %v1509_v2 }
  0x81   :  { %172 = vmatprep.subr.bf16.mxu0 %v164_v12  ;;  %v1243_v12 = vld [vmem:[%s1771_s4 + $0x8] sm:$0xff] }
  0x82   :  { %v296_v19 = vpop.permute.xlu1 %295  ;;  %v294_v20 = vpop.permute.xlu0 %293 }
  0x83   :  { %v298_v22 = vsel %vm297_vm4, %v294_v20, %v296_v19 }
  0x86   :  { %v362_v23 = vpop.permute.xlu1 %361  ;;  %v360_v24 = vpop.permute.xlu0 %359 }
  0x87   :  { %v364_v26 = vsel %vm363_vm5, %v360_v24, %v362_v23 }
  0x8a   :  { %v428_v27 = vpop.permute.xlu1 %427  ;;  %v426_v28 = vpop.permute.xlu0 %425 }
  0x8b   :  { %1336 = vmatmul.mubr.msk.bf16.vlgmr.msra.gmra.mrb[0].mxu0 %vm53_vm1, %v1492_v13  ;;  %v430_v30 = vsel %vm429_vm6, %v426_v28, %v428_v27  ;;  %v1260_v13 = vunpack.c.l.bf16 %v1557_v0 }
  0x8c   :  { %173 = vmatpush1.bf16.msra.mxu0 %v166_v14  ;;  %204 = vmatprep.mubr.bf16.mxu0 %v1509_v2  ;;  %v1261_v14 = vunpack.c.h.bf16 %v1557_v0 }
  0x8d   :  { %238 = vmatprep.subr.bf16.mxu0 %v230_v15  ;;  %v1262_v15 = vunpack.c.l.bf16 %v1562_v1  ;;  %v1501_v1 = vld [vmem:[%s1770_s3] sm:$0xff]  }
  0x8e   :  { %v494_v31 = vpop.permute.xlu1 %493  ;;  %v492_v32 = vpop.permute.xlu0 %491 }
  0x8f   :  { %v496_v34 = vsel %vm495_vm7, %v492_v32, %v494_v31 }
  0x92   :  { %v560_v35 = vpop.permute.xlu1 %559  ;;  %v558_v36 = vpop.permute.xlu0 %557 }
  0x93   :  { %v562_v38 = vsel %vm561_vm8, %v558_v36, %v560_v35 }
  0x97   :  { %1340 = vmatmul.mubr.msk.bf16.vlgmr.msra.gmra.mrb[0].mxu0 %vm53_vm1, %v1493_v17  ;;  %v1479_v17 = vpack.i.bf16 %v1261_v14, %v1260_v13 }
  0x98   :  { %239 = vmatpush1.bf16.msra.mxu0 %v232_v18  ;;  %270 = vmatprep.mubr.bf16.mxu0 %v1509_v2  ;;  %v1484_v18 = vpack.i.bf16 %v1263_v16, %v1262_v15 }
  0x99   :  { %304 = vmatprep.subr.bf16.mxu0 %v296_v19 }
  0xa3   :  { %1344 = vmatmul.mubr.msk.bf16.vlgmr.msra.gmra.mrb[0].mxu0 %vm53_vm1, %v1494_v21  ;;  %v620_v42 = vpop.permute.xlu0 %619  ;;  %v625_v47 = vpop.permute.xlu1 %624 }
  0xa4   :  { %305 = vmatpush1.bf16.msra.mxu0 %v298_v22  ;;  %336 = vmatprep.mubr.bf16.mxu0 %v1509_v2  ;;  %v1500_v22 = vld [vmem:[%s1770_s3 + $0x8] sm:$0xff]  }
  0xa5   :  { %370 = vmatprep.subr.bf16.mxu0 %v362_v23 }
  0xaf   :  { %1348 = vmatmul.mubr.msk.bf16.vlgmr.msra.gmra.mrb[0].mxu0 %vm53_vm1, %v1495_v25 }
  0xb0   :  { %371 = vmatpush1.bf16.msra.mxu0 %v364_v26  ;;  %402 = vmatprep.mubr.bf16.mxu0 %v1509_v2  ;;  %v1502_v26 = vld [vmem:[%s1770_s3 + $0x10] sm:$0xff]  }
  0xb1   :  { %436 = vmatprep.subr.bf16.mxu0 %v428_v27 }
  0xbb   :  { %1352 = vmatmul.mubr.msk.bf16.vlgmr.msra.gmra.mrb[0].mxu0 %vm53_vm1, %v1496_v29 }
  0xbc   :  { %437 = vmatpush1.bf16.msra.mxu0 %v430_v30  ;;  %468 = vmatprep.mubr.bf16.mxu0 %v1509_v2  ;;  %v1503_v30 = vld [vmem:[%s1770_s3 + $0x18] sm:$0xff]  }
  0xbd   :  { %502 = vmatprep.subr.bf16.mxu0 %v494_v31 }
  0xc7   :  { %1356 = vmatmul.mubr.msk.bf16.vlgmr.msra.gmra.mrb[0].mxu0 %vm53_vm1, %v1497_v33 }
  0xc8   :  { %503 = vmatpush1.bf16.msra.mxu0 %v496_v34  ;;  %534 = vmatprep.mubr.bf16.mxu0 %v1509_v2  ;;  %v1504_v34 = vld [vmem:[%s1770_s3 + $0x20] sm:$0xff]  }
  0xc9   :  { %568 = vmatprep.subr.bf16.mxu0 %v560_v35 }
  0xd3   :  { %1360 = vmatmul.mubr.msk.bf16.vlgmr.msra.gmra.mrb[0].mxu0 %vm53_vm1, %v1498_v37 }
  0xd4   :  { %569 = vmatpush1.bf16.msra.mxu0 %v562_v38  ;;  %600 = vmatprep.mubr.bf16.mxu0 %v1509_v2  ;;  %v1505_v38 = vld [vmem:[%s1770_s3 + $0x28] sm:$0xff]  }
  0xdf   :  { %1364 = vmatmul.mubr.msk.bf16.vlgmr.msra.gmra.mrb[0].mxu0 %vm53_vm1, %v1499_v39 }
 0x1b2   :  { %v602_v44 = vpop.f32.mrb[0].mxu0 }
 0x1b3   :  { %v627_v48 = vadd.f32 %v620_v42, %v602_v44  ;;  %v604_v49 = vpop.f32.mrb[1].mxu0 }
 0x1b4   :  { %v628_v50 = vadd.f32 %v620_v42, %v604_v49  ;;  %v606_v51 = vpop.f32.mrb[2].mxu0  ;;  %v1506_v42 = vld [vmem:[%s1770_s3 + $0x30] sm:$0xff]   ;;  %v1508_v49 = vld [vmem:[%s1770_s3 + $0x40] sm:$0xff]  }
 0x1b5   :  { %v631_v53 = vmax.f32 %v627_v48, 0.0  ;;  %v629_v54 = vadd.f32 %v625_v47, %v606_v51  ;;  %v608_v55 = vpop.f32.mrb[3].mxu0 }
 0x1b6   :  { %v632_v56 = vmax.f32 %v628_v50, 0.0  ;;  %v630_v58 = vadd.f32 %v625_v47, %v608_v55 }
 0x1b7   :  { %v633_v59 = vmax.f32 %v629_v54, 0.0  ;;  %v646_v61 = vmul.f32 %v1651_v52, %v631_v53 }
 0x1b8   :  { %v634_v60 = vmax.f32 %v630_v58, 0.0  ;;  %v647_v63 = vmul.f32 %v1653_v57, %v632_v56 }
 0x1b9   :  { %v648_v62 = vmul.f32 %v1651_v52, %v633_v59 }
 0x1ba   :  { %v649_v3 = vmul.f32 %v1653_v57, %v634_v60 }
 0x1bb   :  { %v653_v4 = vpack.c.bf16 %v648_v62, %v646_v61 }
 0x1bc   :  { %v654_v5 = vpack.c.bf16 %v649_v3, %v647_v63 }
 0x1bd   :  { %657 = vrot.lane.b32.xlu1 %v653_v4, %s1518_s1 }
 0x1be   :  { %659 = vrot.lane.b32.xlu0 %v654_v5, %s1518_s1 }
 0x22f   :  { %v658_v6 = vpop.permute.xlu1 %657 }
 0x230   :  { %666 = vst.msk [vmem:[#allocation2] sm:$0xff] %vm665_vm10, %v658_v6  ;;  %v660_v7 = vpop.permute.xlu0 %659 }
 0x231   :  { %v662_v8 = vsel %vm661_vm11, %v658_v6, %v660_v7 }
 0x232   :  { %668 = vst.msk [vmem:[#allocation2 + $0x8] sm:$0xff] %vm667_vm12, %v662_v8 }
 0x237   :  { %v671_v9 = vld [vmem:[#allocation2] sm:$0xff] }
 0x238   :  { %683 = vrot.lane.b32.xlu1 %v671_v9, %s1510_s25 }
 0x239   :  { %v672_v10 = vld [vmem:[#allocation2 + $0x8] sm:$0xff] }
 0x23a   :  { %685 = vrot.lane.b32.xlu0 %v672_v10, %s1510_s25 }
 0x23c   :  { %795 = vrot.lane.b32.xlu1 %v671_v9, %s1511_s0 }
 0x23e   :  { %797 = vrot.lane.b32.xlu0 %v672_v10, %s1511_s0 }
 0x240   :  { %860 = vrot.lane.b32.xlu1 %v671_v9, %s1512_s26 }
 0x242   :  { %862 = vrot.lane.b32.xlu0 %v672_v10, %s1512_s26 }
 0x244   :  { %925 = vrot.lane.b32.xlu1 %v671_v9, %s1513_s27 }
 0x246   :  { %927 = vrot.lane.b32.xlu0 %v672_v10, %s1513_s27 }
 0x248   :  { %990 = vrot.lane.b32.xlu1 %v671_v9, %s1514_s28 }
 0x24a   :  { %992 = vrot.lane.b32.xlu0 %v672_v10, %s1514_s28 }
 0x24c   :  { %1055 = vrot.lane.b32.xlu1 %v671_v9, %s1515_s29 }
 0x24e   :  { %1057 = vrot.lane.b32.xlu0 %v672_v10, %s1515_s29 }
 0x250   :  { %1120 = vrot.lane.b32.xlu1 %v671_v9, %s1516_s30 }
 0x252   :  { %1122 = vrot.lane.b32.xlu0 %v672_v10, %s1516_s30 }
 0x254   :  { %1185 = vrot.lane.b32.xlu1 %v671_v9, %s1517_s7 }
 0x256   :  { %1187 = vrot.lane.b32.xlu0 %v672_v10, %s1517_s7 }
 0x258   :  { %1246 = vperm.xlu1 %1478, %v1242_v11  }
 0x25a   :  { %1251 = vperm.xlu0 %1477, %v1243_v12  }
 0x25c   :  { %1480 = vrot.lane.b32.xlu1 %v1479_v17, %s1513_s27 }
 0x25e   :  { %1485 = vrot.lane.b32.xlu0 %v1484_v18, %s1513_s27 }
 0x2aa   :  { %v684_v19 = vpop.permute.xlu1 %683 }
 0x2ac   :  { %v686_v20 = vpop.permute.xlu0 %685 }
 0x2ad   :  { %693 = vmatprep.subr.bf16.mxu1 %v686_v20  ;;  %v687_v21 = vsel %vm49_vm0, %v684_v19, %v686_v20  ;;  %vm1320_vm0 = vcmask 1043544  }
 0x2ae   :  { %694 = vmatpush1.bf16.msra.mxu1 %v687_v21  ;;  %v796_v23 = vpop.permute.xlu1 %795 }
 0x2af   :  { %744 = vmatprep.subr.bf16.mxu1 %v672_v10 }
 0x2b0   :  { %v798_v0 = vpop.permute.xlu0 %797 }
 0x2b1   :  { %1368 = vmatmul.mubr.msk.bf16.vlgmr.msra.gmra.mrb[0].mxu1 %vm53_vm1, %v1500_v22  ;;  %v799_v24 = vsel %vm165_vm2, %v796_v23, %v798_v0 }
 0x2b2   :  { %745 = vmatpush1.bf16.msra.mxu1 %v671_v9  ;;  %776 = vmatprep.mubr.bf16.mxu1 %v1509_v2  ;;  %v861_v27 = vpop.permute.xlu1 %860 }
 0x2b3   :  { %805 = vmatprep.subr.bf16.mxu1 %v798_v0 }
 0x2b4   :  { %v863_v25 = vpop.permute.xlu0 %862 }
 0x2b5   :  { %v864_v28 = vsel %vm231_vm3, %v861_v27, %v863_v25 }
 0x2b6   :  { %v926_v31 = vpop.permute.xlu1 %925 }
 0x2b8   :  { %v928_v29 = vpop.permute.xlu0 %927 }
 0x2b9   :  { %v929_v32 = vsel %vm297_vm4, %v926_v31, %v928_v29 }
 0x2ba   :  { %v991_v35 = vpop.permute.xlu1 %990 }
 0x2bc   :  { %v993_v33 = vpop.permute.xlu0 %992 }
 0x2bd   :  { %1370 = vmatmul.mubr.msk.bf16.vlgmr.msra.gmra.mrb[0].mxu1 %vm53_vm1, %v1501_v1  ;;  %v994_v36 = vsel %vm363_vm5, %v991_v35, %v993_v33 }
 0x2be   :  { %806 = vmatpush1.bf16.msra.mxu1 %v799_v24  ;;  %837 = vmatprep.mubr.bf16.mxu1 %v1509_v2  ;;  %v1056_v39 = vpop.permute.xlu1 %1055 }
 0x2bf   :  { %870 = vmatprep.subr.bf16.mxu1 %v863_v25 }
 0x2c0   :  { %v1058_v37 = vpop.permute.xlu0 %1057 }
 0x2c1   :  { %v1059_v40 = vsel %vm429_vm6, %v1056_v39, %v1058_v37 }
 0x2c2   :  { %v1121_v43 = vpop.permute.xlu1 %1120 }
 0x2c4   :  { %v1123_v41 = vpop.permute.xlu0 %1122 }
 0x2c5   :  { %v1124_v44 = vsel %vm495_vm7, %v1121_v43, %v1123_v41 }
 0x2c6   :  { %v1186_v47 = vpop.permute.xlu1 %1185 }
 0x2c8   :  { %v1188_v45 = vpop.permute.xlu0 %1187 }
 0x2c9   :  { %1374 = vmatmul.mubr.msk.bf16.vlgmr.msra.gmra.mrb[0].mxu1 %vm53_vm1, %v1502_v26  ;;  %v1189_v48 = vsel %vm561_vm8, %v1186_v47, %v1188_v45 }
 0x2ca   :  { %871 = vmatpush1.bf16.msra.mxu1 %v864_v28  ;;  %902 = vmatprep.mubr.bf16.mxu1 %v1509_v2 }
 0x2cb   :  { %935 = vmatprep.subr.bf16.mxu1 %v928_v29 }
 0x2d5   :  { %1378 = vmatmul.mubr.msk.bf16.vlgmr.msra.gmra.mrb[0].mxu1 %vm53_vm1, %v1503_v30 }
 0x2d6   :  { %936 = vmatpush1.bf16.msra.mxu1 %v929_v32  ;;  %967 = vmatprep.mubr.bf16.mxu1 %v1509_v2 }
 0x2d7   :  { %1000 = vmatprep.subr.bf16.mxu1 %v993_v33  ;;  %v1247_v50 = vpop.permute.xlu1 %1246 }
 0x2d9   :  { %v1252_v51 = vpop.permute.xlu0 %1251 }
 0x2db   :  { %v1481_v53 = vpop.permute.xlu1 %1480 }
 0x2dc   :  { %v1483_v55 = vunpack.i.h.bf16 %v1481_v53  ;;  %v1482_v56 = vunpack.i.l.bf16 %v1481_v53 }
 0x2dd   :  { %v1486_v54 = vpop.permute.xlu0 %1485 }
 0x2de   :  { %v1488_v58 = vunpack.i.h.bf16 %v1486_v54  ;;  %v1487_v59 = vunpack.i.l.bf16 %v1486_v54  ;;  %v1277_v61 = vsel %vm297_vm4, %v1482_v56, %v1483_v55 }
 0x2e0   :  { %v1278_v5 = vsel %vm297_vm4, %v1487_v59, %v1488_v58 }
 0x2e1   :  { %1382 = vmatmul.mubr.msk.bf16.vlgmr.msra.gmra.mrb[0].mxu1 %vm53_vm1, %v1504_v34 }
 0x2e2   :  { %1001 = vmatpush1.bf16.msra.mxu1 %v994_v36  ;;  %1032 = vmatprep.mubr.bf16.mxu1 %v1509_v2 }
 0x2e3   :  { %1065 = vmatprep.subr.bf16.mxu1 %v1058_v37 }
 0x2ed   :  { %1386 = vmatmul.mubr.msk.bf16.vlgmr.msra.gmra.mrb[0].mxu1 %vm53_vm1, %v1505_v38 }
 0x2ee   :  { %1066 = vmatpush1.bf16.msra.mxu1 %v1059_v40  ;;  %1097 = vmatprep.mubr.bf16.mxu1 %v1509_v2 }
 0x2ef   :  { %1130 = vmatprep.subr.bf16.mxu1 %v1123_v41 }
 0x2f9   :  { %1390 = vmatmul.mubr.msk.bf16.vlgmr.msra.gmra.mrb[0].mxu1 %vm53_vm1, %v1506_v42 }
 0x2fa   :  { %1131 = vmatpush1.bf16.msra.mxu1 %v1124_v44  ;;  %1162 = vmatprep.mubr.bf16.mxu1 %v1509_v2 }
 0x2fb   :  { %1195 = vmatprep.subr.bf16.mxu1 %v1188_v45 }
 0x305   :  { %1394 = vmatmul.mubr.msk.bf16.vlgmr.msra.gmra.mrb[0].mxu1 %vm53_vm1, %v1507_v46 }
 0x306   :  { %1196 = vmatpush1.bf16.msra.mxu1 %v1189_v48  ;;  %1227 = vmatprep.mubr.bf16.mxu1 %v1509_v2 }
 0x311   :  { %1398 = vmatmul.mubr.msk.bf16.vlgmr.msra.gmra.mrb[0].mxu1 %vm53_vm1, %v1508_v49  ;;  %vm1321_vm1 = vcmask 678916  }
 0x312   :  { %vm1322_vm2 = vmor %vm1321_vm1, %vm1320_vm0 }
 0x3e4   :  { %v1229_v60 = vpop.f32.mrb[0].mxu1 }
 0x3e5   :  { %v1254_v62 = vadd.f32 %v1247_v50, %v1229_v60  ;;  %v1231_v63 = vpop.f32.mrb[1].mxu1 }
 0x3e6   :  { %v1255_v3 = vadd.f32 %v1247_v50, %v1231_v63  ;;  %v1233_v4 = vpop.f32.mrb[2].mxu1 }
 0x3e7   :  { %v1283_v6 = vadd.f32 %v1277_v61, %v1254_v62  ;;  %v1256_v7 = vadd.f32 %v1252_v51, %v1233_v4  ;;  %v1235_v2 = vpop.f32.mrb[3].mxu1 }
 0x3e8   :  { %v1284_v8 = vadd.f32 %v1483_v55, %v1255_v3  ;;  %v1257_v9 = vadd.f32 %v1252_v51, %v1235_v2 }
 0x3e9   :  { %v1287_v10 = vmax.f32 %v1283_v6, 0.0  ;;  %v1285_v11 = vadd.f32 %v1278_v5, %v1256_v7 }
 0x3ea   :  { %v1288_v12 = vmax.f32 %v1284_v8, 0.0  ;;  %v1286_v13 = vadd.f32 %v1488_v58, %v1257_v9 }
 0x3eb   :  { %v1291_v14 = vmul.f32 %v1287_v10, %v1651_v52  ;;  %v1289_v15 = vmax.f32 %v1285_v11, 0.0 }
 0x3ec   :  { %v1292_v16 = vmul.f32 %v1288_v12, %v1653_v57  ;;  %v1290_v17 = vmax.f32 %v1286_v13, 0.0 }
 0x3ed   :  { %v1293_v18 = vmul.f32 %v1289_v15, %v1651_v52 }
 0x3ee   :  { %v1294_v19 = vmul.f32 %v1290_v17, %v1653_v57  ;;  %v1401_v20 = vpack.c.bf16 %v1292_v16, %v1291_v14 }
 0x3f0   :  { %1310 = vrot.lane.b32.xlu1 %v1401_v20, %s1518_s1  ;;  %v1402_v21 = vpack.c.bf16 %v1294_v19, %v1293_v18 }
 0x3f2   :  { %1312 = vrot.lane.b32.xlu0 %v1402_v21, %s1518_s1 }
 0x462   :  { %v1311_v22 = vpop.permute.xlu1 %1310 }
 0x463   :  { %v1314_v0 = vrot.slane %v1311_v22, 4 }
 0x464   :  { %v1313_v1 = vpop.permute.xlu0 %1312 }
 0x465   :  { %v1316_v23 = vsel %vm661_vm11, %v1314_v0, %v1311_v22  ;;  %v1315_v24 = vrot.slane %v1313_v1, 4 }
 0x466   :  { %1323 = vst.msk [vmem:[%s1772_s6] sm:$0xff] %vm1322_vm2, %v1316_v23 }
 0x467   :  { %v1317_v52 = vsel %vm661_vm11, %v1315_v24, %v1313_v1 }
 0x468   :  { %1324 = vst.msk [vmem:[%s1772_s6 + $0x8] sm:$0xff] %vm1322_vm2, %v1317_v52 }

// kernel: resnet_forward.41
= control target key start
LH: loop header
LB: loop body
LE: loop exit
PB: predicated region body
PF: predicated region fallthrough
CT: control target
= control target key end

     0   :  { %v1064_v1 = vmov 0   ;;  %s1065_s14 = smov 117   ;;  %s1066_s15 = smov 127   ;;  %vm48_vm0 = vcmask 1039360   ;;  %vm382_vm1 = vcmask 957440   ;;  %vm472_vm2 = vcmask 949248   ;;  %s1247_s0 = inlined_call_operand.vmem [shape: bf16[16,222], index: 0, kind: input, shape index: {}]   ;;  %s1248_s1 = inlined_call_operand.vmem [shape: bf16[9,32,16], index: 1, kind: input, shape index: {}]   ;;  %s1249_s2 = inlined_call_operand.vmem [shape: f32[32,1], index: 2, kind: input, shape index: {}]   ;;  %s1250_s3 = inlined_call_operand.vmem [shape: bf16[32,200], index: 3, kind: output, shape index: {}]  }
   0x1   :  { %v1096_v0 = vld [vmem:[%s1247_s0] ss:$8 sps:$4 sm:$0xff]   ;;  %91 = vmatprep.mubr.bf16.mxu1 %v1064_v1  ;;  %424 = vmatprep.mubr.bf16.mxu0 %v1064_v1  ;;  %v1045_v2 = vld [vmem:[%s1247_s0 + $0x4] ss:$8 sps:$4 sm:$0xff]   ;;  %s1067_s18 = smov 116   ;;  %s1068_s19 = smov 108  }
   0x2   :  { %1041 = vset.pattern.permute.xlu0 %v1064_v1  ;;  %1042 = vset.pattern.permute.xlu1 %v1064_v1  ;;  %s1069_s20 = smov 126   ;;  %s1070_s21 = smov 107   ;;  %v813_v3 = vld [vmem:[%s1249_s2] sm:$0xff]  ;;  %v814_v4 = vld [vmem:[%s1249_s2 + $0x8] sm:$0xff]  ;;  %v815_v5 = vld [vmem:[%s1249_s2 + $0x10] sm:$0xff]  ;;  %vm52_vm3 = vcmask 130048  }
   0x3   :  { %378 = vrot.lane.b32.xlu1 %v1096_v0, %s1065_s14  ;;  %44 = vrot.lane.b32.xlu0 %v1096_v0, %s1066_s15  ;;  %s1071_s22 = smov 118   ;;  %s1072_s0 = smov 106   ;;  %v816_v6 = vld [vmem:[%s1249_s2 + $0x18] sm:$0xff]  ;;  %v1046_v13 = vld [vmem:[%s1248_s1 + $0x10] sm:$0xff]   ;;  %vm562_vm4 = vcmask 883712   ;;  %vm202_vm5 = vcmask 1031168  }
   0x4   :  { %v1047_v14 = vld [vmem:[%s1248_s1 + $0x40] sm:$0xff]   ;;  %v1048_v19 = vld [vmem:[%s1248_s1 + $0x18] sm:$0xff]   ;;  %v1049_v22 = vld [vmem:[%s1248_s1 + $0x50] sm:$0xff]   ;;  %vm652_vm6 = vcmask 875520   ;;  %vm292_vm7 = vcmask 965632   ;;  %vm742_vm8 = vcmask 867328  }
   0x5   :  { %v1050_v25 = vld [vmem:[%s1248_s1] sm:$0xff]   ;;  %v1051_v29 = vld [vmem:[%s1248_s1 + $0x58] sm:$0xff]   ;;  %v1052_v30 = vld [vmem:[%s1248_s1 + $0x8] sm:$0xff]   ;;  %vm877_vm9 = vcmask 1043456   ;;  %vm878_vm10 = vcmask 588804  }
   0x6   :  { %v1053_v32 = vld [vmem:[%s1248_s1 + $0x60] sm:$0xff]   ;;  %v1055_v38 = vld [vmem:[%s1248_s1 + $0x68] sm:$0xff]   ;;  %v1057_v41 = vld [vmem:[%s1248_s1 + $0x70] sm:$0xff]  }
   0x7   :  { %380 = vrot.lane.b32.xlu1 %v1045_v2, %s1065_s14  ;;  %46 = vrot.lane.b32.xlu0 %v1045_v2, %s1066_s15  ;;  %v1054_v36 = vld [vmem:[%s1248_s1 + $0x20] sm:$0xff]   ;;  %v1056_v39 = vld [vmem:[%s1248_s1 + $0x28] sm:$0xff]   ;;  %vm1223_vm11 = vmor %vm878_vm10, %vm877_vm9 }
   0x8   :  { %v1058_v43 = vld [vmem:[%s1248_s1 + $0x30] sm:$0xff]   ;;  %v1059_v44 = vld [vmem:[%s1248_s1 + $0x78] sm:$0xff]   ;;  %v1061_v46 = vld [vmem:[%s1248_s1 + $0x80] sm:$0xff]  }
   0x9   :  { %v1060_v45 = vld [vmem:[%s1248_s1 + $0x38] sm:$0xff]   ;;  %v1062_v47 = vld [vmem:[%s1248_s1 + $0x48] sm:$0xff]  }
   0xa   :  { %v1063_v48 = vld [vmem:[%s1248_s1 + $0x88] sm:$0xff]  }
   0xb   :  { %470 = vrot.lane.b32.xlu1 %v1045_v2, %s1067_s18  ;;  %468 = vrot.lane.b32.xlu0 %v1096_v0, %s1067_s18 }
   0xf   :  { %560 = vrot.lane.b32.xlu1 %v1045_v2, %s1068_s19  ;;  %558 = vrot.lane.b32.xlu0 %v1096_v0, %s1068_s19 }
  0x13   :  { %200 = vrot.lane.b32.xlu1 %v1045_v2, %s1069_s20  ;;  %198 = vrot.lane.b32.xlu0 %v1096_v0, %s1069_s20 }
  0x17   :  { %650 = vrot.lane.b32.xlu1 %v1045_v2, %s1070_s21  ;;  %648 = vrot.lane.b32.xlu0 %v1096_v0, %s1070_s21 }
  0x1b   :  { %290 = vrot.lane.b32.xlu1 %v1045_v2, %s1071_s22  ;;  %288 = vrot.lane.b32.xlu0 %v1096_v0, %s1071_s22 }
  0x1f   :  { %740 = vrot.lane.b32.xlu1 %v1045_v2, %s1072_s0  ;;  %738 = vrot.lane.b32.xlu0 %v1096_v0, %s1072_s0 }
  0x23   :  { %819 = vperm.xlu0 %1041, %v813_v3   ;;  %824 = vperm.xlu1 %1042, %v814_v4  }
  0x27   :  { %829 = vperm.xlu1 %1042, %v815_v5   ;;  %834 = vperm.xlu0 %1041, %v816_v6  }
  0x75   :  { %v379_v7 = vpop.permute.xlu1 %378  ;;  %v45_v8 = vpop.permute.xlu0 %44 }
  0x79   :  { %v1125_v9 = vpop.permute.xlu1 %380  ;;  %v47_v10 = vpop.permute.xlu0 %46 }
  0x7a   :  { %59 = vmatprep.subr.bf16.mxu1 %v47_v10  ;;  %392 = vmatprep.subr.bf16.mxu0 %v1125_v9  ;;  %v49_v11 = vsel %vm48_vm0, %v45_v8, %v47_v10  ;;  %v1129_v12 = vsel %vm382_vm1, %v379_v7, %v1125_v9 }
  0x7b   :  { %60 = vmatpush1.bf16.msra.mxu1 %v49_v11  ;;  %393 = vmatpush1.bf16.msra.mxu0 %v1129_v12 }
  0x7c   :  { %130 = vmatprep.subr.bf16.mxu1 %v1045_v2 }
  0x7d   :  { %v471_v15 = vpop.permute.xlu1 %470  ;;  %v469_v16 = vpop.permute.xlu0 %468 }
  0x7e   :  { %v473_v17 = vsel %vm472_vm2, %v469_v16, %v471_v15  ;;  %896 = vmatmul.mubr.msk.bf16.vlgmr.msra.gmra.mrb[0].mxu1 %vm52_vm3, %v1046_v13  ;;  %924 = vmatmul.mubr.msk.bf16.vlgmr.msra.gmra.mrb[0].mxu0 %vm52_vm3, %v1047_v14 }
  0x7f   :  { %482 = vmatprep.subr.bf16.mxu0 %v471_v15  ;;  %131 = vmatpush1.bf16.msra.mxu1 %v1096_v0 }
  0x80   :  { %483 = vmatpush1.bf16.msra.mxu0 %v473_v17  ;;  %101 = vmatprep.mubr.bf16.mxu1 %v1064_v1 }
  0x81   :  { %514 = vmatprep.mubr.bf16.mxu0 %v1064_v1  ;;  %v561_v18 = vpop.permute.xlu1 %560  ;;  %v559_v20 = vpop.permute.xlu0 %558 }
  0x82   :  { %572 = vmatprep.subr.bf16.mxu0 %v561_v18  ;;  %v563_v23 = vsel %vm562_vm4, %v559_v20, %v561_v18 }
  0x85   :  { %v201_v21 = vpop.permute.xlu1 %200  ;;  %v199_v26 = vpop.permute.xlu0 %198 }
  0x86   :  { %897 = vmatmul.mubr.msk.bf16.gmra.mrb[4].mxu1 %vm52_vm3, %v1048_v19  ;;  %212 = vmatprep.subr.bf16.mxu1 %v201_v21  ;;  %v203_v27 = vsel %vm202_vm5, %v199_v26, %v201_v21 }
  0x87   :  { %162 = vmatprep.mubr.bf16.mxu1 %v1064_v1 }
  0x89   :  { %v651_v24 = vpop.permute.xlu1 %650  ;;  %v649_v31 = vpop.permute.xlu0 %648 }
  0x8a   :  { %932 = vmatmul.mubr.msk.bf16.vlgmr.msra.gmra.mrb[0].mxu0 %vm52_vm3, %v1049_v22  ;;  %v653_v33 = vsel %vm652_vm6, %v649_v31, %v651_v24 }
  0x8b   :  { %573 = vmatpush1.bf16.msra.mxu0 %v563_v23  ;;  %524 = vmatprep.mubr.bf16.mxu0 %v1064_v1 }
  0x8c   :  { %662 = vmatprep.subr.bf16.mxu0 %v651_v24 }
  0x8d   :  { %v291_v28 = vpop.permute.xlu1 %290  ;;  %v289_v34 = vpop.permute.xlu0 %288 }
  0x8e   :  { %900 = vmatmul.mubr.msk.bf16.vlgmr.msra.gmra.mrb[0].mxu1 %vm52_vm3, %v1050_v25  ;;  %v293_v37 = vsel %vm292_vm7, %v289_v34, %v291_v28 }
  0x8f   :  { %213 = vmatpush1.bf16.msra.mxu1 %v203_v27  ;;  %172 = vmatprep.mubr.bf16.mxu1 %v1064_v1 }
  0x90   :  { %302 = vmatprep.subr.bf16.mxu1 %v291_v28 }
  0x91   :  { %v741_v35 = vpop.permute.xlu1 %740  ;;  %v739_v40 = vpop.permute.xlu0 %738 }
  0x92   :  { %933 = vmatmul.mubr.msk.bf16.gmra.mrb[4].mxu0 %vm52_vm3, %v1051_v29  ;;  %v743_v42 = vsel %vm742_vm8, %v739_v40, %v741_v35 }
  0x93   :  { %604 = vmatprep.mubr.bf16.mxu0 %v1064_v1 }
  0x96   :  { %901 = vmatmul.mubr.msk.bf16.gmra.mrb[4].mxu1 %vm52_vm3, %v1052_v30 }
  0x97   :  { %244 = vmatprep.mubr.bf16.mxu1 %v1064_v1 }
  0x9a   :  { %940 = vmatmul.mubr.msk.bf16.vlgmr.msra.gmra.mrb[0].mxu0 %vm52_vm3, %v1053_v32 }
  0x9b   :  { %663 = vmatpush1.bf16.msra.mxu0 %v653_v33  ;;  %614 = vmatprep.mubr.bf16.mxu0 %v1064_v1 }
  0x9c   :  { %752 = vmatprep.subr.bf16.mxu0 %v741_v35 }
  0x9e   :  { %908 = vmatmul.mubr.msk.bf16.vlgmr.msra.gmra.mrb[0].mxu1 %vm52_vm3, %v1054_v36 }
  0x9f   :  { %303 = vmatpush1.bf16.msra.mxu1 %v293_v37  ;;  %254 = vmatprep.mubr.bf16.mxu1 %v1064_v1 }
  0xa0   :  { %966 = vmatprep.subr.bf16.mxu1 %v1125_v9 }
  0xa2   :  { %941 = vmatmul.mubr.msk.bf16.gmra.mrb[4].mxu0 %vm52_vm3, %v1055_v38  ;;  %v820_v54 = vpop.permute.xlu0 %819  ;;  %v825_v57 = vpop.permute.xlu1 %824 }
  0xa3   :  { %694 = vmatprep.mubr.bf16.mxu0 %v1064_v1 }
  0xa6   :  { %909 = vmatmul.mubr.msk.bf16.gmra.mrb[4].mxu1 %vm52_vm3, %v1056_v39  ;;  %v830_v7 = vpop.permute.xlu1 %829  ;;  %v835_v24 = vpop.permute.xlu0 %834 }
  0xa7   :  { %334 = vmatprep.mubr.bf16.mxu1 %v1064_v1 }
  0xaa   :  { %948 = vmatmul.mubr.msk.bf16.vlgmr.msra.gmra.mrb[0].mxu0 %vm52_vm3, %v1057_v41 }
  0xab   :  { %753 = vmatpush1.bf16.msra.mxu0 %v743_v42  ;;  %704 = vmatprep.mubr.bf16.mxu0 %v1064_v1 }
  0xae   :  { %916 = vmatmul.mubr.msk.bf16.vlgmr.msra.gmra.mrb[0].mxu1 %vm52_vm3, %v1058_v43 }
  0xaf   :  { %967 = vmatpush1.bf16.msra.mxu1 %v1129_v12  ;;  %344 = vmatprep.mubr.bf16.mxu1 %v1064_v1 }
  0xb2   :  { %949 = vmatmul.mubr.msk.bf16.gmra.mrb[4].mxu0 %vm52_vm3, %v1059_v44 }
  0xb3   :  { %784 = vmatprep.mubr.bf16.mxu0 %v1064_v1 }
  0xb6   :  { %917 = vmatmul.mubr.msk.bf16.gmra.mrb[4].mxu1 %vm52_vm3, %v1060_v45 }
  0xb7   :  { %434 = vmatprep.mubr.bf16.mxu1 %v1064_v1 }
  0xba   :  { %956 = vmatmul.mubr.msk.bf16.vlgmr.msra.gmra.mrb[0].mxu0 %vm52_vm3, %v1061_v46 }
  0xbb   :  { %794 = vmatprep.mubr.bf16.mxu0 %v1064_v1 }
  0xc2   :  { %925 = vmatmul.mubr.msk.bf16.vlgmr.msra.gmra.mrb[4].mxu1 %vm52_vm3, %v1062_v47  ;;  %957 = vmatmul.mubr.msk.bf16.gmra.mrb[4].mxu0 %vm52_vm3, %v1063_v48 }
 0x181   :  { %v336_v49 = vpop.f32.mrb[0].mxu1 }
 0x182   :  { %v338_v50 = vpop.f32.mrb[1].mxu1 }
 0x183   :  { %v340_v51 = vpop.f32.mrb[2].mxu1 }
 0x184   :  { %v342_v52 = vpop.f32.mrb[3].mxu1 }
 0x18d   :  { %v786_v53 = vpop.f32.mrb[0].mxu0 }
 0x18e   :  { %v968_v55 = vadd.f32 %v786_v53, %v336_v49  ;;  %v788_v56 = vpop.f32.mrb[1].mxu0 }
 0x18f   :  { %v969_v58 = vadd.f32 %v788_v56, %v338_v50  ;;  %v790_v59 = vpop.f32.mrb[2].mxu0 }
 0x190   :  { %v970_v60 = vadd.f32 %v790_v59, %v340_v51  ;;  %v837_v61 = vadd.f32 %v968_v55, %v820_v54  ;;  %v792_v62 = vpop.f32.mrb[3].mxu0 }
 0x191   :  { %v838_v63 = vadd.f32 %v969_v58, %v820_v54  ;;  %v971_v0 = vadd.f32 %v792_v62, %v342_v52 }
 0x192   :  { %v845_v1 = vmax.f32 %v837_v61, 0.0  ;;  %v839_v2 = vadd.f32 %v970_v60, %v825_v57 }
 0x193   :  { %v846_v3 = vmax.f32 %v838_v63, 0.0  ;;  %v840_v4 = vadd.f32 %v971_v0, %v825_v57 }
 0x194   :  { %v847_v6 = vmax.f32 %v839_v2, 0.0 }
 0x195   :  { %v962_v8 = vpack.c.bf16 %v846_v3, %v845_v1  ;;  %v848_v9 = vmax.f32 %v840_v4, 0.0  ;;  %v436_v10 = vpop.f32.mrb[4].mxu1  ;;  %v796_v11 = vpop.f32.mrb[4].mxu0 }
 0x196   :  { %v972_v12 = vadd.f32 %v796_v11, %v436_v10  ;;  %v438_v13 = vpop.f32.mrb[5].mxu1  ;;  %v798_v14 = vpop.f32.mrb[5].mxu0 }
 0x197   :  { %880 = vst.msk [vmem:[%s1250_s3] sm:$0xff] %vm1223_vm11, %v962_v8  ;;  %v963_v15 = vpack.c.bf16 %v848_v9, %v847_v6  ;;  %v973_v16 = vadd.f32 %v798_v14, %v438_v13  ;;  %v440_v17 = vpop.f32.mrb[6].mxu1  ;;  %v800_v18 = vpop.f32.mrb[6].mxu0 }
 0x198   :  { %v841_v19 = vadd.f32 %v972_v12, %v830_v7  ;;  %v974_v20 = vadd.f32 %v800_v18, %v440_v17  ;;  %v442_v21 = vpop.f32.mrb[7].mxu1  ;;  %v802_v22 = vpop.f32.mrb[7].mxu0 }
 0x199   :  { %881 = vst.msk [vmem:[%s1250_s3 + $0x8] sm:$0xff] %vm1223_vm11, %v963_v15  ;;  %v842_v23 = vadd.f32 %v973_v16, %v830_v7  ;;  %v975_v25 = vadd.f32 %v802_v22, %v442_v21 }
 0x19a   :  { %v849_v26 = vmax.f32 %v841_v19, 0.0  ;;  %v843_v27 = vadd.f32 %v974_v20, %v835_v24 }
 0x19b   :  { %v850_v28 = vmax.f32 %v842_v23, 0.0  ;;  %v844_v29 = vadd.f32 %v975_v25, %v835_v24 }
 0x19c   :  { %v851_v30 = vmax.f32 %v843_v27, 0.0 }
 0x19d   :  { %v964_v31 = vpack.c.bf16 %v850_v28, %v849_v26  ;;  %v852_v32 = vmax.f32 %v844_v29, 0.0 }
 0x19f   :  { %882 = vst.msk [vmem:[%s1250_s3 + $0x10] sm:$0xff] %vm1223_vm11, %v964_v31  ;;  %v965_v33 = vpack.c.bf16 %v852_v32, %v851_v30 }
 0x1a1   :  { %883 = vst.msk [vmem:[%s1250_s3 + $0x18] sm:$0xff] %vm1223_vm11, %v965_v33 }

// kernel: resnet_forward.31
= control target key start
LH: loop header
LB: loop body
LE: loop exit
PB: predicated region body
PF: predicated region fallthrough
CT: control target
= control target key end

     0   :  { %v33_v0 = vlaneseq  ;;  %v7640_v1 = vmov 1983009808   ;;  %v7641_v12 = vmov 0   ;;  %s7642_s16 = smov 127   ;;  %s7643_s19 = smov 126   ;;  %vm87_vm0 = vcmask 1040384   ;;  %s9019_s0 = inlined_call_operand.vmem [shape: bf16[3,884], index: 0, kind: input, shape index: {}]   ;;  %s9020_s1 = inlined_call_operand.vmem [shape: bf16[25,16,3], index: 1, kind: input, shape index: {}]   ;;  %s9021_s2 = inlined_call_operand.vmem [shape: f32[16,1], index: 2, kind: input, shape index: {}]   ;;  %s9022_s3 = inlined_call_operand.vmem [shape: bf16[16,800], index: 3, kind: output, shape index: {}]  }
   0x1   :  { %v31_v2 = vunpack.c.l.s4 %v7640_v1  ;;  %v17_v3 = vld [vmem:[%s9019_s0] sm:$0xff]  ;;  %v18_v7 = vld [vmem:[%s9019_s0 + $0x8] sm:$0x3f]  ;;  %187 = vmatprep.mubr.bf16.mxu1 %v7641_v12  ;;  %144 = vmatprep.mubr.bf16.mxu0 %v7641_v12  ;;  %s7644_s22 = smov 125   ;;  %s7645_s25 = smov 124   ;;  %vm88_vm1 = vcmask 1041408  }
   0x2   :  { %v34_v4 = vshrl.u32 %v33_v0, 7  ;;  %v29_v6 = vcombine.high %v17_v3, %v17_v3  ;;  %7586 = vset.pattern.permute.xlu0 %v7641_v12  ;;  %7587 = vset.pattern.permute.xlu1 %v7641_v12  ;;  %v46_v15 = vcombine.high %v18_v7, %v18_v7  ;;  %v485_v18 = vld [vmem:[%s9019_s0 + $0x8] sm:$0x3f]  ;;  %s7646_s28 = smov 108   ;;  %s7647_s4 = smov 107   ;;  %v7651_v55 = vmov 65535  }
   0x3   :  { %v32_v5 = vunpack.c.0.s8 %v31_v2  ;;  %v510_v20 = vcombine.high %v485_v18, %v485_v18  ;;  %v759_v23 = vld [vmem:[%s9019_s0 + $0x8] sm:$0x3f]  ;;  %s7648_s7 = smov 106   ;;  %s7649_s10 = smov 105   ;;  %v89_v56 = vsel %vm87_vm0, 4294967295, %v7651_v55  ;;  %vm76_vm2 = vcmask 1039360  }
   0x4   :  { %v784_v25 = vcombine.high %v759_v23, %v759_v23  ;;  %v1033_v28 = vld [vmem:[%s9019_s0 + $0x8] sm:$0x3f]  ;;  %s7650_s13 = smov 104   ;;  %v7804_v59 = vsel %vm88_vm1, %v89_v56, 0  ;;  %vm83_vm3 = vcmask 23552   ;;  %s7653_s18 = smov 88  }
   0x5   :  { %v7695_v8 = vsub.s32 %v32_v5, %v34_v4  ;;  %v1058_v30 = vcombine.high %v1033_v28, %v1033_v28  ;;  %v1307_v33 = vld [vmem:[%s9019_s0 + $0x8] sm:$0x3f]  ;;  %vm7654_vm4 = vmmov 0   ;;  %vm540_vm5 = vcmask 1031168   ;;  %s7655_s23 = smov 87   ;;  %s7656_s26 = smov 86  }
   0x6   :  { %v1332_v35 = vcombine.high %v1307_v33, %v1307_v33  ;;  %v1581_v38 = vld [vmem:[%s9019_s0 + $0x8] sm:$0x3f]  ;;  %vm814_vm6 = vcmask 1022976   ;;  %vm1088_vm7 = vcmask 1014784   ;;  %vm1362_vm8 = vcmask 883712   ;;  %s7657_s8 = smov 85  }
   0x7   :  { %v7698_v9 = vrot.slane %v18_v7, %v7695_v8  ;;  %v7701_v10 = vrot.slane %v17_v3, %v7695_v8  ;;  %v7704_v11 = vrot.slane %v29_v6, %v7695_v8  ;;  %v7728_v17 = vrot.slane %v46_v15, %v7695_v8  ;;  %v1855_v43 = vld [vmem:[%s9019_s0 + $0x8] sm:$0x3f]  ;;  %s7659_s20 = smov 68   ;;  %s7661_s30 = smov 66  }
   0x8   :  { %v517_v19 = vrot.slane %v485_v18, %v7695_v8  ;;  %v524_v22 = vrot.slane %v510_v20, %v7695_v8  ;;  %v791_v24 = vrot.slane %v759_v23, %v7695_v8  ;;  %v798_v27 = vrot.slane %v784_v25, %v7695_v8  ;;  %v2129_v48 = vld [vmem:[%s9019_s0 + $0x8] sm:$0x3f]  ;;  %s7667_s6 = smov 45  }
   0x9   :  { %70 = vrot.lane.b32.xlu0 %v7698_v9, %s7642_s16  ;;  %v7711_v13 = vcombine.high %v7701_v10, %v7701_v10  ;;  %v7715_v14 = vcombine.high %v7704_v11, %v7704_v11  ;;  %v7724_v16 = vcombine.high %v7698_v9, %v7698_v9  ;;  %v1065_v29 = vrot.slane %v1033_v28, %v7695_v8  ;;  %v2403_v53 = vld [vmem:[%s9019_s0 + $0x8] sm:$0x3f] }
   0xa   :  { %v525_v21 = vcombine.high %v517_v19, %v517_v19  ;;  %v799_v26 = vcombine.high %v791_v24, %v791_v24  ;;  %v1072_v32 = vrot.slane %v1058_v30, %v7695_v8  ;;  %v1339_v34 = vrot.slane %v1307_v33, %v7695_v8  ;;  %v7596_v18 = vld [vmem:[%s9020_s1 + $0x8] sm:$0xff]  }
   0xb   :  { %64 = vrot.lane.b32.xlu1 %v7711_v13, %s7642_s16  ;;  %v1073_v31 = vcombine.high %v1065_v29, %v1065_v29  ;;  %v1346_v37 = vrot.slane %v1332_v35, %v7695_v8  ;;  %v1613_v39 = vrot.slane %v1581_v38, %v7695_v8  ;;  %v1606_v40 = vcombine.high %v1581_v38, %v1581_v38 }
   0xc   :  { %v1347_v36 = vcombine.high %v1339_v34, %v1339_v34  ;;  %v1887_v44 = vrot.slane %v1855_v43, %v7695_v8  ;;  %v1880_v45 = vcombine.high %v1855_v43, %v1855_v43  ;;  %v2161_v49 = vrot.slane %v2129_v48, %v7695_v8 }
   0xd   :  { %68 = vrot.lane.b32.xlu0 %v7715_v14, %s7642_s16  ;;  %v1621_v41 = vcombine.high %v1613_v39, %v1613_v39  ;;  %v1620_v42 = vrot.slane %v1606_v40, %v7695_v8  ;;  %v2154_v50 = vcombine.high %v2129_v48, %v2129_v48  ;;  %v2435_v54 = vrot.slane %v2403_v53, %v7695_v8 }
   0xe   :  { %v1895_v46 = vcombine.high %v1887_v44, %v1887_v44  ;;  %v1894_v47 = vrot.slane %v1880_v45, %v7695_v8  ;;  %v2169_v51 = vcombine.high %v2161_v49, %v2161_v49  ;;  %v2428_v60 = vcombine.high %v2403_v53, %v2403_v53 }
   0xf   :  { %66 = vrot.lane.b32.xlu1 %v7704_v11, %s7642_s16  ;;  %v2168_v52 = vrot.slane %v2154_v50, %v7695_v8  ;;  %v2443_v62 = vcombine.high %v2435_v54, %v2435_v54  ;;  %v294_v28 = vand.u32 %v7804_v59, %v7711_v13  ;;  %v306_v38 = vand.u32 %v7804_v59, %v7724_v16 }
  0x10   :  { %v2442_v4 = vrot.slane %v2428_v60, %v7695_v8  ;;  %v303_v48 = vand.u32 %v7804_v59, %v7698_v9  ;;  %vm1636_vm9 = vcmask 875520   ;;  %vm1910_vm10 = vcmask 867328  }
  0x11   :  { %62 = vrot.lane.b32.xlu0 %v7701_v10, %s7642_s16  ;;  %vm2184_vm11 = vcmask 859136   ;;  %vm2458_vm12 = vcmask 850944   ;;  %vm2732_vm13 = vcmask 719872   ;;  %vm3006_vm14 = vcmask 711680  }
  0x12   :  { %vm3280_vm15 = vcmask 703488   ;;  %vm3554_vm0 = vcmask 695296   ;;  %vm3828_vm1 = vcmask 687104  }
  0x13   :  { %72 = vrot.lane.b32.xlu1 %v7724_v16, %s7642_s16 }
  0x15   :  { %74 = vrot.lane.b32.xlu0 %v7728_v17, %s7642_s16 }
  0x17   :  { %532 = vrot.lane.b32.xlu1 %v7715_v14, %s7643_s19 }
  0x19   :  { %534 = vrot.lane.b32.xlu0 %v517_v19, %s7643_s19 }
  0x1b   :  { %528 = vrot.lane.b32.xlu1 %v7711_v13, %s7643_s19 }
  0x1d   :  { %530 = vrot.lane.b32.xlu0 %v7704_v11, %s7643_s19 }
  0x1f   :  { %526 = vrot.lane.b32.xlu1 %v7701_v10, %s7643_s19 }
  0x21   :  { %536 = vrot.lane.b32.xlu0 %v525_v21, %s7643_s19  ;;  %v7652_v21 = vmov 0.0  }
  0x23   :  { %538 = vrot.lane.b32.xlu1 %v524_v22, %s7643_s19  ;;  %v2677_v22 = vld [vmem:[%s9019_s0 + $0x8] sm:$0x3f] }
  0x24   :  { %v2702_v43 = vcombine.high %v2677_v22, %v2677_v22 }
  0x25   :  { %806 = vrot.lane.b32.xlu0 %v7715_v14, %s7644_s22 }
  0x27   :  { %808 = vrot.lane.b32.xlu1 %v791_v24, %s7644_s22 }
  0x29   :  { %802 = vrot.lane.b32.xlu0 %v7711_v13, %s7644_s22 }
  0x2b   :  { %804 = vrot.lane.b32.xlu1 %v7704_v11, %s7644_s22 }
  0x2d   :  { %800 = vrot.lane.b32.xlu0 %v7701_v10, %s7644_s22 }
  0x2f   :  { %810 = vrot.lane.b32.xlu1 %v799_v26, %s7644_s22 }
  0x31   :  { %812 = vrot.lane.b32.xlu0 %v798_v27, %s7644_s22  ;;  %v300_v27 = vand.u32 %v7804_v59, %v7715_v14 }
  0x33   :  { %1080 = vrot.lane.b32.xlu1 %v7715_v14, %s7645_s25 }
  0x35   :  { %1082 = vrot.lane.b32.xlu0 %v1065_v29, %s7645_s25 }
  0x37   :  { %1076 = vrot.lane.b32.xlu1 %v7711_v13, %s7645_s25 }
  0x39   :  { %1078 = vrot.lane.b32.xlu0 %v7704_v11, %s7645_s25 }
  0x3b   :  { %1074 = vrot.lane.b32.xlu1 %v7701_v10, %s7645_s25 }
  0x3d   :  { %1084 = vrot.lane.b32.xlu0 %v1073_v31, %s7645_s25  ;;  %v2709_v31 = vrot.slane %v2677_v22, %v7695_v8 }
  0x3f   :  { %1086 = vrot.lane.b32.xlu1 %v1072_v32, %s7645_s25  ;;  %v2717_v16 = vcombine.high %v2709_v31, %v2709_v31  ;;  %s7660_s25 = smov 67  }
  0x41   :  { %1354 = vrot.lane.b32.xlu0 %v7715_v14, %s7646_s28 }
  0x43   :  { %1356 = vrot.lane.b32.xlu1 %v1339_v34, %s7646_s28  ;;  %v297_v34 = vand.u32 %v7804_v59, %v7704_v11 }
  0x45   :  { %1350 = vrot.lane.b32.xlu0 %v7711_v13, %s7646_s28 }
  0x47   :  { %1352 = vrot.lane.b32.xlu1 %v7704_v11, %s7646_s28 }
  0x49   :  { %1348 = vrot.lane.b32.xlu0 %v7701_v10, %s7646_s28 }
  0x4b   :  { %1358 = vrot.lane.b32.xlu1 %v1347_v36, %s7646_s28  ;;  %v291_v36 = vand.u32 %v7804_v59, %v7701_v10 }
  0x4d   :  { %1360 = vrot.lane.b32.xlu0 %v1346_v37, %s7646_s28  ;;  %s7666_s28 = smov 46  }
  0x4f   :  { %1628 = vrot.lane.b32.xlu1 %v7715_v14, %s7647_s4 }
  0x51   :  { %1630 = vrot.lane.b32.xlu0 %v1613_v39, %s7647_s4 }
  0x53   :  { %1624 = vrot.lane.b32.xlu1 %v7711_v13, %s7647_s4 }
  0x55   :  { %1626 = vrot.lane.b32.xlu0 %v7704_v11, %s7647_s4 }
  0x57   :  { %1622 = vrot.lane.b32.xlu1 %v7701_v10, %s7647_s4 }
  0x59   :  { %1632 = vrot.lane.b32.xlu0 %v1621_v41, %s7647_s4 }
  0x5b   :  { %1634 = vrot.lane.b32.xlu1 %v1620_v42, %s7647_s4  ;;  %v7598_v42 = vld [vmem:[%s9020_s1] sm:$0xff]  }
  0x5d   :  { %1902 = vrot.lane.b32.xlu0 %v7715_v14, %s7648_s7 }
  0x5f   :  { %1904 = vrot.lane.b32.xlu1 %v1887_v44, %s7648_s7  ;;  %v309_v44 = vand.u32 %v7804_v59, %v7728_v17  ;;  %v2716_v17 = vrot.slane %v2702_v43, %v7695_v8 }
  0x61   :  { %1898 = vrot.lane.b32.xlu0 %v7711_v13, %s7648_s7 }
  0x63   :  { %1900 = vrot.lane.b32.xlu1 %v7704_v11, %s7648_s7 }
  0x65   :  { %1896 = vrot.lane.b32.xlu0 %v7701_v10, %s7648_s7 }
  0x67   :  { %1906 = vrot.lane.b32.xlu1 %v1895_v46, %s7648_s7 }
  0x69   :  { %1908 = vrot.lane.b32.xlu0 %v1894_v47, %s7648_s7 }
  0x6b   :  { %2176 = vrot.lane.b32.xlu1 %v7715_v14, %s7649_s10 }
  0x6d   :  { %2178 = vrot.lane.b32.xlu0 %v2161_v49, %s7649_s10 }
  0x6f   :  { %2172 = vrot.lane.b32.xlu1 %v7711_v13, %s7649_s10 }
  0x71   :  { %2174 = vrot.lane.b32.xlu0 %v7704_v11, %s7649_s10 }
  0x73   :  { %2170 = vrot.lane.b32.xlu1 %v7701_v10, %s7649_s10 }
  0x75   :  { %2180 = vrot.lane.b32.xlu0 %v2169_v51, %s7649_s10 }
  0x77   :  { %2182 = vrot.lane.b32.xlu1 %v2168_v52, %s7649_s10  ;;  %v2951_v52 = vld [vmem:[%s9019_s0 + $0x8] sm:$0x3f] }
  0x78   :  { %v2983_v55 = vrot.slane %v2951_v52, %v7695_v8 }
  0x79   :  { %2450 = vrot.lane.b32.xlu0 %v7715_v14, %s7650_s13 }
  0x7b   :  { %v71_v57 = vpop.permute.xlu0 %70  ;;  %2452 = vrot.lane.b32.xlu1 %v2435_v54, %s7650_s13 }
  0x7d   :  { %v65_v58 = vpop.permute.xlu1 %64  ;;  %2446 = vrot.lane.b32.xlu0 %v7711_v13, %s7650_s13 }
  0x7f   :  { %v69_v61 = vpop.permute.xlu0 %68  ;;  %2448 = vrot.lane.b32.xlu1 %v7704_v11, %s7650_s13 }
  0x80   :  { %v80_v63 = vsel %vm76_vm2, %v69_v61, %v71_v57 }
  0x81   :  { %v67_v0 = vpop.permute.xlu1 %66  ;;  %v101_v1 = vand.u32 %v7804_v59, %v80_v63  ;;  %2444 = vrot.lane.b32.xlu0 %v7701_v10, %s7650_s13 }
  0x82   :  { %v78_v2 = vsel %vm76_vm2, %v65_v58, %v67_v0  ;;  %v79_v3 = vsel %vm76_vm2, %v67_v0, %v69_v61 }
  0x83   :  { %155 = vmatprep.subr.bf16.mxu1 %v101_v1  ;;  %v63_v5 = vpop.permute.xlu0 %62  ;;  %v95_v6 = vand.u32 %v7804_v59, %v78_v2  ;;  %v98_v7 = vand.u32 %v7804_v59, %v79_v3  ;;  %2454 = vrot.lane.b32.xlu1 %v2443_v62, %s7650_s13  ;;  %v7600_v2 = vld [vmem:[%s9020_s1 + $0x10] sm:$0xff]   ;;  %v2991_v3 = vcombine.high %v2983_v55, %v2983_v55 }
  0x84   :  { %v77_v15 = vsel %vm76_vm2, %v63_v5, %v65_v58 }
  0x85   :  { %112 = vmatprep.subr.bf16.mxu0 %v95_v6  ;;  %v73_v19 = vpop.permute.xlu1 %72  ;;  %156 = vmatpush1.bf16.msra.mxu1 %v98_v7  ;;  %v92_v20 = vand.u32 %v7804_v59, %v77_v15 }
  0x86   :  { %7119 = vmatprep.subr.bf16.mxu1 %v7652_v21  ;;  %2456 = vrot.lane.b32.xlu0 %v2442_v4, %s7650_s13  ;;  %v81_v23 = vsel %vm76_vm2, %v71_v57, %v73_v19  ;;  %s7658_s13 = smov 84  }
  0x87   :  { %113 = vmatpush1.bf16.msra.mxu0 %v92_v20  ;;  %v75_v24 = vpop.permute.xlu0 %74  ;;  %2724 = vrot.lane.b32.xlu1 %v7715_v14, %s7653_s18  ;;  %v104_v32 = vand.u32 %v7804_v59, %v81_v23  ;;  %v2976_v20 = vcombine.high %v2951_v52, %v2951_v52 }
  0x88   :  { %v82_v25 = vsel %vm76_vm2, %v73_v19, %v75_v24  ;;  %v110_v26 = vand.u32 %v7804_v59, %v75_v24  ;;  %6884 = vmatmul.mubr.msk.bf16.vlgmr.msra.gmra.mrb[0].mxu1 %vm83_vm3, %v7596_v18  ;;  %vm4102_vm2 = vcmask 556032  }
  0x89   :  { %v107_v29 = vand.u32 %v7804_v59, %v82_v25  ;;  %7121 = vmatprep.mubr.msk.bf16.mxu1 %vm7654_vm4, %v7652_v21  ;;  %v533_v30 = vpop.permute.xlu1 %532 }
  0x8a   :  { %6883 = vmatmul.mubr.msk.bf16.vlgmr.msra.gmra.mrb[0].mxu0 %vm83_vm3, %v7596_v18  ;;  %7120 = vmatpush3.bf16.msra.mxu1 %v110_v26 }
  0x8b   :  { %198 = vmatprep.subr.bf16.mxu0 %v107_v29  ;;  %230 = vmatprep.mubr.bf16.mxu0 %v7641_v12  ;;  %v7845_v33 = vpop.permute.xlu0 %534 }
  0x8c   :  { %199 = vmatpush1.bf16.msra.mxu0 %v104_v32  ;;  %354 = vmatprep.subr.bf16.mxu1 %v300_v27  ;;  %v544_v40 = vsel %vm540_vm5, %v533_v30, %v7845_v33  ;;  %v2990_v27 = vrot.slane %v2976_v20, %v7695_v8 }
  0x8d   :  { %311 = vmatprep.subr.bf16.mxu0 %v294_v28  ;;  %v529_v35 = vpop.permute.xlu1 %528  ;;  %2726 = vrot.lane.b32.xlu0 %v2709_v31, %s7653_s18  ;;  %v560_v47 = vand.u32 %v544_v40, %v7804_v59  ;;  %v3225_v31 = vld [vmem:[%s9019_s0 + $0x8] sm:$0x3f] }
  0x8e   :  { %2720 = vrot.lane.b32.xlu1 %v7711_v13, %s7653_s18 }
  0x8f   :  { %v531_v37 = vpop.permute.xlu0 %530 }
  0x90   :  { %7122 = vmatmul.mubr.msk.bf16.vlgmr.msra.gmra.mrb[4].mxu1 %vm83_vm3, %v7596_v18  ;;  %v542_v45 = vsel %vm540_vm5, %v529_v35, %v531_v37  ;;  %v543_v9 = vsel %vm540_vm5, %v531_v37, %v533_v30 }
  0x91   :  { %355 = vmatpush1.bf16.msra.mxu1 %v297_v34  ;;  %386 = vmatprep.mubr.bf16.mxu1 %v7641_v12  ;;  %v527_v39 = vpop.permute.xlu1 %526  ;;  %v554_v50 = vand.u32 %v542_v45, %v7804_v59  ;;  %v557_v56 = vand.u32 %v543_v9, %v7804_v59 }
  0x92   :  { %6885 = vmatmul.mubr.msk.bf16.vlgmr.msra.gmra.mrb[4].mxu0 %vm83_vm3, %v7596_v18  ;;  %7125 = vmatprep.subr.bf16.mxu1 %v7652_v21  ;;  %v541_v54 = vsel %vm540_vm5, %v527_v39, %v529_v35  ;;  %v3257_v35 = vrot.slane %v3225_v31, %v7695_v8  ;;  %v7602_v39 = vld [vmem:[%s9020_s1 + $0x18] sm:$0xff]  }
  0x93   :  { %312 = vmatpush1.bf16.msra.mxu0 %v291_v36  ;;  %343 = vmatprep.mubr.bf16.mxu0 %v7641_v12  ;;  %v537_v41 = vpop.permute.xlu0 %536  ;;  %v551_v60 = vand.u32 %v541_v54, %v7804_v59 }
  0x94   :  { %397 = vmatprep.subr.bf16.mxu0 %v306_v38  ;;  %2722 = vrot.lane.b32.xlu0 %v7704_v11, %s7653_s18  ;;  %v545_v7 = vsel %vm540_vm5, %v7845_v33, %v537_v41 }
  0x95   :  { %v539_v46 = vpop.permute.xlu1 %538  ;;  %2718 = vrot.lane.b32.xlu1 %v7701_v10, %s7653_s18  ;;  %v563_v22 = vand.u32 %v545_v7, %v7804_v59 }
  0x96   :  { %v546_v57 = vsel %vm540_vm5, %v537_v41, %v539_v46  ;;  %v569_v4 = vand.u32 %v539_v46, %v7804_v59  ;;  %v3250_v46 = vcombine.high %v3225_v31, %v3225_v31  ;;  %vm4376_vm5 = vcmask 547840  }
  0x97   :  { %v807_v49 = vpop.permute.xlu0 %806  ;;  %v566_v62 = vand.u32 %v546_v57, %v7804_v59 }
  0x98   :  { %6889 = vmatmul.mubr.msk.bf16.vlgmr.msra.gmra.mrb[0].mxu1 %vm83_vm3, %v7598_v42  ;;  %2728 = vrot.lane.b32.xlu0 %v2717_v16, %s7653_s18  ;;  %v3264_v52 = vrot.slane %v3250_v46, %v7695_v8 }
  0x99   :  { %7126 = vmatpush3.bf16.msra.mxu1 %v309_v44  ;;  %7127 = vmatprep.mubr.msk.bf16.mxu1 %vm7654_vm4, %v7652_v21  ;;  %v7882_v51 = vpop.permute.xlu1 %808 }
  0x9a   :  { %6888 = vmatmul.mubr.msk.bf16.vlgmr.msra.gmra.mrb[0].mxu0 %vm83_vm3, %v7598_v42  ;;  %614 = vmatprep.subr.bf16.mxu1 %v560_v47  ;;  %v818_v0 = vsel %vm814_vm6, %v807_v49, %v7882_v51 }
  0x9b   :  { %398 = vmatpush1.bf16.msra.mxu0 %v303_v48  ;;  %429 = vmatprep.mubr.bf16.mxu0 %v7641_v12  ;;  %v803_v53 = vpop.permute.xlu0 %802  ;;  %v834_v15 = vand.u32 %v818_v0, %v7804_v59  ;;  %v7604_v0 = vld [vmem:[%s9020_s1 + $0x20] sm:$0xff]  }
  0x9c   :  { %571 = vmatprep.subr.bf16.mxu0 %v554_v50  ;;  %2730 = vrot.lane.b32.xlu1 %v2716_v17, %s7653_s18  ;;  %s7664_s18 = smov 48  }
  0x9d   :  { %v805_v58 = vpop.permute.xlu1 %804  ;;  %2998 = vrot.lane.b32.xlu0 %v7715_v14, %s7655_s23 }
  0x9e   :  { %v816_v5 = vsel %vm814_vm6, %v803_v53, %v805_v58  ;;  %v817_v24 = vsel %vm814_vm6, %v805_v58, %v807_v49  ;;  %v3265_v49 = vcombine.high %v3257_v35, %v3257_v35 }
  0x9f   :  { %v801_v61 = vpop.permute.xlu0 %800  ;;  %v828_v19 = vand.u32 %v816_v5, %v7804_v59  ;;  %v831_v28 = vand.u32 %v817_v24, %v7804_v59 }
  0xa0   :  { %7128 = vmatmul.mubr.msk.bf16.vlgmr.msra.gmra.mrb[8].mxu1 %vm83_vm3, %v7598_v42  ;;  %3000 = vrot.lane.b32.xlu1 %v2983_v55, %s7655_s23  ;;  %v815_v26 = vsel %vm814_vm6, %v801_v61, %v803_v53  ;;  %v3499_v55 = vld [vmem:[%s9019_s0 + $0x8] sm:$0x3f] }
  0xa1   :  { %615 = vmatpush1.bf16.msra.mxu1 %v557_v56  ;;  %646 = vmatprep.mubr.bf16.mxu1 %v7641_v12  ;;  %v7902_v63 = vpop.permute.xlu1 %810  ;;  %v825_v32 = vand.u32 %v815_v26, %v7804_v59  ;;  %v3524_v24 = vcombine.high %v3499_v55, %v3499_v55 }
  0xa2   :  { %6890 = vmatmul.mubr.msk.bf16.vlgmr.msra.gmra.mrb[4].mxu0 %vm83_vm3, %v7598_v42  ;;  %7131 = vmatprep.subr.bf16.mxu1 %v7652_v21  ;;  %v819_v16 = vsel %vm814_vm6, %v7882_v51, %v7902_v63 }
  0xa3   :  { %572 = vmatpush1.bf16.msra.mxu0 %v551_v60  ;;  %603 = vmatprep.mubr.bf16.mxu0 %v7641_v12  ;;  %v7909_v1 = vpop.permute.xlu0 %812  ;;  %v837_v47 = vand.u32 %v819_v16, %v7804_v59  ;;  %v3531_v60 = vrot.slane %v3499_v55, %v7695_v8  ;;  %v3538_v31 = vrot.slane %v3524_v24, %v7695_v8 }
  0xa4   :  { %657 = vmatprep.subr.bf16.mxu0 %v566_v62  ;;  %2996 = vrot.lane.b32.xlu1 %v7704_v11, %s7655_s23  ;;  %v820_v29 = vsel %vm814_vm6, %v7902_v63, %v7909_v1  ;;  %v843_v40 = vand.u32 %v7909_v1, %v7804_v59  ;;  %vm4650_vm6 = vcmask 539648  }
  0xa5   :  { %v7918_v6 = vpop.permute.xlu1 %1080  ;;  %2994 = vrot.lane.b32.xlu0 %v7711_v13, %s7655_s23  ;;  %v840_v34 = vand.u32 %v820_v29, %v7804_v59 }
  0xa7   :  { %v7925_v18 = vpop.permute.xlu0 %1082 }
  0xa8   :  { %6896 = vmatmul.mubr.msk.bf16.vlgmr.msra.gmra.mrb[0].mxu1 %vm83_vm3, %v7600_v2  ;;  %3002 = vrot.lane.b32.xlu1 %v2991_v3, %s7655_s23  ;;  %v1092_v37 = vsel %vm1088_vm7, %v7918_v6, %v7925_v18 }
  0xa9   :  { %7132 = vmatpush3.bf16.msra.mxu1 %v569_v4  ;;  %7133 = vmatprep.mubr.msk.bf16.mxu1 %vm7654_vm4, %v7652_v21  ;;  %v1077_v23 = vpop.permute.xlu1 %1076  ;;  %v1108_v43 = vand.u32 %v1092_v37, %v7804_v59 }
  0xaa   :  { %6895 = vmatmul.mubr.msk.bf16.vlgmr.msra.gmra.mrb[0].mxu0 %vm83_vm3, %v7600_v2  ;;  %888 = vmatprep.subr.bf16.mxu1 %v834_v15 }
  0xab   :  { %658 = vmatpush1.bf16.msra.mxu0 %v563_v22  ;;  %689 = vmatprep.mubr.bf16.mxu0 %v7641_v12  ;;  %v1079_v25 = vpop.permute.xlu0 %1078 }
  0xac   :  { %845 = vmatprep.subr.bf16.mxu0 %v828_v19  ;;  %2992 = vrot.lane.b32.xlu0 %v7701_v10, %s7655_s23  ;;  %v1090_v41 = vsel %vm1088_vm7, %v1077_v23, %v1079_v25  ;;  %v1091_v50 = vsel %vm1088_vm7, %v1079_v25, %v7918_v6  ;;  %v3539_v19 = vcombine.high %v3531_v60, %v3531_v60 }
  0xad   :  { %v1075_v30 = vpop.permute.xlu1 %1074  ;;  %3272 = vrot.lane.b32.xlu1 %v7715_v14, %s7656_s26  ;;  %v1102_v45 = vand.u32 %v1090_v41, %v7804_v59  ;;  %v1105_v9 = vand.u32 %v1091_v50, %v7804_v59 }
  0xae   :  { %v1089_v51 = vsel %vm1088_vm7, %v1075_v30, %v1077_v23 }
  0xaf   :  { %v7950_v33 = vpop.permute.xlu0 %1084  ;;  %v1099_v56 = vand.u32 %v1089_v51, %v7804_v59 }
  0xb0   :  { %7134 = vmatmul.mubr.msk.bf16.vlgmr.msra.gmra.mrb[12].mxu1 %vm83_vm3, %v7600_v2  ;;  %3004 = vrot.lane.b32.xlu0 %v2990_v27, %s7655_s23  ;;  %v1093_v4 = vsel %vm1088_vm7, %v7925_v18, %v7950_v33  ;;  %s7665_s23 = smov 47  }
  0xb1   :  { %889 = vmatpush1.bf16.msra.mxu1 %v831_v28  ;;  %920 = vmatprep.mubr.bf16.mxu1 %v7641_v12  ;;  %v7957_v36 = vpop.permute.xlu1 %1086  ;;  %v1111_v15 = vand.u32 %v1093_v4, %v7804_v59 }
  0xb2   :  { %6897 = vmatmul.mubr.msk.bf16.vlgmr.msra.gmra.mrb[4].mxu0 %vm83_vm3, %v7600_v2  ;;  %7137 = vmatprep.subr.bf16.mxu1 %v7652_v21  ;;  %v1094_v53 = vsel %vm1088_vm7, %v7950_v33, %v7957_v36  ;;  %v1117_v1 = vand.u32 %v7957_v36, %v7804_v59  ;;  %v7606_v36 = vld [vmem:[%s9020_s1 + $0x28] sm:$0xff]   ;;  %vm4924_vm7 = vcmask 531456  }
  0xb3   :  { %846 = vmatpush1.bf16.msra.mxu0 %v825_v32  ;;  %877 = vmatprep.mubr.bf16.mxu0 %v7641_v12  ;;  %v7965_v38 = vpop.permute.xlu0 %1354  ;;  %v1114_v58 = vand.u32 %v1094_v53, %v7804_v59  ;;  %v3773_v32 = vld [vmem:[%s9019_s0 + $0x8] sm:$0x3f] }
  0xb4   :  { %931 = vmatprep.subr.bf16.mxu0 %v840_v34  ;;  %3274 = vrot.lane.b32.xlu0 %v3257_v35, %s7656_s26  ;;  %v3805_v37 = vrot.slane %v3773_v32, %v7695_v8  ;;  %v3798_v51 = vcombine.high %v3773_v32, %v3773_v32 }
  0xb5   :  { %v7974_v42 = vpop.permute.xlu1 %1356  ;;  %3268 = vrot.lane.b32.xlu1 %v7711_v13, %s7656_s26 }
  0xb6   :  { %v1366_v62 = vsel %vm1362_vm8, %v7965_v38, %v7974_v42 }
  0xb7   :  { %v7982_v44 = vpop.permute.xlu0 %1350  ;;  %v1382_v5 = vand.u32 %v1366_v62, %v7804_v59 }
  0xb8   :  { %6903 = vmatmul.mubr.msk.bf16.vlgmr.msra.gmra.mrb[0].mxu1 %vm83_vm3, %v7602_v39  ;;  %3270 = vrot.lane.b32.xlu0 %v7704_v11, %s7656_s26 }
  0xb9   :  { %7138 = vmatpush3.bf16.msra.mxu1 %v843_v40  ;;  %7139 = vmatprep.mubr.msk.bf16.mxu1 %vm7654_vm4, %v7652_v21  ;;  %v1353_v48 = vpop.permute.xlu1 %1352 }
  0xba   :  { %6902 = vmatmul.mubr.msk.bf16.vlgmr.msra.gmra.mrb[0].mxu0 %vm83_vm3, %v7602_v39  ;;  %1162 = vmatprep.subr.bf16.mxu1 %v1108_v43  ;;  %v1364_v2 = vsel %vm1362_vm8, %v7982_v44, %v1353_v48  ;;  %v1365_v18 = vsel %vm1362_vm8, %v1353_v48, %v7965_v38 }
  0xbb   :  { %932 = vmatpush1.bf16.msra.mxu0 %v837_v47  ;;  %963 = vmatprep.mubr.bf16.mxu0 %v7641_v12  ;;  %v1349_v17 = vpop.permute.xlu0 %1348  ;;  %v1376_v7 = vand.u32 %v1364_v2, %v7804_v59  ;;  %v1379_v25 = vand.u32 %v1365_v18, %v7804_v59 }
  0xbc   :  { %1119 = vmatprep.subr.bf16.mxu0 %v1102_v45  ;;  %3266 = vrot.lane.b32.xlu1 %v7701_v10, %s7656_s26  ;;  %v1363_v23 = vsel %vm1362_vm8, %v1349_v17, %v7982_v44  ;;  %v4046_v44 = vld [vmem:[%s9019_s0] sm:$0xff] }
  0xbd   :  { %3276 = vrot.lane.b32.xlu0 %v3265_v49, %s7656_s26  ;;  %v8004_v54 = vpop.permute.xlu1 %1358  ;;  %v1373_v28 = vand.u32 %v1363_v23, %v7804_v59  ;;  %v4055_v47 = vcombine.high %v4046_v44, %v4046_v44 }
  0xbe   :  { %v1367_v41 = vsel %vm1362_vm8, %v7974_v42, %v8004_v54 }
  0xbf   :  { %v8010_v57 = vpop.permute.xlu0 %1360  ;;  %v8138_v53 = vrot.slane %v4055_v47, %v7695_v8 }
  0xc0   :  { %7140 = vmatmul.mubr.msk.bf16.vlgmr.msra.gmra.mrb[16].mxu1 %vm83_vm3, %v7602_v39  ;;  %3278 = vrot.lane.b32.xlu1 %v3264_v52, %s7656_s26  ;;  %v1368_v26 = vsel %vm1362_vm8, %v8004_v54, %v8010_v57  ;;  %v1391_v38 = vand.u32 %v8010_v57, %v7804_v59  ;;  %vm5198_vm8 = vcmask 523264  }
  0xc1   :  { %1163 = vmatpush1.bf16.msra.mxu1 %v1105_v9  ;;  %1194 = vmatprep.mubr.bf16.mxu1 %v7641_v12  ;;  %v8017_v61 = vpop.permute.xlu1 %1628  ;;  %v1388_v30 = vand.u32 %v1368_v26, %v7804_v59  ;;  %v3813_v9 = vcombine.high %v3805_v37, %v3805_v37  ;;  %v8155_v57 = vcombine.high %v8138_v53, %v8138_v53 }
  0xc2   :  { %6904 = vmatmul.mubr.msk.bf16.vlgmr.msra.gmra.mrb[4].mxu0 %vm83_vm3, %v7602_v39  ;;  %7143 = vmatprep.subr.bf16.mxu1 %v7652_v21 }
  0xc3   :  { %1120 = vmatpush1.bf16.msra.mxu0 %v1099_v56  ;;  %1151 = vmatprep.mubr.bf16.mxu0 %v7641_v12  ;;  %v8025_v63 = vpop.permute.xlu0 %1630 }
  0xc4   :  { %1205 = vmatprep.subr.bf16.mxu0 %v1114_v58  ;;  %3548 = vrot.lane.b32.xlu1 %v3531_v60, %s7657_s8  ;;  %v1640_v34 = vsel %vm1636_vm9, %v8017_v61, %v8025_v63  ;;  %v7608_v60 = vld [vmem:[%s9020_s1 + $0x30] sm:$0xff]  }
  0xc5   :  { %3546 = vrot.lane.b32.xlu0 %v7715_v14, %s7657_s8  ;;  %v8037_v3 = vpop.permute.xlu1 %1624  ;;  %v1656_v16 = vand.u32 %v1640_v34, %v7804_v59 }
  0xc7   :  { %v1627_v6 = vpop.permute.xlu0 %1626 }
  0xc8   :  { %6910 = vmatmul.mubr.msk.bf16.vlgmr.msra.gmra.mrb[0].mxu1 %vm83_vm3, %v7604_v0  ;;  %3544 = vrot.lane.b32.xlu1 %v7704_v11, %s7657_s8  ;;  %v1638_v39 = vsel %vm1636_vm9, %v8037_v3, %v1627_v6  ;;  %v1639_v46 = vsel %vm1636_vm9, %v1627_v6, %v8017_v61  ;;  %v4047_v61 = vld [vmem:[%s9019_s0 + $0x8] sm:$0x3f] }
  0xc9   :  { %7144 = vmatpush3.bf16.msra.mxu1 %v1117_v1  ;;  %7145 = vmatprep.mubr.msk.bf16.mxu1 %vm7654_vm4, %v7652_v21  ;;  %v1623_v20 = vpop.permute.xlu1 %1622  ;;  %v1650_v45 = vand.u32 %v1638_v39, %v7804_v59  ;;  %v1653_v50 = vand.u32 %v1639_v46, %v7804_v59  ;;  %v8177_v1 = vrot.slane %v4046_v44, %v7695_v8 }
  0xca   :  { %6909 = vmatmul.mubr.msk.bf16.vlgmr.msra.gmra.mrb[0].mxu0 %vm83_vm3, %v7604_v0  ;;  %1436 = vmatprep.subr.bf16.mxu1 %v1382_v5  ;;  %v1637_v49 = vsel %vm1636_vm9, %v1623_v20, %v8037_v3  ;;  %v4079_v5 = vrot.slane %v4047_v61, %v7695_v8  ;;  %v4072_v26 = vcombine.high %v4047_v61, %v4047_v61 }
  0xcb   :  { %1206 = vmatpush1.bf16.msra.mxu0 %v1111_v15  ;;  %1237 = vmatprep.mubr.bf16.mxu0 %v7641_v12  ;;  %v8054_v22 = vpop.permute.xlu0 %1632  ;;  %v1647_v54 = vand.u32 %v1637_v49, %v7804_v59 }
  0xcc   :  { %1393 = vmatprep.subr.bf16.mxu0 %v1376_v7  ;;  %3542 = vrot.lane.b32.xlu0 %v7711_v13, %s7657_s8  ;;  %v1641_v3 = vsel %vm1636_vm9, %v8025_v63, %v8054_v22  ;;  %v8197_v63 = vcombine.high %v8177_v1, %v8177_v1 }
  0xcd   :  { %3550 = vrot.lane.b32.xlu1 %v3539_v19, %s7657_s8  ;;  %v8065_v27 = vpop.permute.xlu1 %1634  ;;  %v1659_v15 = vand.u32 %v1641_v3, %v7804_v59 }
  0xce   :  { %v1642_v17 = vsel %vm1636_vm9, %v8054_v22, %v8065_v27  ;;  %v1665_v62 = vand.u32 %v8065_v27, %v7804_v59  ;;  %vm5472_vm9 = vcmask 392192  }
  0xcf   :  { %v8068_v29 = vpop.permute.xlu0 %1902 }
  0xd0   :  { %7146 = vmatmul.mubr.msk.bf16.vlgmr.msra.gmra.mrb[20].mxu1 %vm83_vm3, %v7604_v0  ;;  %3540 = vrot.lane.b32.xlu0 %v7701_v10, %s7657_s8 }
  0xd1   :  { %1437 = vmatpush1.bf16.msra.mxu1 %v1379_v25  ;;  %1468 = vmatprep.mubr.bf16.mxu1 %v7641_v12  ;;  %v8079_v33 = vpop.permute.xlu1 %1904 }
  0xd2   :  { %6911 = vmatmul.mubr.msk.bf16.vlgmr.msra.gmra.mrb[4].mxu0 %vm83_vm3, %v7604_v0  ;;  %7149 = vmatprep.subr.bf16.mxu1 %v7652_v21 }
  0xd3   :  { %1394 = vmatpush1.bf16.msra.mxu0 %v1373_v28  ;;  %1425 = vmatprep.mubr.bf16.mxu0 %v7641_v12  ;;  %v8087_v35 = vpop.permute.xlu0 %1898  ;;  %v4087_v28 = vcombine.high %v4079_v5, %v4079_v5 }
  0xd4   :  { %1479 = vmatprep.subr.bf16.mxu0 %v1388_v30  ;;  %3552 = vrot.lane.b32.xlu0 %v3538_v31, %s7657_s8  ;;  %v4086_v31 = vrot.slane %v4072_v26, %v7695_v8  ;;  %s7662_s8 = smov 65  }
  0xd5   :  { %3820 = vrot.lane.b32.xlu1 %v7715_v14, %s7658_s13  ;;  %v8100_v40 = vpop.permute.xlu1 %1900  ;;  %v1385_v14 = vand.u32 %v1367_v41, %v7804_v59 }
  0xd6   :  { %v1912_v0 = vsel %vm1910_vm10, %v8087_v35, %v8100_v40  ;;  %v1913_v20 = vsel %vm1910_vm10, %v8100_v40, %v8068_v29 }
  0xd7   :  { %v8106_v43 = vpop.permute.xlu0 %1896  ;;  %v1924_v7 = vand.u32 %v1912_v0, %v7804_v59  ;;  %v1927_v23 = vand.u32 %v1913_v20, %v7804_v59 }
  0xd8   :  { %6917 = vmatmul.mubr.msk.bf16.vlgmr.msra.gmra.mrb[0].mxu1 %vm83_vm3, %v7606_v36  ;;  %3822 = vrot.lane.b32.xlu0 %v3805_v37, %s7658_s13  ;;  %v1911_v22 = vsel %vm1910_vm10, %v8106_v43, %v8087_v35  ;;  %v7611_v35 = vld [vmem:[%s9020_s1 + $0x38] sm:$0xff]  }
  0xd9   :  { %7150 = vmatpush3.bf16.msra.mxu1 %v1391_v38  ;;  %7151 = vmatprep.mubr.msk.bf16.mxu1 %vm7654_vm4, %v7652_v21  ;;  %v8117_v42 = vpop.permute.xlu1 %1906  ;;  %v1921_v27 = vand.u32 %v1911_v22, %v7804_v59 }
  0xda   :  { %6916 = vmatmul.mubr.msk.bf16.vlgmr.msra.gmra.mrb[0].mxu0 %vm83_vm3, %v7606_v36  ;;  %1710 = vmatprep.subr.bf16.mxu1 %v1656_v16  ;;  %v1915_v39 = vsel %vm1910_vm10, %v8079_v33, %v8117_v42 }
  0xdb   :  { %1480 = vmatpush1.bf16.msra.mxu0 %v1385_v14  ;;  %1511 = vmatprep.mubr.bf16.mxu0 %v7641_v12  ;;  %v8123_v48 = vpop.permute.xlu0 %1908 }
  0xdc   :  { %1667 = vmatprep.subr.bf16.mxu0 %v1650_v45  ;;  %3816 = vrot.lane.b32.xlu1 %v7711_v13, %s7658_s13  ;;  %v1662_v13 = vand.u32 %v1642_v17, %v7804_v59  ;;  %v1916_v24 = vsel %vm1910_vm10, %v8117_v42, %v8123_v48  ;;  %v1939_v37 = vand.u32 %v8123_v48, %v7804_v59 }
  0xdd   :  { %3818 = vrot.lane.b32.xlu0 %v7704_v11, %s7658_s13  ;;  %v8135_v52 = vpop.permute.xlu1 %2176  ;;  %v3812_v11 = vrot.slane %v3798_v51, %v7695_v8 }
  0xdf   :  { %v8141_v55 = vpop.permute.xlu0 %2178 }
  0xe0   :  { %7152 = vmatmul.mubr.msk.bf16.vlgmr.msra.gmra.mrb[24].mxu1 %vm83_vm3, %v7606_v36  ;;  %3814 = vrot.lane.b32.xlu1 %v7701_v10, %s7658_s13  ;;  %v1914_v10 = vsel %vm1910_vm10, %v8068_v29, %v8079_v33  ;;  %v1936_v29 = vand.u32 %v1916_v24, %v7804_v59  ;;  %v2188_v34 = vsel %vm2184_vm11, %v8135_v52, %v8141_v55  ;;  %vm5746_vm10 = vcmask 384000  }
  0xe1   :  { %1711 = vmatpush1.bf16.msra.mxu1 %v1653_v50  ;;  %1742 = vmatprep.mubr.bf16.mxu1 %v7641_v12  ;;  %v8149_v56 = vpop.permute.xlu1 %2172  ;;  %v1930_v4 = vand.u32 %v1914_v10, %v7804_v59  ;;  %v2204_v40 = vand.u32 %v2188_v34, %v7804_v59  ;;  %v1933_v33 = vand.u32 %v1915_v39, %v7804_v59 }
  0xe2   :  { %6918 = vmatmul.mubr.msk.bf16.vlgmr.msra.gmra.mrb[4].mxu0 %vm83_vm3, %v7606_v36  ;;  %3824 = vrot.lane.b32.xlu0 %v3813_v9, %s7658_s13  ;;  %v4321_v36 = vld [vmem:[%s9019_s0 + $0x8] sm:$0x3f] }
  0xe3   :  { %1668 = vmatpush1.bf16.msra.mxu0 %v1647_v54  ;;  %1699 = vmatprep.mubr.bf16.mxu0 %v7641_v12  ;;  %v8161_v58 = vpop.permute.xlu0 %2174  ;;  %v4353_v16 = vrot.slane %v4321_v36, %v7695_v8  ;;  %v4346_v49 = vcombine.high %v4321_v36, %v4321_v36 }
  0xe4   :  { %1753 = vmatprep.subr.bf16.mxu0 %v1662_v13  ;;  %7155 = vmatprep.subr.bf16.mxu1 %v7652_v21  ;;  %v2186_v38 = vsel %vm2184_vm11, %v8149_v56, %v8161_v58  ;;  %v2187_v45 = vsel %vm2184_vm11, %v8161_v58, %v8135_v52 }
  0xe5   :  { %3826 = vrot.lane.b32.xlu1 %v3812_v11, %s7658_s13  ;;  %v8179_v2 = vpop.permute.xlu1 %2170  ;;  %v2198_v43 = vand.u32 %v2186_v38, %v7804_v59  ;;  %v2201_v47 = vand.u32 %v2187_v45, %v7804_v59  ;;  %v4361_v17 = vcombine.high %v4353_v16, %v4353_v16  ;;  %v4360_v52 = vrot.slane %v4346_v49, %v7695_v8  ;;  %v7613_v11 = vld [vmem:[%s9020_s1 + $0x40] sm:$0xff]   ;;  %s7663_s13 = smov 64  }
  0xe6   :  { %4094 = vrot.lane.b32.xlu0 %v8155_v57, %s7659_s20  ;;  %v2185_v14 = vsel %vm2184_vm11, %v8179_v2, %v8149_v56  ;;  %v4595_v56 = vld [vmem:[%s9019_s0 + $0x8] sm:$0x3f] }
  0xe7   :  { %v8188_v6 = vpop.permute.xlu0 %2180  ;;  %v2195_v50 = vand.u32 %v2185_v14, %v7804_v59 }
  0xe8   :  { %6924 = vmatmul.mubr.msk.bf16.vlgmr.msra.gmra.mrb[0].mxu1 %vm83_vm3, %v7608_v60 }
  0xe9   :  { %7156 = vmatpush3.bf16.msra.mxu1 %v1665_v62  ;;  %7157 = vmatprep.mubr.msk.bf16.mxu1 %vm7654_vm4, %v7652_v21  ;;  %v8199_v19 = vpop.permute.xlu1 %2182  ;;  %v4627_v62 = vrot.slane %v4595_v56, %v7695_v8 }
  0xea   :  { %6923 = vmatmul.mubr.msk.bf16.vlgmr.msra.gmra.mrb[0].mxu0 %vm83_vm3, %v7608_v60  ;;  %1984 = vmatprep.subr.bf16.mxu1 %v1930_v4  ;;  %v2190_v48 = vsel %vm2184_vm11, %v8188_v6, %v8199_v19  ;;  %v2213_v10 = vand.u32 %v8199_v19, %v7804_v59  ;;  %v4620_v19 = vcombine.high %v4595_v56, %v4595_v56 }
  0xeb   :  { %1754 = vmatpush1.bf16.msra.mxu0 %v1659_v15  ;;  %4096 = vrot.lane.b32.xlu1 %v4079_v5, %s7659_s20  ;;  %v8206_v18 = vpop.permute.xlu0 %2450  ;;  %v2210_v51 = vand.u32 %v2190_v48, %v7804_v59  ;;  %v4635_v22 = vcombine.high %v4627_v62, %v4627_v62 }
  0xec   :  { %1941 = vmatprep.subr.bf16.mxu0 %v1924_v7  ;;  %1785 = vmatprep.mubr.bf16.mxu0 %v7641_v12  ;;  %v4634_v24 = vrot.slane %v4620_v19, %v7695_v8 }
  0xed   :  { %4090 = vrot.lane.b32.xlu0 %v8197_v63, %s7659_s20  ;;  %v8218_v25 = vpop.permute.xlu1 %2452 }
  0xee   :  { %v2462_v13 = vsel %vm2458_vm12, %v8206_v18, %v8218_v25 }
  0xef   :  { %4092 = vrot.lane.b32.xlu1 %v8138_v53, %s7659_s20  ;;  %v8225_v30 = vpop.permute.xlu0 %2446  ;;  %v2478_v61 = vand.u32 %v2462_v13, %v7804_v59 }
  0xf0   :  { %7158 = vmatmul.mubr.msk.bf16.vlgmr.msra.gmra.mrb[28].mxu1 %vm83_vm3, %v7608_v60 }
  0xf1   :  { %1985 = vmatpush1.bf16.msra.mxu1 %v1927_v23  ;;  %2016 = vmatprep.mubr.bf16.mxu1 %v7641_v12  ;;  %v8232_v32 = vpop.permute.xlu1 %2448 }
  0xf2   :  { %6925 = vmatmul.mubr.msk.bf16.vlgmr.msra.gmra.mrb[4].mxu0 %vm83_vm3, %v7608_v60  ;;  %4088 = vrot.lane.b32.xlu0 %v8177_v1, %s7659_s20  ;;  %v2460_v58 = vsel %vm2458_vm12, %v8225_v30, %v8232_v32  ;;  %v2189_v60 = vsel %vm2184_vm11, %v8141_v55, %v8188_v6  ;;  %v2461_v55 = vsel %vm2458_vm12, %v8232_v32, %v8206_v18  ;;  %vm6020_vm11 = vcmask 375808  }
  0xf3   :  { %1942 = vmatpush1.bf16.msra.mxu0 %v1921_v27  ;;  %4098 = vrot.lane.b32.xlu1 %v4087_v28, %s7659_s20  ;;  %v8256_v41 = vpop.permute.xlu0 %2444  ;;  %v2472_v0 = vand.u32 %v2460_v58, %v7804_v59  ;;  %v2207_v4 = vand.u32 %v2189_v60, %v7804_v59  ;;  %v2475_v6 = vand.u32 %v2461_v55, %v7804_v59 }
  0xf4   :  { %2027 = vmatprep.subr.bf16.mxu0 %v1936_v29  ;;  %1973 = vmatprep.mubr.bf16.mxu0 %v7641_v12  ;;  %v2459_v5 = vsel %vm2458_vm12, %v8256_v41, %v8225_v30  ;;  %v7615_v29 = vld [vmem:[%s9020_s1 + $0x48] sm:$0xff]  }
  0xf5   :  { %7161 = vmatprep.subr.bf16.mxu1 %v7652_v21  ;;  %v8263_v44 = vpop.permute.xlu1 %2454  ;;  %v2469_v18 = vand.u32 %v2459_v5, %v7804_v59  ;;  %v4869_v30 = vld [vmem:[%s9019_s0 + $0x8] sm:$0x3f] }
  0xf6   :  { %4100 = vrot.lane.b32.xlu0 %v4086_v31, %s7659_s20  ;;  %v2463_v34 = vsel %vm2458_vm12, %v8218_v25, %v8263_v44  ;;  %v4901_v36 = vrot.slane %v4869_v30, %v7695_v8  ;;  %v4894_v45 = vcombine.high %v4869_v30, %v4869_v30 }
  0xf7   :  { %4368 = vrot.lane.b32.xlu1 %v8155_v57, %s7660_s25 }
  0xf8   :  { %6931 = vmatmul.mubr.msk.bf16.vlgmr.msra.gmra.mrb[0].mxu1 %vm83_vm3, %v7611_v35  ;;  %v8277_v42 = vpop.permute.xlu0 %2456 }
  0xf9   :  { %7162 = vmatpush3.bf16.msra.mxu1 %v1939_v37  ;;  %7163 = vmatprep.mubr.msk.bf16.mxu1 %vm7654_vm4, %v7652_v21  ;;  %v8279_v46 = vpop.permute.xlu1 %2724  ;;  %v2464_v7 = vsel %vm2458_vm12, %v8263_v44, %v8277_v42  ;;  %v2487_v31 = vand.u32 %v8277_v42, %v7804_v59  ;;  %v4909_v42 = vcombine.high %v4901_v36, %v4901_v36  ;;  %vm6294_vm12 = vcmask 367616  }
  0xfa   :  { %6930 = vmatmul.mubr.msk.bf16.vlgmr.msra.gmra.mrb[0].mxu0 %vm83_vm3, %v7611_v35  ;;  %2258 = vmatprep.subr.bf16.mxu1 %v2204_v40  ;;  %v2484_v23 = vand.u32 %v2464_v7, %v7804_v59  ;;  %v2481_v40 = vand.u32 %v2463_v34, %v7804_v59 }
  0xfb   :  { %2028 = vmatpush1.bf16.msra.mxu0 %v1933_v33  ;;  %4370 = vrot.lane.b32.xlu0 %v4353_v16, %s7660_s25 }
  0xfc   :  { %2215 = vmatprep.subr.bf16.mxu0 %v2198_v43  ;;  %2059 = vmatprep.mubr.bf16.mxu0 %v7641_v12 }
  0xfd   :  { %4364 = vrot.lane.b32.xlu1 %v8197_v63, %s7660_s25 }
  0xff   :  { %4366 = vrot.lane.b32.xlu0 %v8138_v53, %s7660_s25  ;;  %v8297_v9 = vpop.permute.xlu0 %2726 }
 0x100   :  { %7164 = vmatmul.mubr.msk.bf16.vlgmr.msra.gmra.mrb[32].mxu1 %vm83_vm3, %v7611_v35  ;;  %v8299_v54 = vpop.permute.xlu1 %2720  ;;  %v2736_v28 = vsel %vm2732_vm13, %v8279_v46, %v8297_v9 }
 0x101   :  { %2259 = vmatpush1.bf16.msra.mxu1 %v2201_v47  ;;  %2290 = vmatprep.mubr.bf16.mxu1 %v7641_v12  ;;  %v4908_v47 = vrot.slane %v4894_v45, %v7695_v8 }
 0x102   :  { %6932 = vmatmul.mubr.msk.bf16.vlgmr.msra.gmra.mrb[4].mxu0 %vm83_vm3, %v7611_v35  ;;  %4362 = vrot.lane.b32.xlu1 %v8177_v1, %s7660_s25  ;;  %v2752_v35 = vand.u32 %v2736_v28, %v7804_v59 }
 0x103   :  { %2216 = vmatpush1.bf16.msra.mxu0 %v2195_v50  ;;  %4372 = vrot.lane.b32.xlu0 %v4361_v17, %s7660_s25  ;;  %v7617_v17 = vld [vmem:[%s9020_s1 + $0x50] sm:$0xff]  }
 0x104   :  { %2301 = vmatprep.subr.bf16.mxu0 %v2210_v51  ;;  %2247 = vmatprep.mubr.bf16.mxu0 %v7641_v12  ;;  %v5143_v51 = vld [vmem:[%s9019_s0 + $0x8] sm:$0x3f] }
 0x105   :  { %7167 = vmatprep.subr.bf16.mxu1 %v7652_v21  ;;  %v5175_v56 = vrot.slane %v5143_v51, %v7695_v8  ;;  %v5168_v55 = vcombine.high %v5143_v51, %v5143_v51 }
 0x106   :  { %4374 = vrot.lane.b32.xlu1 %v4360_v52, %s7660_s25  ;;  %v2723_v2 = vpop.permute.xlu0 %2722 }
 0x107   :  { %4642 = vrot.lane.b32.xlu0 %v8155_v57, %s7661_s30  ;;  %v2719_v3 = vpop.permute.xlu1 %2718  ;;  %v2734_v32 = vsel %vm2732_vm13, %v8299_v54, %v2723_v2  ;;  %v2735_v25 = vsel %vm2732_vm13, %v2723_v2, %v8279_v46 }
 0x108   :  { %6938 = vmatmul.mubr.msk.bf16.vlgmr.msra.gmra.mrb[0].mxu1 %vm83_vm3, %v7613_v11  ;;  %v2746_v37 = vand.u32 %v2734_v32, %v7804_v59  ;;  %v2733_v41 = vsel %vm2732_vm13, %v2719_v3, %v8299_v54  ;;  %v2749_v16 = vand.u32 %v2735_v25, %v7804_v59 }
 0x109   :  { %7168 = vmatpush3.bf16.msra.mxu1 %v2213_v10  ;;  %7169 = vmatprep.mubr.msk.bf16.mxu1 %vm7654_vm4, %v7652_v21  ;;  %v2743_v14 = vand.u32 %v2733_v41, %v7804_v59 }
 0x10a   :  { %6937 = vmatmul.mubr.msk.bf16.vlgmr.msra.gmra.mrb[0].mxu0 %vm83_vm3, %v7613_v11  ;;  %2532 = vmatprep.subr.bf16.mxu1 %v2478_v61  ;;  %v8346_v15 = vpop.permute.xlu0 %2728 }
 0x10b   :  { %2302 = vmatpush1.bf16.msra.mxu0 %v2207_v4  ;;  %4644 = vrot.lane.b32.xlu1 %v4627_v62, %s7661_s30  ;;  %v2737_v13 = vsel %vm2732_vm13, %v8297_v9, %v8346_v15 }
 0x10c   :  { %2489 = vmatprep.subr.bf16.mxu0 %v2472_v0  ;;  %2333 = vmatprep.mubr.bf16.mxu0 %v7641_v12  ;;  %v2755_v61 = vand.u32 %v2737_v13, %v7804_v59 }
 0x10d   :  { %4638 = vrot.lane.b32.xlu0 %v8197_v63, %s7661_s30 }
 0x10e   :  { %v8348_v20 = vpop.permute.xlu1 %2730 }
 0x10f   :  { %4640 = vrot.lane.b32.xlu1 %v8138_v53, %s7661_s30  ;;  %v8362_v27 = vpop.permute.xlu0 %2998  ;;  %v2738_v43 = vsel %vm2732_vm13, %v8346_v15, %v8348_v20  ;;  %v2761_v52 = vand.u32 %v8348_v20, %v7804_v59  ;;  %v5182_v15 = vrot.slane %v5168_v55, %v7695_v8  ;;  %vm6568_vm13 = vcmask 359424  }
 0x110   :  { %7170 = vmatmul.mubr.msk.bf16.vlgmr.msra.gmra.mrb[36].mxu1 %vm83_vm3, %v7613_v11  ;;  %v2758_v46 = vand.u32 %v2738_v43, %v7804_v59 }
 0x111   :  { %2533 = vmatpush1.bf16.msra.mxu1 %v2475_v6  ;;  %2564 = vmatprep.mubr.bf16.mxu1 %v7641_v12  ;;  %v5183_v6 = vcombine.high %v5175_v56, %v5175_v56 }
 0x112   :  { %6939 = vmatmul.mubr.msk.bf16.vlgmr.msra.gmra.mrb[4].mxu0 %vm83_vm3, %v7613_v11  ;;  %4636 = vrot.lane.b32.xlu0 %v8177_v1, %s7661_s30  ;;  %v8360_v26 = vpop.permute.xlu1 %3000 }
 0x113   :  { %2490 = vmatpush1.bf16.msra.mxu0 %v2469_v18  ;;  %4646 = vrot.lane.b32.xlu1 %v4635_v22, %s7661_s30  ;;  %v3010_v50 = vsel %vm3006_vm14, %v8362_v27, %v8360_v26  ;;  %v7619_v18 = vld [vmem:[%s9020_s1 + $0x58] sm:$0xff]  }
 0x114   :  { %2575 = vmatprep.subr.bf16.mxu0 %v2484_v23  ;;  %2521 = vmatprep.mubr.bf16.mxu0 %v7641_v12  ;;  %v3026_v11 = vand.u32 %v3010_v50, %v7804_v59  ;;  %v5417_v23 = vld [vmem:[%s9019_s0 + $0x8] sm:$0x3f] }
 0x115   :  { %7173 = vmatprep.subr.bf16.mxu1 %v7652_v21  ;;  %v5449_v30 = vrot.slane %v5417_v23, %v7695_v8  ;;  %v5442_v25 = vcombine.high %v5417_v23, %v5417_v23 }
 0x116   :  { %4648 = vrot.lane.b32.xlu0 %v4634_v24, %s7661_s30  ;;  %v2997_v38 = vpop.permute.xlu1 %2996 }
 0x117   :  { %4916 = vrot.lane.b32.xlu1 %v8155_v57, %s7662_s8  ;;  %v2995_v39 = vpop.permute.xlu0 %2994  ;;  %v3009_v9 = vsel %vm3006_vm14, %v2997_v38, %v8362_v27 }
 0x118   :  { %6945 = vmatmul.mubr.msk.bf16.vlgmr.msra.gmra.mrb[0].mxu1 %vm83_vm3, %v7615_v29  ;;  %v3008_v54 = vsel %vm3006_vm14, %v2995_v39, %v2997_v38  ;;  %v3023_v0 = vand.u32 %v3009_v9, %v7804_v59 }
 0x119   :  { %7174 = vmatpush3.bf16.msra.mxu1 %v2487_v31  ;;  %7175 = vmatprep.mubr.msk.bf16.mxu1 %vm7654_vm4, %v7652_v21  ;;  %v3020_v10 = vand.u32 %v3008_v54, %v7804_v59 }
 0x11a   :  { %6944 = vmatmul.mubr.msk.bf16.vlgmr.msra.gmra.mrb[0].mxu0 %vm83_vm3, %v7615_v29  ;;  %2806 = vmatprep.subr.bf16.mxu1 %v2752_v35  ;;  %v8406_v44 = vpop.permute.xlu1 %3002 }
 0x11b   :  { %2576 = vmatpush1.bf16.msra.mxu0 %v2481_v40  ;;  %4918 = vrot.lane.b32.xlu0 %v4901_v36, %s7662_s8  ;;  %v3011_v28 = vsel %vm3006_vm14, %v8360_v26, %v8406_v44 }
 0x11c   :  { %2763 = vmatprep.subr.bf16.mxu0 %v2746_v37  ;;  %2607 = vmatprep.mubr.bf16.mxu0 %v7641_v12  ;;  %v3029_v35 = vand.u32 %v3011_v28, %v7804_v59 }
 0x11d   :  { %4912 = vrot.lane.b32.xlu1 %v8197_v63, %s7662_s8 }
 0x11e   :  { %v2993_v33 = vpop.permute.xlu0 %2992 }
 0x11f   :  { %4914 = vrot.lane.b32.xlu0 %v8138_v53, %s7662_s8  ;;  %v8420_v49 = vpop.permute.xlu1 %3272  ;;  %v3007_v62 = vsel %vm3006_vm14, %v2993_v33, %v2995_v39  ;;  %v5456_v33 = vrot.slane %v5442_v25, %v7695_v8 }
 0x120   :  { %7176 = vmatmul.mubr.msk.bf16.vlgmr.msra.gmra.mrb[40].mxu1 %vm83_vm3, %v7615_v29  ;;  %v3017_v5 = vand.u32 %v3007_v62, %v7804_v59 }
 0x121   :  { %2807 = vmatpush1.bf16.msra.mxu1 %v2749_v16  ;;  %2838 = vmatprep.mubr.bf16.mxu1 %v7641_v12  ;;  %v5457_v16 = vcombine.high %v5449_v30, %v5449_v30 }
 0x122   :  { %6946 = vmatmul.mubr.msk.bf16.vlgmr.msra.gmra.mrb[4].mxu0 %vm83_vm3, %v7615_v29  ;;  %4910 = vrot.lane.b32.xlu1 %v8177_v1, %s7662_s8  ;;  %v8418_v48 = vpop.permute.xlu0 %3004 }
 0x123   :  { %2764 = vmatpush1.bf16.msra.mxu0 %v2743_v14  ;;  %4920 = vrot.lane.b32.xlu0 %v4909_v42, %s7662_s8  ;;  %v3012_v2 = vsel %vm3006_vm14, %v8406_v44, %v8418_v48  ;;  %v3035_v24 = vand.u32 %v8418_v48, %v7804_v59  ;;  %v7621_v14 = vld [vmem:[%s9020_s1 + $0x60] sm:$0xff]  }
 0x124   :  { %2849 = vmatprep.subr.bf16.mxu0 %v2758_v46  ;;  %2795 = vmatprep.mubr.bf16.mxu0 %v7641_v12  ;;  %v3032_v7 = vand.u32 %v3012_v2, %v7804_v59  ;;  %v5691_v46 = vld [vmem:[%s9019_s0 + $0x8] sm:$0x3f] }
 0x125   :  { %7179 = vmatprep.subr.bf16.mxu1 %v7652_v21  ;;  %v5723_v51 = vrot.slane %v5691_v46, %v7695_v8  ;;  %v5716_v9 = vcombine.high %v5691_v46, %v5691_v46 }
 0x126   :  { %4922 = vrot.lane.b32.xlu1 %v4908_v47, %s7662_s8  ;;  %v8447_v58 = vpop.permute.xlu0 %3274 }
 0x127   :  { %5190 = vrot.lane.b32.xlu0 %v8155_v57, %s7663_s13  ;;  %v3269_v60 = vpop.permute.xlu1 %3268  ;;  %v3284_v20 = vsel %vm3280_vm15, %v8420_v49, %v8447_v58  ;;  %v5731_v2 = vcombine.high %v5723_v51, %v5723_v51  ;;  %v5730_v55 = vrot.slane %v5716_v9, %v7695_v8 }
 0x128   :  { %6952 = vmatmul.mubr.msk.bf16.vlgmr.msra.gmra.mrb[0].mxu1 %vm83_vm3, %v7617_v17  ;;  %v3300_v29 = vand.u32 %v3284_v20, %v7804_v59 }
 0x129   :  { %7180 = vmatpush3.bf16.msra.mxu1 %v2761_v52  ;;  %7181 = vmatprep.mubr.msk.bf16.mxu1 %vm7654_vm4, %v7652_v21 }
 0x12a   :  { %6951 = vmatmul.mubr.msk.bf16.vlgmr.msra.gmra.mrb[0].mxu0 %vm83_vm3, %v7617_v17  ;;  %3080 = vmatprep.subr.bf16.mxu1 %v3026_v11  ;;  %v3271_v3 = vpop.permute.xlu0 %3270 }
 0x12b   :  { %2850 = vmatpush1.bf16.msra.mxu0 %v2755_v61  ;;  %5192 = vrot.lane.b32.xlu1 %v5175_v56, %s7663_s13  ;;  %v3282_v27 = vsel %vm3280_vm15, %v3269_v60, %v3271_v3  ;;  %v3283_v26 = vsel %vm3280_vm15, %v3271_v3, %v8420_v49 }
 0x12c   :  { %3037 = vmatprep.subr.bf16.mxu0 %v3020_v10  ;;  %2881 = vmatprep.mubr.bf16.mxu0 %v7641_v12  ;;  %v3294_v31 = vand.u32 %v3282_v27, %v7804_v59  ;;  %v3297_v37 = vand.u32 %v3283_v26, %v7804_v59 }
 0x12d   :  { %5186 = vrot.lane.b32.xlu0 %v8197_v63, %s7663_s13 }
 0x12e   :  { %v3267_v4 = vpop.permute.xlu1 %3266 }
 0x12f   :  { %5188 = vrot.lane.b32.xlu1 %v8138_v53, %s7663_s13  ;;  %v3277_v22 = vpop.permute.xlu0 %3276  ;;  %v3281_v36 = vsel %vm3280_vm15, %v3267_v4, %v3269_v60 }
 0x130   :  { %7182 = vmatmul.mubr.msk.bf16.vlgmr.msra.gmra.mrb[44].mxu1 %vm83_vm3, %v7617_v17  ;;  %v3291_v41 = vand.u32 %v3281_v36, %v7804_v59  ;;  %v3285_v49 = vsel %vm3280_vm15, %v8447_v58, %v3277_v22 }
 0x131   :  { %3081 = vmatpush1.bf16.msra.mxu1 %v3023_v0  ;;  %3112 = vmatprep.mubr.bf16.mxu1 %v7641_v12  ;;  %v3303_v13 = vand.u32 %v3285_v49, %v7804_v59 }
 0x132   :  { %6953 = vmatmul.mubr.msk.bf16.vlgmr.msra.gmra.mrb[4].mxu0 %vm83_vm3, %v7617_v17  ;;  %5184 = vrot.lane.b32.xlu0 %v8177_v1, %s7663_s13  ;;  %v8474_v19 = vpop.permute.xlu1 %3278 }
 0x133   :  { %3038 = vmatpush1.bf16.msra.mxu0 %v3017_v5  ;;  %5194 = vrot.lane.b32.xlu1 %v5183_v6, %s7663_s13  ;;  %v3286_v38 = vsel %vm3280_vm15, %v3277_v22, %v8474_v19  ;;  %v3309_v47 = vand.u32 %v8474_v19, %v7804_v59  ;;  %v7623_v6 = vld [vmem:[%s9020_s1 + $0x68] sm:$0xff]  }
 0x134   :  { %3123 = vmatprep.subr.bf16.mxu0 %v3032_v7  ;;  %3069 = vmatprep.mubr.bf16.mxu0 %v7641_v12  ;;  %v3306_v43 = vand.u32 %v3286_v38, %v7804_v59  ;;  %v5965_v7 = vld [vmem:[%s9019_s0 + $0x8] sm:$0x3f] }
 0x135   :  { %7185 = vmatprep.subr.bf16.mxu1 %v7652_v21  ;;  %v5990_v26 = vcombine.high %v5965_v7, %v5965_v7 }
 0x136   :  { %5196 = vrot.lane.b32.xlu0 %v5182_v15, %s7663_s13  ;;  %v8501_v32 = vpop.permute.xlu1 %3548 }
 0x137   :  { %5464 = vrot.lane.b32.xlu1 %v8155_v57, %s7664_s18  ;;  %v3547_v34 = vpop.permute.xlu0 %3546  ;;  %v6004_v25 = vrot.slane %v5990_v26, %v7695_v8 }
 0x138   :  { %6959 = vmatmul.mubr.msk.bf16.vlgmr.msra.gmra.mrb[0].mxu1 %vm83_vm3, %v7619_v18  ;;  %v3558_v45 = vsel %vm3554_vm0, %v3547_v34, %v8501_v32 }
 0x139   :  { %7186 = vmatpush3.bf16.msra.mxu1 %v3035_v24  ;;  %7187 = vmatprep.mubr.msk.bf16.mxu1 %vm7654_vm4, %v7652_v21  ;;  %v3574_v50 = vand.u32 %v3558_v45, %v7804_v59  ;;  %v5997_v24 = vrot.slane %v5965_v7, %v7695_v8  ;;  %v6239_v45 = vld [vmem:[%s9019_s0 + $0x8] sm:$0x3f] }
 0x13a   :  { %6958 = vmatmul.mubr.msk.bf16.vlgmr.msra.gmra.mrb[0].mxu0 %vm83_vm3, %v7619_v18  ;;  %3354 = vmatprep.subr.bf16.mxu1 %v3300_v29  ;;  %v3545_v39 = vpop.permute.xlu1 %3544  ;;  %v6264_v9 = vcombine.high %v6239_v45, %v6239_v45 }
 0x13b   :  { %3124 = vmatpush1.bf16.msra.mxu0 %v3029_v35  ;;  %5466 = vrot.lane.b32.xlu0 %v5449_v30, %s7664_s18  ;;  %v3557_v11 = vsel %vm3554_vm0, %v3545_v39, %v3547_v34  ;;  %v6005_v38 = vcombine.high %v5997_v24, %v5997_v24 }
 0x13c   :  { %3311 = vmatprep.subr.bf16.mxu0 %v3294_v31  ;;  %3155 = vmatprep.mubr.bf16.mxu0 %v7641_v12  ;;  %v3571_v58 = vand.u32 %v3557_v11, %v7804_v59 }
 0x13d   :  { %5460 = vrot.lane.b32.xlu1 %v8197_v63, %s7664_s18 }
 0x13e   :  { %v3543_v40 = vpop.permute.xlu0 %3542 }
 0x13f   :  { %5462 = vrot.lane.b32.xlu0 %v8138_v53, %s7664_s18  ;;  %v3551_v42 = vpop.permute.xlu1 %3550  ;;  %v3556_v48 = vsel %vm3554_vm0, %v3543_v40, %v3545_v39 }
 0x140   :  { %7188 = vmatmul.mubr.msk.bf16.vlgmr.msra.gmra.mrb[48].mxu1 %vm83_vm3, %v7619_v18  ;;  %v3568_v52 = vand.u32 %v3556_v48, %v7804_v59 }
 0x141   :  { %3355 = vmatpush1.bf16.msra.mxu1 %v3297_v37  ;;  %3386 = vmatprep.mubr.bf16.mxu1 %v7641_v12 }
 0x142   :  { %6960 = vmatmul.mubr.msk.bf16.vlgmr.msra.gmra.mrb[4].mxu0 %vm83_vm3, %v7619_v18  ;;  %5458 = vrot.lane.b32.xlu1 %v8177_v1, %s7664_s18  ;;  %v3541_v44 = vpop.permute.xlu0 %3540  ;;  %v3559_v18 = vsel %vm3554_vm0, %v8501_v32, %v3551_v42 }
 0x143   :  { %3312 = vmatpush1.bf16.msra.mxu0 %v3291_v41  ;;  %5468 = vrot.lane.b32.xlu0 %v5457_v16, %s7664_s18  ;;  %v3555_v10 = vsel %vm3554_vm0, %v3541_v44, %v3543_v40  ;;  %v3577_v28 = vand.u32 %v3559_v18, %v7804_v59  ;;  %v7625_v44 = vld [vmem:[%s9020_s1 + $0x70] sm:$0xff]  }
 0x144   :  { %3397 = vmatprep.subr.bf16.mxu0 %v3306_v43  ;;  %3343 = vmatprep.mubr.bf16.mxu0 %v7641_v12  ;;  %v3565_v62 = vand.u32 %v3555_v10, %v7804_v59 }
 0x145   :  { %7191 = vmatprep.subr.bf16.mxu1 %v7652_v21 }
 0x146   :  { %5470 = vrot.lane.b32.xlu1 %v5456_v33, %s7664_s18  ;;  %v3553_v17 = vpop.permute.xlu0 %3552 }
 0x147   :  { %5738 = vrot.lane.b32.xlu0 %v8155_v57, %s7665_s23  ;;  %v3821_v54 = vpop.permute.xlu1 %3820  ;;  %v3560_v60 = vsel %vm3554_vm0, %v3551_v42, %v3553_v17  ;;  %v3583_v15 = vand.u32 %v3553_v17, %v7804_v59  ;;  %v6271_v17 = vrot.slane %v6239_v45, %v7695_v8 }
 0x148   :  { %6966 = vmatmul.mubr.msk.bf16.vlgmr.msra.gmra.mrb[0].mxu1 %vm83_vm3, %v7621_v14  ;;  %v3580_v3 = vand.u32 %v3560_v60, %v7804_v59 }
 0x149   :  { %7192 = vmatpush3.bf16.msra.mxu1 %v3309_v47  ;;  %7193 = vmatprep.mubr.msk.bf16.mxu1 %vm7654_vm4, %v7652_v21 }
 0x14a   :  { %6965 = vmatmul.mubr.msk.bf16.vlgmr.msra.gmra.mrb[0].mxu0 %vm83_vm3, %v7621_v14  ;;  %3628 = vmatprep.subr.bf16.mxu1 %v3574_v50  ;;  %v8555_v56 = vpop.permute.xlu0 %3822 }
 0x14b   :  { %3398 = vmatpush1.bf16.msra.mxu0 %v3303_v13  ;;  %5740 = vrot.lane.b32.xlu1 %v5723_v51, %s7665_s23  ;;  %v3832_v5 = vsel %vm3828_vm1, %v3821_v54, %v8555_v56 }
 0x14c   :  { %3585 = vmatprep.subr.bf16.mxu0 %v3568_v52  ;;  %3429 = vmatprep.mubr.bf16.mxu0 %v7641_v12  ;;  %v3848_v22 = vand.u32 %v3832_v5, %v7804_v59 }
 0x14d   :  { %5734 = vrot.lane.b32.xlu0 %v8197_v63, %s7665_s23 }
 0x14e   :  { %v3817_v61 = vpop.permute.xlu1 %3816 }
 0x14f   :  { %5736 = vrot.lane.b32.xlu1 %v8138_v53, %s7665_s23  ;;  %v3819_v0 = vpop.permute.xlu0 %3818 }
 0x150   :  { %7194 = vmatmul.mubr.msk.bf16.vlgmr.msra.gmra.mrb[52].mxu1 %vm83_vm3, %v7621_v14  ;;  %v3830_v19 = vsel %vm3828_vm1, %v3817_v61, %v3819_v0  ;;  %v3831_v30 = vsel %vm3828_vm1, %v3819_v0, %v3821_v54  ;;  %v6512_v54 = vld [vmem:[%s9019_s0] sm:$0xff] }
 0x151   :  { %3629 = vmatpush1.bf16.msra.mxu1 %v3571_v58  ;;  %3660 = vmatprep.mubr.bf16.mxu1 %v7641_v12  ;;  %v3842_v27 = vand.u32 %v3830_v19, %v7804_v59  ;;  %v3845_v32 = vand.u32 %v3831_v30, %v7804_v59  ;;  %v7627_v19 = vld [vmem:[%s9020_s1 + $0x78] sm:$0xff]  }
 0x152   :  { %6967 = vmatmul.mubr.msk.bf16.vlgmr.msra.gmra.mrb[4].mxu0 %vm83_vm3, %v7621_v14  ;;  %5732 = vrot.lane.b32.xlu0 %v8177_v1, %s7665_s23  ;;  %v3815_v4 = vpop.permute.xlu1 %3814 }
 0x153   :  { %3586 = vmatpush1.bf16.msra.mxu0 %v3565_v62  ;;  %5742 = vrot.lane.b32.xlu1 %v5731_v2, %s7665_s23  ;;  %v3829_v31 = vsel %vm3828_vm1, %v3815_v4, %v3817_v61  ;;  %v6279_v2 = vcombine.high %v6271_v17, %v6271_v17 }
 0x154   :  { %3671 = vmatprep.subr.bf16.mxu0 %v3580_v3  ;;  %3617 = vmatprep.mubr.bf16.mxu0 %v7641_v12  ;;  %v3825_v20 = vpop.permute.xlu0 %3824  ;;  %v3839_v36 = vand.u32 %v3829_v31, %v7804_v59 }
 0x155   :  { %7197 = vmatprep.subr.bf16.mxu1 %v7652_v21  ;;  %v3833_v48 = vsel %vm3828_vm1, %v8555_v56, %v3825_v20  ;;  %v6521_v56 = vcombine.high %v6512_v54, %v6512_v54 }
 0x156   :  { %5744 = vrot.lane.b32.xlu0 %v5730_v55, %s7665_s23  ;;  %v3851_v13 = vand.u32 %v3833_v48, %v7804_v59  ;;  %v7630_v48 = vld [vmem:[%s9020_s1 + $0x80] sm:$0xff]  }
 0x157   :  { %v8591_v23 = vpop.permute.xlu1 %3826  ;;  %6012 = vrot.lane.b32.xlu1 %v8155_v57, %s7666_s28  ;;  %v6535_v3 = vrot.slane %v6521_v56, %v7695_v8 }
 0x158   :  { %6973 = vmatmul.mubr.msk.bf16.vlgmr.msra.gmra.mrb[0].mxu1 %vm83_vm3, %v7623_v6  ;;  %v4095_v29 = vpop.permute.xlu0 %4094  ;;  %v3834_v34 = vsel %vm3828_vm1, %v3825_v20, %v8591_v23  ;;  %v3857_v14 = vand.u32 %v8591_v23, %v7804_v59  ;;  %v8695_v20 = vld [vmem:[%s9019_s0 + $0x8] sm:$0x3f]  ;;  %s7668_s0 = smov 44  }
 0x159   :  { %7198 = vmatpush3.bf16.msra.mxu1 %v3583_v15  ;;  %7199 = vmatprep.mubr.msk.bf16.mxu1 %vm7654_vm4, %v7652_v21  ;;  %v3854_v39 = vand.u32 %v3834_v34, %v7804_v59 }
 0x15a   :  { %6972 = vmatmul.mubr.msk.bf16.vlgmr.msra.gmra.mrb[0].mxu0 %vm83_vm3, %v7623_v6  ;;  %3902 = vmatprep.subr.bf16.mxu1 %v3848_v22 }
 0x15b   :  { %3672 = vmatpush1.bf16.msra.mxu0 %v3577_v28  ;;  %6014 = vrot.lane.b32.xlu0 %v5997_v24, %s7666_s28 }
 0x15c   :  { %3859 = vmatprep.subr.bf16.mxu0 %v3842_v27  ;;  %3703 = vmatprep.mubr.bf16.mxu0 %v7641_v12  ;;  %v6528_v27 = vrot.slane %v6512_v54, %v7695_v8 }
 0x15d   :  { %v8609_v35 = vpop.permute.xlu1 %4096  ;;  %6008 = vrot.lane.b32.xlu1 %v8197_v63, %s7666_s28 }
 0x15e   :  { %v4106_v16 = vsel %vm4102_vm2, %v4095_v29, %v8609_v35 }
 0x15f   :  { %6010 = vrot.lane.b32.xlu0 %v8138_v53, %s7666_s28  ;;  %v4091_v37 = vpop.permute.xlu0 %4090  ;;  %v4122_v49 = vand.u32 %v4106_v16, %v7804_v59 }
 0x160   :  { %7200 = vmatmul.mubr.msk.bf16.vlgmr.msra.gmra.mrb[56].mxu1 %vm83_vm3, %v7623_v6 }
 0x161   :  { %3903 = vmatpush1.bf16.msra.mxu1 %v3845_v32  ;;  %v4093_v40 = vpop.permute.xlu1 %4092  ;;  %3934 = vmatprep.mubr.bf16.mxu1 %v7641_v12  ;;  %v6545_v32 = vrot.slane %v8695_v20, %v7695_v8 }
 0x162   :  { %6974 = vmatmul.mubr.msk.bf16.vlgmr.msra.gmra.mrb[4].mxu0 %vm83_vm3, %v7623_v6  ;;  %6006 = vrot.lane.b32.xlu1 %v8177_v1, %s7666_s28  ;;  %v4104_v46 = vsel %vm4102_vm2, %v4091_v37, %v4093_v40  ;;  %v6537_v6 = vcombine.high %v6535_v3, %v6535_v3 }
 0x163   :  { %3860 = vmatpush1.bf16.msra.mxu0 %v3839_v36  ;;  %v275_v41 = vpop.f32.mrb[4].mxu1  ;;  %6016 = vrot.lane.b32.xlu0 %v6005_v38, %s7666_s28  ;;  %v4116_v51 = vand.u32 %v4104_v46, %v7804_v59 }
 0x164   :  { %v7123_v43 = vpop.f32.mrb[5].mxu1  ;;  %3945 = vmatprep.subr.bf16.mxu0 %v3854_v39  ;;  %3891 = vmatprep.mubr.bf16.mxu0 %v7641_v12  ;;  %v4089_v33 = vpop.permute.xlu0 %4088 }
 0x165   :  { %v8635_v42 = vpop.f32.mrb[6].mxu1  ;;  %7203 = vmatprep.subr.bf16.mxu1 %v7652_v21  ;;  %v8639_v47 = vpop.permute.xlu1 %4098  ;;  %v4103_v10 = vsel %vm4102_vm2, %v4089_v33, %v4091_v37  ;;  %v6536_v37 = vcombine.high %v6528_v27, %v6528_v27 }
 0x166   :  { %v7124_v50 = vpop.f32.mrb[7].mxu1  ;;  %6018 = vrot.lane.b32.xlu1 %v6004_v25, %s7666_s28  ;;  %v4113_v62 = vand.u32 %v4103_v10, %v7804_v59  ;;  %v4107_v28 = vsel %vm4102_vm2, %v8609_v35, %v8639_v47 }
 0x167   :  { %6286 = vrot.lane.b32.xlu0 %v8155_v57, %s7667_s6  ;;  %v4105_v57 = vsel %vm4102_vm2, %v4093_v40, %v4095_v29  ;;  %v4125_v35 = vand.u32 %v4107_v28, %v7804_v59  ;;  %v6538_v50 = vcombine.high %v8695_v20, %v8695_v20 }
 0x168   :  { %6980 = vmatmul.mubr.msk.bf16.vlgmr.msra.gmra.mrb[0].mxu1 %vm83_vm3, %v7625_v44  ;;  %v8650_v52 = vpop.permute.xlu0 %4100  ;;  %v4119_v58 = vand.u32 %v4105_v57, %v7804_v59 }
 0x169   :  { %7204 = vmatpush3.bf16.msra.mxu1 %v3857_v14  ;;  %7205 = vmatprep.mubr.msk.bf16.mxu1 %vm7654_vm4, %v7652_v21  ;;  %v8658_v11 = vpop.permute.xlu1 %4368  ;;  %v4108_v60 = vsel %vm4102_vm2, %v8639_v47, %v8650_v52  ;;  %v4131_v18 = vand.u32 %v8650_v52, %v7804_v59 }
 0x16a   :  { %6979 = vmatmul.mubr.msk.bf16.vlgmr.msra.gmra.mrb[0].mxu0 %vm83_vm3, %v7625_v44  ;;  %4176 = vmatprep.subr.bf16.mxu1 %v4122_v49  ;;  %v4128_v4 = vand.u32 %v4108_v60, %v7804_v59  ;;  %v6552_v60 = vrot.slane %v6538_v50, %v7695_v8 }
 0x16b   :  { %3946 = vmatpush1.bf16.msra.mxu0 %v3851_v13  ;;  %6288 = vrot.lane.b32.xlu1 %v6271_v17, %s7667_s6 }
 0x16c   :  { %4133 = vmatprep.subr.bf16.mxu0 %v4116_v51  ;;  %3977 = vmatprep.mubr.bf16.mxu0 %v7641_v12 }
 0x16d   :  { %v8669_v61 = vpop.permute.xlu0 %4370  ;;  %6282 = vrot.lane.b32.xlu0 %v8197_v63, %s7667_s6 }
 0x16e   :  { %v4380_v63 = vsel %vm4376_vm5, %v8658_v11, %v8669_v61 }
 0x16f   :  { %6284 = vrot.lane.b32.xlu1 %v8138_v53, %s7667_s6  ;;  %v4365_v0 = vpop.permute.xlu1 %4364  ;;  %v6278_v53 = vrot.slane %v6264_v9, %v7695_v8  ;;  %v4396_v29 = vand.u32 %v4380_v63, %v7804_v59 }
 0x170   :  { %7206 = vmatmul.mubr.msk.bf16.vlgmr.msra.gmra.mrb[60].mxu1 %vm83_vm3, %v7625_v44 }
 0x171   :  { %4177 = vmatpush1.bf16.msra.mxu1 %v4119_v58  ;;  %v4367_v55 = vpop.permute.xlu0 %4366  ;;  %4208 = vmatprep.mubr.bf16.mxu1 %v7641_v12 }
 0x172   :  { %6981 = vmatmul.mubr.msk.bf16.vlgmr.msra.gmra.mrb[4].mxu0 %vm83_vm3, %v7625_v44  ;;  %6280 = vrot.lane.b32.xlu0 %v8177_v1, %s7667_s6  ;;  %v4378_v23 = vsel %vm4376_vm5, %v4365_v0, %v4367_v55  ;;  %v4379_v38 = vsel %vm4376_vm5, %v4367_v55, %v8658_v11  ;;  %v6553_v44 = vcombine.high %v6545_v32, %v6545_v32 }
 0x173   :  { %4134 = vmatpush1.bf16.msra.mxu0 %v4113_v62  ;;  %v474_v5 = vpop.f32.mrb[8].mxu1  ;;  %6290 = vrot.lane.b32.xlu1 %v6279_v2, %s7667_s6  ;;  %v4390_v34 = vand.u32 %v4378_v23, %v7804_v59  ;;  %v4393_v40 = vand.u32 %v4379_v38, %v7804_v59 }
 0x174   :  { %v475_v7 = vadd.f32 %v474_v5, %v275_v41  ;;  %v7129_v15 = vpop.f32.mrb[9].mxu1  ;;  %4219 = vmatprep.subr.bf16.mxu0 %v4128_v4  ;;  %4165 = vmatprep.mubr.bf16.mxu0 %v7641_v12  ;;  %v4363_v1 = vpop.permute.xlu1 %4362 }
 0x175   :  { %v477_v22 = vpop.f32.mrb[10].mxu1  ;;  %7209 = vmatprep.subr.bf16.mxu1 %v7652_v21  ;;  %v4373_v24 = vpop.permute.xlu0 %4372  ;;  %v4377_v39 = vsel %vm4376_vm5, %v4363_v1, %v4365_v0 }
 0x176   :  { %v478_v30 = vadd.f32 %v477_v22, %v8635_v42  ;;  %v7130_v31 = vpop.f32.mrb[11].mxu1  ;;  %6292 = vrot.lane.b32.xlu0 %v6278_v53, %s7667_s6  ;;  %v4387_v16 = vand.u32 %v4377_v39, %v7804_v59  ;;  %v4381_v13 = vsel %vm4376_vm5, %v8669_v61, %v4373_v24 }
 0x177   :  { %6560 = vrot.lane.b32.xlu1 %v6537_v6, %s7668_s0  ;;  %v4399_v9 = vand.u32 %v4381_v13, %v7804_v59 }
 0x178   :  { %6987 = vmatmul.mubr.msk.bf16.vlgmr.msra.gmra.mrb[0].mxu1 %vm83_vm3, %v7627_v19  ;;  %v4375_v26 = vpop.permute.xlu1 %4374 }
 0x179   :  { %7210 = vmatpush3.bf16.msra.mxu1 %v4131_v18  ;;  %7211 = vmatprep.mubr.msk.bf16.mxu1 %vm7654_vm4, %v7652_v21  ;;  %v4643_v36 = vpop.permute.xlu0 %4642  ;;  %v4382_v25 = vsel %vm4376_vm5, %v4373_v24, %v4375_v26  ;;  %v4405_v17 = vand.u32 %v4375_v26, %v7804_v59 }
 0x17a   :  { %6986 = vmatmul.mubr.msk.bf16.vlgmr.msra.gmra.mrb[0].mxu0 %vm83_vm3, %v7627_v19  ;;  %4450 = vmatprep.subr.bf16.mxu1 %v4396_v29  ;;  %v4402_v33 = vand.u32 %v4382_v25, %v7804_v59 }
 0x17b   :  { %4220 = vmatpush1.bf16.msra.mxu0 %v4125_v35  ;;  %6562 = vrot.lane.b32.xlu0 %v6545_v32, %s7668_s0 }
 0x17c   :  { %4407 = vmatprep.subr.bf16.mxu0 %v4390_v34  ;;  %4251 = vmatprep.mubr.bf16.mxu0 %v7641_v12 }
 0x17d   :  { %v8724_v41 = vpop.permute.xlu1 %4644  ;;  %6556 = vrot.lane.b32.xlu1 %v6536_v37, %s7668_s0 }
 0x17e   :  { %v4654_v14 = vsel %vm4650_vm6, %v4643_v36, %v8724_v41 }
 0x17f   :  { %6558 = vrot.lane.b32.xlu0 %v6535_v3, %s7668_s0  ;;  %v4639_v43 = vpop.permute.xlu0 %4638  ;;  %v4670_v11 = vand.u32 %v4654_v14, %v7804_v59 }
 0x180   :  { %7212 = vmatmul.mubr.msk.bf16.vlgmr.msra.gmra.mrb[64].mxu1 %vm83_vm3, %v7627_v19 }
 0x181   :  { %4451 = vmatpush1.bf16.msra.mxu1 %v4393_v40  ;;  %v4641_v45 = vpop.permute.xlu1 %4640  ;;  %4482 = vmatprep.mubr.bf16.mxu1 %v7641_v12 }
 0x182   :  { %6988 = vmatmul.mubr.msk.bf16.vlgmr.msra.gmra.mrb[4].mxu0 %vm83_vm3, %v7627_v19  ;;  %7215 = vmatprep.subr.bf16.mxu1 %v7652_v21  ;;  %v4652_v52 = vsel %vm4650_vm6, %v4639_v43, %v4641_v45  ;;  %v4653_v61 = vsel %vm4650_vm6, %v4641_v45, %v4643_v36  ;;  %v7632_v19 = vld [vmem:[%s9020_s1 + $0x88] sm:$0xff]   ;;  %v7633_v45 = vld [vmem:[%s9020_s1 + $0x90] sm:$0xff]  }
 0x183   :  { %4408 = vmatpush1.bf16.msra.mxu0 %v4387_v16  ;;  %v734_v42 = vpop.f32.mrb[12].mxu1  ;;  %6564 = vrot.lane.b32.xlu0 %v6553_v44, %s7668_s0  ;;  %v4664_v10 = vand.u32 %v4652_v52, %v7804_v59  ;;  %v4667_v8 = vand.u32 %v4653_v61, %v7804_v59 }
 0x184   :  { %v747_v46 = vadd.f32 %v734_v42, %v475_v7  ;;  %v7135_v47 = vpop.f32.mrb[13].mxu1  ;;  %4493 = vmatprep.subr.bf16.mxu0 %v4402_v33  ;;  %4439 = vmatprep.mubr.bf16.mxu0 %v7641_v12  ;;  %v4637_v49 = vpop.permute.xlu0 %4636 }
 0x185   :  { %v737_v51 = vpop.f32.mrb[14].mxu1  ;;  %6554 = vrot.lane.b32.xlu1 %v6528_v27, %s7668_s0  ;;  %v4647_v54 = vpop.permute.xlu1 %4646  ;;  %v4651_v0 = vsel %vm4650_vm6, %v4637_v49, %v4639_v43 }
 0x186   :  { %v754_v57 = vadd.f32 %v737_v51, %v478_v30  ;;  %v7136_v56 = vpop.f32.mrb[15].mxu1  ;;  %v4661_v4 = vand.u32 %v4651_v0, %v7804_v59  ;;  %v4655_v24 = vsel %vm4650_vm6, %v8724_v41, %v4647_v54 }
 0x187   :  { %v4673_v32 = vand.u32 %v4655_v24, %v7804_v59 }
 0x188   :  { %6994 = vmatmul.mubr.msk.bf16.vlgmr.msra.gmra.mrb[0].mxu1 %vm83_vm3, %v7630_v48  ;;  %v4649_v58 = vpop.permute.xlu0 %4648 }
 0x189   :  { %7216 = vmatpush3.bf16.msra.mxu1 %v4405_v17  ;;  %7217 = vmatprep.mubr.msk.bf16.mxu1 %vm7654_vm4, %v7652_v21  ;;  %v4917_v62 = vpop.permute.xlu1 %4916  ;;  %v4656_v2 = vsel %vm4650_vm6, %v4647_v54, %v4649_v58  ;;  %v4679_v20 = vand.u32 %v4649_v58, %v7804_v59 }
 0x18a   :  { %6993 = vmatmul.mubr.msk.bf16.vlgmr.msra.gmra.mrb[0].mxu0 %vm83_vm3, %v7630_v48  ;;  %4724 = vmatprep.subr.bf16.mxu1 %v4670_v11  ;;  %v4676_v53 = vand.u32 %v4656_v2, %v7804_v59 }
 0x18b   :  { %4494 = vmatpush1.bf16.msra.mxu0 %v4399_v9  ;;  %4525 = vmatprep.mubr.bf16.mxu0 %v7641_v12 }
 0x18c   :  { %4681 = vmatprep.subr.bf16.mxu0 %v4664_v10  ;;  %6566 = vrot.lane.b32.xlu1 %v6552_v60, %s7668_s0 }
 0x18d   :  { %v8762_v3 = vpop.permute.xlu0 %4918 }
 0x18e   :  { %v4928_v5 = vsel %vm4924_vm7, %v4917_v62, %v8762_v3 }
 0x18f   :  { %v4913_v55 = vpop.permute.xlu1 %4912  ;;  %v4944_v27 = vand.u32 %v4928_v5, %v7804_v59 }
 0x190   :  { %7218 = vmatmul.mubr.msk.bf16.vlgmr.msra.gmra.mrb[68].mxu1 %vm83_vm3, %v7630_v48 }
 0x191   :  { %4725 = vmatpush1.bf16.msra.mxu1 %v4667_v8  ;;  %v4915_v63 = vpop.permute.xlu0 %4914  ;;  %4756 = vmatprep.mubr.bf16.mxu1 %v7641_v12 }
 0x192   :  { %6995 = vmatmul.mubr.msk.bf16.vlgmr.msra.gmra.mrb[4].mxu0 %vm83_vm3, %v7630_v48  ;;  %7221 = vmatprep.subr.bf16.mxu1 %v7652_v21  ;;  %v4926_v22 = vsel %vm4924_vm7, %v4913_v55, %v4915_v63  ;;  %v4927_v26 = vsel %vm4924_vm7, %v4915_v63, %v4917_v62 }
 0x193   :  { %4682 = vmatpush1.bf16.msra.mxu0 %v4661_v4  ;;  %v1008_v6 = vpop.f32.mrb[16].mxu1  ;;  %4713 = vmatprep.mubr.bf16.mxu0 %v7641_v12  ;;  %v4938_v30 = vand.u32 %v4926_v22, %v7804_v59  ;;  %v4941_v36 = vand.u32 %v4927_v26, %v7804_v59 }
 0x194   :  { %v1021_v7 = vadd.f32 %v1008_v6, %v747_v46  ;;  %v7141_v15 = vpop.f32.mrb[17].mxu1  ;;  %4767 = vmatprep.subr.bf16.mxu0 %v4676_v53  ;;  %v4911_v1 = vpop.permute.xlu1 %4910 }
 0x195   :  { %v1011_v18 = vpop.f32.mrb[18].mxu1  ;;  %v4921_v23 = vpop.permute.xlu0 %4920  ;;  %v4925_v35 = vsel %vm4924_vm7, %v4911_v1, %v4913_v55  ;;  %v7634_v55 = vld [vmem:[%s9020_s1 + $0x98] sm:$0xff]  }
 0x196   :  { %v1028_v28 = vadd.f32 %v1011_v18, %v754_v57  ;;  %v7142_v29 = vpop.f32.mrb[19].mxu1  ;;  %v4935_v39 = vand.u32 %v4925_v35, %v7804_v59  ;;  %v4929_v49 = vsel %vm4924_vm7, %v8762_v3, %v4921_v23 }
 0x197   :  { %v4947_v13 = vand.u32 %v4929_v49, %v7804_v59 }
 0x198   :  { %7001 = vmatmul.mubr.msk.bf16.vlgmr.msra.gmra.mrb[0].mxu1 %vm83_vm3, %v7632_v19  ;;  %v4923_v31 = vpop.permute.xlu1 %4922 }
 0x199   :  { %7222 = vmatpush3.bf16.msra.mxu1 %v4679_v20  ;;  %7223 = vmatprep.mubr.msk.bf16.mxu1 %vm7654_vm4, %v7652_v21  ;;  %v5191_v34 = vpop.permute.xlu0 %5190  ;;  %v4930_v37 = vsel %vm4924_vm7, %v4921_v23, %v4923_v31  ;;  %v4953_v42 = vand.u32 %v4923_v31, %v7804_v59 }
 0x19a   :  { %7000 = vmatmul.mubr.msk.bf16.vlgmr.msra.gmra.mrb[0].mxu0 %vm83_vm3, %v7632_v19  ;;  %4998 = vmatprep.subr.bf16.mxu1 %v4944_v27  ;;  %v4950_v25 = vand.u32 %v4930_v37, %v7804_v59 }
 0x19b   :  { %4768 = vmatpush1.bf16.msra.mxu0 %v4673_v32  ;;  %4799 = vmatprep.mubr.bf16.mxu0 %v7641_v12 }
 0x19c   :  { %4955 = vmatprep.subr.bf16.mxu0 %v4938_v30 }
 0x19d   :  { %v8792_v38 = vpop.permute.xlu1 %5192 }
 0x19e   :  { %v5202_v16 = vsel %vm5198_vm8, %v5191_v34, %v8792_v38 }
 0x19f   :  { %v5187_v40 = vpop.permute.xlu0 %5186  ;;  %v5218_v50 = vand.u32 %v5202_v16, %v7804_v59 }
 0x1a0   :  { %7224 = vmatmul.mubr.msk.bf16.vlgmr.msra.gmra.mrb[72].mxu1 %vm83_vm3, %v7632_v19 }
 0x1a1   :  { %4999 = vmatpush1.bf16.msra.mxu1 %v4941_v36  ;;  %v5189_v41 = vpop.permute.xlu1 %5188  ;;  %5030 = vmatprep.mubr.bf16.mxu1 %v7641_v12 }
 0x1a2   :  { %7002 = vmatmul.mubr.msk.bf16.vlgmr.msra.gmra.mrb[4].mxu0 %vm83_vm3, %v7632_v19  ;;  %7227 = vmatprep.subr.bf16.mxu1 %v7652_v21  ;;  %v5200_v47 = vsel %vm5198_vm8, %v5187_v40, %v5189_v41  ;;  %v5201_v57 = vsel %vm5198_vm8, %v5189_v41, %v5191_v34 }
 0x1a3   :  { %4956 = vmatpush1.bf16.msra.mxu0 %v4935_v39  ;;  %v1282_v43 = vpop.f32.mrb[20].mxu1  ;;  %4987 = vmatprep.mubr.bf16.mxu0 %v7641_v12  ;;  %v5212_v52 = vand.u32 %v5200_v47, %v7804_v59  ;;  %v5215_v10 = vand.u32 %v5201_v57, %v7804_v59 }
 0x1a4   :  { %v1295_v44 = vadd.f32 %v1282_v43, %v1021_v7  ;;  %v7147_v33 = vpop.f32.mrb[21].mxu1  ;;  %5041 = vmatprep.subr.bf16.mxu0 %v4950_v25  ;;  %v5185_v14 = vpop.permute.xlu0 %5184 }
 0x1a5   :  { %v1285_v46 = vpop.f32.mrb[22].mxu1  ;;  %v5195_v48 = vpop.permute.xlu1 %5194  ;;  %v5199_v56 = vsel %vm5198_vm8, %v5185_v14, %v5187_v40  ;;  %v7635_v40 = vld [vmem:[%s9020_s1 + $0xa0] sm:$0xff]  }
 0x1a6   :  { %v1302_v17 = vadd.f32 %v1285_v46, %v1028_v28  ;;  %v7148_v51 = vpop.f32.mrb[23].mxu1  ;;  %v5209_v9 = vand.u32 %v5199_v56, %v7804_v59  ;;  %v5203_v15 = vsel %vm5198_vm8, %v8792_v38, %v5195_v48 }
 0x1a7   :  { %v5221_v23 = vand.u32 %v5203_v15, %v7804_v59 }
 0x1a8   :  { %7008 = vmatmul.mubr.msk.bf16.vlgmr.msra.gmra.mrb[0].mxu1 %vm83_vm3, %v7633_v45  ;;  %v5197_v54 = vpop.permute.xlu0 %5196 }
 0x1a9   :  { %7228 = vmatpush3.bf16.msra.mxu1 %v4953_v42  ;;  %7229 = vmatprep.mubr.msk.bf16.mxu1 %vm7654_vm4, %v7652_v21  ;;  %v5465_v11 = vpop.permute.xlu1 %5464  ;;  %v5204_v58 = vsel %vm5198_vm8, %v5195_v48, %v5197_v54  ;;  %v5227_v63 = vand.u32 %v5197_v54, %v7804_v59 }
 0x1aa   :  { %7007 = vmatmul.mubr.msk.bf16.vlgmr.msra.gmra.mrb[0].mxu0 %vm83_vm3, %v7633_v45  ;;  %5272 = vmatprep.subr.bf16.mxu1 %v5218_v50  ;;  %v5224_v61 = vand.u32 %v5204_v58, %v7804_v59 }
 0x1ab   :  { %5042 = vmatpush1.bf16.msra.mxu0 %v4947_v13  ;;  %5073 = vmatprep.mubr.bf16.mxu0 %v7641_v12 }
 0x1ac   :  { %5229 = vmatprep.subr.bf16.mxu0 %v5212_v52 }
 0x1ad   :  { %v8822_v60 = vpop.permute.xlu0 %5466 }
 0x1ae   :  { %v5476_v8 = vsel %vm5472_vm9, %v5465_v11, %v8822_v60 }
 0x1af   :  { %v5461_v62 = vpop.permute.xlu1 %5460  ;;  %v5492_v19 = vand.u32 %v5476_v8, %v7804_v59 }
 0x1b0   :  { %7230 = vmatmul.mubr.msk.bf16.vlgmr.msra.gmra.mrb[76].mxu1 %vm83_vm3, %v7633_v45 }
 0x1b1   :  { %5273 = vmatpush1.bf16.msra.mxu1 %v5215_v10  ;;  %v5463_v0 = vpop.permute.xlu0 %5462  ;;  %5304 = vmatprep.mubr.bf16.mxu1 %v7641_v12 }
 0x1b2   :  { %7009 = vmatmul.mubr.msk.bf16.vlgmr.msra.gmra.mrb[4].mxu0 %vm83_vm3, %v7633_v45  ;;  %7233 = vmatprep.subr.bf16.mxu1 %v7652_v21  ;;  %v5474_v6 = vsel %vm5472_vm9, %v5461_v62, %v5463_v0  ;;  %v5475_v27 = vsel %vm5472_vm9, %v5463_v0, %v5465_v11 }
 0x1b3   :  { %5230 = vmatpush1.bf16.msra.mxu0 %v5209_v9  ;;  %v1556_v2 = vpop.f32.mrb[24].mxu1  ;;  %5261 = vmatprep.mubr.bf16.mxu0 %v7641_v12  ;;  %v5486_v18 = vand.u32 %v5474_v6, %v7804_v59  ;;  %v5489_v29 = vand.u32 %v5475_v27, %v7804_v59 }
 0x1b4   :  { %v1569_v3 = vadd.f32 %v1556_v2, %v1295_v44  ;;  %v7153_v4 = vpop.f32.mrb[25].mxu1  ;;  %5315 = vmatprep.subr.bf16.mxu0 %v5224_v61  ;;  %v5459_v53 = vpop.permute.xlu1 %5458 }
 0x1b5   :  { %v1559_v5 = vpop.f32.mrb[26].mxu1  ;;  %v5469_v7 = vpop.permute.xlu0 %5468  ;;  %v5473_v28 = vsel %vm5472_vm9, %v5459_v53, %v5461_v62  ;;  %v7636_v62 = vld [vmem:[%s9020_s1 + $0xa8] sm:$0xff]  }
 0x1b6   :  { %v1576_v1 = vadd.f32 %v1559_v5, %v1302_v17  ;;  %v7154_v20 = vpop.f32.mrb[27].mxu1  ;;  %v5483_v32 = vand.u32 %v5473_v28, %v7804_v59  ;;  %v5477_v33 = vsel %vm5472_vm9, %v8822_v60, %v5469_v7  ;;  %v6783_v5 = vld [vmem:[%s9021_s2] sm:$0xff] }
 0x1b7   :  { %v5495_v48 = vand.u32 %v5477_v33, %v7804_v59  ;;  %6787 = vperm.xlu0 %7586, %v6783_v5  }
 0x1b8   :  { %7015 = vmatmul.mubr.msk.bf16.vlgmr.msra.gmra.mrb[0].mxu1 %vm83_vm3, %v7634_v55  ;;  %v5471_v22 = vpop.permute.xlu1 %5470 }
 0x1b9   :  { %7234 = vmatpush3.bf16.msra.mxu1 %v5227_v63  ;;  %7235 = vmatprep.mubr.msk.bf16.mxu1 %vm7654_vm4, %v7652_v21  ;;  %v5739_v24 = vpop.permute.xlu0 %5738  ;;  %v5478_v30 = vsel %vm5472_vm9, %v5469_v7, %v5471_v22  ;;  %v5501_v41 = vand.u32 %v5471_v22, %v7804_v59 }
 0x1ba   :  { %7014 = vmatmul.mubr.msk.bf16.vlgmr.msra.gmra.mrb[0].mxu0 %vm83_vm3, %v7634_v55  ;;  %5546 = vmatprep.subr.bf16.mxu1 %v5492_v19  ;;  %v5498_v26 = vand.u32 %v5478_v30, %v7804_v59 }
 0x1bb   :  { %5316 = vmatpush1.bf16.msra.mxu0 %v5221_v23  ;;  %5347 = vmatprep.mubr.bf16.mxu0 %v7641_v12 }
 0x1bc   :  { %5503 = vmatprep.subr.bf16.mxu0 %v5486_v18 }
 0x1bd   :  { %v8852_v31 = vpop.permute.xlu1 %5740 }
 0x1be   :  { %v5750_v36 = vsel %vm5746_vm10, %v5739_v24, %v8852_v31 }
 0x1bf   :  { %v5735_v34 = vpop.permute.xlu0 %5734  ;;  %v5766_v45 = vand.u32 %v5750_v36, %v7804_v59 }
 0x1c0   :  { %7236 = vmatmul.mubr.msk.bf16.vlgmr.msra.gmra.mrb[80].mxu1 %vm83_vm3, %v7634_v55 }
 0x1c1   :  { %5547 = vmatpush1.bf16.msra.mxu1 %v5489_v29  ;;  %v5737_v35 = vpop.permute.xlu1 %5736  ;;  %5578 = vmatprep.mubr.bf16.mxu1 %v7641_v12 }
 0x1c2   :  { %7016 = vmatmul.mubr.msk.bf16.vlgmr.msra.gmra.mrb[4].mxu0 %vm83_vm3, %v7634_v55  ;;  %7239 = vmatprep.subr.bf16.mxu1 %v7652_v21  ;;  %v5748_v43 = vsel %vm5746_vm10, %v5735_v34, %v5737_v35  ;;  %v5749_v50 = vsel %vm5746_vm10, %v5737_v35, %v5739_v24  ;;  %v7637_v35 = vld [vmem:[%s9020_s1 + $0xb0] sm:$0xff]  }
 0x1c3   :  { %5504 = vmatpush1.bf16.msra.mxu0 %v5483_v32  ;;  %v1830_v37 = vpop.f32.mrb[28].mxu1  ;;  %5535 = vmatprep.mubr.bf16.mxu0 %v7641_v12  ;;  %v5760_v46 = vand.u32 %v5748_v43, %v7804_v59  ;;  %v5763_v51 = vand.u32 %v5749_v50, %v7804_v59 }
 0x1c4   :  { %v1843_v38 = vadd.f32 %v1830_v37, %v1569_v3  ;;  %v7159_v39 = vpop.f32.mrb[29].mxu1  ;;  %5589 = vmatprep.subr.bf16.mxu0 %v5498_v26  ;;  %v5733_v25 = vpop.permute.xlu0 %5732 }
 0x1c5   :  { %v1833_v16 = vpop.f32.mrb[30].mxu1  ;;  %v5743_v44 = vpop.permute.xlu1 %5742  ;;  %v5747_v17 = vsel %vm5746_vm10, %v5733_v25, %v5735_v34 }
 0x1c6   :  { %v1850_v14 = vadd.f32 %v1833_v16, %v1576_v1  ;;  %v7160_v42 = vpop.f32.mrb[31].mxu1  ;;  %v5757_v13 = vand.u32 %v5747_v17, %v7804_v59  ;;  %v5751_v4 = vsel %vm5746_vm10, %v8852_v31, %v5743_v44  ;;  %v6784_v1 = vld [vmem:[%s9021_s2 + $0x8] sm:$0xff] }
 0x1c7   :  { %v5769_v15 = vand.u32 %v5751_v4, %v7804_v59  ;;  %6792 = vperm.xlu1 %7587, %v6784_v1  }
 0x1c8   :  { %7022 = vmatmul.mubr.msk.bf16.vlgmr.msra.gmra.mrb[0].mxu1 %vm83_vm3, %v7635_v40  ;;  %v5745_v47 = vpop.permute.xlu0 %5744 }
 0x1c9   :  { %7240 = vmatpush3.bf16.msra.mxu1 %v5501_v41  ;;  %7241 = vmatprep.mubr.msk.bf16.mxu1 %vm7654_vm4, %v7652_v21  ;;  %v6013_v49 = vpop.permute.xlu1 %6012  ;;  %v5752_v52 = vsel %vm5746_vm10, %v5743_v44, %v5745_v47  ;;  %v5775_v0 = vand.u32 %v5745_v47, %v7804_v59 }
 0x1ca   :  { %7021 = vmatmul.mubr.msk.bf16.vlgmr.msra.gmra.mrb[0].mxu0 %vm83_vm3, %v7635_v40  ;;  %5820 = vmatprep.subr.bf16.mxu1 %v5766_v45  ;;  %v5772_v57 = vand.u32 %v5752_v52, %v7804_v59 }
 0x1cb   :  { %5590 = vmatpush1.bf16.msra.mxu0 %v5495_v48  ;;  %5621 = vmatprep.mubr.bf16.mxu0 %v7641_v12 }
 0x1cc   :  { %5777 = vmatprep.subr.bf16.mxu0 %v5760_v46 }
 0x1cd   :  { %v8882_v54 = vpop.permute.xlu0 %6014 }
 0x1ce   :  { %v6024_v10 = vsel %vm6020_vm11, %v6013_v49, %v8882_v54 }
 0x1cf   :  { %v6009_v11 = vpop.permute.xlu1 %6008  ;;  %v6040_v55 = vand.u32 %v6024_v10, %v7804_v59 }
 0x1d0   :  { %7242 = vmatmul.mubr.msk.bf16.vlgmr.msra.gmra.mrb[84].mxu1 %vm83_vm3, %v7635_v40 }
 0x1d1   :  { %5821 = vmatpush1.bf16.msra.mxu1 %v5763_v51  ;;  %v6011_v56 = vpop.permute.xlu0 %6010  ;;  %5852 = vmatprep.mubr.bf16.mxu1 %v7641_v12 }
 0x1d2   :  { %7023 = vmatmul.mubr.msk.bf16.vlgmr.msra.gmra.mrb[4].mxu0 %vm83_vm3, %v7635_v40  ;;  %7245 = vmatprep.subr.bf16.mxu1 %v7652_v21  ;;  %v6022_v2 = vsel %vm6020_vm11, %v6009_v11, %v6011_v56  ;;  %v6023_v20 = vsel %vm6020_vm11, %v6011_v56, %v6013_v49  ;;  %v7638_v56 = vld [vmem:[%s9020_s1 + $0xb8] sm:$0xff]  }
 0x1d3   :  { %5778 = vmatpush1.bf16.msra.mxu0 %v5757_v13  ;;  %v2104_v58 = vpop.f32.mrb[32].mxu1  ;;  %5809 = vmatprep.mubr.bf16.mxu0 %v7641_v12  ;;  %v6034_v6 = vand.u32 %v6022_v2, %v7804_v59  ;;  %v6037_v22 = vand.u32 %v6023_v20, %v7804_v59 }
 0x1d4   :  { %v2117_v60 = vadd.f32 %v2104_v58, %v1843_v38  ;;  %v7165_v9 = vpop.f32.mrb[33].mxu1  ;;  %5863 = vmatprep.subr.bf16.mxu0 %v5772_v57  ;;  %v6007_v61 = vpop.permute.xlu1 %6006 }
 0x1d5   :  { %v2107_v8 = vpop.f32.mrb[34].mxu1  ;;  %v6017_v3 = vpop.permute.xlu0 %6016  ;;  %v6021_v18 = vsel %vm6020_vm11, %v6007_v61, %v6009_v11 }
 0x1d6   :  { %v2124_v53 = vadd.f32 %v2107_v8, %v1850_v14  ;;  %v7166_v63 = vpop.f32.mrb[35].mxu1  ;;  %v6031_v27 = vand.u32 %v6021_v18, %v7804_v59  ;;  %v6025_v40 = vsel %vm6020_vm11, %v8882_v54, %v6017_v3  ;;  %v7639_v18 = vld [vmem:[%s9020_s1 + $0xc0] sm:$0xff]  }
 0x1d7   :  { %v6043_v33 = vand.u32 %v6025_v40, %v7804_v59 }
 0x1d8   :  { %7029 = vmatmul.mubr.msk.bf16.vlgmr.msra.gmra.mrb[0].mxu1 %vm83_vm3, %v7636_v62  ;;  %v6019_v7 = vpop.permute.xlu1 %6018 }
 0x1d9   :  { %7246 = vmatpush3.bf16.msra.mxu1 %v5775_v0  ;;  %7247 = vmatprep.mubr.msk.bf16.mxu1 %vm7654_vm4, %v7652_v21  ;;  %v6287_v19 = vpop.permute.xlu0 %6286  ;;  %v6026_v23 = vsel %vm6020_vm11, %v6017_v3, %v6019_v7  ;;  %v6049_v37 = vand.u32 %v6019_v7, %v7804_v59 }
 0x1da   :  { %7028 = vmatmul.mubr.msk.bf16.vlgmr.msra.gmra.mrb[0].mxu0 %vm83_vm3, %v7636_v62  ;;  %6094 = vmatprep.subr.bf16.mxu1 %v6040_v55  ;;  %v6046_v29 = vand.u32 %v6026_v23, %v7804_v59 }
 0x1db   :  { %5864 = vmatpush1.bf16.msra.mxu0 %v5769_v15  ;;  %5895 = vmatprep.mubr.bf16.mxu0 %v7641_v12 }
 0x1dc   :  { %6051 = vmatprep.subr.bf16.mxu0 %v6034_v6 }
 0x1dd   :  { %v8918_v24 = vpop.permute.xlu1 %6288 }
 0x1de   :  { %v6298_v30 = vsel %vm6294_vm12, %v6287_v19, %v8918_v24 }
 0x1df   :  { %v6283_v28 = vpop.permute.xlu0 %6282  ;;  %v6314_v25 = vand.u32 %v6298_v30, %v7804_v59 }
 0x1e0   :  { %7248 = vmatmul.mubr.msk.bf16.vlgmr.msra.gmra.mrb[88].mxu1 %vm83_vm3, %v7636_v62 }
 0x1e1   :  { %6095 = vmatpush1.bf16.msra.mxu1 %v6037_v22  ;;  %6126 = vmatprep.mubr.bf16.mxu1 %v7641_v12  ;;  %v6285_v32 = vpop.permute.xlu1 %6284 }
 0x1e2   :  { %7030 = vmatmul.mubr.msk.bf16.vlgmr.msra.gmra.mrb[4].mxu0 %vm83_vm3, %v7636_v62  ;;  %7251 = vmatprep.subr.bf16.mxu1 %v7652_v21  ;;  %v6296_v39 = vsel %vm6294_vm12, %v6283_v28, %v6285_v32  ;;  %v6297_v14 = vsel %vm6294_vm12, %v6285_v32, %v6287_v19 }
 0x1e3   :  { %6052 = vmatpush1.bf16.msra.mxu0 %v6031_v27  ;;  %v2378_v31 = vpop.f32.mrb[36].mxu1  ;;  %6083 = vmatprep.mubr.bf16.mxu0 %v7641_v12  ;;  %v6308_v43 = vand.u32 %v6296_v39, %v7804_v59  ;;  %v6311_v46 = vand.u32 %v6297_v14, %v7804_v59 }
 0x1e4   :  { %v2391_v34 = vadd.f32 %v2378_v31, %v2117_v60  ;;  %v7171_v26 = vpop.f32.mrb[37].mxu1  ;;  %6137 = vmatprep.subr.bf16.mxu0 %v6046_v29  ;;  %v6281_v36 = vpop.permute.xlu0 %6280 }
 0x1e5   :  { %v2381_v38 = vpop.f32.mrb[38].mxu1  ;;  %v6291_v45 = vpop.permute.xlu1 %6290  ;;  %v6295_v42 = vsel %vm6294_vm12, %v6281_v36, %v6283_v28 }
 0x1e6   :  { %v2398_v41 = vadd.f32 %v2381_v38, %v2124_v53  ;;  %v7172_v16 = vpop.f32.mrb[39].mxu1  ;;  %v6305_v50 = vand.u32 %v6295_v42, %v7804_v59  ;;  %v6299_v9 = vsel %vm6294_vm12, %v8918_v24, %v6291_v45 }
 0x1e7   :  { %v6317_v2 = vand.u32 %v6299_v9, %v7804_v59 }
 0x1e8   :  { %7036 = vmatmul.mubr.msk.bf16.vlgmr.msra.gmra.mrb[0].mxu1 %vm83_vm3, %v7637_v35  ;;  %v6293_v44 = vpop.permute.xlu0 %6292 }
 0x1e9   :  { %7252 = vmatpush3.bf16.msra.mxu1 %v6049_v37  ;;  %7253 = vmatprep.mubr.msk.bf16.mxu1 %vm7654_vm4, %v7652_v21  ;;  %v6300_v47 = vsel %vm6294_vm12, %v6291_v45, %v6293_v44  ;;  %v6561_v48 = vpop.permute.xlu1 %6560  ;;  %v6323_v10 = vand.u32 %v6293_v44, %v7804_v59 }
 0x1ea   :  { %7035 = vmatmul.mubr.msk.bf16.vlgmr.msra.gmra.mrb[0].mxu0 %vm83_vm3, %v7637_v35  ;;  %6368 = vmatprep.subr.bf16.mxu1 %v6314_v25  ;;  %v6320_v17 = vand.u32 %v6300_v47, %v7804_v59 }
 0x1eb   :  { %6138 = vmatpush1.bf16.msra.mxu0 %v6043_v33  ;;  %6169 = vmatprep.mubr.bf16.mxu0 %v7641_v12 }
 0x1ec   :  { %6325 = vmatprep.subr.bf16.mxu0 %v6308_v43 }
 0x1ed   :  { %v6563_v49 = vpop.permute.xlu0 %6562 }
 0x1ee   :  { %v6572_v52 = vsel %vm6568_vm13, %v6561_v48, %v6563_v49 }
 0x1ef   :  { %v6557_v54 = vpop.permute.xlu1 %6556  ;;  %v6588_v62 = vand.u32 %v6572_v52, %v7804_v59 }
 0x1f0   :  { %7254 = vmatmul.mubr.msk.bf16.vlgmr.msra.gmra.mrb[92].mxu1 %vm83_vm3, %v7637_v35 }
 0x1f1   :  { %6369 = vmatpush1.bf16.msra.mxu1 %v6311_v46  ;;  %6400 = vmatprep.mubr.bf16.mxu1 %v7641_v12  ;;  %v6559_v57 = vpop.permute.xlu0 %6558 }
 0x1f2   :  { %7037 = vmatmul.mubr.msk.bf16.vlgmr.msra.gmra.mrb[4].mxu0 %vm83_vm3, %v7637_v35  ;;  %7257 = vmatprep.subr.bf16.mxu1 %v7652_v21  ;;  %v6570_v60 = vsel %vm6568_vm13, %v6557_v54, %v6559_v57  ;;  %v6571_v4 = vsel %vm6568_vm13, %v6559_v57, %v6561_v48 }
 0x1f3   :  { %6326 = vmatpush1.bf16.msra.mxu0 %v6305_v50  ;;  %v2652_v51 = vpop.f32.mrb[40].mxu1  ;;  %6357 = vmatprep.mubr.bf16.mxu0 %v7641_v12  ;;  %v6582_v8 = vand.u32 %v6570_v60, %v7804_v59  ;;  %v6585_v53 = vand.u32 %v6571_v4, %v7804_v59 }
 0x1f4   :  { %v2665_v13 = vadd.f32 %v2652_v51, %v2391_v34  ;;  %v7177_v11 = vpop.f32.mrb[41].mxu1  ;;  %6411 = vmatprep.subr.bf16.mxu0 %v6320_v17 }
 0x1f5   :  { %v2655_v58 = vpop.f32.mrb[42].mxu1  ;;  %v6565_v63 = vpop.permute.xlu0 %6564 }
 0x1f6   :  { %v2672_v61 = vadd.f32 %v2655_v58, %v2398_v41  ;;  %v7178_v0 = vpop.f32.mrb[43].mxu1  ;;  %v6573_v24 = vsel %vm6568_vm13, %v6563_v49, %v6565_v63 }
 0x1f7   :  { %v6555_v3 = vpop.permute.xlu1 %6554  ;;  %v6591_v29 = vand.u32 %v6573_v24, %v7804_v59 }
 0x1f8   :  { %7043 = vmatmul.mubr.msk.bf16.vlgmr.msra.gmra.mrb[0].mxu1 %vm83_vm3, %v7638_v56  ;;  %v6569_v55 = vsel %vm6568_vm13, %v6555_v3, %v6557_v54 }
 0x1f9   :  { %7258 = vmatpush3.bf16.msra.mxu1 %v6323_v10  ;;  %7259 = vmatprep.mubr.msk.bf16.mxu1 %vm7654_vm4, %v7652_v21  ;;  %v6579_v6 = vand.u32 %v6569_v55, %v7804_v59 }
 0x1fa   :  { %7042 = vmatmul.mubr.msk.bf16.vlgmr.msra.gmra.mrb[0].mxu0 %vm83_vm3, %v7638_v56  ;;  %6642 = vmatprep.subr.bf16.mxu1 %v6588_v62 }
 0x1fb   :  { %6412 = vmatpush1.bf16.msra.mxu0 %v6317_v2  ;;  %6443 = vmatprep.mubr.bf16.mxu0 %v7641_v12 }
 0x1fc   :  { %6599 = vmatprep.subr.bf16.mxu0 %v6582_v8 }
 0x1fe   :  { %v6567_v5 = vpop.permute.xlu1 %6566 }
 0x1ff   :  { %v6574_v7 = vsel %vm6568_vm13, %v6565_v63, %v6567_v5  ;;  %v6597_v22 = vand.u32 %v6567_v5, %v7804_v59 }
 0x200   :  { %7260 = vmatmul.mubr.msk.bf16.vlgmr.msra.gmra.mrb[96].mxu1 %vm83_vm3, %v7638_v56  ;;  %v6594_v15 = vand.u32 %v6574_v7, %v7804_v59 }
 0x201   :  { %6643 = vmatpush1.bf16.msra.mxu1 %v6585_v53  ;;  %6674 = vmatprep.mubr.bf16.mxu1 %v7641_v12 }
 0x202   :  { %7044 = vmatmul.mubr.msk.bf16.vlgmr.msra.gmra.mrb[4].mxu0 %vm83_vm3, %v7638_v56  ;;  %7263 = vmatprep.subr.bf16.mxu1 %v7652_v21 }
 0x203   :  { %6600 = vmatpush1.bf16.msra.mxu0 %v6579_v6  ;;  %v2926_v19 = vpop.f32.mrb[44].mxu1  ;;  %6631 = vmatprep.mubr.bf16.mxu0 %v7641_v12 }
 0x204   :  { %v2939_v1 = vadd.f32 %v2926_v19, %v2665_v13  ;;  %v7183_v20 = vpop.f32.mrb[45].mxu1  ;;  %6685 = vmatprep.subr.bf16.mxu0 %v6594_v15 }
 0x205   :  { %v2929_v23 = vpop.f32.mrb[46].mxu1 }
 0x206   :  { %v2946_v27 = vadd.f32 %v2929_v23, %v2672_v61  ;;  %v7184_v28 = vpop.f32.mrb[47].mxu1 }
 0x208   :  { %7050 = vmatmul.mubr.msk.bf16.vlgmr.msra.gmra.mrb[0].mxu1 %vm83_vm3, %v7639_v18 }
 0x209   :  { %7264 = vmatpush3.bf16.msra.mxu1 %v6597_v22  ;;  %7265 = vmatprep.mubr.msk.bf16.mxu1 %vm7654_vm4, %v7652_v21 }
 0x20a   :  { %7049 = vmatmul.mubr.msk.bf16.vlgmr.msra.gmra.mrb[0].mxu0 %vm83_vm3, %v7639_v18 }
 0x20b   :  { %6686 = vmatpush1.bf16.msra.mxu0 %v6591_v29  ;;  %6717 = vmatprep.mubr.bf16.mxu0 %v7641_v12 }
 0x210   :  { %7266 = vmatmul.mubr.msk.bf16.vlgmr.msra.gmra.mrb[100].mxu1 %vm83_vm3, %v7639_v18 }
 0x212   :  { %7051 = vmatmul.mubr.msk.bf16.vlgmr.msra.gmra.mrb[4].mxu0 %vm83_vm3, %v7639_v18  ;;  %vm6870_vm3 = vcmask 257024  }
 0x213   :  { %v3200_v30 = vpop.f32.mrb[48].mxu1 }
 0x214   :  { %v3213_v31 = vadd.f32 %v3200_v30, %v2939_v1  ;;  %v7189_v32 = vpop.f32.mrb[49].mxu1 }
 0x215   :  { %v3203_v34 = vpop.f32.mrb[50].mxu1 }
 0x216   :  { %v3220_v26 = vadd.f32 %v3203_v34, %v2946_v27  ;;  %v7190_v35 = vpop.f32.mrb[51].mxu1 }
 0x223   :  { %v3474_v59 = vpop.f32.mrb[52].mxu1 }
 0x224   :  { %v3487_v36 = vadd.f32 %v3474_v59, %v3213_v31  ;;  %v7195_v37 = vpop.f32.mrb[53].mxu1 }
 0x225   :  { %v3477_v38 = vpop.f32.mrb[54].mxu1 }
 0x226   :  { %v3494_v21 = vadd.f32 %v3477_v38, %v3220_v26  ;;  %v7196_v39 = vpop.f32.mrb[55].mxu1 }
 0x233   :  { %v3748_v40 = vpop.f32.mrb[56].mxu1 }
 0x234   :  { %v3761_v25 = vadd.f32 %v3748_v40, %v3487_v36  ;;  %v7201_v41 = vpop.f32.mrb[57].mxu1 }
 0x235   :  { %v3751_v12 = vpop.f32.mrb[58].mxu1 }
 0x236   :  { %v3768_v16 = vadd.f32 %v3751_v12, %v3494_v21  ;;  %v7202_v43 = vpop.f32.mrb[59].mxu1  ;;  %v6788_v41 = vpop.permute.xlu0 %6787 }
 0x243   :  { %v4022_v44 = vpop.f32.mrb[60].mxu1 }
 0x244   :  { %v4035_v33 = vadd.f32 %v4022_v44, %v3761_v25  ;;  %v7207_v45 = vpop.f32.mrb[61].mxu1 }
 0x245   :  { %v4025_v14 = vpop.f32.mrb[62].mxu1 }
 0x246   :  { %v4042_v42 = vadd.f32 %v4025_v14, %v3768_v16  ;;  %v7208_v46 = vpop.f32.mrb[63].mxu1  ;;  %v6793_v16 = vpop.permute.xlu1 %6792 }
 0x253   :  { %v4296_v47 = vpop.f32.mrb[64].mxu1 }
 0x254   :  { %v4309_v48 = vadd.f32 %v4296_v47, %v4035_v33  ;;  %v7213_v49 = vpop.f32.mrb[65].mxu1 }
 0x255   :  { %v4299_v50 = vpop.f32.mrb[66].mxu1 }
 0x256   :  { %v4316_v17 = vadd.f32 %v4299_v50, %v4042_v42  ;;  %v7214_v51 = vpop.f32.mrb[67].mxu1 }
 0x263   :  { %v4570_v52 = vpop.f32.mrb[68].mxu1 }
 0x264   :  { %v4583_v54 = vadd.f32 %v4570_v52, %v4309_v48  ;;  %v7219_v13 = vpop.f32.mrb[69].mxu1 }
 0x265   :  { %v4573_v11 = vpop.f32.mrb[70].mxu1 }
 0x266   :  { %v4590_v57 = vadd.f32 %v4573_v11, %v4316_v17  ;;  %v7220_v56 = vpop.f32.mrb[71].mxu1 }
 0x273   :  { %v4844_v10 = vpop.f32.mrb[72].mxu1 }
 0x274   :  { %v4857_v58 = vadd.f32 %v4844_v10, %v4583_v54  ;;  %v7225_v60 = vpop.f32.mrb[73].mxu1 }
 0x275   :  { %v4847_v9 = vpop.f32.mrb[74].mxu1 }
 0x276   :  { %v4864_v62 = vadd.f32 %v4847_v9, %v4590_v57  ;;  %v7226_v61 = vpop.f32.mrb[75].mxu1 }
 0x283   :  { %v5118_v0 = vpop.f32.mrb[76].mxu1 }
 0x284   :  { %v5131_v8 = vadd.f32 %v5118_v0, %v4857_v58  ;;  %v7231_v2 = vpop.f32.mrb[77].mxu1 }
 0x285   :  { %v5121_v3 = vpop.f32.mrb[78].mxu1 }
 0x286   :  { %v5138_v4 = vadd.f32 %v5121_v3, %v4864_v62  ;;  %v7232_v55 = vpop.f32.mrb[79].mxu1 }
 0x293   :  { %v5392_v53 = vpop.f32.mrb[80].mxu1 }
 0x294   :  { %v5405_v63 = vadd.f32 %v5392_v53, %v5131_v8  ;;  %v7237_v5 = vpop.f32.mrb[81].mxu1 }
 0x295   :  { %v5395_v6 = vpop.f32.mrb[82].mxu1 }
 0x296   :  { %v5412_v7 = vadd.f32 %v5395_v6, %v5138_v4  ;;  %v7238_v15 = vpop.f32.mrb[83].mxu1 }
 0x2a3   :  { %v5666_v19 = vpop.f32.mrb[84].mxu1 }
 0x2a4   :  { %v5679_v1 = vadd.f32 %v5666_v19, %v5405_v63  ;;  %v7243_v20 = vpop.f32.mrb[85].mxu1 }
 0x2a5   :  { %v5669_v18 = vpop.f32.mrb[86].mxu1 }
 0x2a6   :  { %v5686_v22 = vadd.f32 %v5669_v18, %v5412_v7  ;;  %v7244_v23 = vpop.f32.mrb[87].mxu1 }
 0x2b3   :  { %v5940_v24 = vpop.f32.mrb[88].mxu1 }
 0x2b4   :  { %v5953_v27 = vadd.f32 %v5940_v24, %v5679_v1  ;;  %v7249_v28 = vpop.f32.mrb[89].mxu1 }
 0x2b5   :  { %v5943_v29 = vpop.f32.mrb[90].mxu1 }
 0x2b6   :  { %v5960_v30 = vadd.f32 %v5943_v29, %v5686_v22  ;;  %v7250_v31 = vpop.f32.mrb[91].mxu1 }
 0x2c3   :  { %v6214_v32 = vpop.f32.mrb[92].mxu1 }
 0x2c4   :  { %v6227_v34 = vadd.f32 %v6214_v32, %v5953_v27  ;;  %v7255_v26 = vpop.f32.mrb[93].mxu1 }
 0x2c5   :  { %v6217_v35 = vpop.f32.mrb[94].mxu1 }
 0x2c6   :  { %v6234_v59 = vadd.f32 %v6217_v35, %v5960_v30  ;;  %v7256_v36 = vpop.f32.mrb[95].mxu1 }
 0x2d3   :  { %v6488_v37 = vpop.f32.mrb[96].mxu1 }
 0x2d4   :  { %v6501_v38 = vadd.f32 %v6488_v37, %v6227_v34  ;;  %v7261_v21 = vpop.f32.mrb[97].mxu1 }
 0x2d5   :  { %v6491_v39 = vpop.f32.mrb[98].mxu1 }
 0x2d6   :  { %v6508_v40 = vadd.f32 %v6491_v39, %v6234_v59  ;;  %v7262_v25 = vpop.f32.mrb[99].mxu1 }
 0x2db   :  { %v6676_v12 = vpop.f32.mrb[0].mxu1 }
 0x2dc   :  { %v6797_v43 = vadd.f32 %v6788_v41, %v6676_v12  ;;  %v6678_v44 = vpop.f32.mrb[1].mxu1 }
 0x2dd   :  { %v6798_v33 = vadd.f32 %v6788_v41, %v6678_v44  ;;  %v6633_v45 = vpop.f32.mrb[0].mxu0  ;;  %v6680_v14 = vpop.f32.mrb[2].mxu1 }
 0x2de   :  { %v6811_v42 = vmax.f32 %v6797_v43, 0.0  ;;  %v6795_v46 = vadd.f32 %v6788_v41, %v6633_v45  ;;  %v6804_v47 = vadd.f32 %v6793_v16, %v6680_v14  ;;  %v6635_v48 = vpop.f32.mrb[1].mxu0  ;;  %v6682_v49 = vpop.f32.mrb[3].mxu1 }
 0x2df   :  { %v6812_v50 = vmax.f32 %v6798_v33, 0.0  ;;  %v6796_v17 = vadd.f32 %v6788_v41, %v6635_v48  ;;  %v6805_v51 = vadd.f32 %v6793_v16, %v6682_v49  ;;  %v6637_v52 = vpop.f32.mrb[2].mxu0 }
 0x2e0   :  { %v6809_v54 = vmax.f32 %v6795_v46, 0.0  ;;  %v6818_v13 = vmax.f32 %v6804_v47, 0.0  ;;  %v6802_v11 = vadd.f32 %v6793_v16, %v6637_v52  ;;  %v6639_v57 = vpop.f32.mrb[3].mxu0 }
 0x2e1   :  { %v7062_v56 = vpack.c.bf16 %v6812_v50, %v6811_v42  ;;  %v6810_v10 = vmax.f32 %v6796_v17, 0.0  ;;  %v6819_v58 = vmax.f32 %v6805_v51, 0.0  ;;  %v6803_v60 = vadd.f32 %v6793_v16, %v6639_v57 }
 0x2e2   :  { %v6816_v9 = vmax.f32 %v6802_v11, 0.0 }
 0x2e3   :  { %6868 = vst [vmem:[%s9022_s3 + $0x8] sm:$0xff] %v7062_v56  ;;  %v7061_v62 = vpack.c.bf16 %v6810_v10, %v6809_v54  ;;  %v7066_v61 = vpack.c.bf16 %v6819_v58, %v6818_v13  ;;  %v6817_v0 = vmax.f32 %v6803_v60, 0.0  ;;  %v6762_v8 = vpop.f32.mrb[100].mxu1 }
 0x2e4   :  { %v6775_v2 = vadd.f32 %v6762_v8, %v6501_v38  ;;  %v7267_v3 = vpop.f32.mrb[101].mxu1 }
 0x2e5   :  { %6867 = vst [vmem:[%s9022_s3] sm:$0xff] %v7061_v62  ;;  %6873 = vst [vmem:[%s9022_s3 + $0x24] sm:$0xff] %v7066_v61  ;;  %v7065_v4 = vpack.c.bf16 %v6817_v0, %v6816_v9  ;;  %v6719_v55 = vpop.f32.mrb[4].mxu0  ;;  %v6765_v53 = vpop.f32.mrb[102].mxu1 }
 0x2e6   :  { %v6801_v63 = vadd.f32 %v6788_v41, %v6775_v2  ;;  %v6799_v5 = vadd.f32 %v6788_v41, %v6719_v55  ;;  %v6782_v6 = vadd.f32 %v6765_v53, %v6508_v40  ;;  %v6721_v7 = vpop.f32.mrb[5].mxu0  ;;  %v7268_v15 = vpop.f32.mrb[103].mxu1 }
 0x2e7   :  { %6872 = vst [vmem:[%s9022_s3 + $0x1c] sm:$0xff] %v7065_v4  ;;  %v6800_v19 = vadd.f32 %v6788_v41, %v6721_v7  ;;  %v6723_v1 = vpop.f32.mrb[6].mxu0 }
 0x2e8   :  { %v6815_v20 = vmax.f32 %v6801_v63, 0.0  ;;  %v6813_v18 = vmax.f32 %v6799_v5, 0.0  ;;  %v6808_v22 = vadd.f32 %v6793_v16, %v6782_v6  ;;  %v6806_v23 = vadd.f32 %v6793_v16, %v6723_v1  ;;  %v6725_v24 = vpop.f32.mrb[7].mxu0 }
 0x2e9   :  { %v6814_v27 = vmax.f32 %v6800_v19, 0.0  ;;  %v6807_v28 = vadd.f32 %v6793_v16, %v6725_v24 }
 0x2ea   :  { %v7064_v29 = vpack.c.bf16 %v6815_v20, %v6815_v20  ;;  %v6822_v30 = vmax.f32 %v6808_v22, 0.0  ;;  %v6820_v31 = vmax.f32 %v6806_v23, 0.0 }
 0x2eb   :  { %v7063_v32 = vpack.c.bf16 %v6814_v27, %v6813_v18  ;;  %v6821_v34 = vmax.f32 %v6807_v28, 0.0 }
 0x2ec   :  { %6871 = vst.msk [vmem:[%s9022_s3 + $0x18] sm:$0xf] %vm6870_vm3, %v7064_v29  ;;  %v7068_v26 = vpack.c.bf16 %v6822_v30, %v6822_v30 }
 0x2ed   :  { %6869 = vst [vmem:[%s9022_s3 + $0x10] sm:$0xff] %v7063_v32  ;;  %v7067_v35 = vpack.c.bf16 %v6821_v34, %v6820_v31 }
 0x2ee   :  { %6875 = vst.msk [vmem:[%s9022_s3 + $0x34] sm:$0xf] %vm6870_vm3, %v7068_v26 }
 0x2ef   :  { %6874 = vst [vmem:[%s9022_s3 + $0x2c] sm:$0xff] %v7067_v35 }

// kernel: resnet_forward.42
= control target key start
LH: loop header
LB: loop body
LE: loop exit
PB: predicated region body
PF: predicated region fallthrough
CT: control target
= control target key end

     0   :  { %s1067_s19 = smov 121   ;;  %s1068_s20 = smov 127   ;;  %vm57_vm0 = vcmask 261120   ;;  %v1075_v4 = vmov 0   ;;  %vm800_vm1 = vcmask 584704   ;;  %s1233_s0 = inlined_call_operand.vmem [shape: bf16[32,86], index: 0, kind: input, shape index: {}]   ;;  %s1234_s1 = inlined_call_operand.vmem [shape: bf16[9,32,32], index: 1, kind: input, shape index: {}]   ;;  %s1235_s2 = inlined_call_operand.vmem [shape: f32[32,1], index: 2, kind: input, shape index: {}]   ;;  %s1236_s3 = inlined_call_operand.vmem [shape: bf16[32,72], index: 3, kind: input, shape index: {}]   ;;  %s1237_s4 = inlined_call_operand.vmem [shape: bf16[32,72], index: 4, kind: output, shape index: {}]  }
   0x1   :  { %v1104_v0 = vld [vmem:[%s1233_s0] sm:$0xff]   ;;  %v1109_v1 = vld [vmem:[%s1233_s0 + $0x8] sm:$0xff]   ;;  %v1051_v3 = vld [vmem:[%s1234_s1 + $0x10] sm:$0xff]   ;;  %s1069_s0 = smov 120   ;;  %s1070_s25 = smov 116   ;;  %1046 = vset.pattern.permute.xlu1 %v1075_v4  ;;  %1045 = vset.pattern.permute.xlu0 %v1075_v4 }
   0x2   :  { %355 = vrot.lane.b32.xlu0 %v1104_v0, %s1067_s19  ;;  %51 = vrot.lane.b32.xlu1 %v1104_v0, %s1068_s20  ;;  %v1049_v2 = vld [vmem:[%s1234_s1 + $0x40] sm:$0xff]   ;;  %s1071_s26 = smov 126   ;;  %s1072_s27 = smov 115   ;;  %v741_v5 = vld [vmem:[%s1235_s2 + $0x8] sm:$0xff] }
   0x3   :  { %968 = vmatprep.mubr.msk.bf16.mxu0 %vm57_vm0, %v1049_v2  ;;  %936 = vmatprep.mubr.msk.bf16.mxu1 %vm57_vm0, %v1051_v3  ;;  %s1073_s28 = smov 122   ;;  %s1074_s29 = smov 114   ;;  %v740_v6 = vld [vmem:[%s1235_s2] sm:$0xff]  ;;  %v742_v7 = vld [vmem:[%s1235_s2 + $0x10] sm:$0xff]  ;;  %v743_v8 = vld [vmem:[%s1235_s2 + $0x18] sm:$0xff] }
   0x4   :  { %v1050_v13 = vld [vmem:[%s1234_s1 + $0x48] sm:$0xff]   ;;  %v1053_v16 = vld [vmem:[%s1234_s1 + $0x50] sm:$0xff]   ;;  %v1052_v17 = vld [vmem:[%s1234_s1 + $0x18] sm:$0xff]  }
   0x5   :  { %v1055_v19 = vld [vmem:[%s1234_s1] sm:$0xff]   ;;  %v1054_v21 = vld [vmem:[%s1234_s1 + $0x58] sm:$0xff]   ;;  %v1056_v24 = vld [vmem:[%s1234_s1 + $0x8] sm:$0xff]  }
   0x6   :  { %357 = vrot.lane.b32.xlu0 %v1109_v1, %s1067_s19  ;;  %435 = vrot.lane.b32.xlu1 %v1104_v0, %s1069_s0  ;;  %v1057_v22 = vld [vmem:[%s1234_s1 + $0x60] sm:$0xff]   ;;  %v1058_v29 = vld [vmem:[%s1234_s1 + $0x68] sm:$0xff]  }
   0x7   :  { %v1059_v27 = vld [vmem:[%s1234_s1 + $0x20] sm:$0xff]   ;;  %v1061_v30 = vld [vmem:[%s1234_s1 + $0x70] sm:$0xff]   ;;  %v1060_v32 = vld [vmem:[%s1234_s1 + $0x28] sm:$0xff]  }
   0x8   :  { %v1063_v35 = vld [vmem:[%s1234_s1 + $0x30] sm:$0xff]   ;;  %v1062_v36 = vld [vmem:[%s1234_s1 + $0x78] sm:$0xff]   ;;  %v1065_v37 = vld [vmem:[%s1234_s1 + $0x80] sm:$0xff]  }
   0x9   :  { %v1064_v39 = vld [vmem:[%s1234_s1 + $0x38] sm:$0xff]   ;;  %v1066_v40 = vld [vmem:[%s1234_s1 + $0x88] sm:$0xff]   ;;  %v888_v48 = vld [vmem:[%s1236_s3] sm:$0xff]  }
   0xa   :  { %53 = vrot.lane.b32.xlu0 %v1109_v1, %s1068_s20  ;;  %437 = vrot.lane.b32.xlu1 %v1109_v1, %s1069_s0  ;;  %v895_v47 = vld [vmem:[%s1236_s3 + $0x8] sm:$0xff]   ;;  %v889_v55 = vunpack.c.l.bf16 %v888_v48 }
   0xb   :  { %v893_v53 = vunpack.c.l.bf16 %v895_v47  ;;  %v894_v59 = vunpack.c.h.bf16 %v895_v47 }
   0xe   :  { %515 = vrot.lane.b32.xlu0 %v1104_v0, %s1070_s25  ;;  %517 = vrot.lane.b32.xlu1 %v1109_v1, %s1070_s25 }
  0x12   :  { %195 = vrot.lane.b32.xlu0 %v1104_v0, %s1071_s26  ;;  %595 = vrot.lane.b32.xlu1 %v1104_v0, %s1072_s27 }
  0x16   :  { %197 = vrot.lane.b32.xlu0 %v1109_v1, %s1071_s26  ;;  %597 = vrot.lane.b32.xlu1 %v1109_v1, %s1072_s27 }
  0x1a   :  { %275 = vrot.lane.b32.xlu0 %v1104_v0, %s1073_s28  ;;  %675 = vrot.lane.b32.xlu1 %v1104_v0, %s1074_s29 }
  0x1e   :  { %277 = vrot.lane.b32.xlu0 %v1109_v1, %s1073_s28  ;;  %677 = vrot.lane.b32.xlu1 %v1109_v1, %s1074_s29 }
  0x22   :  { %751 = vperm.xlu1 %1046, %v741_v5   ;;  %746 = vperm.xlu0 %1045, %v740_v6  }
  0x26   :  { %756 = vperm.xlu1 %1046, %v742_v7   ;;  %761 = vperm.xlu0 %1045, %v743_v8  }
  0x74   :  { %v356_v9 = vpop.permute.xlu0 %355  ;;  %v52_v10 = vpop.permute.xlu1 %51 }
  0x75   :  { %964 = vmatprep.subr.bf16.mxu0 %v356_v9  ;;  %932 = vmatprep.subr.bf16.mxu1 %v52_v10 }
  0x76   :  { %965 = vmatpush3.bf16.msra.mxu0 %v356_v9  ;;  %933 = vmatpush3.bf16.msra.mxu1 %v52_v10 }
  0x78   :  { %v358_v11 = vpop.permute.xlu0 %357  ;;  %v436_v12 = vpop.permute.xlu1 %435 }
  0x79   :  { %966 = vmatprep.subr.bf16.mxu0 %v358_v11 }
  0x7a   :  { %967 = vmatpush3.bf16.msra.mxu0 %v358_v11 }
  0x7b   :  { %972 = vmatprep.subr.bf16.mxu0 %v436_v12 }
  0x7c   :  { %v54_v14 = vpop.permute.xlu0 %53  ;;  %v438_v15 = vpop.permute.xlu1 %437 }
  0x7d   :  { %934 = vmatprep.subr.bf16.mxu1 %v54_v14  ;;  %969 = vmatmul.mubr.msk.bf16.vlgmr.msra.gmra.mrb[0].mxu0 %vm57_vm0, %v1050_v13 }
  0x7e   :  { %935 = vmatpush3.bf16.msra.mxu1 %v54_v14  ;;  %973 = vmatpush3.bf16.msra.mxu0 %v436_v12 }
  0x7f   :  { %974 = vmatprep.subr.bf16.mxu0 %v438_v15  ;;  %940 = vmatprep.subr.bf16.mxu1 %v1104_v0 }
  0x80   :  { %v516_v18 = vpop.permute.xlu0 %515  ;;  %976 = vmatprep.mubr.msk.bf16.mxu0 %vm57_vm0, %v1053_v16  ;;  %v518_v23 = vpop.permute.xlu1 %517 }
  0x81   :  { %937 = vmatmul.mubr.msk.bf16.vlgmr.msra.gmra.mrb[0].mxu1 %vm57_vm0, %v1052_v17 }
  0x82   :  { %975 = vmatpush3.bf16.msra.mxu0 %v438_v15  ;;  %941 = vmatpush3.bf16.msra.mxu1 %v1104_v0  ;;  %v890_v0 = vunpack.c.h.bf16 %v888_v48 }
  0x83   :  { %980 = vmatprep.subr.bf16.mxu0 %v516_v18  ;;  %942 = vmatprep.subr.bf16.mxu1 %v1109_v1 }
  0x84   :  { %944 = vmatprep.mubr.msk.bf16.mxu1 %vm57_vm0, %v1055_v19  ;;  %v196_v20 = vpop.permute.xlu0 %195  ;;  %v596_v25 = vpop.permute.xlu1 %595 }
  0x86   :  { %943 = vmatpush3.bf16.msra.mxu1 %v1109_v1 }
  0x87   :  { %948 = vmatprep.subr.bf16.mxu1 %v196_v20 }
  0x88   :  { %v198_v26 = vpop.permute.xlu0 %197  ;;  %v598_v31 = vpop.permute.xlu1 %597 }
  0x89   :  { %977 = vmatmul.mubr.msk.bf16.vlgmr.msra.gmra.mrb[0].mxu0 %vm57_vm0, %v1054_v21 }
  0x8a   :  { %981 = vmatpush3.bf16.msra.mxu0 %v516_v18  ;;  %984 = vmatprep.mubr.msk.bf16.mxu0 %vm57_vm0, %v1057_v22 }
  0x8b   :  { %982 = vmatprep.subr.bf16.mxu0 %v518_v23 }
  0x8c   :  { %v276_v28 = vpop.permute.xlu0 %275  ;;  %v676_v33 = vpop.permute.xlu1 %675 }
  0x8d   :  { %945 = vmatmul.mubr.msk.bf16.vlgmr.msra.gmra.mrb[0].mxu1 %vm57_vm0, %v1056_v24 }
  0x8e   :  { %983 = vmatpush3.bf16.msra.mxu0 %v518_v23  ;;  %949 = vmatpush3.bf16.msra.mxu1 %v196_v20 }
  0x8f   :  { %988 = vmatprep.subr.bf16.mxu0 %v596_v25  ;;  %950 = vmatprep.subr.bf16.mxu1 %v198_v26 }
  0x90   :  { %952 = vmatprep.mubr.msk.bf16.mxu1 %vm57_vm0, %v1059_v27  ;;  %v278_v34 = vpop.permute.xlu0 %277  ;;  %v678_v38 = vpop.permute.xlu1 %677 }
  0x92   :  { %951 = vmatpush3.bf16.msra.mxu1 %v198_v26 }
  0x93   :  { %956 = vmatprep.subr.bf16.mxu1 %v276_v28 }
  0x95   :  { %985 = vmatmul.mubr.msk.bf16.vlgmr.msra.gmra.mrb[0].mxu0 %vm57_vm0, %v1058_v29 }
  0x96   :  { %989 = vmatpush3.bf16.msra.mxu0 %v596_v25  ;;  %992 = vmatprep.mubr.msk.bf16.mxu0 %vm57_vm0, %v1061_v30 }
  0x97   :  { %990 = vmatprep.subr.bf16.mxu0 %v598_v31 }
  0x99   :  { %953 = vmatmul.mubr.msk.bf16.vlgmr.msra.gmra.mrb[0].mxu1 %vm57_vm0, %v1060_v32 }
  0x9a   :  { %991 = vmatpush3.bf16.msra.mxu0 %v598_v31  ;;  %957 = vmatpush3.bf16.msra.mxu1 %v276_v28 }
  0x9b   :  { %996 = vmatprep.subr.bf16.mxu0 %v676_v33  ;;  %958 = vmatprep.subr.bf16.mxu1 %v278_v34 }
  0x9c   :  { %960 = vmatprep.mubr.msk.bf16.mxu1 %vm57_vm0, %v1063_v35 }
  0x9e   :  { %959 = vmatpush3.bf16.msra.mxu1 %v278_v34 }
  0xa1   :  { %993 = vmatmul.mubr.msk.bf16.vlgmr.msra.gmra.mrb[0].mxu0 %vm57_vm0, %v1062_v36  ;;  %v752_v44 = vpop.permute.xlu1 %751  ;;  %v747_v46 = vpop.permute.xlu0 %746 }
  0xa2   :  { %997 = vmatpush3.bf16.msra.mxu0 %v676_v33  ;;  %1000 = vmatprep.mubr.msk.bf16.mxu0 %vm57_vm0, %v1065_v37 }
  0xa3   :  { %998 = vmatprep.subr.bf16.mxu0 %v678_v38 }
  0xa5   :  { %961 = vmatmul.mubr.msk.bf16.vlgmr.msra.gmra.mrb[0].mxu1 %vm57_vm0, %v1064_v39  ;;  %v757_v50 = vpop.permute.xlu1 %756  ;;  %v762_v62 = vpop.permute.xlu0 %761 }
  0xa6   :  { %999 = vmatpush3.bf16.msra.mxu0 %v678_v38 }
  0xad   :  { %1001 = vmatmul.mubr.msk.bf16.vlgmr.msra.gmra.mrb[0].mxu0 %vm57_vm0, %v1066_v40 }
 0x178   :  { %v962_v41 = vpop.f32.mrb[0].mxu1 }
 0x179   :  { %v321_v42 = vpop.f32.mrb[1].mxu1 }
 0x17a   :  { %v963_v43 = vpop.f32.mrb[2].mxu1 }
 0x17b   :  { %v324_v45 = vpop.f32.mrb[3].mxu1 }
 0x180   :  { %v1002_v49 = vpop.f32.mrb[0].mxu0 }
 0x181   :  { %v1004_v51 = vadd.f32 %v1002_v49, %v962_v41  ;;  %v721_v52 = vpop.f32.mrb[1].mxu0 }
 0x182   :  { %v1005_v54 = vadd.f32 %v721_v52, %v321_v42  ;;  %v1003_v56 = vpop.f32.mrb[2].mxu0 }
 0x183   :  { %v766_v57 = vadd.f32 %v1004_v51, %v757_v50  ;;  %v1006_v58 = vadd.f32 %v1003_v56, %v963_v43  ;;  %v724_v60 = vpop.f32.mrb[3].mxu0 }
 0x184   :  { %v764_v61 = vadd.f32 %v1005_v54, %v747_v46  ;;  %v1007_v63 = vadd.f32 %v724_v60, %v324_v45 }
 0x185   :  { %v778_v1 = vadd.f32 %v893_v53, %v766_v57  ;;  %v767_v2 = vadd.f32 %v1006_v58, %v762_v62 }
 0x186   :  { %v776_v3 = vadd.f32 %v889_v55, %v764_v61  ;;  %v765_v4 = vadd.f32 %v1007_v63, %v752_v44 }
 0x187   :  { %v782_v5 = vmax.f32 %v778_v1, 0.0  ;;  %v779_v6 = vadd.f32 %v894_v59, %v767_v2 }
 0x188   :  { %v780_v7 = vmax.f32 %v776_v3, 0.0  ;;  %v777_v8 = vadd.f32 %v890_v0, %v765_v4 }
 0x189   :  { %v885_v9 = vpack.c.bf16 %v782_v5, %v782_v5  ;;  %v783_v10 = vmax.f32 %v779_v6, 0.0 }
 0x18a   :  { %v883_v11 = vpack.c.bf16 %v780_v7, %v780_v7  ;;  %v781_v12 = vmax.f32 %v777_v8, 0.0 }
 0x18b   :  { %803 = vst.msk [vmem:[%s1237_s4 + $0x8] sm:$0xf] %vm800_vm1, %v885_v9  ;;  %v886_v13 = vpack.c.bf16 %v783_v10, %v783_v10 }
 0x18c   :  { %801 = vst.msk [vmem:[%s1237_s4] sm:$0xf] %vm800_vm1, %v883_v11  ;;  %v884_v14 = vpack.c.bf16 %v781_v12, %v781_v12 }
 0x18d   :  { %804 = vst.msk [vmem:[%s1237_s4 + $0xc] sm:$0xf] %vm800_vm1, %v886_v13 }
 0x18e   :  { %802 = vst.msk [vmem:[%s1237_s4 + $0x4] sm:$0xf] %vm800_vm1, %v884_v14 }

// kernel: resnet_forward.43
= control target key start
LH: loop header
LB: loop body
LE: loop exit
PB: predicated region body
PF: predicated region fallthrough
CT: control target
= control target key end

     0   :  { %s2116_s25 = smov 127   ;;  %s2117_s26 = smov 126   ;;  %vm64_vm0 = vcmask 261120   ;;  %v2124_v3 = vmov 0   ;;  %vm789_vm1 = vcmask 703488   ;;  %vm802_vm2 = vcmask 646200   ;;  %s2426_s0 = inlined_call_operand.vmem [shape: bf16[32,86], index: 0, kind: input, shape index: {}]   ;;  %s2427_s1 = inlined_call_operand.vmem [shape: bf16[9,32,32], index: 1, kind: input, shape index: {}]   ;;  %s2428_s2 = inlined_call_operand.vmem [shape: f32[32,1], index: 2, kind: input, shape index: {}]   ;;  %s2429_s5 = inlined_call_operand.vmem [shape: f32[1,72], index: 5, kind: input, shape index: {}]   ;;  %s2430_s3 = inlined_call_operand.vmem [shape: bf16[9,32,32], index: 3, kind: input, shape index: {}]   ;;  %s2431_s4 = inlined_call_operand.vmem [shape: f32[32,1], index: 4, kind: input, shape index: {}]   ;;  %s2432_s6 = inlined_call_operand.vmem [shape: bf16[32,86], index: 6, kind: output, shape index: {}]  }
   0x1   :  { %v2074_v0 = vld [vmem:[%s2426_s0] sm:$0xff]   ;;  %v2075_v1 = vld [vmem:[%s2426_s0 + $0x8] sm:$0xff]   ;;  %v2076_v2 = vld [vmem:[%s2427_s1 + $0x10] sm:$0xff]   ;;  %s2118_s29 = smov 122   ;;  %s2119_s30 = smov 121   ;;  %2063 = vset.pattern.permute.xlu1 %v2124_v3  ;;  %2062 = vset.pattern.permute.xlu0 %v2124_v3  ;;  %791 = vst.msk [vmem:[#allocation2 + $0x8] sm:$0xff] %vm789_vm1, %v2124_v3 }
   0x2   :  { %58 = vrot.lane.b32.xlu0 %v2074_v0, %s2116_s25  ;;  %202 = vrot.lane.b32.xlu1 %v2074_v0, %s2117_s26  ;;  %s2120_s7 = smov 120   ;;  %s2121_s8 = smov 116   ;;  %v748_v4 = vld [vmem:[%s2428_s2 + $0x8] sm:$0xff]  ;;  %v747_v5 = vld [vmem:[%s2428_s2] sm:$0xff]  ;;  %790 = vst.msk [vmem:[#allocation2] sm:$0xff] %vm789_vm1, %v2124_v3  ;;  %vm1578_vm3 = vcmask 699392  }
   0x3   :  { %1848 = vmatprep.mubr.msk.bf16.mxu0 %vm64_vm0, %v2076_v2  ;;  %s2122_s9 = smov 115   ;;  %s2123_s10 = smov 114   ;;  %v749_v6 = vld [vmem:[%s2428_s2 + $0x10] sm:$0xff]  ;;  %v750_v7 = vld [vmem:[%s2428_s2 + $0x18] sm:$0xff]  ;;  %v2078_v11 = vld [vmem:[%s2427_s1] sm:$0xff]   ;;  %vm1607_vm4 = vcmask 642104  }
   0x4   :  { %v2077_v10 = vld [vmem:[%s2427_s1 + $0x18] sm:$0xff]   ;;  %v2079_v13 = vld [vmem:[%s2427_s1 + $0x8] sm:$0xff]   ;;  %v2080_v14 = vld [vmem:[%s2427_s1 + $0x20] sm:$0xff]   ;;  %s2125_s20 = smov 7   ;;  %1579 = vst.msk [vmem:[%s2432_s6] sm:$0xf] %vm1578_vm3, %v2124_v3 }
   0x5   :  { %v2081_v17 = vld [vmem:[%s2427_s1 + $0x28] sm:$0xff]   ;;  %v2082_v18 = vld [vmem:[%s2427_s1 + $0x30] sm:$0xff]   ;;  %v2083_v21 = vld [vmem:[%s2427_s1 + $0x38] sm:$0xff]   ;;  %1580 = vst.msk [vmem:[%s2432_s6 + $0x4] sm:$0xf] %vm1578_vm3, %v2124_v3 }
   0x6   :  { %60 = vrot.lane.b32.xlu0 %v2075_v1, %s2116_s25  ;;  %204 = vrot.lane.b32.xlu1 %v2075_v1, %s2117_s26  ;;  %v2084_v22 = vld [vmem:[%s2427_s1 + $0x40] sm:$0xff]   ;;  %v2085_v25 = vld [vmem:[%s2427_s1 + $0x48] sm:$0xff]  }
   0x7   :  { %v2086_v26 = vld [vmem:[%s2427_s1 + $0x50] sm:$0xff]   ;;  %v2087_v29 = vld [vmem:[%s2427_s1 + $0x58] sm:$0xff]   ;;  %v2088_v30 = vld [vmem:[%s2427_s1 + $0x60] sm:$0xff]   ;;  %1581 = vst.msk [vmem:[%s2432_s6 + $0x8] sm:$0xf] %vm1578_vm3, %v2124_v3 }
   0x8   :  { %v2089_v33 = vld [vmem:[%s2427_s1 + $0x68] sm:$0xff]   ;;  %v2090_v34 = vld [vmem:[%s2427_s1 + $0x70] sm:$0xff]   ;;  %v2091_v37 = vld [vmem:[%s2427_s1 + $0x78] sm:$0xff]   ;;  %1582 = vst.msk [vmem:[%s2432_s6 + $0xc] sm:$0xf] %vm1578_vm3, %v2124_v3 }
   0x9   :  { %v2092_v38 = vld [vmem:[%s2427_s1 + $0x80] sm:$0xff]   ;;  %v2093_v40 = vld [vmem:[%s2427_s1 + $0x88] sm:$0xff]   ;;  %v2094_v2 = vld [vmem:[%s2430_s3 + $0x10] sm:$0xff]  }
   0xa   :  { %282 = vrot.lane.b32.xlu0 %v2074_v0, %s2118_s29  ;;  %284 = vrot.lane.b32.xlu1 %v2075_v1, %s2118_s29  ;;  %v2274_v53 = vld [vmem:[%s2429_s5] ss:$0 sm:$0xff] }
   0xb   :  { %1920 = vmatprep.mubr.msk.bf16.mxu1 %vm64_vm0, %v2094_v2 }
   0xe   :  { %362 = vrot.lane.b32.xlu0 %v2074_v0, %s2119_s30  ;;  %364 = vrot.lane.b32.xlu1 %v2075_v1, %s2119_s30 }
  0x12   :  { %442 = vrot.lane.b32.xlu0 %v2074_v0, %s2120_s7  ;;  %444 = vrot.lane.b32.xlu1 %v2075_v1, %s2120_s7 }
  0x16   :  { %522 = vrot.lane.b32.xlu0 %v2074_v0, %s2121_s8  ;;  %524 = vrot.lane.b32.xlu1 %v2075_v1, %s2121_s8 }
  0x1a   :  { %602 = vrot.lane.b32.xlu0 %v2074_v0, %s2122_s9  ;;  %604 = vrot.lane.b32.xlu1 %v2075_v1, %s2122_s9 }
  0x1e   :  { %682 = vrot.lane.b32.xlu0 %v2074_v0, %s2123_s10  ;;  %684 = vrot.lane.b32.xlu1 %v2075_v1, %s2123_s10 }
  0x22   :  { %758 = vperm.xlu1 %2063, %v748_v4   ;;  %753 = vperm.xlu0 %2062, %v747_v5  }
  0x26   :  { %763 = vperm.xlu1 %2063, %v749_v6   ;;  %768 = vperm.xlu0 %2062, %v750_v7   ;;  %v1515_v6 = vld [vmem:[%s2431_s4 + $0x8] sm:$0xff]  ;;  %v1514_v7 = vld [vmem:[%s2431_s4] sm:$0xff] }
  0x74   :  { %v59_v8 = vpop.permute.xlu0 %58  ;;  %v203_v12 = vpop.permute.xlu1 %202 }
  0x75   :  { %1844 = vmatprep.subr.bf16.mxu0 %v59_v8 }
  0x76   :  { %1845 = vmatpush3.bf16.msra.mxu0 %v59_v8  ;;  %v1517_v8 = vld [vmem:[%s2431_s4 + $0x18] sm:$0xff] }
  0x78   :  { %v61_v9 = vpop.permute.xlu0 %60  ;;  %v205_v15 = vpop.permute.xlu1 %204 }
  0x79   :  { %1846 = vmatprep.subr.bf16.mxu0 %v61_v9 }
  0x7a   :  { %1847 = vmatpush3.bf16.msra.mxu0 %v61_v9  ;;  %v1516_v9 = vld [vmem:[%s2431_s4 + $0x10] sm:$0xff] }
  0x7b   :  { %1852 = vmatprep.subr.bf16.mxu0 %v2074_v0 }
  0x7c   :  { %v283_v16 = vpop.permute.xlu0 %282  ;;  %v285_v19 = vpop.permute.xlu1 %284 }
  0x7d   :  { %1849 = vmatmul.mubr.msk.bf16.vlgmr.msra.gmra.mrb[0].mxu0 %vm64_vm0, %v2077_v10  ;;  %v1771_v10 = vld [vmem:[%s2426_s0 + $0x8] sm:$0xff]  }
  0x7e   :  { %1853 = vmatpush3.bf16.msra.mxu0 %v2074_v0  ;;  %1856 = vmatprep.mubr.msk.bf16.mxu0 %vm64_vm0, %v2078_v11  ;;  %v1764_v11 = vld [vmem:[%s2426_s0] sm:$0xff]  }
  0x7f   :  { %1854 = vmatprep.subr.bf16.mxu0 %v2075_v1 }
  0x80   :  { %v363_v20 = vpop.permute.xlu0 %362  ;;  %v365_v23 = vpop.permute.xlu1 %364 }
  0x82   :  { %1855 = vmatpush3.bf16.msra.mxu0 %v2075_v1 }
  0x83   :  { %1860 = vmatprep.subr.bf16.mxu0 %v203_v12 }
  0x84   :  { %v443_v24 = vpop.permute.xlu0 %442  ;;  %v445_v27 = vpop.permute.xlu1 %444 }
  0x88   :  { %v523_v28 = vpop.permute.xlu0 %522  ;;  %v525_v31 = vpop.permute.xlu1 %524 }
  0x89   :  { %1857 = vmatmul.mubr.msk.bf16.vlgmr.msra.gmra.mrb[0].mxu0 %vm64_vm0, %v2079_v13  ;;  %v1770_v13 = vunpack.c.h.bf16 %v1771_v10 }
  0x8a   :  { %1861 = vmatpush3.bf16.msra.mxu0 %v203_v12  ;;  %1864 = vmatprep.mubr.msk.bf16.mxu0 %vm64_vm0, %v2080_v14  ;;  %v1769_v12 = vunpack.c.l.bf16 %v1771_v10  ;;  %v1765_v14 = vunpack.c.l.bf16 %v1764_v11 }
  0x8b   :  { %1862 = vmatprep.subr.bf16.mxu0 %v205_v15 }
  0x8c   :  { %v603_v32 = vpop.permute.xlu0 %602  ;;  %v605_v35 = vpop.permute.xlu1 %604 }
  0x8e   :  { %1863 = vmatpush3.bf16.msra.mxu0 %v205_v15  ;;  %v1766_v15 = vunpack.c.h.bf16 %v1764_v11 }
  0x8f   :  { %1868 = vmatprep.subr.bf16.mxu0 %v283_v16 }
  0x90   :  { %v683_v36 = vpop.permute.xlu0 %682  ;;  %v685_v39 = vpop.permute.xlu1 %684 }
  0x95   :  { %1865 = vmatmul.mubr.msk.bf16.vlgmr.msra.gmra.mrb[0].mxu0 %vm64_vm0, %v2081_v17  ;;  %v2064_v17 = vpack.i.bf16 %v1766_v15, %v1765_v14 }
  0x96   :  { %1869 = vmatpush3.bf16.msra.mxu0 %v283_v16  ;;  %1872 = vmatprep.mubr.msk.bf16.mxu0 %vm64_vm0, %v2082_v18  ;;  %v2069_v16 = vpack.i.bf16 %v1770_v13, %v1769_v12 }
  0x97   :  { %1870 = vmatprep.subr.bf16.mxu0 %v285_v19 }
  0x9a   :  { %1871 = vmatpush3.bf16.msra.mxu0 %v285_v19 }
  0x9b   :  { %1876 = vmatprep.subr.bf16.mxu0 %v363_v20 }
  0xa1   :  { %1873 = vmatmul.mubr.msk.bf16.vlgmr.msra.gmra.mrb[0].mxu0 %vm64_vm0, %v2083_v21  ;;  %v759_v41 = vpop.permute.xlu1 %758  ;;  %v754_v42 = vpop.permute.xlu0 %753  ;;  %v2096_v21 = vld [vmem:[%s2430_s3] sm:$0xff]  }
  0xa2   :  { %1877 = vmatpush3.bf16.msra.mxu0 %v363_v20  ;;  %1880 = vmatprep.mubr.msk.bf16.mxu0 %vm64_vm0, %v2084_v22  ;;  %v2095_v20 = vld [vmem:[%s2430_s3 + $0x18] sm:$0xff]  }
  0xa3   :  { %1878 = vmatprep.subr.bf16.mxu0 %v365_v23 }
  0xa5   :  { %v764_v43 = vpop.permute.xlu1 %763  ;;  %v769_v45 = vpop.permute.xlu0 %768 }
  0xa6   :  { %1879 = vmatpush3.bf16.msra.mxu0 %v365_v23  ;;  %v2097_v23 = vld [vmem:[%s2430_s3 + $0x8] sm:$0xff]  }
  0xa7   :  { %1884 = vmatprep.subr.bf16.mxu0 %v443_v24 }
  0xad   :  { %1881 = vmatmul.mubr.msk.bf16.vlgmr.msra.gmra.mrb[0].mxu0 %vm64_vm0, %v2085_v25 }
  0xae   :  { %1885 = vmatpush3.bf16.msra.mxu0 %v443_v24  ;;  %1888 = vmatprep.mubr.msk.bf16.mxu0 %vm64_vm0, %v2086_v26  ;;  %v2098_v24 = vld [vmem:[%s2430_s3 + $0x20] sm:$0xff]  }
  0xaf   :  { %1886 = vmatprep.subr.bf16.mxu0 %v445_v27 }
  0xb2   :  { %1887 = vmatpush3.bf16.msra.mxu0 %v445_v27  ;;  %v2099_v27 = vld [vmem:[%s2430_s3 + $0x28] sm:$0xff]  }
  0xb3   :  { %1892 = vmatprep.subr.bf16.mxu0 %v523_v28 }
  0xb9   :  { %1889 = vmatmul.mubr.msk.bf16.vlgmr.msra.gmra.mrb[0].mxu0 %vm64_vm0, %v2087_v29 }
  0xba   :  { %1893 = vmatpush3.bf16.msra.mxu0 %v523_v28  ;;  %1896 = vmatprep.mubr.msk.bf16.mxu0 %vm64_vm0, %v2088_v30  ;;  %v2100_v28 = vld [vmem:[%s2430_s3 + $0x30] sm:$0xff]  }
  0xbb   :  { %1894 = vmatprep.subr.bf16.mxu0 %v525_v31 }
  0xbe   :  { %1895 = vmatpush3.bf16.msra.mxu0 %v525_v31  ;;  %v2101_v31 = vld [vmem:[%s2430_s3 + $0x38] sm:$0xff]  }
  0xbf   :  { %1900 = vmatprep.subr.bf16.mxu0 %v603_v32 }
  0xc5   :  { %1897 = vmatmul.mubr.msk.bf16.vlgmr.msra.gmra.mrb[0].mxu0 %vm64_vm0, %v2089_v33 }
  0xc6   :  { %1901 = vmatpush3.bf16.msra.mxu0 %v603_v32  ;;  %1904 = vmatprep.mubr.msk.bf16.mxu0 %vm64_vm0, %v2090_v34  ;;  %v2102_v32 = vld [vmem:[%s2430_s3 + $0x40] sm:$0xff]  }
  0xc7   :  { %1902 = vmatprep.subr.bf16.mxu0 %v605_v35 }
  0xca   :  { %1903 = vmatpush3.bf16.msra.mxu0 %v605_v35  ;;  %v2103_v35 = vld [vmem:[%s2430_s3 + $0x48] sm:$0xff]  }
  0xcb   :  { %1908 = vmatprep.subr.bf16.mxu0 %v683_v36 }
  0xd1   :  { %1905 = vmatmul.mubr.msk.bf16.vlgmr.msra.gmra.mrb[0].mxu0 %vm64_vm0, %v2091_v37 }
  0xd2   :  { %1909 = vmatpush3.bf16.msra.mxu0 %v683_v36  ;;  %1912 = vmatprep.mubr.msk.bf16.mxu0 %vm64_vm0, %v2092_v38  ;;  %v2104_v36 = vld [vmem:[%s2430_s3 + $0x50] sm:$0xff]  }
  0xd3   :  { %1910 = vmatprep.subr.bf16.mxu0 %v685_v39 }
  0xd6   :  { %1911 = vmatpush3.bf16.msra.mxu0 %v685_v39  ;;  %v2105_v39 = vld [vmem:[%s2430_s3 + $0x58] sm:$0xff]  }
  0xdd   :  { %1913 = vmatmul.mubr.msk.bf16.vlgmr.msra.gmra.mrb[0].mxu0 %vm64_vm0, %v2093_v40  ;;  %v2106_v40 = vld [vmem:[%s2430_s3 + $0x60] sm:$0xff]  }
 0x1b0   :  { %v1914_v44 = vpop.f32.mrb[0].mxu0 }
 0x1b1   :  { %v773_v46 = vadd.f32 %v1914_v44, %v764_v43  ;;  %v728_v47 = vpop.f32.mrb[1].mxu0  ;;  %v2107_v43 = vld [vmem:[%s2430_s3 + $0x68] sm:$0xff]   ;;  %v2108_v44 = vld [vmem:[%s2430_s3 + $0x70] sm:$0xff]  }
 0x1b2   :  { %v771_v48 = vadd.f32 %v754_v42, %v728_v47  ;;  %v1915_v49 = vpop.f32.mrb[2].mxu0  ;;  %v2109_v47 = vld [vmem:[%s2430_s3 + $0x78] sm:$0xff]  }
 0x1b3   :  { %v777_v50 = vmax.f32 %v773_v46, 0.0  ;;  %v774_v51 = vadd.f32 %v1915_v49, %v769_v45  ;;  %v731_v52 = vpop.f32.mrb[3].mxu0 }
 0x1b4   :  { %v775_v54 = vmax.f32 %v771_v48, 0.0  ;;  %v772_v55 = vadd.f32 %v759_v41, %v731_v52  ;;  %v2110_v48 = vld [vmem:[%s2430_s3 + $0x80] sm:$0xff]  }
 0x1b5   :  { %v778_v56 = vmax.f32 %v774_v51, 0.0  ;;  %v787_v58 = vmul.f32 %v2274_v53, %v777_v50  ;;  %v2111_v50 = vld [vmem:[%s2430_s3 + $0x88] sm:$0xff]  }
 0x1b6   :  { %v776_v57 = vmax.f32 %v772_v55, 0.0  ;;  %v785_v60 = vmul.f32 %v2274_v53, %v775_v54 }
 0x1b7   :  { %v788_v59 = vmul.f32 %v2274_v53, %v778_v56 }
 0x1b8   :  { %v786_v61 = vmul.f32 %v2274_v53, %v776_v57 }
 0x1b9   :  { %v793_v62 = vpack.c.bf16 %v788_v59, %v787_v58 }
 0x1ba   :  { %v792_v63 = vpack.c.bf16 %v786_v61, %v785_v60 }
 0x1bb   :  { %798 = vrot.lane.b32.xlu0 %v793_v62, %s2125_s20 }
 0x1bc   :  { %796 = vrot.lane.b32.xlu1 %v792_v63, %s2125_s20 }
 0x22d   :  { %v799_v0 = vpop.permute.xlu0 %798 }
 0x22e   :  { %804 = vst.msk [vmem:[#allocation2 + $0x8] sm:$0xff] %vm802_vm2, %v799_v0  ;;  %v797_v1 = vpop.permute.xlu1 %796 }
 0x22f   :  { %803 = vst.msk [vmem:[#allocation2] sm:$0xff] %vm802_vm2, %v797_v1 }
 0x235   :  { %v810_v4 = vld [vmem:[#allocation2 + $0x8] sm:$0xff] }
 0x236   :  { %830 = vrot.lane.b32.xlu0 %v810_v4, %s2116_s25  ;;  %v809_v5 = vld [vmem:[#allocation2] sm:$0xff] }
 0x237   :  { %828 = vrot.lane.b32.xlu1 %v809_v5, %s2116_s25 }
 0x23a   :  { %971 = vrot.lane.b32.xlu0 %v810_v4, %s2117_s26 }
 0x23b   :  { %969 = vrot.lane.b32.xlu1 %v809_v5, %s2117_s26 }
 0x23e   :  { %1051 = vrot.lane.b32.xlu0 %v810_v4, %s2118_s29 }
 0x23f   :  { %1049 = vrot.lane.b32.xlu1 %v809_v5, %s2118_s29 }
 0x242   :  { %1131 = vrot.lane.b32.xlu0 %v810_v4, %s2119_s30 }
 0x243   :  { %1129 = vrot.lane.b32.xlu1 %v809_v5, %s2119_s30 }
 0x246   :  { %1211 = vrot.lane.b32.xlu0 %v810_v4, %s2120_s7 }
 0x247   :  { %1209 = vrot.lane.b32.xlu1 %v809_v5, %s2120_s7 }
 0x24a   :  { %1291 = vrot.lane.b32.xlu0 %v810_v4, %s2121_s8 }
 0x24b   :  { %1289 = vrot.lane.b32.xlu1 %v809_v5, %s2121_s8 }
 0x24e   :  { %1371 = vrot.lane.b32.xlu0 %v810_v4, %s2122_s9 }
 0x24f   :  { %1369 = vrot.lane.b32.xlu1 %v809_v5, %s2122_s9 }
 0x252   :  { %1451 = vrot.lane.b32.xlu0 %v810_v4, %s2123_s10 }
 0x253   :  { %1449 = vrot.lane.b32.xlu1 %v809_v5, %s2123_s10 }
 0x256   :  { %1525 = vperm.xlu0 %2062, %v1515_v6  }
 0x257   :  { %1520 = vperm.xlu1 %2063, %v1514_v7  }
 0x25a   :  { %1535 = vperm.xlu0 %2062, %v1517_v8  }
 0x25b   :  { %1530 = vperm.xlu1 %2063, %v1516_v9  }
 0x25e   :  { %2070 = vrot.lane.b32.xlu0 %v2069_v16, %s2119_s30 }
 0x25f   :  { %2065 = vrot.lane.b32.xlu1 %v2064_v17, %s2119_s30 }
 0x2a8   :  { %v831_v19 = vpop.permute.xlu0 %830 }
 0x2a9   :  { %v829_v18 = vpop.permute.xlu1 %828 }
 0x2aa   :  { %1916 = vmatprep.subr.bf16.mxu1 %v829_v18 }
 0x2ab   :  { %1917 = vmatpush3.bf16.msra.mxu1 %v829_v18 }
 0x2ac   :  { %1918 = vmatprep.subr.bf16.mxu1 %v831_v19  ;;  %v972_v25 = vpop.permute.xlu0 %971 }
 0x2ad   :  { %v970_v22 = vpop.permute.xlu1 %969 }
 0x2af   :  { %1919 = vmatpush3.bf16.msra.mxu1 %v831_v19 }
 0x2b0   :  { %1924 = vmatprep.subr.bf16.mxu1 %v809_v5  ;;  %v1052_v29 = vpop.permute.xlu0 %1051 }
 0x2b1   :  { %v1050_v26 = vpop.permute.xlu1 %1049 }
 0x2b2   :  { %1921 = vmatmul.mubr.msk.bf16.vlgmr.msra.gmra.mrb[0].mxu1 %vm64_vm0, %v2095_v20 }
 0x2b3   :  { %1925 = vmatpush3.bf16.msra.mxu1 %v809_v5  ;;  %1928 = vmatprep.mubr.msk.bf16.mxu1 %vm64_vm0, %v2096_v21 }
 0x2b4   :  { %1926 = vmatprep.subr.bf16.mxu1 %v810_v4  ;;  %v1132_v33 = vpop.permute.xlu0 %1131 }
 0x2b5   :  { %v1130_v30 = vpop.permute.xlu1 %1129 }
 0x2b7   :  { %1927 = vmatpush3.bf16.msra.mxu1 %v810_v4 }
 0x2b8   :  { %1932 = vmatprep.subr.bf16.mxu1 %v970_v22  ;;  %v1212_v37 = vpop.permute.xlu0 %1211 }
 0x2b9   :  { %v1210_v34 = vpop.permute.xlu1 %1209 }
 0x2bc   :  { %v1292_v41 = vpop.permute.xlu0 %1291 }
 0x2bd   :  { %v1290_v38 = vpop.permute.xlu1 %1289 }
 0x2be   :  { %1929 = vmatmul.mubr.msk.bf16.vlgmr.msra.gmra.mrb[0].mxu1 %vm64_vm0, %v2097_v23 }
 0x2bf   :  { %1933 = vmatpush3.bf16.msra.mxu1 %v970_v22  ;;  %1936 = vmatprep.mubr.msk.bf16.mxu1 %vm64_vm0, %v2098_v24 }
 0x2c0   :  { %1934 = vmatprep.subr.bf16.mxu1 %v972_v25  ;;  %v1372_v45 = vpop.permute.xlu0 %1371 }
 0x2c1   :  { %v1370_v42 = vpop.permute.xlu1 %1369 }
 0x2c3   :  { %1935 = vmatpush3.bf16.msra.mxu1 %v972_v25 }
 0x2c4   :  { %1940 = vmatprep.subr.bf16.mxu1 %v1050_v26  ;;  %v1452_v49 = vpop.permute.xlu0 %1451 }
 0x2c5   :  { %v1450_v46 = vpop.permute.xlu1 %1449 }
 0x2ca   :  { %1937 = vmatmul.mubr.msk.bf16.vlgmr.msra.gmra.mrb[0].mxu1 %vm64_vm0, %v2099_v27 }
 0x2cb   :  { %1941 = vmatpush3.bf16.msra.mxu1 %v1050_v26  ;;  %1944 = vmatprep.mubr.msk.bf16.mxu1 %vm64_vm0, %v2100_v28 }
 0x2cc   :  { %1942 = vmatprep.subr.bf16.mxu1 %v1052_v29 }
 0x2cf   :  { %1943 = vmatpush3.bf16.msra.mxu1 %v1052_v29 }
 0x2d0   :  { %1948 = vmatprep.subr.bf16.mxu1 %v1130_v30 }
 0x2d5   :  { %v1526_v51 = vpop.permute.xlu0 %1525 }
 0x2d6   :  { %1945 = vmatmul.mubr.msk.bf16.vlgmr.msra.gmra.mrb[0].mxu1 %vm64_vm0, %v2101_v31  ;;  %v1521_v52 = vpop.permute.xlu1 %1520 }
 0x2d7   :  { %1949 = vmatpush3.bf16.msra.mxu1 %v1130_v30  ;;  %1952 = vmatprep.mubr.msk.bf16.mxu1 %vm64_vm0, %v2102_v32 }
 0x2d8   :  { %1950 = vmatprep.subr.bf16.mxu1 %v1132_v33 }
 0x2d9   :  { %v1536_v54 = vpop.permute.xlu0 %1535 }
 0x2da   :  { %v1531_v55 = vpop.permute.xlu1 %1530 }
 0x2db   :  { %1951 = vmatpush3.bf16.msra.mxu1 %v1132_v33 }
 0x2dc   :  { %1956 = vmatprep.subr.bf16.mxu1 %v1210_v34 }
 0x2dd   :  { %v2071_v56 = vpop.permute.xlu0 %2070 }
 0x2de   :  { %v2066_v57 = vpop.permute.xlu1 %2065 }
 0x2e2   :  { %1953 = vmatmul.mubr.msk.bf16.vlgmr.msra.gmra.mrb[0].mxu1 %vm64_vm0, %v2103_v35 }
 0x2e3   :  { %1957 = vmatpush3.bf16.msra.mxu1 %v1210_v34  ;;  %1960 = vmatprep.mubr.msk.bf16.mxu1 %vm64_vm0, %v2104_v36 }
 0x2e4   :  { %1958 = vmatprep.subr.bf16.mxu1 %v1212_v37 }
 0x2e7   :  { %1959 = vmatpush3.bf16.msra.mxu1 %v1212_v37 }
 0x2e8   :  { %1964 = vmatprep.subr.bf16.mxu1 %v1290_v38 }
 0x2ee   :  { %1961 = vmatmul.mubr.msk.bf16.vlgmr.msra.gmra.mrb[0].mxu1 %vm64_vm0, %v2105_v39 }
 0x2ef   :  { %1965 = vmatpush3.bf16.msra.mxu1 %v1290_v38  ;;  %1968 = vmatprep.mubr.msk.bf16.mxu1 %vm64_vm0, %v2106_v40 }
 0x2f0   :  { %1966 = vmatprep.subr.bf16.mxu1 %v1292_v41 }
 0x2f3   :  { %1967 = vmatpush3.bf16.msra.mxu1 %v1292_v41 }
 0x2f4   :  { %1972 = vmatprep.subr.bf16.mxu1 %v1370_v42 }
 0x2fa   :  { %1969 = vmatmul.mubr.msk.bf16.vlgmr.msra.gmra.mrb[0].mxu1 %vm64_vm0, %v2107_v43 }
 0x2fb   :  { %1973 = vmatpush3.bf16.msra.mxu1 %v1370_v42  ;;  %1976 = vmatprep.mubr.msk.bf16.mxu1 %vm64_vm0, %v2108_v44 }
 0x2fc   :  { %1974 = vmatprep.subr.bf16.mxu1 %v1372_v45 }
 0x2ff   :  { %1975 = vmatpush3.bf16.msra.mxu1 %v1372_v45 }
 0x300   :  { %1980 = vmatprep.subr.bf16.mxu1 %v1450_v46 }
 0x306   :  { %1977 = vmatmul.mubr.msk.bf16.vlgmr.msra.gmra.mrb[0].mxu1 %vm64_vm0, %v2109_v47 }
 0x307   :  { %1981 = vmatpush3.bf16.msra.mxu1 %v1450_v46  ;;  %1984 = vmatprep.mubr.msk.bf16.mxu1 %vm64_vm0, %v2110_v48 }
 0x308   :  { %1982 = vmatprep.subr.bf16.mxu1 %v1452_v49 }
 0x30b   :  { %1983 = vmatpush3.bf16.msra.mxu1 %v1452_v49 }
 0x312   :  { %1985 = vmatmul.mubr.msk.bf16.vlgmr.msra.gmra.mrb[0].mxu1 %vm64_vm0, %v2111_v50 }
 0x3e5   :  { %v1986_v58 = vpop.f32.mrb[0].mxu1 }
 0x3e6   :  { %v1540_v59 = vadd.f32 %v1986_v58, %v1531_v55  ;;  %v1495_v60 = vpop.f32.mrb[1].mxu1 }
 0x3e7   :  { %v1538_v61 = vadd.f32 %v1521_v52, %v1495_v60  ;;  %v1987_v62 = vpop.f32.mrb[2].mxu1 }
 0x3e8   :  { %v2112_v63 = vadd.low.f32.bf16 %v1540_v59, %v2071_v56  ;;  %v1541_v0 = vadd.f32 %v1987_v62, %v1536_v54  ;;  %v1498_v1 = vpop.f32.mrb[3].mxu1 }
 0x3e9   :  { %v2113_v2 = vadd.low.f32.bf16 %v1538_v61, %v2066_v57  ;;  %v1539_v4 = vadd.f32 %v1526_v51, %v1498_v1 }
 0x3ea   :  { %v2114_v5 = vadd.high.f32.bf16 %v1541_v0, %v2071_v56  ;;  %v1572_v6 = vmax.f32 %v2112_v63, 0.0 }
 0x3eb   :  { %v1570_v7 = vmax.f32 %v2113_v2, 0.0  ;;  %v2115_v3 = vadd.high.f32.bf16 %v1539_v4, %v2066_v57 }
 0x3ec   :  { %v1573_v8 = vmax.f32 %v2114_v5, 0.0  ;;  %v1576_v13 = vmul.f32 %v2274_v53, %v1572_v6 }
 0x3ed   :  { %v1571_v9 = vmax.f32 %v2115_v3, 0.0  ;;  %v1574_v10 = vmul.f32 %v2274_v53, %v1570_v7 }
 0x3ee   :  { %v1577_v15 = vmul.f32 %v2274_v53, %v1573_v8  ;;  %v1761_v16 = vpack.c.bf16 %v1576_v13, %v1576_v13 }
 0x3ef   :  { %v1759_v11 = vpack.c.bf16 %v1574_v10, %v1574_v10  ;;  %v1575_v12 = vmul.f32 %v2274_v53, %v1571_v9 }
 0x3f0   :  { %v1762_v17 = vpack.c.bf16 %v1577_v15, %v1577_v15 }
 0x3f1   :  { %1595 = vrot.lane.b32.xlu1 %v1759_v11, %s2125_s20  ;;  %v1760_v14 = vpack.c.bf16 %v1575_v12, %v1575_v12 }
 0x3f3   :  { %1597 = vrot.lane.b32.xlu0 %v1760_v14, %s2125_s20 }
 0x3f5   :  { %1599 = vrot.lane.b32.xlu1 %v1761_v16, %s2125_s20 }
 0x3f7   :  { %1601 = vrot.lane.b32.xlu0 %v1762_v17, %s2125_s20 }
 0x463   :  { %v1596_v18 = vpop.permute.xlu1 %1595 }
 0x464   :  { %1608 = vst.msk [vmem:[%s2432_s6] sm:$0xf] %vm1607_vm4, %v1596_v18 }
 0x465   :  { %v1598_v19 = vpop.permute.xlu0 %1597 }
 0x466   :  { %1609 = vst.msk [vmem:[%s2432_s6 + $0x4] sm:$0xf] %vm1607_vm4, %v1598_v19 }
 0x467   :  { %v1600_v53 = vpop.permute.xlu1 %1599 }
 0x468   :  { %1610 = vst.msk [vmem:[%s2432_s6 + $0x8] sm:$0xf] %vm1607_vm4, %v1600_v53 }
 0x469   :  { %v1602_v20 = vpop.permute.xlu0 %1601 }
 0x46a   :  { %1611 = vst.msk [vmem:[%s2432_s6 + $0xc] sm:$0xf] %vm1607_vm4, %v1602_v20 }

// kernel: resnet_forward.51
= control target key start
LH: loop header
LB: loop body
LE: loop exit
PB: predicated region body
PF: predicated region fallthrough
CT: control target
= control target key end

     0   :  { %s1631_s16 = smov 127   ;;  %vm72_vm0 = vcmask 261120   ;;  %s1632_s21 = smov 121   ;;  %v1639_v4 = vmov 0   ;;  %vm1185_vm1 = vcmask 584704   ;;  %s1902_s0 = inlined_call_operand.vmem [shape: bf16[32,86], index: 0, kind: input, shape index: {}]   ;;  %s1903_s1 = inlined_call_operand.vmem [shape: bf16[9,64,32], index: 1, kind: input, shape index: {}]   ;;  %s1904_s2 = inlined_call_operand.vmem [shape: f32[64,1], index: 2, kind: input, shape index: {}]   ;;  %s1905_s3 = inlined_call_operand.vmem [shape: bf16[64,72], index: 3, kind: output, shape index: {}]  }
   0x1   :  { %v1663_v0 = vld [vmem:[%s1902_s0] sm:$0xff]   ;;  %v1668_v1 = vld [vmem:[%s1902_s0 + $0x8] sm:$0xff]   ;;  %s1633_s0 = smov 120   ;;  %s1634_s22 = smov 116   ;;  %1592 = vset.pattern.permute.xlu1 %v1639_v4  ;;  %1591 = vset.pattern.permute.xlu0 %v1639_v4  ;;  %v1091_v7 = vld [vmem:[%s1904_s2 + $0x10] sm:$0xff] }
   0x2   :  { %66 = vrot.lane.b32.xlu0 %v1663_v0, %s1631_s16  ;;  %68 = vrot.lane.b32.xlu1 %v1668_v1, %s1631_s16  ;;  %v1595_v2 = vld [vmem:[%s1903_s1 + $0x20] sm:$0xff]   ;;  %s1635_s23 = smov 126   ;;  %s1636_s24 = smov 115   ;;  %v1090_v5 = vld [vmem:[%s1904_s2 + $0x8] sm:$0xff] }
   0x3   :  { %1410 = vmatprep.mubr.msk.bf16.mxu1 %vm72_vm0, %v1595_v2  ;;  %v1597_v3 = vld [vmem:[%s1903_s1 + $0x80] sm:$0xff]   ;;  %s1637_s25 = smov 122   ;;  %s1638_s26 = smov 114   ;;  %v1092_v8 = vld [vmem:[%s1904_s2 + $0x18] sm:$0xff]  ;;  %v1094_v10 = vld [vmem:[%s1904_s2 + $0x28] sm:$0xff] }
   0x4   :  { %1458 = vmatprep.mubr.msk.bf16.mxu0 %vm72_vm0, %v1597_v3  ;;  %v1089_v6 = vld [vmem:[%s1904_s2] sm:$0xff]  ;;  %v1095_v11 = vld [vmem:[%s1904_s2 + $0x30] sm:$0xff]  ;;  %v1096_v12 = vld [vmem:[%s1904_s2 + $0x38] sm:$0xff] }
   0x5   :  { %v1093_v9 = vld [vmem:[%s1904_s2 + $0x20] sm:$0xff]  ;;  %v1596_v17 = vld [vmem:[%s1903_s1 + $0x28] sm:$0xff]   ;;  %v1599_v18 = vld [vmem:[%s1903_s1 + $0x30] sm:$0xff]  }
   0x6   :  { %518 = vrot.lane.b32.xlu0 %v1663_v0, %s1632_s21  ;;  %520 = vrot.lane.b32.xlu1 %v1668_v1, %s1632_s21  ;;  %v1598_v20 = vld [vmem:[%s1903_s1 + $0x88] sm:$0xff]   ;;  %v1602_v22 = vld [vmem:[%s1903_s1 + $0xa0] sm:$0xff]  }
   0x7   :  { %v1600_v23 = vld [vmem:[%s1903_s1 + $0x38] sm:$0xff]   ;;  %v1601_v25 = vld [vmem:[%s1903_s1] sm:$0xff]   ;;  %v1603_v27 = vld [vmem:[%s1903_s1 + $0x8] sm:$0xff]  }
   0x8   :  { %v1604_v28 = vld [vmem:[%s1903_s1 + $0xa8] sm:$0xff]   ;;  %v1605_v30 = vld [vmem:[%s1903_s1 + $0x10] sm:$0xff]   ;;  %v1607_v35 = vld [vmem:[%s1903_s1 + $0x18] sm:$0xff]  }
   0x9   :  { %v1606_v31 = vld [vmem:[%s1903_s1 + $0xb0] sm:$0xff]   ;;  %v1608_v36 = vld [vmem:[%s1903_s1 + $0xb8] sm:$0xff]   ;;  %v1609_v37 = vld [vmem:[%s1903_s1 + $0x40] sm:$0xff]  }
   0xa   :  { %638 = vrot.lane.b32.xlu0 %v1663_v0, %s1633_s0  ;;  %640 = vrot.lane.b32.xlu1 %v1668_v1, %s1633_s0  ;;  %v1610_v38 = vld [vmem:[%s1903_s1 + $0xc0] sm:$0xff]   ;;  %v1611_v39 = vld [vmem:[%s1903_s1 + $0x48] sm:$0xff]  }
   0xb   :  { %v1612_v40 = vld [vmem:[%s1903_s1 + $0xc8] sm:$0xff]   ;;  %v1613_v41 = vld [vmem:[%s1903_s1 + $0x50] sm:$0xff]   ;;  %v1615_v46 = vld [vmem:[%s1903_s1 + $0x58] sm:$0xff]  }
   0xc   :  { %v1614_v44 = vld [vmem:[%s1903_s1 + $0xd0] sm:$0xff]   ;;  %v1616_v47 = vld [vmem:[%s1903_s1 + $0xd8] sm:$0xff]   ;;  %v1617_v48 = vld [vmem:[%s1903_s1 + $0x60] sm:$0xff]  }
   0xd   :  { %v1618_v49 = vld [vmem:[%s1903_s1 + $0xe0] sm:$0xff]   ;;  %v1619_v50 = vld [vmem:[%s1903_s1 + $0x68] sm:$0xff]   ;;  %v1621_v52 = vld [vmem:[%s1903_s1 + $0x70] sm:$0xff]  }
   0xe   :  { %758 = vrot.lane.b32.xlu0 %v1663_v0, %s1634_s22  ;;  %278 = vrot.lane.b32.xlu1 %v1663_v0, %s1635_s23  ;;  %v1620_v51 = vld [vmem:[%s1903_s1 + $0xe8] sm:$0xff]   ;;  %v1622_v53 = vld [vmem:[%s1903_s1 + $0xf0] sm:$0xff]  }
   0xf   :  { %v1623_v55 = vld [vmem:[%s1903_s1 + $0x78] sm:$0xff]   ;;  %v1625_v57 = vld [vmem:[%s1903_s1 + $0x100] sm:$0xff]   ;;  %v1627_v58 = vld [vmem:[%s1903_s1 + $0x90] sm:$0xff]  }
  0x10   :  { %v1624_v56 = vld [vmem:[%s1903_s1 + $0xf8] sm:$0xff]   ;;  %v1626_v59 = vld [vmem:[%s1903_s1 + $0x108] sm:$0xff]   ;;  %v1629_v60 = vld [vmem:[%s1903_s1 + $0x110] sm:$0xff]  }
  0x11   :  { %v1628_v61 = vld [vmem:[%s1903_s1 + $0x98] sm:$0xff]  }
  0x12   :  { %760 = vrot.lane.b32.xlu0 %v1668_v1, %s1634_s22  ;;  %280 = vrot.lane.b32.xlu1 %v1668_v1, %s1635_s23  ;;  %v1630_v62 = vld [vmem:[%s1903_s1 + $0x118] sm:$0xff]  }
  0x16   :  { %878 = vrot.lane.b32.xlu0 %v1663_v0, %s1636_s24  ;;  %398 = vrot.lane.b32.xlu1 %v1663_v0, %s1637_s25 }
  0x1a   :  { %880 = vrot.lane.b32.xlu0 %v1668_v1, %s1636_s24  ;;  %400 = vrot.lane.b32.xlu1 %v1668_v1, %s1637_s25 }
  0x1e   :  { %998 = vrot.lane.b32.xlu0 %v1663_v0, %s1638_s26  ;;  %1000 = vrot.lane.b32.xlu1 %v1668_v1, %s1638_s26 }
  0x22   :  { %1104 = vperm.xlu1 %1592, %v1090_v5   ;;  %1099 = vperm.xlu0 %1591, %v1089_v6  }
  0x26   :  { %1109 = vperm.xlu1 %1592, %v1091_v7   ;;  %1114 = vperm.xlu0 %1591, %v1092_v8  }
  0x2a   :  { %1119 = vperm.xlu1 %1592, %v1093_v9   ;;  %1124 = vperm.xlu0 %1591, %v1094_v10  }
  0x2e   :  { %1129 = vperm.xlu1 %1592, %v1095_v11   ;;  %1134 = vperm.xlu0 %1591, %v1096_v12  }
  0x74   :  { %v67_v13 = vpop.permute.xlu0 %66  ;;  %v69_v14 = vpop.permute.xlu1 %68 }
  0x75   :  { %1406 = vmatprep.subr.bf16.mxu1 %v67_v13 }
  0x76   :  { %1407 = vmatpush3.bf16.msra.mxu1 %v67_v13 }
  0x77   :  { %1408 = vmatprep.subr.bf16.mxu1 %v69_v14 }
  0x78   :  { %v1718_v15 = vpop.permute.xlu0 %518  ;;  %v1721_v16 = vpop.permute.xlu1 %520 }
  0x79   :  { %1454 = vmatprep.subr.bf16.mxu0 %v1718_v15 }
  0x7a   :  { %1409 = vmatpush3.bf16.msra.mxu1 %v69_v14  ;;  %1455 = vmatpush3.bf16.msra.mxu0 %v1718_v15 }
  0x7b   :  { %1456 = vmatprep.subr.bf16.mxu0 %v1721_v16  ;;  %1418 = vmatprep.subr.bf16.mxu1 %v1663_v0 }
  0x7c   :  { %v639_v19 = vpop.permute.xlu0 %638  ;;  %v641_v21 = vpop.permute.xlu1 %640 }
  0x7d   :  { %1411 = vmatmul.mubr.msk.bf16.vlgmr.msra.gmra.mrb[0].mxu1 %vm72_vm0, %v1596_v17 }
  0x7e   :  { %1457 = vmatpush3.bf16.msra.mxu0 %v1721_v16  ;;  %1419 = vmatpush3.bf16.msra.mxu1 %v1663_v0 }
  0x7f   :  { %1466 = vmatprep.subr.bf16.mxu0 %v639_v19  ;;  %1414 = vmatprep.mubr.msk.bf16.mxu1 %vm72_vm0, %v1599_v18 }
  0x80   :  { %1420 = vmatprep.subr.bf16.mxu1 %v1668_v1  ;;  %v279_v24 = vpop.permute.xlu1 %278  ;;  %v759_v26 = vpop.permute.xlu0 %758 }
  0x81   :  { %1459 = vmatmul.mubr.msk.bf16.vlgmr.msra.gmra.mrb[0].mxu0 %vm72_vm0, %v1598_v20 }
  0x82   :  { %1467 = vmatpush3.bf16.msra.mxu0 %v639_v19  ;;  %1421 = vmatpush3.bf16.msra.mxu1 %v1668_v1 }
  0x83   :  { %1468 = vmatprep.subr.bf16.mxu0 %v641_v21  ;;  %1470 = vmatprep.mubr.msk.bf16.mxu0 %vm72_vm0, %v1602_v22 }
  0x84   :  { %1430 = vmatprep.subr.bf16.mxu1 %v279_v24  ;;  %v281_v29 = vpop.permute.xlu1 %280  ;;  %v761_v32 = vpop.permute.xlu0 %760 }
  0x85   :  { %1415 = vmatmul.mubr.msk.bf16.gmra.mrb[4].mxu1 %vm72_vm0, %v1600_v23 }
  0x86   :  { %1469 = vmatpush3.bf16.msra.mxu0 %v641_v21  ;;  %1422 = vmatprep.mubr.msk.bf16.mxu1 %vm72_vm0, %v1601_v25 }
  0x87   :  { %1478 = vmatprep.subr.bf16.mxu0 %v759_v26 }
  0x88   :  { %v399_v33 = vpop.permute.xlu1 %398  ;;  %v879_v34 = vpop.permute.xlu0 %878 }
  0x8c   :  { %v401_v42 = vpop.permute.xlu1 %400  ;;  %v881_v43 = vpop.permute.xlu0 %880 }
  0x8d   :  { %1423 = vmatmul.mubr.msk.bf16.vlgmr.msra.gmra.mrb[0].mxu1 %vm72_vm0, %v1603_v27  ;;  %1471 = vmatmul.mubr.msk.bf16.vlgmr.msra.gmra.mrb[0].mxu0 %vm72_vm0, %v1604_v28 }
  0x8e   :  { %1479 = vmatpush3.bf16.msra.mxu0 %v759_v26  ;;  %1431 = vmatpush3.bf16.msra.mxu1 %v279_v24 }
  0x8f   :  { %1426 = vmatprep.mubr.msk.bf16.mxu1 %vm72_vm0, %v1605_v30  ;;  %1474 = vmatprep.mubr.msk.bf16.mxu0 %vm72_vm0, %v1606_v31 }
  0x90   :  { %1480 = vmatprep.subr.bf16.mxu0 %v761_v32  ;;  %1432 = vmatprep.subr.bf16.mxu1 %v281_v29  ;;  %v999_v45 = vpop.permute.xlu0 %998  ;;  %v1001_v54 = vpop.permute.xlu1 %1000 }
  0x92   :  { %1481 = vmatpush3.bf16.msra.mxu0 %v761_v32  ;;  %1433 = vmatpush3.bf16.msra.mxu1 %v281_v29 }
  0x93   :  { %1442 = vmatprep.subr.bf16.mxu1 %v399_v33  ;;  %1490 = vmatprep.subr.bf16.mxu0 %v879_v34 }
  0x95   :  { %1427 = vmatmul.mubr.msk.bf16.gmra.mrb[4].mxu1 %vm72_vm0, %v1607_v35  ;;  %1475 = vmatmul.mubr.msk.bf16.gmra.mrb[4].mxu0 %vm72_vm0, %v1608_v36 }
  0x96   :  { %1434 = vmatprep.mubr.msk.bf16.mxu1 %vm72_vm0, %v1609_v37  ;;  %1482 = vmatprep.mubr.msk.bf16.mxu0 %vm72_vm0, %v1610_v38 }
  0x9d   :  { %1435 = vmatmul.mubr.msk.bf16.vlgmr.msra.gmra.mrb[0].mxu1 %vm72_vm0, %v1611_v39  ;;  %1483 = vmatmul.mubr.msk.bf16.vlgmr.msra.gmra.mrb[0].mxu0 %vm72_vm0, %v1612_v40 }
  0x9e   :  { %1443 = vmatpush3.bf16.msra.mxu1 %v399_v33  ;;  %1491 = vmatpush3.bf16.msra.mxu0 %v879_v34 }
  0x9f   :  { %1444 = vmatprep.subr.bf16.mxu1 %v401_v42  ;;  %1438 = vmatprep.mubr.msk.bf16.mxu1 %vm72_vm0, %v1613_v41 }
  0xa0   :  { %1486 = vmatprep.mubr.msk.bf16.mxu0 %vm72_vm0, %v1614_v44  ;;  %1492 = vmatprep.subr.bf16.mxu0 %v881_v43 }
  0xa1   :  { %v1105_v3 = vpop.permute.xlu1 %1104  ;;  %v1100_v4 = vpop.permute.xlu0 %1099 }
  0xa2   :  { %1445 = vmatpush3.bf16.msra.mxu1 %v401_v42  ;;  %1493 = vmatpush3.bf16.msra.mxu0 %v881_v43 }
  0xa3   :  { %1514 = vmatprep.subr.bf16.mxu1 %v1718_v15  ;;  %1502 = vmatprep.subr.bf16.mxu0 %v999_v45 }
  0xa5   :  { %1439 = vmatmul.mubr.msk.bf16.gmra.mrb[4].mxu1 %vm72_vm0, %v1615_v46  ;;  %1487 = vmatmul.mubr.msk.bf16.gmra.mrb[4].mxu0 %vm72_vm0, %v1616_v47  ;;  %v1110_v5 = vpop.permute.xlu1 %1109  ;;  %v1115_v6 = vpop.permute.xlu0 %1114 }
  0xa6   :  { %1446 = vmatprep.mubr.msk.bf16.mxu1 %vm72_vm0, %v1617_v48  ;;  %1494 = vmatprep.mubr.msk.bf16.mxu0 %vm72_vm0, %v1618_v49 }
  0xa9   :  { %v1125_v22 = vpop.permute.xlu0 %1124 }
  0xad   :  { %1447 = vmatmul.mubr.msk.bf16.vlgmr.msra.gmra.mrb[0].mxu1 %vm72_vm0, %v1619_v50  ;;  %1495 = vmatmul.mubr.msk.bf16.vlgmr.msra.gmra.mrb[0].mxu0 %vm72_vm0, %v1620_v51  ;;  %v1135_v42 = vpop.permute.xlu0 %1134 }
  0xae   :  { %1516 = vmatpush3.bf16.msra.mxu1 %v1718_v15  ;;  %1503 = vmatpush3.bf16.msra.mxu0 %v999_v45  ;;  %v1120_v15 = vpop.permute.xlu1 %1119 }
  0xaf   :  { %1515 = vmatprep.subr.bf16.mxu1 %v1721_v16  ;;  %1450 = vmatprep.mubr.msk.bf16.mxu1 %vm72_vm0, %v1621_v52 }
  0xb0   :  { %1498 = vmatprep.mubr.msk.bf16.mxu0 %vm72_vm0, %v1622_v53  ;;  %1504 = vmatprep.subr.bf16.mxu0 %v1001_v54 }
  0xb2   :  { %1517 = vmatpush3.bf16.msra.mxu1 %v1721_v16  ;;  %1505 = vmatpush3.bf16.msra.mxu0 %v1001_v54  ;;  %v1130_v35 = vpop.permute.xlu1 %1129 }
  0xb5   :  { %1451 = vmatmul.mubr.msk.bf16.gmra.mrb[4].mxu1 %vm72_vm0, %v1623_v55  ;;  %1499 = vmatmul.mubr.msk.bf16.gmra.mrb[4].mxu0 %vm72_vm0, %v1624_v56 }
  0xb6   :  { %1506 = vmatprep.mubr.msk.bf16.mxu0 %vm72_vm0, %v1625_v57  ;;  %1462 = vmatprep.mubr.msk.bf16.mxu1 %vm72_vm0, %v1627_v58 }
  0xbd   :  { %1507 = vmatmul.mubr.msk.bf16.vlgmr.msra.gmra.mrb[0].mxu0 %vm72_vm0, %v1626_v59 }
  0xbe   :  { %1510 = vmatprep.mubr.msk.bf16.mxu0 %vm72_vm0, %v1629_v60 }
  0xc1   :  { %1463 = vmatmul.mubr.msk.bf16.vlgmr.msra.gmra.mrb[4].mxu1 %vm72_vm0, %v1628_v61 }
  0xc5   :  { %1511 = vmatmul.mubr.msk.bf16.gmra.mrb[4].mxu0 %vm72_vm0, %v1630_v62 }
 0x180   :  { %v1448_v63 = vpop.f32.mrb[0].mxu1 }
 0x181   :  { %v450_v0 = vpop.f32.mrb[1].mxu1 }
 0x182   :  { %v1449_v1 = vpop.f32.mrb[2].mxu1 }
 0x183   :  { %v453_v2 = vpop.f32.mrb[3].mxu1 }
 0x190   :  { %v1508_v7 = vpop.f32.mrb[0].mxu0 }
 0x191   :  { %v1518_v8 = vadd.f32 %v1508_v7, %v1448_v63  ;;  %v1050_v9 = vpop.f32.mrb[1].mxu0 }
 0x192   :  { %v1519_v10 = vadd.f32 %v1050_v9, %v450_v0  ;;  %v1509_v11 = vpop.f32.mrb[2].mxu0 }
 0x193   :  { %v1139_v12 = vadd.f32 %v1518_v8, %v1110_v5  ;;  %v1520_v13 = vadd.f32 %v1509_v11, %v1449_v1  ;;  %v1053_v14 = vpop.f32.mrb[3].mxu0 }
 0x194   :  { %v1137_v16 = vadd.f32 %v1519_v10, %v1100_v4  ;;  %v1521_v17 = vadd.f32 %v1053_v14, %v453_v2  ;;  %v1464_v18 = vpop.f32.mrb[4].mxu1 }
 0x195   :  { %v1147_v19 = vmax.f32 %v1139_v12, 0.0  ;;  %v1140_v20 = vadd.f32 %v1520_v13, %v1115_v6  ;;  %v586_v21 = vpop.f32.mrb[5].mxu1 }
 0x196   :  { %v1145_v23 = vmax.f32 %v1137_v16, 0.0  ;;  %v1138_v24 = vadd.f32 %v1521_v17, %v1105_v3  ;;  %v1465_v25 = vpop.f32.mrb[6].mxu1 }
 0x197   :  { %v1346_v26 = vpack.c.bf16 %v1147_v19, %v1147_v19  ;;  %v1148_v27 = vmax.f32 %v1140_v20, 0.0  ;;  %v589_v28 = vpop.f32.mrb[7].mxu1 }
 0x198   :  { %v1344_v29 = vpack.c.bf16 %v1145_v23, %v1145_v23  ;;  %v1146_v30 = vmax.f32 %v1138_v24, 0.0  ;;  %v1512_v31 = vpop.f32.mrb[4].mxu0 }
 0x199   :  { %1188 = vst.msk [vmem:[%s1905_s3 + $0x8] sm:$0xf] %vm1185_vm1, %v1346_v26  ;;  %v1347_v32 = vpack.c.bf16 %v1148_v27, %v1148_v27  ;;  %v1522_v33 = vadd.f32 %v1512_v31, %v1464_v18  ;;  %v1066_v34 = vpop.f32.mrb[5].mxu0 }
 0x19a   :  { %1186 = vst.msk [vmem:[%s1905_s3] sm:$0xf] %vm1185_vm1, %v1344_v29  ;;  %v1345_v36 = vpack.c.bf16 %v1146_v30, %v1146_v30  ;;  %v1523_v37 = vadd.f32 %v1066_v34, %v586_v21  ;;  %v1513_v38 = vpop.f32.mrb[6].mxu0 }
 0x19b   :  { %1189 = vst.msk [vmem:[%s1905_s3 + $0xc] sm:$0xf] %vm1185_vm1, %v1347_v32  ;;  %v1143_v39 = vadd.f32 %v1522_v33, %v1130_v35  ;;  %v1524_v40 = vadd.f32 %v1513_v38, %v1465_v25  ;;  %v1069_v41 = vpop.f32.mrb[7].mxu0 }
 0x19c   :  { %1187 = vst.msk [vmem:[%s1905_s3 + $0x4] sm:$0xf] %vm1185_vm1, %v1345_v36  ;;  %v1141_v43 = vadd.f32 %v1523_v37, %v1120_v15  ;;  %v1525_v44 = vadd.f32 %v1069_v41, %v589_v28 }
 0x19d   :  { %v1151_v45 = vmax.f32 %v1143_v39, 0.0  ;;  %v1144_v46 = vadd.f32 %v1524_v40, %v1135_v42 }
 0x19e   :  { %v1149_v47 = vmax.f32 %v1141_v43, 0.0  ;;  %v1142_v48 = vadd.f32 %v1525_v44, %v1125_v22 }
 0x19f   :  { %v1350_v49 = vpack.c.bf16 %v1151_v45, %v1151_v45  ;;  %v1152_v50 = vmax.f32 %v1144_v46, 0.0 }
 0x1a0   :  { %v1348_v51 = vpack.c.bf16 %v1149_v47, %v1149_v47  ;;  %v1150_v52 = vmax.f32 %v1142_v48, 0.0 }
 0x1a1   :  { %1192 = vst.msk [vmem:[%s1905_s3 + $0x18] sm:$0xf] %vm1185_vm1, %v1350_v49  ;;  %v1351_v53 = vpack.c.bf16 %v1152_v50, %v1152_v50 }
 0x1a2   :  { %1190 = vst.msk [vmem:[%s1905_s3 + $0x10] sm:$0xf] %vm1185_vm1, %v1348_v51  ;;  %v1349_v54 = vpack.c.bf16 %v1150_v52, %v1150_v52 }
 0x1a3   :  { %1193 = vst.msk [vmem:[%s1905_s3 + $0x1c] sm:$0xf] %vm1185_vm1, %v1351_v53 }
 0x1a4   :  { %1191 = vst.msk [vmem:[%s1905_s3 + $0x14] sm:$0xf] %vm1185_vm1, %v1349_v54 }

// kernel: resnet_forward.52
= control target key start
LH: loop header
LB: loop body
LE: loop exit
PB: predicated region body
PF: predicated region fallthrough
CT: control target
= control target key end

     0   :  { %s1803_s19 = smov 127   ;;  %vm95_vm0 = vcmask 523264   ;;  %s1804_s22 = smov 123   ;;  %v1811_v6 = vmov 0   ;;  %vm1276_vm1 = vcmask 257024   ;;  %s2115_s0 = inlined_call_operand.vmem [shape: bf16[64,42], index: 0, kind: input, shape index: {}]   ;;  %s2116_s1 = inlined_call_operand.vmem [shape: bf16[9,64,64], index: 1, kind: input, shape index: {}]   ;;  %s2117_s2 = inlined_call_operand.vmem [shape: f32[64,1], index: 2, kind: input, shape index: {}]   ;;  %s2118_s3 = inlined_call_operand.vmem [shape: bf16[64,32], index: 3, kind: input, shape index: {}]   ;;  %s2119_s4 = inlined_call_operand.vmem [shape: bf16[64,32], index: 4, kind: output, shape index: {}]  }
   0x1   :  { %v1840_v0 = vld [vmem:[%s2115_s0] sm:$0xff]   ;;  %v1845_v1 = vld [vmem:[%s2115_s0 + $0x8] sm:$0xff]   ;;  %v1856_v3 = vld [vmem:[%s2115_s0 + $0x10] sm:$0xff]   ;;  %s1805_s29 = smov 122   ;;  %s1806_s30 = smov 126   ;;  %1762 = vset.pattern.permute.xlu1 %v1811_v6  ;;  %1761 = vset.pattern.permute.xlu0 %v1811_v6 }
   0x2   :  { %83 = vrot.lane.b32.xlu0 %v1840_v0, %s1803_s19  ;;  %85 = vrot.lane.b32.xlu1 %v1845_v1, %s1803_s19  ;;  %v1767_v2 = vld [vmem:[%s2116_s1 + $0x20] sm:$0xff]   ;;  %v1868_v5 = vld [vmem:[%s2115_s0 + $0x18] sm:$0xff]   ;;  %s1807_s0 = smov 120   ;;  %s1808_s5 = smov 124  }
   0x3   :  { %1544 = vmatprep.mubr.msk.bf16.mxu1 %vm95_vm0, %v1767_v2  ;;  %v1769_v4 = vld [vmem:[%s2116_s1 + $0x80] sm:$0xff]   ;;  %s1809_s6 = smov 119   ;;  %s1810_s7 = smov 118   ;;  %v1157_v7 = vld [vmem:[%s2117_s2 + $0x8] sm:$0xff]  ;;  %v1158_v9 = vld [vmem:[%s2117_s2 + $0x10] sm:$0xff] }
   0x4   :  { %1608 = vmatprep.mubr.msk.bf16.mxu0 %vm95_vm0, %v1769_v4  ;;  %v1156_v8 = vld [vmem:[%s2117_s2] sm:$0xff]  ;;  %v1159_v10 = vld [vmem:[%s2117_s2 + $0x18] sm:$0xff]  ;;  %v1161_v12 = vld [vmem:[%s2117_s2 + $0x28] sm:$0xff] }
   0x5   :  { %v1160_v11 = vld [vmem:[%s2117_s2 + $0x20] sm:$0xff]  ;;  %v1162_v13 = vld [vmem:[%s2117_s2 + $0x30] sm:$0xff]  ;;  %v1163_v14 = vld [vmem:[%s2117_s2 + $0x38] sm:$0xff] }
   0x6   :  { %555 = vrot.lane.b32.xlu0 %v1840_v0, %s1804_s22  ;;  %557 = vrot.lane.b32.xlu1 %v1845_v1, %s1804_s22  ;;  %v1768_v23 = vld [vmem:[%s2116_s1 + $0x28] sm:$0xff]   ;;  %v1771_v25 = vld [vmem:[%s2116_s1 + $0x30] sm:$0xff]  }
   0x7   :  { %v1770_v26 = vld [vmem:[%s2116_s1 + $0x88] sm:$0xff]   ;;  %v1773_v28 = vld [vmem:[%s2116_s1 + $0x90] sm:$0xff]   ;;  %v1772_v30 = vld [vmem:[%s2116_s1 + $0x38] sm:$0xff]  }
   0x8   :  { %v1775_v32 = vld [vmem:[%s2116_s1] sm:$0xff]   ;;  %v1774_v34 = vld [vmem:[%s2116_s1 + $0x98] sm:$0xff]   ;;  %v1776_v38 = vld [vmem:[%s2116_s1 + $0x8] sm:$0xff]  }
   0x9   :  { %v1777_v36 = vld [vmem:[%s2116_s1 + $0xa0] sm:$0xff]   ;;  %v1779_v40 = vld [vmem:[%s2116_s1 + $0x10] sm:$0xff]   ;;  %v1778_v42 = vld [vmem:[%s2116_s1 + $0xa8] sm:$0xff]  }
   0xa   :  { %87 = vrot.lane.b32.xlu0 %v1856_v3, %s1803_s19  ;;  %559 = vrot.lane.b32.xlu1 %v1856_v3, %s1804_s22  ;;  %v1781_v44 = vld [vmem:[%s2116_s1 + $0xb0] sm:$0xff]   ;;  %v1780_v46 = vld [vmem:[%s2116_s1 + $0x18] sm:$0xff]  }
   0xb   :  { %v1783_v48 = vld [vmem:[%s2116_s1 + $0x40] sm:$0xff]   ;;  %v1782_v50 = vld [vmem:[%s2116_s1 + $0xb8] sm:$0xff]   ;;  %v1784_v54 = vld [vmem:[%s2116_s1 + $0x48] sm:$0xff]  }
   0xc   :  { %v1785_v52 = vld [vmem:[%s2116_s1 + $0xc0] sm:$0xff]   ;;  %v1787_v56 = vld [vmem:[%s2116_s1 + $0x50] sm:$0xff]   ;;  %v1786_v58 = vld [vmem:[%s2116_s1 + $0xc8] sm:$0xff]  }
   0xd   :  { %v1789_v60 = vld [vmem:[%s2116_s1 + $0xd0] sm:$0xff]   ;;  %v1788_v61 = vld [vmem:[%s2116_s1 + $0x58] sm:$0xff]   ;;  %v1791_v63 = vld [vmem:[%s2116_s1 + $0x60] sm:$0xff]  }
   0xe   :  { %89 = vrot.lane.b32.xlu0 %v1868_v5, %s1803_s19  ;;  %561 = vrot.lane.b32.xlu1 %v1868_v5, %s1804_s22  ;;  %v1792_v4 = vld [vmem:[%s2116_s1 + $0x68] sm:$0xff]   ;;  %v1795_v6 = vld [vmem:[%s2116_s1 + $0x70] sm:$0xff]  }
  0x12   :  { %681 = vrot.lane.b32.xlu0 %v1840_v0, %s1805_s29  ;;  %683 = vrot.lane.b32.xlu1 %v1845_v1, %s1805_s29 }
  0x16   :  { %685 = vrot.lane.b32.xlu0 %v1856_v3, %s1805_s29  ;;  %687 = vrot.lane.b32.xlu1 %v1868_v5, %s1805_s29 }
  0x1a   :  { %303 = vrot.lane.b32.xlu0 %v1840_v0, %s1806_s30  ;;  %807 = vrot.lane.b32.xlu1 %v1840_v0, %s1807_s0 }
  0x1e   :  { %305 = vrot.lane.b32.xlu0 %v1845_v1, %s1806_s30  ;;  %809 = vrot.lane.b32.xlu1 %v1845_v1, %s1807_s0 }
  0x22   :  { %307 = vrot.lane.b32.xlu0 %v1856_v3, %s1806_s30  ;;  %811 = vrot.lane.b32.xlu1 %v1856_v3, %s1807_s0 }
  0x26   :  { %309 = vrot.lane.b32.xlu0 %v1868_v5, %s1806_s30  ;;  %813 = vrot.lane.b32.xlu1 %v1868_v5, %s1807_s0 }
  0x2a   :  { %429 = vrot.lane.b32.xlu0 %v1840_v0, %s1808_s5  ;;  %933 = vrot.lane.b32.xlu1 %v1840_v0, %s1809_s6 }
  0x2e   :  { %431 = vrot.lane.b32.xlu0 %v1845_v1, %s1808_s5  ;;  %935 = vrot.lane.b32.xlu1 %v1845_v1, %s1809_s6 }
  0x32   :  { %433 = vrot.lane.b32.xlu0 %v1856_v3, %s1808_s5  ;;  %937 = vrot.lane.b32.xlu1 %v1856_v3, %s1809_s6 }
  0x36   :  { %435 = vrot.lane.b32.xlu0 %v1868_v5, %s1808_s5  ;;  %939 = vrot.lane.b32.xlu1 %v1868_v5, %s1809_s6 }
  0x3a   :  { %1059 = vrot.lane.b32.xlu0 %v1840_v0, %s1810_s7  ;;  %1061 = vrot.lane.b32.xlu1 %v1845_v1, %s1810_s7 }
  0x3e   :  { %1063 = vrot.lane.b32.xlu0 %v1856_v3, %s1810_s7  ;;  %1065 = vrot.lane.b32.xlu1 %v1868_v5, %s1810_s7 }
  0x42   :  { %1171 = vperm.xlu1 %1762, %v1157_v7   ;;  %1166 = vperm.xlu0 %1761, %v1156_v8   ;;  %v1794_v7 = vld [vmem:[%s2116_s1 + $0xe8] sm:$0xff]  }
  0x46   :  { %1176 = vperm.xlu1 %1762, %v1158_v9   ;;  %1181 = vperm.xlu0 %1761, %v1159_v10   ;;  %v1797_v9 = vld [vmem:[%s2116_s1 + $0xf0] sm:$0xff]   ;;  %v1796_v10 = vld [vmem:[%s2116_s1 + $0x78] sm:$0xff]  }
  0x4a   :  { %1186 = vperm.xlu1 %1762, %v1160_v11   ;;  %1191 = vperm.xlu0 %1761, %v1161_v12   ;;  %v1799_v12 = vld [vmem:[%s2116_s1 + $0x110] sm:$0xff]  }
  0x4e   :  { %1196 = vperm.xlu1 %1762, %v1162_v13   ;;  %1201 = vperm.xlu0 %1761, %v1163_v14   ;;  %v1798_v13 = vld [vmem:[%s2116_s1 + $0xf8] sm:$0xff]   ;;  %v1801_v14 = vld [vmem:[%s2116_s1 + $0x100] sm:$0xff]  }
  0x74   :  { %v84_v15 = vpop.permute.xlu0 %83  ;;  %v86_v16 = vpop.permute.xlu1 %85 }
  0x75   :  { %1536 = vmatprep.subr.bf16.mxu1 %v84_v15 }
  0x76   :  { %1537 = vmatpush3.bf16.msra.mxu1 %v84_v15  ;;  %v1800_v15 = vld [vmem:[%s2116_s1 + $0x118] sm:$0xff]  }
  0x77   :  { %1538 = vmatprep.subr.bf16.mxu1 %v86_v16 }
  0x78   :  { %v556_v17 = vpop.permute.xlu0 %555  ;;  %v558_v18 = vpop.permute.xlu1 %557 }
  0x79   :  { %1600 = vmatprep.subr.bf16.mxu0 %v556_v17 }
  0x7a   :  { %1539 = vmatpush3.bf16.msra.mxu1 %v86_v16  ;;  %1601 = vmatpush3.bf16.msra.mxu0 %v556_v17  ;;  %v1802_v16 = vld [vmem:[%s2116_s1 + $0x108] sm:$0xff]  }
  0x7b   :  { %1602 = vmatprep.subr.bf16.mxu0 %v558_v18 }
  0x7c   :  { %v88_v19 = vpop.permute.xlu0 %87  ;;  %v560_v20 = vpop.permute.xlu1 %559 }
  0x7d   :  { %1540 = vmatprep.subr.bf16.mxu1 %v88_v19 }
  0x7e   :  { %1541 = vmatpush3.bf16.msra.mxu1 %v88_v19  ;;  %1603 = vmatpush3.bf16.msra.mxu0 %v558_v18 }
  0x7f   :  { %1604 = vmatprep.subr.bf16.mxu0 %v560_v20 }
  0x80   :  { %v90_v21 = vpop.permute.xlu0 %89  ;;  %v562_v22 = vpop.permute.xlu1 %561 }
  0x81   :  { %1542 = vmatprep.subr.bf16.mxu1 %v90_v21 }
  0x82   :  { %1543 = vmatpush3.bf16.msra.mxu1 %v90_v21  ;;  %1605 = vmatpush3.bf16.msra.mxu0 %v560_v20 }
  0x83   :  { %1552 = vmatprep.subr.bf16.mxu1 %v1840_v0  ;;  %1606 = vmatprep.subr.bf16.mxu0 %v562_v22 }
  0x84   :  { %v682_v24 = vpop.permute.xlu0 %681  ;;  %v684_v27 = vpop.permute.xlu1 %683 }
  0x85   :  { %1545 = vmatmul.mubr.msk.bf16.vlgmr.msra.gmra.mrb[0].mxu1 %vm95_vm0, %v1768_v23 }
  0x86   :  { %1553 = vmatpush3.bf16.msra.mxu1 %v1840_v0  ;;  %1607 = vmatpush3.bf16.msra.mxu0 %v562_v22  ;;  %v1790_v0 = vld [vmem:[%s2116_s1 + $0xd8] sm:$0xff]  }
  0x87   :  { %1554 = vmatprep.subr.bf16.mxu1 %v1845_v1  ;;  %1616 = vmatprep.subr.bf16.mxu0 %v682_v24 }
  0x88   :  { %1548 = vmatprep.mubr.msk.bf16.mxu1 %vm95_vm0, %v1771_v25  ;;  %v686_v29 = vpop.permute.xlu0 %685  ;;  %v688_v31 = vpop.permute.xlu1 %687 }
  0x89   :  { %1609 = vmatmul.mubr.msk.bf16.vlgmr.msra.gmra.mrb[0].mxu0 %vm95_vm0, %v1770_v26 }
  0x8a   :  { %1555 = vmatpush3.bf16.msra.mxu1 %v1845_v1  ;;  %1617 = vmatpush3.bf16.msra.mxu0 %v682_v24 }
  0x8b   :  { %1556 = vmatprep.subr.bf16.mxu1 %v1856_v3  ;;  %1618 = vmatprep.subr.bf16.mxu0 %v684_v27 }
  0x8c   :  { %1612 = vmatprep.mubr.msk.bf16.mxu0 %vm95_vm0, %v1773_v28  ;;  %v304_v33 = vpop.permute.xlu0 %303  ;;  %v808_v35 = vpop.permute.xlu1 %807 }
  0x8d   :  { %1549 = vmatmul.mubr.msk.bf16.gmra.mrb[4].mxu1 %vm95_vm0, %v1772_v30 }
  0x8e   :  { %1557 = vmatpush3.bf16.msra.mxu1 %v1856_v3  ;;  %1619 = vmatpush3.bf16.msra.mxu0 %v684_v27  ;;  %v1793_v3 = vld [vmem:[%s2116_s1 + $0xe0] sm:$0xff]  }
  0x8f   :  { %1558 = vmatprep.subr.bf16.mxu1 %v1868_v5  ;;  %1620 = vmatprep.subr.bf16.mxu0 %v686_v29 }
  0x90   :  { %1560 = vmatprep.mubr.msk.bf16.mxu1 %vm95_vm0, %v1775_v32  ;;  %v306_v37 = vpop.permute.xlu0 %305  ;;  %v810_v39 = vpop.permute.xlu1 %809 }
  0x91   :  { %1613 = vmatmul.mubr.msk.bf16.gmra.mrb[4].mxu0 %vm95_vm0, %v1774_v34 }
  0x92   :  { %1559 = vmatpush3.bf16.msra.mxu1 %v1868_v5  ;;  %1621 = vmatpush3.bf16.msra.mxu0 %v686_v29 }
  0x93   :  { %1568 = vmatprep.subr.bf16.mxu1 %v304_v33  ;;  %1622 = vmatprep.subr.bf16.mxu0 %v688_v31 }
  0x94   :  { %1624 = vmatprep.mubr.msk.bf16.mxu0 %vm95_vm0, %v1777_v36  ;;  %v308_v41 = vpop.permute.xlu0 %307  ;;  %v812_v43 = vpop.permute.xlu1 %811  ;;  %v1463_v36 = vld [vmem:[%s2118_s3 + $0x18] sm:$0xff]  }
  0x95   :  { %1561 = vmatmul.mubr.msk.bf16.vlgmr.msra.gmra.mrb[0].mxu1 %vm95_vm0, %v1776_v38 }
  0x96   :  { %1569 = vmatpush3.bf16.msra.mxu1 %v304_v33  ;;  %1623 = vmatpush3.bf16.msra.mxu0 %v688_v31 }
  0x97   :  { %1570 = vmatprep.subr.bf16.mxu1 %v306_v37  ;;  %1632 = vmatprep.subr.bf16.mxu0 %v808_v35 }
  0x98   :  { %1564 = vmatprep.mubr.msk.bf16.mxu1 %vm95_vm0, %v1779_v40  ;;  %v310_v45 = vpop.permute.xlu0 %309  ;;  %v814_v47 = vpop.permute.xlu1 %813 }
  0x99   :  { %1625 = vmatmul.mubr.msk.bf16.vlgmr.msra.gmra.mrb[0].mxu0 %vm95_vm0, %v1778_v42  ;;  %v1461_v42 = vld [vmem:[%s2118_s3 + $0x8] sm:$0xff]  }
  0x9a   :  { %1571 = vmatpush3.bf16.msra.mxu1 %v306_v37  ;;  %1633 = vmatpush3.bf16.msra.mxu0 %v808_v35 }
  0x9b   :  { %1572 = vmatprep.subr.bf16.mxu1 %v308_v41  ;;  %1634 = vmatprep.subr.bf16.mxu0 %v810_v39 }
  0x9c   :  { %1628 = vmatprep.mubr.msk.bf16.mxu0 %vm95_vm0, %v1781_v44  ;;  %v430_v49 = vpop.permute.xlu0 %429  ;;  %v934_v51 = vpop.permute.xlu1 %933  ;;  %v1459_v44 = vunpack.c.l.bf16 %v1463_v36 }
  0x9d   :  { %1565 = vmatmul.mubr.msk.bf16.gmra.mrb[4].mxu1 %vm95_vm0, %v1780_v46  ;;  %v1446_v46 = vld [vmem:[%s2118_s3] sm:$0xff]  }
  0x9e   :  { %1573 = vmatpush3.bf16.msra.mxu1 %v308_v41  ;;  %1635 = vmatpush3.bf16.msra.mxu0 %v810_v39  ;;  %v1462_v39 = vld [vmem:[%s2118_s3 + $0x10] sm:$0xff]  }
  0x9f   :  { %1574 = vmatprep.subr.bf16.mxu1 %v310_v45  ;;  %1636 = vmatprep.subr.bf16.mxu0 %v812_v43 }
  0xa0   :  { %1576 = vmatprep.mubr.msk.bf16.mxu1 %vm95_vm0, %v1783_v48  ;;  %v432_v53 = vpop.permute.xlu0 %431  ;;  %v936_v55 = vpop.permute.xlu1 %935 }
  0xa1   :  { %1629 = vmatmul.mubr.msk.bf16.gmra.mrb[4].mxu0 %vm95_vm0, %v1782_v50 }
  0xa2   :  { %1575 = vmatpush3.bf16.msra.mxu1 %v310_v45  ;;  %1637 = vmatpush3.bf16.msra.mxu0 %v812_v43 }
  0xa3   :  { %1584 = vmatprep.subr.bf16.mxu1 %v430_v49  ;;  %1638 = vmatprep.subr.bf16.mxu0 %v814_v47 }
  0xa4   :  { %1640 = vmatprep.mubr.msk.bf16.mxu0 %vm95_vm0, %v1785_v52  ;;  %v434_v57 = vpop.permute.xlu0 %433  ;;  %v938_v59 = vpop.permute.xlu1 %937 }
  0xa5   :  { %1577 = vmatmul.mubr.msk.bf16.vlgmr.msra.gmra.mrb[0].mxu1 %vm95_vm0, %v1784_v54 }
  0xa6   :  { %1585 = vmatpush3.bf16.msra.mxu1 %v430_v49  ;;  %1639 = vmatpush3.bf16.msra.mxu0 %v814_v47  ;;  %v1455_v49 = vunpack.c.l.bf16 %v1462_v39 }
  0xa7   :  { %1586 = vmatprep.subr.bf16.mxu1 %v432_v53  ;;  %1648 = vmatprep.subr.bf16.mxu0 %v934_v51 }
  0xa8   :  { %1580 = vmatprep.mubr.msk.bf16.mxu1 %vm95_vm0, %v1787_v56  ;;  %v436_v62 = vpop.permute.xlu0 %435  ;;  %v940_v1 = vpop.permute.xlu1 %939  ;;  %v1451_v56 = vunpack.c.l.bf16 %v1461_v42 }
  0xa9   :  { %1641 = vmatmul.mubr.msk.bf16.vlgmr.msra.gmra.mrb[0].mxu0 %vm95_vm0, %v1786_v58 }
  0xaa   :  { %1587 = vmatpush3.bf16.msra.mxu1 %v432_v53  ;;  %1649 = vmatpush3.bf16.msra.mxu0 %v934_v51  ;;  %v1460_v51 = vunpack.c.h.bf16 %v1463_v36 }
  0xab   :  { %1588 = vmatprep.subr.bf16.mxu1 %v434_v57  ;;  %1650 = vmatprep.subr.bf16.mxu0 %v936_v55 }
  0xac   :  { %1644 = vmatprep.mubr.msk.bf16.mxu0 %vm95_vm0, %v1789_v60  ;;  %v1060_v2 = vpop.permute.xlu0 %1059  ;;  %v1062_v5 = vpop.permute.xlu1 %1061 }
  0xad   :  { %1581 = vmatmul.mubr.msk.bf16.gmra.mrb[4].mxu1 %vm95_vm0, %v1788_v61  ;;  %v1447_v61 = vunpack.c.l.bf16 %v1446_v46 }
  0xae   :  { %1589 = vmatpush3.bf16.msra.mxu1 %v434_v57  ;;  %1651 = vmatpush3.bf16.msra.mxu0 %v936_v55  ;;  %v1456_v55 = vunpack.c.h.bf16 %v1462_v39 }
  0xaf   :  { %1590 = vmatprep.subr.bf16.mxu1 %v436_v62  ;;  %1652 = vmatprep.subr.bf16.mxu0 %v938_v59 }
  0xb0   :  { %1592 = vmatprep.mubr.msk.bf16.mxu1 %vm95_vm0, %v1791_v63  ;;  %v1064_v8 = vpop.permute.xlu0 %1063  ;;  %v1066_v11 = vpop.permute.xlu1 %1065 }
  0xb1   :  { %1645 = vmatmul.mubr.msk.bf16.gmra.mrb[4].mxu0 %vm95_vm0, %v1790_v0 }
  0xb2   :  { %1591 = vmatpush3.bf16.msra.mxu1 %v436_v62  ;;  %1653 = vmatpush3.bf16.msra.mxu0 %v938_v59 }
  0xb3   :  { %1654 = vmatprep.subr.bf16.mxu0 %v940_v1  ;;  %1680 = vmatprep.subr.bf16.mxu1 %v1060_v2 }
  0xb4   :  { %1656 = vmatprep.mubr.msk.bf16.mxu0 %vm95_vm0, %v1793_v3 }
  0xb5   :  { %1593 = vmatmul.mubr.msk.bf16.vlgmr.msra.gmra.mrb[0].mxu1 %vm95_vm0, %v1792_v4 }
  0xb6   :  { %1655 = vmatpush3.bf16.msra.mxu0 %v940_v1  ;;  %1684 = vmatpush3.bf16.msra.mxu1 %v1060_v2 }
  0xb7   :  { %1664 = vmatprep.subr.bf16.mxu0 %v1060_v2  ;;  %1681 = vmatprep.subr.bf16.mxu1 %v1062_v5 }
  0xb8   :  { %1596 = vmatprep.mubr.msk.bf16.mxu1 %vm95_vm0, %v1795_v6 }
  0xb9   :  { %1657 = vmatmul.mubr.msk.bf16.vlgmr.msra.gmra.mrb[0].mxu0 %vm95_vm0, %v1794_v7  ;;  %v1448_v7 = vunpack.c.h.bf16 %v1446_v46 }
  0xba   :  { %1665 = vmatpush3.bf16.msra.mxu0 %v1060_v2  ;;  %1685 = vmatpush3.bf16.msra.mxu1 %v1062_v5  ;;  %v1452_v2 = vunpack.c.h.bf16 %v1461_v42 }
  0xbb   :  { %1666 = vmatprep.subr.bf16.mxu0 %v1062_v5  ;;  %1682 = vmatprep.subr.bf16.mxu1 %v1064_v8 }
  0xbc   :  { %1660 = vmatprep.mubr.msk.bf16.mxu0 %vm95_vm0, %v1797_v9 }
  0xbd   :  { %1597 = vmatmul.mubr.msk.bf16.gmra.mrb[4].mxu1 %vm95_vm0, %v1796_v10 }
  0xbe   :  { %1667 = vmatpush3.bf16.msra.mxu0 %v1062_v5  ;;  %1686 = vmatpush3.bf16.msra.mxu1 %v1064_v8 }
  0xbf   :  { %1668 = vmatprep.subr.bf16.mxu0 %v1064_v8  ;;  %1683 = vmatprep.subr.bf16.mxu1 %v1066_v11 }
  0xc0   :  { %1676 = vmatprep.mubr.msk.bf16.mxu1 %vm95_vm0, %v1799_v12 }
  0xc1   :  { %1661 = vmatmul.mubr.msk.bf16.gmra.mrb[4].mxu0 %vm95_vm0, %v1798_v13  ;;  %v2065_v18 = vpop.permute.xlu1 %1171  ;;  %v1167_v21 = vpop.permute.xlu0 %1166 }
  0xc2   :  { %1669 = vmatpush3.bf16.msra.mxu0 %v1064_v8  ;;  %1687 = vmatpush3.bf16.msra.mxu1 %v1066_v11 }
  0xc3   :  { %1670 = vmatprep.subr.bf16.mxu0 %v1066_v11  ;;  %1672 = vmatprep.mubr.msk.bf16.mxu0 %vm95_vm0, %v1801_v14 }
  0xc5   :  { %1677 = vmatmul.mubr.msk.bf16.vlgmr.msra.gmra.mrb[8].mxu1 %vm95_vm0, %v1800_v15  ;;  %v1177_v23 = vpop.permute.xlu1 %1176  ;;  %v2067_v24 = vpop.permute.xlu0 %1181 }
  0xc6   :  { %1671 = vmatpush3.bf16.msra.mxu0 %v1066_v11 }
  0xc9   :  { %1673 = vmatmul.mubr.msk.bf16.vlgmr.msra.gmra.mrb[0].mxu0 %vm95_vm0, %v1802_v16  ;;  %v1187_v29 = vpop.permute.xlu1 %1186  ;;  %v1192_v33 = vpop.permute.xlu0 %1191 }
  0xcd   :  { %v1197_v47 = vpop.permute.xlu1 %1196  ;;  %v1202_v57 = vpop.permute.xlu0 %1201 }
 0x188   :  { %v1594_v17 = vpop.f32.mrb[0].mxu1 }
 0x189   :  { %v487_v19 = vpop.f32.mrb[1].mxu1 }
 0x18a   :  { %v1595_v20 = vpop.f32.mrb[2].mxu1 }
 0x18b   :  { %v490_v22 = vpop.f32.mrb[3].mxu1 }
 0x190   :  { %v1598_v25 = vpop.f32.mrb[4].mxu1 }
 0x191   :  { %v503_v26 = vpop.f32.mrb[5].mxu1 }
 0x192   :  { %v1599_v27 = vpop.f32.mrb[6].mxu1 }
 0x193   :  { %v506_v28 = vpop.f32.mrb[7].mxu1 }
 0x194   :  { %v1662_v30 = vpop.f32.mrb[4].mxu0 }
 0x195   :  { %v1692_v31 = vadd.f32 %v1662_v30, %v1598_v25  ;;  %v1007_v32 = vpop.f32.mrb[5].mxu0 }
 0x196   :  { %v1694_v34 = vadd.f32 %v1007_v32, %v503_v26  ;;  %v1663_v35 = vpop.f32.mrb[6].mxu0 }
 0x197   :  { %v1696_v37 = vadd.f32 %v1663_v35, %v1599_v27  ;;  %v1010_v38 = vpop.f32.mrb[7].mxu0 }
 0x198   :  { %v1698_v40 = vadd.f32 %v1010_v38, %v506_v28  ;;  %v1678_v41 = vpop.f32.mrb[8].mxu1 }
 0x199   :  { %v1693_v43 = vadd.f32 %v1692_v31, %v1678_v41  ;;  %v1133_v45 = vpop.f32.mrb[9].mxu1 }
 0x19a   :  { %v1695_v48 = vadd.f32 %v1694_v34, %v1133_v45  ;;  %v1679_v50 = vpop.f32.mrb[10].mxu1 }
 0x19b   :  { %v1210_v52 = vadd.f32 %v1693_v43, %v1197_v47  ;;  %v1697_v53 = vadd.f32 %v1696_v37, %v1679_v50  ;;  %v1136_v54 = vpop.f32.mrb[11].mxu1 }
 0x19c   :  { %v1208_v58 = vadd.f32 %v1695_v48, %v1187_v29  ;;  %v1699_v59 = vadd.f32 %v1698_v40, %v1136_v54  ;;  %v1674_v60 = vpop.f32.mrb[0].mxu0 }
 0x19d   :  { %v1234_v62 = vadd.f32 %v1459_v44, %v1210_v52  ;;  %v1211_v63 = vadd.f32 %v1697_v53, %v1202_v57  ;;  %v1688_v0 = vadd.f32 %v1674_v60, %v1594_v17  ;;  %v1117_v1 = vpop.f32.mrb[1].mxu0 }
 0x19e   :  { %v1232_v3 = vadd.f32 %v1455_v49, %v1208_v58  ;;  %v1209_v4 = vadd.f32 %v1699_v59, %v1192_v33  ;;  %v1689_v5 = vadd.f32 %v1117_v1, %v487_v19  ;;  %v1675_v6 = vpop.f32.mrb[2].mxu0 }
 0x19f   :  { %v1242_v8 = vmax.f32 %v1234_v62, 0.0  ;;  %v1235_v9 = vadd.f32 %v1460_v51, %v1211_v63  ;;  %v1206_v10 = vadd.f32 %v1688_v0, %v1177_v23  ;;  %v1690_v11 = vadd.f32 %v1675_v6, %v1595_v20  ;;  %v1120_v12 = vpop.f32.mrb[3].mxu0 }
 0x1a0   :  { %v1240_v13 = vmax.f32 %v1232_v3, 0.0  ;;  %v1233_v14 = vadd.f32 %v1456_v55, %v1209_v4  ;;  %v1204_v15 = vadd.f32 %v1689_v5, %v1167_v21  ;;  %v1691_v16 = vadd.f32 %v1120_v12, %v490_v22 }
 0x1a1   :  { %v1443_v25 = vpack.c.bf16 %v1242_v8, %v1242_v8  ;;  %v1243_v26 = vmax.f32 %v1235_v9, 0.0  ;;  %v1230_v27 = vadd.f32 %v1451_v56, %v1206_v10  ;;  %v1207_v17 = vadd.f32 %v1690_v11, %v2067_v24 }
 0x1a2   :  { %v1441_v28 = vpack.c.bf16 %v1240_v13, %v1240_v13  ;;  %v1241_v29 = vmax.f32 %v1233_v14, 0.0  ;;  %v1228_v30 = vadd.f32 %v1447_v61, %v1204_v15  ;;  %v1205_v19 = vadd.f32 %v1691_v16, %v2065_v18 }
 0x1a3   :  { %1283 = vst.msk [vmem:[%s2119_s4 + $0x18] sm:$0xf] %vm1276_vm1, %v1443_v25  ;;  %v1444_v20 = vpack.c.bf16 %v1243_v26, %v1243_v26  ;;  %v1238_v23 = vmax.f32 %v1230_v27, 0.0  ;;  %v1231_v31 = vadd.f32 %v1452_v2, %v1207_v17 }
 0x1a4   :  { %1281 = vst.msk [vmem:[%s2119_s4 + $0x10] sm:$0xf] %vm1276_vm1, %v1441_v28  ;;  %v1442_v21 = vpack.c.bf16 %v1241_v29, %v1241_v29  ;;  %v1236_v22 = vmax.f32 %v1228_v30, 0.0  ;;  %v1229_v24 = vadd.f32 %v1448_v7, %v1205_v19 }
 0x1a5   :  { %1284 = vst.msk [vmem:[%s2119_s4 + $0x1c] sm:$0xf] %vm1276_vm1, %v1444_v20  ;;  %v1439_v18 = vpack.c.bf16 %v1238_v23, %v1238_v23  ;;  %v1239_v32 = vmax.f32 %v1231_v31, 0.0 }
 0x1a6   :  { %1282 = vst.msk [vmem:[%s2119_s4 + $0x14] sm:$0xf] %vm1276_vm1, %v1442_v21  ;;  %v1437_v33 = vpack.c.bf16 %v1236_v22, %v1236_v22  ;;  %v1237_v34 = vmax.f32 %v1229_v24, 0.0 }
 0x1a7   :  { %1279 = vst.msk [vmem:[%s2119_s4 + $0x8] sm:$0xf] %vm1276_vm1, %v1439_v18  ;;  %v1440_v35 = vpack.c.bf16 %v1239_v32, %v1239_v32 }
 0x1a8   :  { %1277 = vst.msk [vmem:[%s2119_s4] sm:$0xf] %vm1276_vm1, %v1437_v33  ;;  %v1438_v36 = vpack.c.bf16 %v1237_v34, %v1237_v34 }
 0x1a9   :  { %1280 = vst.msk [vmem:[%s2119_s4 + $0xc] sm:$0xf] %vm1276_vm1, %v1440_v35 }
 0x1aa   :  { %1278 = vst.msk [vmem:[%s2119_s4 + $0x4] sm:$0xf] %vm1276_vm1, %v1438_v36 }

// kernel: resnet_forward.61
= control target key start
LH: loop header
LB: loop body
LE: loop exit
PB: predicated region body
PF: predicated region fallthrough
CT: control target
= control target key end

     0   :  { %vm142_vm0 = vcmask 25600   ;;  %vm807_vm1 = vcmask 523264   ;;  %vm736_vm2 = vcmask 1041409   ;;  %vm738_vm3 = vcmask 1042434   ;;  %s1518_s0 = inlined_call_operand.vmem [shape: bf16[64,2,4], index: 0, kind: input, shape index: {}]   ;;  %s1519_s1 = inlined_call_operand.vmem [shape: f32[10,64], index: 1, kind: input, shape index: {}]   ;;  %s1520_s2 = inlined_call_operand.vmem [shape: f32[10,1], index: 2, kind: input, shape index: {}]   ;;  %s1521_s3 = inlined_call_operand.vmem [shape: f32[10,2], index: 3, kind: output, shape index: {}]  }
   0x1   :  { %v22_v0 = vld [vmem:[%s1518_s0 + $0x8] sm:$0x1]  ;;  %v14_v1 = vld [vmem:[%s1518_s0] sm:$0x1]  ;;  %v23_v2 = vld [vmem:[%s1518_s0 + $0x9] sm:$0x1] }
   0x2   :  { %v86_v3 = vunpack.c.l.bf16 %v22_v0  ;;  %v78_v4 = vunpack.c.l.bf16 %v14_v1  ;;  %v87_v5 = vunpack.c.l.bf16 %v23_v2  ;;  %v15_v6 = vld [vmem:[%s1518_s0 + $0x1] sm:$0x1]  ;;  %v24_v8 = vld [vmem:[%s1518_s0 + $0xa] sm:$0x1]  ;;  %v16_v9 = vld [vmem:[%s1518_s0 + $0x2] sm:$0x1] }
   0x3   :  { %v79_v7 = vunpack.c.l.bf16 %v15_v6  ;;  %v88_v14 = vunpack.c.l.bf16 %v24_v8  ;;  %v80_v15 = vunpack.c.l.bf16 %v16_v9  ;;  %v25_v16 = vld [vmem:[%s1518_s0 + $0xb] sm:$0x1]  ;;  %v17_v17 = vld [vmem:[%s1518_s0 + $0x3] sm:$0x1]  ;;  %v26_v18 = vld [vmem:[%s1518_s0 + $0xc] sm:$0x1] }
   0x4   :  { %v167_v10 = vsel %vm142_vm0, %v86_v3, 0.0  ;;  %v143_v11 = vsel %vm142_vm0, %v78_v4, 0.0  ;;  %v170_v12 = vsel %vm142_vm0, %v87_v5, 0.0  ;;  %v18_v19 = vld [vmem:[%s1518_s0 + $0x4] sm:$0x1]  ;;  %v89_v24 = vunpack.c.l.bf16 %v25_v16 }
   0x5   :  { %168 = vadd.xlane.f32.xlu1 %v167_v10  ;;  %144 = vadd.xlane.f32.xlu0 %v143_v11  ;;  %v146_v13 = vsel %vm142_vm0, %v79_v7, 0.0  ;;  %v27_v20 = vld [vmem:[%s1518_s0 + $0xd] sm:$0x1]  ;;  %v19_v21 = vld [vmem:[%s1518_s0 + $0x5] sm:$0x1]  ;;  %v173_v22 = vsel %vm142_vm0, %v88_v14, 0.0  ;;  %v81_v25 = vunpack.c.l.bf16 %v17_v17  ;;  %v90_v28 = vunpack.c.l.bf16 %v26_v18 }
   0x6   :  { %v149_v23 = vsel %vm142_vm0, %v80_v15, 0.0  ;;  %v31_v26 = vld [vmem:[%s1518_s0 + $0x11] sm:$0x1]  ;;  %v30_v27 = vld [vmem:[%s1518_s0 + $0x10] sm:$0x1]  ;;  %v82_v29 = vunpack.c.l.bf16 %v18_v19  ;;  %v91_v32 = vunpack.c.l.bf16 %v27_v20  ;;  %v83_v33 = vunpack.c.l.bf16 %v19_v21 }
   0x7   :  { %v39_v30 = vld [vmem:[%s1518_s0 + $0x19] sm:$0x1]  ;;  %v38_v31 = vld [vmem:[%s1518_s0 + $0x18] sm:$0x1]  ;;  %v95_v34 = vunpack.c.l.bf16 %v31_v26  ;;  %v94_v35 = vunpack.c.l.bf16 %v30_v27  ;;  %v176_v36 = vsel %vm142_vm0, %v89_v24, 0.0  ;;  %v152_v37 = vsel %vm142_vm0, %v81_v25, 0.0 }
   0x8   :  { %v103_v38 = vunpack.c.l.bf16 %v39_v30  ;;  %v102_v39 = vunpack.c.l.bf16 %v38_v31  ;;  %v1027_v40 = vld [vmem:[%s1518_s0 + $0xe] sm:$0x1]  ;;  %v1032_v41 = vld [vmem:[%s1518_s0 + $0x6] sm:$0x1]  ;;  %v179_v42 = vsel %vm142_vm0, %v90_v28, 0.0  ;;  %v155_v43 = vsel %vm142_vm0, %v82_v29, 0.0 }
   0x9   :  { %171 = vadd.xlane.f32.xlu1 %v170_v12  ;;  %147 = vadd.xlane.f32.xlu0 %v146_v13  ;;  %v182_v44 = vsel %vm142_vm0, %v91_v32, 0.0  ;;  %v158_v45 = vsel %vm142_vm0, %v83_v33, 0.0  ;;  %v1041_v46 = vld [vmem:[%s1518_s0 + $0x1a] sm:$0x1]  ;;  %v1046_v47 = vld [vmem:[%s1518_s0 + $0x12] sm:$0x1]  ;;  %v92_v50 = vunpack.c.l.bf16 %v1027_v40  ;;  %v84_v51 = vunpack.c.l.bf16 %v1032_v41 }
   0xa   :  { %v1049_v48 = vsel %vm142_vm0, %v95_v34, 0.0  ;;  %v1052_v49 = vsel %vm142_vm0, %v94_v35, 0.0  ;;  %v44_v52 = vld [vmem:[%s1518_s0 + $0x1e] sm:$0x1]  ;;  %v36_v53 = vld [vmem:[%s1518_s0 + $0x16] sm:$0x1]  ;;  %v104_v60 = vunpack.c.l.bf16 %v1041_v46  ;;  %v96_v61 = vunpack.c.l.bf16 %v1046_v47 }
   0xb   :  { %v1063_v54 = vsel %vm142_vm0, %v103_v38, 0.0  ;;  %v1066_v55 = vsel %vm142_vm0, %v102_v39, 0.0  ;;  %v108_v56 = vunpack.c.l.bf16 %v44_v52  ;;  %v100_v57 = vunpack.c.l.bf16 %v36_v53  ;;  %v56_v58 = vld [vmem:[%s1518_s0 + $0x2a] sm:$0x1]  ;;  %v48_v59 = vld [vmem:[%s1518_s0 + $0x22] sm:$0x1] }
   0xc   :  { %v120_v62 = vunpack.c.l.bf16 %v56_v58  ;;  %v112_v63 = vunpack.c.l.bf16 %v48_v59  ;;  %v45_v0 = vld [vmem:[%s1518_s0 + $0x1f] sm:$0x1]  ;;  %v37_v1 = vld [vmem:[%s1518_s0 + $0x17] sm:$0x1]  ;;  %v57_v6 = vld [vmem:[%s1518_s0 + $0x2b] sm:$0x1] }
   0xd   :  { %174 = vadd.xlane.f32.xlu1 %v173_v22  ;;  %150 = vadd.xlane.f32.xlu0 %v149_v23  ;;  %v1083_v2 = vsel %vm142_vm0, %v108_v56, 0.0  ;;  %v1086_v3 = vsel %vm142_vm0, %v100_v57, 0.0  ;;  %v109_v4 = vunpack.c.l.bf16 %v45_v0  ;;  %v101_v5 = vunpack.c.l.bf16 %v37_v1  ;;  %v49_v7 = vld [vmem:[%s1518_s0 + $0x23] sm:$0x1]  ;;  %v58_v12 = vld [vmem:[%s1518_s0 + $0x2c] sm:$0x1] }
   0xe   :  { %v1095_v8 = vsel %vm142_vm0, %v120_v62, 0.0  ;;  %v1098_v9 = vsel %vm142_vm0, %v112_v63, 0.0  ;;  %v121_v10 = vunpack.c.l.bf16 %v57_v6  ;;  %v113_v11 = vunpack.c.l.bf16 %v49_v7  ;;  %v50_v13 = vld [vmem:[%s1518_s0 + $0x24] sm:$0x1]  ;;  %v59_v18 = vld [vmem:[%s1518_s0 + $0x2d] sm:$0x1] }
   0xf   :  { %v1107_v14 = vsel %vm142_vm0, %v109_v4, 0.0  ;;  %v1110_v15 = vsel %vm142_vm0, %v101_v5, 0.0  ;;  %v122_v16 = vunpack.c.l.bf16 %v58_v12  ;;  %v114_v17 = vunpack.c.l.bf16 %v50_v13  ;;  %v51_v19 = vld [vmem:[%s1518_s0 + $0x25] sm:$0x1]  ;;  %v63_v24 = vld [vmem:[%s1518_s0 + $0x31] sm:$0x1] }
  0x10   :  { %v1119_v20 = vsel %vm142_vm0, %v121_v10, 0.0  ;;  %v1122_v21 = vsel %vm142_vm0, %v113_v11, 0.0  ;;  %v123_v22 = vunpack.c.l.bf16 %v59_v18  ;;  %v115_v23 = vunpack.c.l.bf16 %v51_v19  ;;  %v62_v25 = vld [vmem:[%s1518_s0 + $0x30] sm:$0x1]  ;;  %v71_v30 = vld [vmem:[%s1518_s0 + $0x39] sm:$0x1] }
  0x11   :  { %177 = vadd.xlane.f32.xlu1 %v176_v36  ;;  %153 = vadd.xlane.f32.xlu0 %v152_v37  ;;  %v1131_v26 = vsel %vm142_vm0, %v122_v16, 0.0  ;;  %v1134_v27 = vsel %vm142_vm0, %v114_v17, 0.0  ;;  %v127_v28 = vunpack.c.l.bf16 %v63_v24  ;;  %v126_v29 = vunpack.c.l.bf16 %v62_v25  ;;  %v70_v31 = vld [vmem:[%s1518_s0 + $0x38] sm:$0x1]  ;;  %v60_v36 = vld [vmem:[%s1518_s0 + $0x2e] sm:$0x1] }
  0x12   :  { %v1143_v32 = vsel %vm142_vm0, %v123_v22, 0.0  ;;  %v1146_v33 = vsel %vm142_vm0, %v115_v23, 0.0  ;;  %v135_v34 = vunpack.c.l.bf16 %v71_v30  ;;  %v134_v35 = vunpack.c.l.bf16 %v70_v31  ;;  %v52_v37 = vld [vmem:[%s1518_s0 + $0x26] sm:$0x1]  ;;  %v61_v58 = vld [vmem:[%s1518_s0 + $0x2f] sm:$0x1] }
  0x13   :  { %v1155_v38 = vsel %vm142_vm0, %v127_v28, 0.0  ;;  %v1158_v39 = vsel %vm142_vm0, %v126_v29, 0.0  ;;  %v53_v59 = vld [vmem:[%s1518_s0 + $0x27] sm:$0x1]  ;;  %v125_v0 = vunpack.c.l.bf16 %v61_v58  ;;  %v73_v4 = vld [vmem:[%s1518_s0 + $0x3b] sm:$0x1] }
  0x14   :  { %v1167_v52 = vsel %vm142_vm0, %v135_v34, 0.0  ;;  %v1170_v53 = vsel %vm142_vm0, %v134_v35, 0.0  ;;  %v117_v1 = vunpack.c.l.bf16 %v53_v59  ;;  %v65_v5 = vld [vmem:[%s1518_s0 + $0x33] sm:$0x1]  ;;  %v137_v10 = vunpack.c.l.bf16 %v73_v4  ;;  %v74_v12 = vld [vmem:[%s1518_s0 + $0x3c] sm:$0x1] }
  0x15   :  { %180 = vadd.xlane.f32.xlu1 %v179_v42  ;;  %156 = vadd.xlane.f32.xlu0 %v155_v43  ;;  %v124_v42 = vunpack.c.l.bf16 %v60_v36  ;;  %v116_v43 = vunpack.c.l.bf16 %v52_v37  ;;  %v129_v11 = vunpack.c.l.bf16 %v65_v5  ;;  %v66_v13 = vld [vmem:[%s1518_s0 + $0x34] sm:$0x1]  ;;  %v138_v16 = vunpack.c.l.bf16 %v74_v12  ;;  %v75_v18 = vld [vmem:[%s1518_s0 + $0x3d] sm:$0x1]  ;;  %v67_v19 = vld [vmem:[%s1518_s0 + $0x35] sm:$0x1] }
  0x16   :  { %v130_v17 = vunpack.c.l.bf16 %v66_v13  ;;  %v1217_v22 = vsel %vm142_vm0, %v137_v10, 0.0  ;;  %v139_v24 = vunpack.c.l.bf16 %v75_v18  ;;  %v131_v25 = vunpack.c.l.bf16 %v67_v19  ;;  %v76_v28 = vld [vmem:[%s1518_s0 + $0x3e] sm:$0x1]  ;;  %v68_v29 = vld [vmem:[%s1518_s0 + $0x36] sm:$0x1] }
  0x17   :  { %v1179_v62 = vsel %vm142_vm0, %v124_v42, 0.0  ;;  %v1182_v63 = vsel %vm142_vm0, %v116_v43, 0.0  ;;  %v1220_v23 = vsel %vm142_vm0, %v129_v11, 0.0  ;;  %v1229_v30 = vsel %vm142_vm0, %v138_v16, 0.0  ;;  %v77_v36 = vld [vmem:[%s1518_s0 + $0x3f] sm:$0x1] }
  0x18   :  { %v1232_v31 = vsel %vm142_vm0, %v130_v17, 0.0  ;;  %v140_v34 = vunpack.c.l.bf16 %v76_v28  ;;  %v132_v35 = vunpack.c.l.bf16 %v68_v29  ;;  %v69_v37 = vld [vmem:[%s1518_s0 + $0x37] sm:$0x1]  ;;  %v1243_v42 = vsel %vm142_vm0, %v139_v24, 0.0  ;;  %v29_v58 = vld [vmem:[%s1518_s0 + $0xf] sm:$0x1] }
  0x19   :  { %183 = vadd.xlane.f32.xlu1 %v182_v44  ;;  %159 = vadd.xlane.f32.xlu0 %v158_v45  ;;  %v72_v44 = vld [vmem:[%s1518_s0 + $0x3a] sm:$0x1]  ;;  %v64_v45 = vld [vmem:[%s1518_s0 + $0x32] sm:$0x1]  ;;  %v1246_v43 = vsel %vm142_vm0, %v131_v25, 0.0  ;;  %v197_v59 = vsel %vm142_vm0, %v96_v61, 0.0 }
  0x1a   :  { %v136_v56 = vunpack.c.l.bf16 %v72_v44  ;;  %v128_v57 = vunpack.c.l.bf16 %v64_v45  ;;  %v141_v44 = vunpack.c.l.bf16 %v77_v36  ;;  %v133_v45 = vunpack.c.l.bf16 %v69_v37  ;;  %v21_v40 = vld [vmem:[%s1518_s0 + $0x7] sm:$0x1]  ;;  %v41_v4 = vld [vmem:[%s1518_s0 + $0x1b] sm:$0x1]  ;;  %v33_v5 = vld [vmem:[%s1518_s0 + $0x13] sm:$0x1] }
  0x1b   :  { %v105_v10 = vunpack.c.l.bf16 %v41_v4  ;;  %v97_v47 = vunpack.c.l.bf16 %v33_v5  ;;  %v42_v61 = vld [vmem:[%s1518_s0 + $0x1c] sm:$0x1]  ;;  %v34_v11 = vld [vmem:[%s1518_s0 + $0x14] sm:$0x1]  ;;  %v43_v18 = vld [vmem:[%s1518_s0 + $0x1d] sm:$0x1] }
  0x1c   :  { %v1193_v6 = vsel %vm142_vm0, %v136_v56, 0.0  ;;  %v1196_v7 = vsel %vm142_vm0, %v128_v57, 0.0  ;;  %v185_v56 = vsel %vm142_vm0, %v92_v50, 0.0  ;;  %v161_v57 = vsel %vm142_vm0, %v84_v51, 0.0  ;;  %v35_v19 = vld [vmem:[%s1518_s0 + $0x15] sm:$0x1] }
  0x1d   :  { %195 = vadd.xlane.f32.xlu1 %v1049_v48  ;;  %192 = vadd.xlane.f32.xlu0 %v1052_v49  ;;  %v1205_v48 = vsel %vm142_vm0, %v125_v0, 0.0  ;;  %v1208_v49 = vsel %vm142_vm0, %v117_v1, 0.0  ;;  %v1267_v50 = vsel %vm142_vm0, %v141_v44, 0.0  ;;  %v1270_v41 = vsel %vm142_vm0, %v133_v45, 0.0 }
  0x1e   :  { %v221_v51 = vsel %vm142_vm0, %v104_v60, 0.0  ;;  %v93_v0 = vunpack.c.l.bf16 %v29_v58  ;;  %v85_v1 = vunpack.c.l.bf16 %v21_v40  ;;  %v224_v12 = vsel %vm142_vm0, %v105_v10, 0.0 }
  0x1f   :  { %v200_v13 = vsel %vm142_vm0, %v97_v47, 0.0  ;;  %v106_v16 = vunpack.c.l.bf16 %v42_v61  ;;  %v98_v17 = vunpack.c.l.bf16 %v34_v11  ;;  %v107_v28 = vunpack.c.l.bf16 %v43_v18 }
  0x20   :  { %v188_v46 = vsel %vm142_vm0, %v93_v0, 0.0  ;;  %v164_v60 = vsel %vm142_vm0, %v85_v1, 0.0  ;;  %v99_v29 = vunpack.c.l.bf16 %v35_v19  ;;  %vm740_vm4 = vcmask 1043459  }
  0x21   :  { %219 = vadd.xlane.f32.xlu1 %v1063_v54  ;;  %216 = vadd.xlane.f32.xlu0 %v1066_v55  ;;  %v1255_v54 = vsel %vm142_vm0, %v140_v34, 0.0  ;;  %v1258_v55 = vsel %vm142_vm0, %v132_v35, 0.0  ;;  %v227_v24 = vsel %vm142_vm0, %v106_v16, 0.0  ;;  %v203_v25 = vsel %vm142_vm0, %v98_v17, 0.0  ;;  %v47_v34 = vld [vmem:[%s1518_s0 + $0x21] sm:$0x1] }
  0x22   :  { %v46_v35 = vld [vmem:[%s1518_s0 + $0x20] sm:$0x1]  ;;  %v230_v36 = vsel %vm142_vm0, %v107_v28, 0.0  ;;  %v206_v37 = vsel %vm142_vm0, %v99_v29, 0.0  ;;  %v111_v44 = vunpack.c.l.bf16 %v47_v34  ;;  %vm742_vm5 = vcmask 1044484  }
  0x23   :  { %v110_v45 = vunpack.c.l.bf16 %v46_v35  ;;  %vm744_vm6 = vcmask 1045509   ;;  %vm746_vm7 = vcmask 1046534   ;;  %vm748_vm8 = vcmask 1047559  }
  0x24   :  { %v242_v58 = vsel %vm142_vm0, %v111_v44, 0.0  ;;  %vm891_vm9 = vcmask 9216   ;;  %vm889_vm10 = vcmask 15360  }
  0x25   :  { %186 = vadd.xlane.f32.xlu1 %v185_v56  ;;  %162 = vadd.xlane.f32.xlu0 %v161_v57  ;;  %v55_v56 = vld [vmem:[%s1518_s0 + $0x29] sm:$0x1]  ;;  %v54_v57 = vld [vmem:[%s1518_s0 + $0x28] sm:$0x1]  ;;  %v239_v40 = vsel %vm142_vm0, %v110_v45, 0.0 }
  0x29   :  { %222 = vadd.xlane.f32.xlu1 %v221_v51  ;;  %198 = vadd.xlane.f32.xlu0 %v197_v59  ;;  %v119_v51 = vunpack.c.l.bf16 %v55_v56  ;;  %v118_v59 = vunpack.c.l.bf16 %v54_v57 }
  0x2b   :  { %v266_v0 = vsel %vm142_vm0, %v119_v51, 0.0  ;;  %v263_v1 = vsel %vm142_vm0, %v118_v59, 0.0 }
  0x2d   :  { %189 = vadd.xlane.f32.xlu1 %v188_v46  ;;  %165 = vadd.xlane.f32.xlu0 %v164_v60 }
  0x31   :  { %225 = vadd.xlane.f32.xlu1 %v224_v12  ;;  %201 = vadd.xlane.f32.xlu0 %v200_v13 }
  0x35   :  { %228 = vadd.xlane.f32.xlu1 %v227_v24  ;;  %204 = vadd.xlane.f32.xlu0 %v203_v25 }
  0x39   :  { %231 = vadd.xlane.f32.xlu1 %v230_v36  ;;  %207 = vadd.xlane.f32.xlu0 %v206_v37 }
  0x3d   :  { %243 = vadd.xlane.f32.xlu1 %v242_v58  ;;  %240 = vadd.xlane.f32.xlu0 %v239_v40 }
  0x41   :  { %267 = vadd.xlane.f32.xlu1 %v266_v0  ;;  %264 = vadd.xlane.f32.xlu0 %v263_v1 }
  0x45   :  { %234 = vadd.xlane.f32.xlu1 %v1083_v2  ;;  %210 = vadd.xlane.f32.xlu0 %v1086_v3 }
  0x49   :  { %270 = vadd.xlane.f32.xlu1 %v1095_v8  ;;  %246 = vadd.xlane.f32.xlu0 %v1098_v9 }
  0x4d   :  { %237 = vadd.xlane.f32.xlu1 %v1107_v14  ;;  %213 = vadd.xlane.f32.xlu0 %v1110_v15  ;;  %v400_v14 = vld [vmem:[%s1519_s1] sm:$0xff] }
  0x4e   :  { %925 = vmatprep.mubr.msk.f32.mxu0 %vm807_vm1, %v400_v14 }
  0x51   :  { %273 = vadd.xlane.f32.xlu1 %v1119_v20  ;;  %249 = vadd.xlane.f32.xlu0 %v1122_v21  ;;  %v947_v21 = vmov 0  }
  0x52   :  { %946 = vset.pattern.permute.xlu1 %v947_v21  ;;  %945 = vset.pattern.permute.xlu0 %v947_v21 }
  0x55   :  { %276 = vadd.xlane.f32.xlu1 %v1131_v26  ;;  %252 = vadd.xlane.f32.xlu0 %v1134_v27  ;;  %v403_v26 = vld [vmem:[%s1520_s2 + $0x8] sm:$0x3]  ;;  %v402_v27 = vld [vmem:[%s1520_s2] sm:$0xff] }
  0x59   :  { %279 = vadd.xlane.f32.xlu1 %v1143_v32  ;;  %255 = vadd.xlane.f32.xlu0 %v1146_v33 }
  0x5d   :  { %291 = vadd.xlane.f32.xlu1 %v1155_v38  ;;  %288 = vadd.xlane.f32.xlu0 %v1158_v39 }
  0x61   :  { %315 = vadd.xlane.f32.xlu1 %v1167_v52  ;;  %312 = vadd.xlane.f32.xlu0 %v1170_v53 }
  0x65   :  { %282 = vadd.xlane.f32.xlu1 %v1179_v62  ;;  %258 = vadd.xlane.f32.xlu0 %v1182_v63  ;;  %v478_v62 = vlaneseq }
  0x69   :  { %318 = vadd.xlane.f32.xlu1 %v1193_v6  ;;  %294 = vadd.xlane.f32.xlu0 %v1196_v7  ;;  %v479_v7 = vand.u32 127, %v478_v62 }
  0x6d   :  { %285 = vadd.xlane.f32.xlu1 %v1205_v48  ;;  %261 = vadd.xlane.f32.xlu0 %v1208_v49  ;;  %v481_v48 = vshrl.u32 %v478_v62, 7 }
  0x71   :  { %321 = vadd.xlane.f32.xlu1 %v1217_v22  ;;  %297 = vadd.xlane.f32.xlu0 %v1220_v23  ;;  %v1370_v23 = vsub.s32 %v479_v7, %v481_v48 }
  0x75   :  { %324 = vadd.xlane.f32.xlu1 %v1229_v30  ;;  %300 = vadd.xlane.f32.xlu0 %v1232_v31 }
  0x79   :  { %327 = vadd.xlane.f32.xlu1 %v1243_v42  ;;  %303 = vadd.xlane.f32.xlu0 %v1246_v43 }
  0x7d   :  { %330 = vadd.xlane.f32.xlu1 %v1255_v54  ;;  %306 = vadd.xlane.f32.xlu0 %v1258_v55 }
  0x81   :  { %333 = vadd.xlane.f32.xlu1 %v1267_v50  ;;  %309 = vadd.xlane.f32.xlu0 %v1270_v41 }
  0x92   :  { %v169_v2 = vpop.xlane.xlu1 %168  ;;  %v145_v3 = vpop.xlane.xlu0 %144  ;;  %411 = vperm.xlu1 %946, %v403_v26  }
  0x93   :  { %v344_v50 = vmul.f32 0.25, %v169_v2  ;;  %v336_v41 = vmul.f32 0.25, %v145_v3 }
  0x95   :  { %v515_v24 = vrot.slane %v344_v50, %v1370_v23  ;;  %v483_v25 = vrot.slane %v336_v41, %v1370_v23 }
  0x96   :  { %v172_v8 = vpop.xlane.xlu1 %171  ;;  %v148_v9 = vpop.xlane.xlu0 %147 }
  0x97   :  { %406 = vperm.xlu0 %945, %v402_v27   ;;  %v345_v30 = vmul.f32 0.25, %v172_v8  ;;  %v337_v31 = vmul.f32 0.25, %v148_v9 }
  0x99   :  { %v519_v10 = vrot.slane %v345_v30, %v1370_v23  ;;  %v487_v47 = vrot.slane %v337_v31, %v1370_v23 }
  0x9a   :  { %v175_v15 = vpop.xlane.xlu1 %174  ;;  %v151_v20 = vpop.xlane.xlu0 %150 }
  0x9b   :  { %v346_v42 = vmul.f32 0.25, %v175_v15  ;;  %v338_v43 = vmul.f32 0.25, %v151_v20  ;;  %v750_v36 = vsel %vm736_vm2, %v519_v10, %v515_v24  ;;  %v737_v37 = vsel %vm736_vm2, %v487_v47, %v483_v25 }
  0x9d   :  { %v523_v12 = vrot.slane %v346_v42, %v1370_v23  ;;  %v491_v13 = vrot.slane %v338_v43, %v1370_v23 }
  0x9e   :  { %v178_v32 = vpop.xlane.xlu1 %177  ;;  %v154_v33 = vpop.xlane.xlu0 %153 }
  0x9f   :  { %v347_v4 = vmul.f32 0.25, %v178_v32  ;;  %v339_v5 = vmul.f32 0.25, %v154_v33  ;;  %v751_v56 = vsel %vm738_vm3, %v523_v12, %v750_v36  ;;  %v739_v57 = vsel %vm738_vm3, %v491_v13, %v737_v37 }
  0xa1   :  { %v527_v28 = vrot.slane %v347_v4, %v1370_v23  ;;  %v495_v29 = vrot.slane %v339_v5, %v1370_v23 }
  0xa2   :  { %v181_v38 = vpop.xlane.xlu1 %180  ;;  %v157_v39 = vpop.xlane.xlu0 %156 }
  0xa3   :  { %v348_v46 = vmul.f32 0.25, %v181_v38  ;;  %v340_v60 = vmul.f32 0.25, %v157_v39  ;;  %v752_v0 = vsel %vm740_vm4, %v527_v28, %v751_v56  ;;  %v741_v1 = vsel %vm740_vm4, %v495_v29, %v739_v57 }
  0xa5   :  { %v531_v34 = vrot.slane %v348_v46, %v1370_v23  ;;  %v499_v35 = vrot.slane %v340_v60, %v1370_v23 }
  0xa6   :  { %v184_v52 = vpop.xlane.xlu1 %183  ;;  %v160_v53 = vpop.xlane.xlu0 %159 }
  0xa7   :  { %v349_v61 = vmul.f32 0.25, %v184_v52  ;;  %v341_v11 = vmul.f32 0.25, %v160_v53  ;;  %v753_v8 = vsel %vm742_vm5, %v531_v34, %v752_v0  ;;  %v743_v9 = vsel %vm742_vm5, %v499_v35, %v741_v1 }
  0xa9   :  { %v535_v44 = vrot.slane %v349_v61, %v1370_v23  ;;  %v503_v45 = vrot.slane %v341_v11, %v1370_v23 }
  0xaa   :  { %v1362_v63 = vpop.xlane.xlu1 %195  ;;  %v1364_v6 = vpop.xlane.xlu0 %192 }
  0xab   :  { %v745_v20 = vsel %vm744_vm6, %v503_v45, %v743_v9  ;;  %v754_v21 = vsel %vm744_vm6, %v535_v44, %v753_v8 }
  0xae   :  { %v1366_v49 = vpop.xlane.xlu1 %219  ;;  %v1368_v22 = vpop.xlane.xlu0 %216 }
  0xaf   :  { %v361_v50 = vmul.f32 0.25, %v1366_v49  ;;  %v360_v41 = vmul.f32 0.25, %v1368_v22 }
  0xb2   :  { %v187_v54 = vpop.xlane.xlu1 %186  ;;  %v163_v55 = vpop.xlane.xlu0 %162 }
  0xb3   :  { %v350_v16 = vmul.f32 0.25, %v187_v54  ;;  %v342_v17 = vmul.f32 0.25, %v163_v55  ;;  %v353_v54 = vmul.f32 0.25, %v1362_v63  ;;  %v352_v55 = vmul.f32 0.25, %v1364_v6 }
  0xb4   :  { %v583_v63 = vrot.slane %v361_v50, %v1370_v23  ;;  %v579_v6 = vrot.slane %v360_v41, %v1370_v23 }
  0xb5   :  { %v539_v58 = vrot.slane %v350_v16, %v1370_v23  ;;  %v507_v40 = vrot.slane %v342_v17, %v1370_v23  ;;  %v551_v61 = vrot.slane %v353_v54, %v1370_v23  ;;  %v547_v11 = vrot.slane %v352_v55, %v1370_v23 }
  0xb6   :  { %v223_v18 = vpop.xlane.xlu1 %222  ;;  %v199_v19 = vpop.xlane.xlu0 %198  ;;  %v764_v37 = vsel %vm736_vm2, %v583_v63, %v579_v6 }
  0xb7   :  { %v747_v32 = vsel %vm746_vm7, %v507_v40, %v745_v20  ;;  %v755_v33 = vsel %vm746_vm7, %v539_v58, %v754_v21  ;;  %v362_v4 = vmul.f32 0.25, %v223_v18  ;;  %v354_v5 = vmul.f32 0.25, %v199_v19 }
  0xb8   :  { %v757_v36 = vsel %vm736_vm2, %v551_v61, %v547_v11 }
  0xb9   :  { %v587_v22 = vrot.slane %v362_v4, %v1370_v23  ;;  %v555_v17 = vrot.slane %v354_v5, %v1370_v23 }
  0xba   :  { %v190_v51 = vpop.xlane.xlu1 %189  ;;  %v166_v59 = vpop.xlane.xlu0 %165 }
  0xbb   :  { %v351_v2 = vmul.f32 0.25, %v190_v51  ;;  %v343_v3 = vmul.f32 0.25, %v166_v59  ;;  %v765_v56 = vsel %vm738_vm3, %v587_v22, %v764_v37  ;;  %v758_v57 = vsel %vm738_vm3, %v555_v17, %v757_v36 }
  0xbd   :  { %v543_v14 = vrot.slane %v351_v2, %v1370_v23  ;;  %v511_v15 = vrot.slane %v343_v3, %v1370_v23 }
  0xbe   :  { %v226_v26 = vpop.xlane.xlu1 %225  ;;  %v202_v27 = vpop.xlane.xlu0 %201 }
  0xbf   :  { %v749_v38 = vsel %vm748_vm8, %v511_v15, %v747_v32  ;;  %v756_v39 = vsel %vm748_vm8, %v543_v14, %v755_v33  ;;  %v363_v10 = vmul.f32 0.25, %v226_v26  ;;  %v355_v47 = vmul.f32 0.25, %v202_v27 }
  0xc0   :  { %v928_v52 = vpack.c.bf16 %v756_v39, %v749_v38 }
  0xc1   :  { %v591_v28 = vrot.slane %v363_v10, %v1370_v23  ;;  %v559_v29 = vrot.slane %v355_v47, %v1370_v23 }
  0xc2   :  { %v229_v53 = vpop.xlane.xlu1 %228  ;;  %929 = vmatprep.subr.bf16.mxu0 %v928_v52  ;;  %v205_v62 = vpop.xlane.xlu0 %204 }
  0xc3   :  { %931 = vmatpush3.bf16.msra.mxu0 %v928_v52  ;;  %v364_v12 = vmul.f32 0.25, %v229_v53  ;;  %v356_v13 = vmul.f32 0.25, %v205_v62  ;;  %v766_v0 = vsel %vm740_vm4, %v591_v28, %v765_v56  ;;  %v759_v1 = vsel %vm740_vm4, %v559_v29, %v758_v57 }
  0xc5   :  { %v595_v34 = vrot.slane %v364_v12, %v1370_v23  ;;  %v563_v35 = vrot.slane %v356_v13, %v1370_v23 }
  0xc6   :  { %v232_v7 = vpop.xlane.xlu1 %231  ;;  %v208_v48 = vpop.xlane.xlu0 %207 }
  0xc7   :  { %v365_v16 = vmul.f32 0.25, %v232_v7  ;;  %v357_v49 = vmul.f32 0.25, %v208_v48  ;;  %v767_v8 = vsel %vm742_vm5, %v595_v34, %v766_v0  ;;  %v760_v9 = vsel %vm742_vm5, %v563_v35, %v759_v1 }
  0xc9   :  { %v599_v44 = vrot.slane %v365_v16, %v1370_v23  ;;  %v567_v45 = vrot.slane %v357_v49, %v1370_v23 }
  0xca   :  { %v1402_v30 = vpop.xlane.xlu1 %243  ;;  %v1404_v31 = vpop.xlane.xlu0 %240 }
  0xcb   :  { %v768_v14 = vsel %vm744_vm6, %v599_v44, %v767_v8  ;;  %v761_v15 = vsel %vm744_vm6, %v567_v45, %v760_v9  ;;  %v369_v4 = vmul.f32 0.25, %v1402_v30  ;;  %v368_v5 = vmul.f32 0.25, %v1404_v31 }
  0xcd   :  { %v615_v63 = vrot.slane %v369_v4, %v1370_v23  ;;  %v611_v6 = vrot.slane %v368_v5, %v1370_v23 }
  0xce   :  { %v1406_v42 = vpop.xlane.xlu1 %267  ;;  %v1408_v43 = vpop.xlane.xlu0 %264 }
  0xcf   :  { %v771_v36 = vsel %vm736_vm2, %v615_v63, %v611_v6 }
  0xd2   :  { %v235_v46 = vpop.xlane.xlu1 %234  ;;  %v211_v60 = vpop.xlane.xlu0 %210 }
  0xd3   :  { %v366_v18 = vmul.f32 0.25, %v235_v46  ;;  %v358_v19 = vmul.f32 0.25, %v211_v60  ;;  %v377_v46 = vmul.f32 0.25, %v1406_v42  ;;  %v376_v60 = vmul.f32 0.25, %v1408_v43 }
  0xd5   :  { %v603_v58 = vrot.slane %v366_v18, %v1370_v23  ;;  %v571_v40 = vrot.slane %v358_v19, %v1370_v23  ;;  %v647_v30 = vrot.slane %v377_v46, %v1370_v23  ;;  %v643_v31 = vrot.slane %v376_v60, %v1370_v23 }
  0xd6   :  { %v271_v24 = vpop.xlane.xlu1 %270  ;;  %v247_v25 = vpop.xlane.xlu0 %246 }
  0xd7   :  { %v769_v26 = vsel %vm746_vm7, %v603_v58, %v768_v14  ;;  %v762_v27 = vsel %vm746_vm7, %v571_v40, %v761_v15  ;;  %v378_v10 = vmul.f32 0.25, %v271_v24  ;;  %v370_v47 = vmul.f32 0.25, %v247_v25 }
  0xd8   :  { %v778_v37 = vsel %vm736_vm2, %v647_v30, %v643_v31 }
  0xd9   :  { %v651_v43 = vrot.slane %v378_v10, %v1370_v23  ;;  %v619_v17 = vrot.slane %v370_v47, %v1370_v23 }
  0xda   :  { %v238_v51 = vpop.xlane.xlu1 %237  ;;  %v214_v59 = vpop.xlane.xlu0 %213 }
  0xdb   :  { %v367_v2 = vmul.f32 0.25, %v238_v51  ;;  %v359_v3 = vmul.f32 0.25, %v214_v59  ;;  %v779_v56 = vsel %vm738_vm3, %v651_v43, %v778_v37  ;;  %v772_v57 = vsel %vm738_vm3, %v619_v17, %v771_v36 }
  0xdd   :  { %v607_v20 = vrot.slane %v367_v2, %v1370_v23  ;;  %v575_v21 = vrot.slane %v359_v3, %v1370_v23 }
  0xde   :  { %v274_v32 = vpop.xlane.xlu1 %273  ;;  %v250_v33 = vpop.xlane.xlu0 %249 }
  0xdf   :  { %v763_v38 = vsel %vm748_vm8, %v575_v21, %v762_v27  ;;  %v770_v39 = vsel %vm748_vm8, %v607_v20, %v769_v26  ;;  %v379_v12 = vmul.f32 0.25, %v274_v32  ;;  %v371_v13 = vmul.f32 0.25, %v250_v33 }
  0xe0   :  { %v932_v52 = vpack.c.bf16 %v770_v39, %v763_v38 }
  0xe1   :  { %v655_v28 = vrot.slane %v379_v12, %v1370_v23  ;;  %v623_v29 = vrot.slane %v371_v13, %v1370_v23 }
  0xe2   :  { %v277_v53 = vpop.xlane.xlu1 %276  ;;  %933 = vmatprep.subr.bf16.mxu0 %v932_v52  ;;  %v253_v62 = vpop.xlane.xlu0 %252 }
  0xe3   :  { %935 = vmatpush3.bf16.msra.mxu0 %v932_v52  ;;  %v380_v16 = vmul.f32 0.25, %v277_v53  ;;  %v372_v49 = vmul.f32 0.25, %v253_v62  ;;  %v780_v0 = vsel %vm740_vm4, %v655_v28, %v779_v56  ;;  %v773_v1 = vsel %vm740_vm4, %v623_v29, %v772_v57 }
  0xe5   :  { %v659_v34 = vrot.slane %v380_v16, %v1370_v23  ;;  %v627_v35 = vrot.slane %v372_v49, %v1370_v23 }
  0xe6   :  { %v280_v7 = vpop.xlane.xlu1 %279  ;;  %v256_v48 = vpop.xlane.xlu0 %255 }
  0xe7   :  { %v381_v22 = vmul.f32 0.25, %v280_v7  ;;  %v373_v42 = vmul.f32 0.25, %v256_v48  ;;  %v781_v8 = vsel %vm742_vm5, %v659_v34, %v780_v0  ;;  %v774_v9 = vsel %vm742_vm5, %v627_v35, %v773_v1 }
  0xe9   :  { %v663_v44 = vrot.slane %v381_v22, %v1370_v23  ;;  %v631_v45 = vrot.slane %v373_v42, %v1370_v23 }
  0xea   :  { %v292_v54 = vpop.xlane.xlu1 %291  ;;  %v289_v55 = vpop.xlane.xlu0 %288 }
  0xeb   :  { %v782_v14 = vsel %vm744_vm6, %v663_v44, %v781_v8  ;;  %v775_v15 = vsel %vm744_vm6, %v631_v45, %v774_v9  ;;  %v385_v7 = vmul.f32 0.25, %v292_v54  ;;  %v384_v48 = vmul.f32 0.25, %v289_v55 }
  0xed   :  { %v679_v12 = vrot.slane %v385_v7, %v1370_v23  ;;  %v675_v13 = vrot.slane %v384_v48, %v1370_v23 }
  0xee   :  { %v316_v50 = vpop.xlane.xlu1 %315  ;;  %v313_v41 = vpop.xlane.xlu0 %312 }
  0xef   :  { %v393_v4 = vmul.f32 0.25, %v316_v50  ;;  %v392_v5 = vmul.f32 0.25, %v313_v41 }
  0xf1   :  { %v711_v16 = vrot.slane %v393_v4, %v1370_v23  ;;  %v707_v49 = vrot.slane %v392_v5, %v1370_v23 }
  0xf2   :  { %v283_v61 = vpop.xlane.xlu1 %282  ;;  %v259_v11 = vpop.xlane.xlu0 %258 }
  0xf3   :  { %v382_v18 = vmul.f32 0.25, %v283_v61  ;;  %v374_v19 = vmul.f32 0.25, %v259_v11 }
  0xf5   :  { %v667_v58 = vrot.slane %v382_v18, %v1370_v23  ;;  %v635_v40 = vrot.slane %v374_v19, %v1370_v23 }
  0xf6   :  { %v319_v24 = vpop.xlane.xlu1 %318  ;;  %v295_v25 = vpop.xlane.xlu0 %294 }
  0xf7   :  { %v783_v26 = vsel %vm746_vm7, %v667_v58, %v782_v14  ;;  %v776_v27 = vsel %vm746_vm7, %v635_v40, %v775_v15  ;;  %v394_v46 = vmul.f32 0.25, %v319_v24  ;;  %v386_v60 = vmul.f32 0.25, %v295_v25 }
  0xf8   :  { %v785_v24 = vsel %vm736_vm2, %v679_v12, %v675_v13  ;;  %v792_v25 = vsel %vm736_vm2, %v711_v16, %v707_v49 }
  0xf9   :  { %v715_v50 = vrot.slane %v394_v46, %v1370_v23  ;;  %v683_v41 = vrot.slane %v386_v60, %v1370_v23 }
  0xfa   :  { %v286_v51 = vpop.xlane.xlu1 %285  ;;  %v262_v59 = vpop.xlane.xlu0 %261 }
  0xfb   :  { %v383_v2 = vmul.f32 0.25, %v286_v51  ;;  %v375_v3 = vmul.f32 0.25, %v262_v59  ;;  %v793_v34 = vsel %vm738_vm3, %v715_v50, %v792_v25  ;;  %v786_v35 = vsel %vm738_vm3, %v683_v41, %v785_v24 }
  0xfd   :  { %v671_v20 = vrot.slane %v383_v2, %v1370_v23  ;;  %v639_v21 = vrot.slane %v375_v3, %v1370_v23 }
  0xfe   :  { %v322_v32 = vpop.xlane.xlu1 %321  ;;  %v298_v33 = vpop.xlane.xlu0 %297 }
  0xff   :  { %v777_v38 = vsel %vm748_vm8, %v639_v21, %v776_v27  ;;  %v784_v39 = vsel %vm748_vm8, %v671_v20, %v783_v26  ;;  %v395_v61 = vmul.f32 0.25, %v322_v32  ;;  %v387_v11 = vmul.f32 0.25, %v298_v33  ;;  %v401_v21 = vld [vmem:[%s1519_s1 + $0x8] sm:$0x3] }
 0x100   :  { %v936_v52 = vpack.c.bf16 %v784_v39, %v777_v38 }
 0x101   :  { %v719_v22 = vrot.slane %v395_v61, %v1370_v23  ;;  %v687_v42 = vrot.slane %v387_v11, %v1370_v23 }
 0x102   :  { %v325_v53 = vpop.xlane.xlu1 %324  ;;  %937 = vmatprep.subr.bf16.mxu0 %v936_v52  ;;  %v301_v62 = vpop.xlane.xlu0 %300 }
 0x103   :  { %939 = vmatpush3.bf16.msra.mxu0 %v936_v52  ;;  %v396_v63 = vmul.f32 0.25, %v325_v53  ;;  %v388_v6 = vmul.f32 0.25, %v301_v62  ;;  %v794_v56 = vsel %vm740_vm4, %v719_v22, %v793_v34  ;;  %v787_v57 = vsel %vm740_vm4, %v687_v42, %v786_v35 }
 0x105   :  { %v723_v18 = vrot.slane %v396_v63, %v1370_v23  ;;  %v691_v19 = vrot.slane %v388_v6, %v1370_v23 }
 0x106   :  { %v328_v10 = vpop.xlane.xlu1 %327  ;;  %v304_v47 = vpop.xlane.xlu0 %303 }
 0x107   :  { %v397_v54 = vmul.f32 0.25, %v328_v10  ;;  %v389_v55 = vmul.f32 0.25, %v304_v47  ;;  %v795_v51 = vsel %vm742_vm5, %v723_v18, %v794_v56  ;;  %v788_v59 = vsel %vm742_vm5, %v691_v19, %v787_v57 }
 0x109   :  { %v727_v28 = vrot.slane %v397_v54, %v1370_v23  ;;  %v695_v29 = vrot.slane %v389_v55, %v1370_v23 }
 0x10a   :  { %v331_v30 = vpop.xlane.xlu1 %330  ;;  %v307_v31 = vpop.xlane.xlu0 %306 }
 0x10b   :  { %v398_v43 = vmul.f32 0.25, %v331_v30  ;;  %v390_v17 = vmul.f32 0.25, %v307_v31  ;;  %v796_v0 = vsel %vm744_vm6, %v727_v28, %v795_v51  ;;  %v789_v1 = vsel %vm744_vm6, %v695_v29, %v788_v59 }
 0x10d   :  { %v731_v36 = vrot.slane %v398_v43, %v1370_v23  ;;  %v699_v37 = vrot.slane %v390_v17, %v1370_v23 }
 0x10e   :  { %v334_v44 = vpop.xlane.xlu1 %333  ;;  %v310_v45 = vpop.xlane.xlu0 %309 }
 0x10f   :  { %v399_v58 = vmul.f32 0.25, %v334_v44  ;;  %v391_v40 = vmul.f32 0.25, %v310_v45  ;;  %v797_v8 = vsel %vm746_vm7, %v731_v36, %v796_v0  ;;  %v790_v9 = vsel %vm746_vm7, %v699_v37, %v789_v1 }
 0x111   :  { %v735_v2 = vrot.slane %v399_v58, %v1370_v23  ;;  %v703_v3 = vrot.slane %v391_v40, %v1370_v23 }
 0x112   :  { %v412_v26 = vpop.permute.xlu1 %411 }
 0x113   :  { %v791_v14 = vsel %vm748_vm8, %v703_v3, %v790_v9  ;;  %v798_v15 = vsel %vm748_vm8, %v735_v2, %v797_v8 }
 0x114   :  { %v940_v20 = vpack.c.bf16 %v798_v15, %v791_v14 }
 0x116   :  { %941 = vmatprep.subr.bf16.mxu0 %v940_v20  ;;  %v407_v27 = vpop.permute.xlu0 %406 }
 0x117   :  { %943 = vmatpush3.bf16.msra.mxu0 %v940_v20 }
 0x11a   :  { %926 = vmatmul.mubr.msk.f32.vlgmr.msra.gmra.mrb[0].mxu0 %vm807_vm1, %v401_v21 }
 0x1ed   :  { %v927_v23 = vpop.f32.mrb[0].mxu0 }
 0x1ee   :  { %v886_v32 = vadd.f32 %v927_v23, %v412_v26  ;;  %v880_v33 = vpop.f32.mrb[1].mxu0 }
 0x1ef   :  { %v881_v38 = vadd.f32 %v880_v33, %v407_v27 }
 0x1f0   :  { %892 = vst.msk [vmem:[%s1521_s3 + $0x8] sm:$0x3] %vm891_vm9, %v886_v32 }
 0x1f1   :  { %890 = vst.msk [vmem:[%s1521_s3] sm:$0xff] %vm889_vm10, %v881_v38 }

// kernel: resnet_forward.53
= control target key start
LH: loop header
LB: loop body
LE: loop exit
PB: predicated region body
PF: predicated region fallthrough
CT: control target
= control target key end

     0   :  { %s3570_s25 = smov 127   ;;  %vm102_vm0 = vcmask 523264   ;;  %s3571_s8 = smov 126   ;;  %v3578_v15 = vmov 0   ;;  %vm1241_vm1 = vcmask 343040   ;;  %vm1266_vm2 = vcmask 302120   ;;  %s4242_s0 = inlined_call_operand.vmem [shape: bf16[64,42], index: 0, kind: input, shape index: {}]   ;;  %s4243_s1 = inlined_call_operand.vmem [shape: bf16[9,64,64], index: 1, kind: input, shape index: {}]   ;;  %s4244_s2 = inlined_call_operand.vmem [shape: f32[64,1], index: 2, kind: input, shape index: {}]   ;;  %s4245_s5 = inlined_call_operand.vmem [shape: f32[1,32], index: 5, kind: input, shape index: {}]   ;;  %s4246_s3 = inlined_call_operand.vmem [shape: bf16[9,64,64], index: 3, kind: input, shape index: {}]   ;;  %s4247_s4 = inlined_call_operand.vmem [shape: f32[64,1], index: 4, kind: input, shape index: {}]   ;;  %s4248_s6 = inlined_call_operand.vmem [shape: bf16[64,42], index: 6, kind: output, shape index: {}]  }
   0x1   :  { %v3618_v0 = vld [vmem:[%s4242_s0] sm:$0xff]   ;;  %v3623_v1 = vld [vmem:[%s4242_s0 + $0x8] sm:$0xff]   ;;  %v3630_v2 = vld [vmem:[%s4242_s0 + $0x10] sm:$0xff]   ;;  %s3572_s9 = smov 124   ;;  %s3573_s10 = smov 123   ;;  %3465 = vset.pattern.permute.xlu1 %v3578_v15  ;;  %3464 = vset.pattern.permute.xlu0 %v3578_v15  ;;  %1243 = vst.msk [vmem:[#allocation2 + $0x8] sm:$0xff] %vm1241_vm1, %v3578_v15 }
   0x2   :  { %90 = vrot.lane.b32.xlu0 %v3618_v0, %s3570_s25  ;;  %94 = vrot.lane.b32.xlu1 %v3630_v2, %s3570_s25  ;;  %v3637_v3 = vld [vmem:[%s4242_s0 + $0x18] sm:$0xff]   ;;  %v3490_v4 = vld [vmem:[%s4243_s1 + $0x20] sm:$0xff]   ;;  %s3574_s11 = smov 122   ;;  %s3575_s12 = smov 120   ;;  %1242 = vst.msk [vmem:[#allocation2] sm:$0xff] %vm1241_vm1, %v3578_v15  ;;  %1244 = vst.msk [vmem:[#allocation2 + $0x10] sm:$0xff] %vm1241_vm1, %v3578_v15 }
   0x3   :  { %3046 = vmatprep.mubr.msk.bf16.mxu0 %vm102_vm0, %v3490_v4  ;;  %s3576_s13 = smov 119   ;;  %s3577_s14 = smov 118   ;;  %v3491_v9 = vld [vmem:[%s4243_s1 + $0x28] sm:$0xff]   ;;  %v3492_v10 = vld [vmem:[%s4243_s1 + $0x30] sm:$0xff]   ;;  %v3493_v11 = vld [vmem:[%s4243_s1 + $0x38] sm:$0xff]   ;;  %1245 = vst.msk [vmem:[#allocation2 + $0x18] sm:$0xff] %vm1241_vm1, %v3578_v15 }
   0x4   :  { %v3494_v12 = vld [vmem:[%s4243_s1] sm:$0xff]   ;;  %v1164_v13 = vld [vmem:[%s4244_s2 + $0x8] sm:$0xff]  ;;  %v1165_v18 = vld [vmem:[%s4244_s2 + $0x10] sm:$0xff]  ;;  %vm2512_vm3 = vcmask 338944   ;;  %vm2569_vm4 = vcmask 298024  }
   0x5   :  { %v1163_v14 = vld [vmem:[%s4244_s2] sm:$0xff]  ;;  %v3495_v17 = vld [vmem:[%s4243_s1 + $0x8] sm:$0xff]   ;;  %v3496_v19 = vld [vmem:[%s4243_s1 + $0x10] sm:$0xff]   ;;  %2515 = vst.msk [vmem:[%s4248_s6 + $0x8] sm:$0xf] %vm2512_vm3, %v3578_v15 }
   0x6   :  { %92 = vrot.lane.b32.xlu0 %v3623_v1, %s3570_s25  ;;  %96 = vrot.lane.b32.xlu1 %v3637_v3, %s3570_s25  ;;  %v1166_v20 = vld [vmem:[%s4244_s2 + $0x18] sm:$0xff]  ;;  %v1167_v22 = vld [vmem:[%s4244_s2 + $0x20] sm:$0xff] }
   0x7   :  { %v1168_v23 = vld [vmem:[%s4244_s2 + $0x28] sm:$0xff]  ;;  %v3497_v25 = vld [vmem:[%s4243_s1 + $0x18] sm:$0xff]   ;;  %v1169_v26 = vld [vmem:[%s4244_s2 + $0x30] sm:$0xff]  ;;  %2513 = vst.msk [vmem:[%s4248_s6] sm:$0xf] %vm2512_vm3, %v3578_v15 }
   0x8   :  { %v3498_v27 = vld [vmem:[%s4243_s1 + $0x40] sm:$0xff]   ;;  %v1170_v28 = vld [vmem:[%s4244_s2 + $0x38] sm:$0xff]  ;;  %v3499_v31 = vld [vmem:[%s4243_s1 + $0x48] sm:$0xff]   ;;  %2514 = vst.msk [vmem:[%s4248_s6 + $0x4] sm:$0xf] %vm2512_vm3, %v3578_v15 }
   0x9   :  { %v3500_v32 = vld [vmem:[%s4243_s1 + $0x50] sm:$0xff]   ;;  %v3501_v35 = vld [vmem:[%s4243_s1 + $0x58] sm:$0xff]   ;;  %v3502_v36 = vld [vmem:[%s4243_s1 + $0x60] sm:$0xff]   ;;  %2516 = vst.msk [vmem:[%s4248_s6 + $0xc] sm:$0xf] %vm2512_vm3, %v3578_v15 }
   0xa   :  { %310 = vrot.lane.b32.xlu0 %v3618_v0, %s3571_s8  ;;  %312 = vrot.lane.b32.xlu1 %v3623_v1, %s3571_s8  ;;  %v3503_v39 = vld [vmem:[%s4243_s1 + $0x68] sm:$0xff]   ;;  %v3504_v40 = vld [vmem:[%s4243_s1 + $0x70] sm:$0xff]  }
   0xb   :  { %v3505_v43 = vld [vmem:[%s4243_s1 + $0x78] sm:$0xff]   ;;  %v3506_v44 = vld [vmem:[%s4243_s1 + $0x80] sm:$0xff]   ;;  %v3507_v47 = vld [vmem:[%s4243_s1 + $0x88] sm:$0xff]   ;;  %2517 = vst.msk [vmem:[%s4248_s6 + $0x10] sm:$0xf] %vm2512_vm3, %v3578_v15 }
   0xc   :  { %v3508_v48 = vld [vmem:[%s4243_s1 + $0x90] sm:$0xff]   ;;  %v3509_v51 = vld [vmem:[%s4243_s1 + $0x98] sm:$0xff]   ;;  %v3510_v52 = vld [vmem:[%s4243_s1 + $0xa0] sm:$0xff]   ;;  %2518 = vst.msk [vmem:[%s4248_s6 + $0x14] sm:$0xf] %vm2512_vm3, %v3578_v15 }
   0xd   :  { %v3511_v55 = vld [vmem:[%s4243_s1 + $0xa8] sm:$0xff]   ;;  %v3512_v56 = vld [vmem:[%s4243_s1 + $0xb0] sm:$0xff]   ;;  %v3513_v59 = vld [vmem:[%s4243_s1 + $0xb8] sm:$0xff]   ;;  %2519 = vst.msk [vmem:[%s4248_s6 + $0x18] sm:$0xf] %vm2512_vm3, %v3578_v15 }
   0xe   :  { %314 = vrot.lane.b32.xlu0 %v3630_v2, %s3571_s8  ;;  %316 = vrot.lane.b32.xlu1 %v3637_v3, %s3571_s8  ;;  %v3514_v60 = vld [vmem:[%s4243_s1 + $0xc0] sm:$0xff]   ;;  %v3515_v63 = vld [vmem:[%s4243_s1 + $0xc8] sm:$0xff]  }
   0xf   :  { %v3518_v4 = vld [vmem:[%s4243_s1 + $0xe0] sm:$0xff]   ;;  %2520 = vst.msk [vmem:[%s4248_s6 + $0x1c] sm:$0xf] %vm2512_vm3, %v3578_v15 }
  0x12   :  { %436 = vrot.lane.b32.xlu0 %v3618_v0, %s3572_s9  ;;  %438 = vrot.lane.b32.xlu1 %v3623_v1, %s3572_s9 }
  0x16   :  { %440 = vrot.lane.b32.xlu0 %v3630_v2, %s3572_s9  ;;  %442 = vrot.lane.b32.xlu1 %v3637_v3, %s3572_s9 }
  0x1a   :  { %562 = vrot.lane.b32.xlu0 %v3618_v0, %s3573_s10  ;;  %564 = vrot.lane.b32.xlu1 %v3623_v1, %s3573_s10 }
  0x1e   :  { %566 = vrot.lane.b32.xlu0 %v3630_v2, %s3573_s10  ;;  %568 = vrot.lane.b32.xlu1 %v3637_v3, %s3573_s10 }
  0x22   :  { %688 = vrot.lane.b32.xlu0 %v3618_v0, %s3574_s11  ;;  %690 = vrot.lane.b32.xlu1 %v3623_v1, %s3574_s11 }
  0x26   :  { %692 = vrot.lane.b32.xlu0 %v3630_v2, %s3574_s11  ;;  %694 = vrot.lane.b32.xlu1 %v3637_v3, %s3574_s11 }
  0x2a   :  { %814 = vrot.lane.b32.xlu0 %v3618_v0, %s3575_s12  ;;  %816 = vrot.lane.b32.xlu1 %v3623_v1, %s3575_s12 }
  0x2e   :  { %818 = vrot.lane.b32.xlu0 %v3630_v2, %s3575_s12  ;;  %820 = vrot.lane.b32.xlu1 %v3637_v3, %s3575_s12 }
  0x32   :  { %940 = vrot.lane.b32.xlu0 %v3618_v0, %s3576_s13  ;;  %942 = vrot.lane.b32.xlu1 %v3623_v1, %s3576_s13 }
  0x36   :  { %944 = vrot.lane.b32.xlu0 %v3630_v2, %s3576_s13  ;;  %946 = vrot.lane.b32.xlu1 %v3637_v3, %s3576_s13 }
  0x3a   :  { %1066 = vrot.lane.b32.xlu0 %v3618_v0, %s3577_s14  ;;  %1068 = vrot.lane.b32.xlu1 %v3623_v1, %s3577_s14 }
  0x3e   :  { %1070 = vrot.lane.b32.xlu0 %v3630_v2, %s3577_s14  ;;  %1072 = vrot.lane.b32.xlu1 %v3637_v3, %s3577_s14 }
  0x42   :  { %1178 = vperm.xlu1 %3465, %v1164_v13   ;;  %1173 = vperm.xlu0 %3464, %v1163_v14   ;;  %v3523_v14 = vld [vmem:[%s4243_s1 + $0x108] sm:$0xff]  }
  0x46   :  { %1183 = vperm.xlu1 %3465, %v1165_v18   ;;  %1188 = vperm.xlu0 %3464, %v1166_v20  }
  0x4a   :  { %1193 = vperm.xlu1 %3465, %v1167_v22   ;;  %1198 = vperm.xlu0 %3464, %v1168_v23  }
  0x4e   :  { %1203 = vperm.xlu1 %3465, %v1169_v26   ;;  %1208 = vperm.xlu0 %3464, %v1170_v28  }
  0x74   :  { %v91_v5 = vpop.permute.xlu0 %90  ;;  %v95_v6 = vpop.permute.xlu1 %94 }
  0x75   :  { %3038 = vmatprep.subr.bf16.mxu0 %v91_v5 }
  0x76   :  { %3039 = vmatpush3.bf16.msra.mxu0 %v91_v5 }
  0x78   :  { %v93_v7 = vpop.permute.xlu0 %92  ;;  %v97_v8 = vpop.permute.xlu1 %96 }
  0x79   :  { %3040 = vmatprep.subr.bf16.mxu0 %v93_v7 }
  0x7a   :  { %3041 = vmatpush3.bf16.msra.mxu0 %v93_v7  ;;  %v3519_v7 = vld [vmem:[%s4243_s1 + $0xe8] sm:$0xff]  }
  0x7b   :  { %3042 = vmatprep.subr.bf16.mxu0 %v95_v6 }
  0x7c   :  { %v311_v16 = vpop.permute.xlu0 %310  ;;  %v313_v21 = vpop.permute.xlu1 %312 }
  0x7e   :  { %3043 = vmatpush3.bf16.msra.mxu0 %v95_v6 }
  0x7f   :  { %3044 = vmatprep.subr.bf16.mxu0 %v97_v8 }
  0x80   :  { %v315_v24 = vpop.permute.xlu0 %314  ;;  %v317_v29 = vpop.permute.xlu1 %316 }
  0x82   :  { %3045 = vmatpush3.bf16.msra.mxu0 %v97_v8  ;;  %v3520_v8 = vld [vmem:[%s4243_s1 + $0xf0] sm:$0xff]  }
  0x83   :  { %3054 = vmatprep.subr.bf16.mxu0 %v3618_v0 }
  0x84   :  { %v437_v30 = vpop.permute.xlu0 %436  ;;  %v439_v33 = vpop.permute.xlu1 %438 }
  0x85   :  { %3047 = vmatmul.mubr.msk.bf16.vlgmr.msra.gmra.mrb[0].mxu0 %vm102_vm0, %v3491_v9 }
  0x86   :  { %3055 = vmatpush3.bf16.msra.mxu0 %v3618_v0  ;;  %3050 = vmatprep.mubr.msk.bf16.mxu0 %vm102_vm0, %v3492_v10  ;;  %v3516_v0 = vld [vmem:[%s4243_s1 + $0xd0] sm:$0xff]  }
  0x87   :  { %3056 = vmatprep.subr.bf16.mxu0 %v3623_v1 }
  0x88   :  { %v441_v34 = vpop.permute.xlu0 %440  ;;  %v443_v37 = vpop.permute.xlu1 %442 }
  0x8a   :  { %3057 = vmatpush3.bf16.msra.mxu0 %v3623_v1 }
  0x8b   :  { %3058 = vmatprep.subr.bf16.mxu0 %v3630_v2 }
  0x8c   :  { %v563_v38 = vpop.permute.xlu0 %562  ;;  %v565_v41 = vpop.permute.xlu1 %564 }
  0x8d   :  { %3051 = vmatmul.mubr.msk.bf16.gmra.mrb[4].mxu0 %vm102_vm0, %v3493_v11  ;;  %v3521_v11 = vld [vmem:[%s4243_s1 + $0xf8] sm:$0xff]  }
  0x8e   :  { %3059 = vmatpush3.bf16.msra.mxu0 %v3630_v2  ;;  %3062 = vmatprep.mubr.msk.bf16.mxu0 %vm102_vm0, %v3494_v12  ;;  %v3522_v12 = vld [vmem:[%s4243_s1 + $0x100] sm:$0xff]  }
  0x8f   :  { %3060 = vmatprep.subr.bf16.mxu0 %v3637_v3 }
  0x90   :  { %v567_v42 = vpop.permute.xlu0 %566  ;;  %v569_v45 = vpop.permute.xlu1 %568 }
  0x92   :  { %3061 = vmatpush3.bf16.msra.mxu0 %v3637_v3  ;;  %v3517_v3 = vld [vmem:[%s4243_s1 + $0xd8] sm:$0xff]  }
  0x93   :  { %3070 = vmatprep.subr.bf16.mxu0 %v311_v16 }
  0x94   :  { %v689_v46 = vpop.permute.xlu0 %688  ;;  %v691_v49 = vpop.permute.xlu1 %690 }
  0x95   :  { %3063 = vmatmul.mubr.msk.bf16.vlgmr.msra.gmra.mrb[0].mxu0 %vm102_vm0, %v3495_v17  ;;  %v3525_v17 = vld [vmem:[%s4243_s1 + $0x118] sm:$0xff]  }
  0x96   :  { %3071 = vmatpush3.bf16.msra.mxu0 %v311_v16  ;;  %3066 = vmatprep.mubr.msk.bf16.mxu0 %vm102_vm0, %v3496_v19  ;;  %v3524_v16 = vld [vmem:[%s4243_s1 + $0x110] sm:$0xff]  }
  0x97   :  { %3072 = vmatprep.subr.bf16.mxu0 %v313_v21 }
  0x98   :  { %v693_v50 = vpop.permute.xlu0 %692  ;;  %v695_v53 = vpop.permute.xlu1 %694 }
  0x9a   :  { %3073 = vmatpush3.bf16.msra.mxu0 %v313_v21 }
  0x9b   :  { %3074 = vmatprep.subr.bf16.mxu0 %v315_v24 }
  0x9c   :  { %v815_v54 = vpop.permute.xlu0 %814  ;;  %v817_v57 = vpop.permute.xlu1 %816 }
  0x9d   :  { %3067 = vmatmul.mubr.msk.bf16.gmra.mrb[4].mxu0 %vm102_vm0, %v3497_v25 }
  0x9e   :  { %3075 = vmatpush3.bf16.msra.mxu0 %v315_v24  ;;  %3078 = vmatprep.mubr.msk.bf16.mxu0 %vm102_vm0, %v3498_v27 }
  0x9f   :  { %3076 = vmatprep.subr.bf16.mxu0 %v317_v29 }
  0xa0   :  { %v819_v58 = vpop.permute.xlu0 %818  ;;  %v821_v61 = vpop.permute.xlu1 %820 }
  0xa2   :  { %3077 = vmatpush3.bf16.msra.mxu0 %v317_v29 }
  0xa3   :  { %3086 = vmatprep.subr.bf16.mxu0 %v437_v30 }
  0xa4   :  { %v941_v62 = vpop.permute.xlu0 %940  ;;  %v943_v1 = vpop.permute.xlu1 %942 }
  0xa5   :  { %3079 = vmatmul.mubr.msk.bf16.vlgmr.msra.gmra.mrb[0].mxu0 %vm102_vm0, %v3499_v31 }
  0xa6   :  { %3087 = vmatpush3.bf16.msra.mxu0 %v437_v30  ;;  %3082 = vmatprep.mubr.msk.bf16.mxu0 %vm102_vm0, %v3500_v32  ;;  %v3884_v32 = vld [vmem:[%s4245_s5] ss:$0 sm:$0xff]  ;;  %s3579_s5 = smov 5  }
  0xa7   :  { %3088 = vmatprep.subr.bf16.mxu0 %v439_v33 }
  0xa8   :  { %v945_v2 = vpop.permute.xlu0 %944  ;;  %v947_v5 = vpop.permute.xlu1 %946 }
  0xaa   :  { %3089 = vmatpush3.bf16.msra.mxu0 %v439_v33 }
  0xab   :  { %3090 = vmatprep.subr.bf16.mxu0 %v441_v34 }
  0xac   :  { %v1067_v6 = vpop.permute.xlu0 %1066  ;;  %v1069_v9 = vpop.permute.xlu1 %1068 }
  0xad   :  { %3083 = vmatmul.mubr.msk.bf16.gmra.mrb[4].mxu0 %vm102_vm0, %v3501_v35 }
  0xae   :  { %3091 = vmatpush3.bf16.msra.mxu0 %v441_v34  ;;  %3094 = vmatprep.mubr.msk.bf16.mxu0 %vm102_vm0, %v3502_v36 }
  0xaf   :  { %3092 = vmatprep.subr.bf16.mxu0 %v443_v37 }
  0xb0   :  { %v1071_v10 = vpop.permute.xlu0 %1070  ;;  %v1073_v13 = vpop.permute.xlu1 %1072 }
  0xb2   :  { %3093 = vmatpush3.bf16.msra.mxu0 %v443_v37 }
  0xb3   :  { %3102 = vmatprep.subr.bf16.mxu0 %v563_v38 }
  0xb5   :  { %3095 = vmatmul.mubr.msk.bf16.vlgmr.msra.gmra.mrb[0].mxu0 %vm102_vm0, %v3503_v39 }
  0xb6   :  { %3103 = vmatpush3.bf16.msra.mxu0 %v563_v38  ;;  %3098 = vmatprep.mubr.msk.bf16.mxu0 %vm102_vm0, %v3504_v40 }
  0xb7   :  { %3104 = vmatprep.subr.bf16.mxu0 %v565_v41 }
  0xba   :  { %3105 = vmatpush3.bf16.msra.mxu0 %v565_v41 }
  0xbb   :  { %3106 = vmatprep.subr.bf16.mxu0 %v567_v42 }
  0xbd   :  { %3099 = vmatmul.mubr.msk.bf16.gmra.mrb[4].mxu0 %vm102_vm0, %v3505_v43 }
  0xbe   :  { %3107 = vmatpush3.bf16.msra.mxu0 %v567_v42  ;;  %3110 = vmatprep.mubr.msk.bf16.mxu0 %vm102_vm0, %v3506_v44 }
  0xbf   :  { %3108 = vmatprep.subr.bf16.mxu0 %v569_v45 }
  0xc1   :  { %v1179_v18 = vpop.permute.xlu1 %1178  ;;  %v1174_v19 = vpop.permute.xlu0 %1173 }
  0xc2   :  { %3109 = vmatpush3.bf16.msra.mxu0 %v569_v45 }
  0xc3   :  { %3118 = vmatprep.subr.bf16.mxu0 %v689_v46 }
  0xc5   :  { %3111 = vmatmul.mubr.msk.bf16.vlgmr.msra.gmra.mrb[0].mxu0 %vm102_vm0, %v3507_v47  ;;  %v1184_v20 = vpop.permute.xlu1 %1183  ;;  %v1189_v21 = vpop.permute.xlu0 %1188 }
  0xc6   :  { %3119 = vmatpush3.bf16.msra.mxu0 %v689_v46  ;;  %3114 = vmatprep.mubr.msk.bf16.mxu0 %vm102_vm0, %v3508_v48 }
  0xc7   :  { %3120 = vmatprep.subr.bf16.mxu0 %v691_v49 }
  0xc9   :  { %v1194_v25 = vpop.permute.xlu1 %1193  ;;  %v1199_v31 = vpop.permute.xlu0 %1198 }
  0xca   :  { %3121 = vmatpush3.bf16.msra.mxu0 %v691_v49 }
  0xcb   :  { %3122 = vmatprep.subr.bf16.mxu0 %v693_v50 }
  0xcd   :  { %3115 = vmatmul.mubr.msk.bf16.gmra.mrb[4].mxu0 %vm102_vm0, %v3509_v51  ;;  %v1204_v40 = vpop.permute.xlu1 %1203  ;;  %v1209_v46 = vpop.permute.xlu0 %1208 }
  0xce   :  { %3123 = vmatpush3.bf16.msra.mxu0 %v693_v50  ;;  %3126 = vmatprep.mubr.msk.bf16.mxu0 %vm102_vm0, %v3510_v52 }
  0xcf   :  { %3124 = vmatprep.subr.bf16.mxu0 %v695_v53 }
  0xd2   :  { %3125 = vmatpush3.bf16.msra.mxu0 %v695_v53 }
  0xd3   :  { %3134 = vmatprep.subr.bf16.mxu0 %v815_v54 }
  0xd5   :  { %3127 = vmatmul.mubr.msk.bf16.vlgmr.msra.gmra.mrb[0].mxu0 %vm102_vm0, %v3511_v55 }
  0xd6   :  { %3135 = vmatpush3.bf16.msra.mxu0 %v815_v54  ;;  %3130 = vmatprep.mubr.msk.bf16.mxu0 %vm102_vm0, %v3512_v56 }
  0xd7   :  { %3136 = vmatprep.subr.bf16.mxu0 %v817_v57 }
  0xda   :  { %3137 = vmatpush3.bf16.msra.mxu0 %v817_v57 }
  0xdb   :  { %3138 = vmatprep.subr.bf16.mxu0 %v819_v58 }
  0xdd   :  { %3131 = vmatmul.mubr.msk.bf16.gmra.mrb[4].mxu0 %vm102_vm0, %v3513_v59 }
  0xde   :  { %3139 = vmatpush3.bf16.msra.mxu0 %v819_v58  ;;  %3142 = vmatprep.mubr.msk.bf16.mxu0 %vm102_vm0, %v3514_v60 }
  0xdf   :  { %3140 = vmatprep.subr.bf16.mxu0 %v821_v61 }
  0xe2   :  { %3141 = vmatpush3.bf16.msra.mxu0 %v821_v61 }
  0xe3   :  { %3150 = vmatprep.subr.bf16.mxu0 %v941_v62 }
  0xe5   :  { %3143 = vmatmul.mubr.msk.bf16.vlgmr.msra.gmra.mrb[0].mxu0 %vm102_vm0, %v3515_v63 }
  0xe6   :  { %3151 = vmatpush3.bf16.msra.mxu0 %v941_v62  ;;  %3146 = vmatprep.mubr.msk.bf16.mxu0 %vm102_vm0, %v3516_v0 }
  0xe7   :  { %3152 = vmatprep.subr.bf16.mxu0 %v943_v1 }
  0xea   :  { %3153 = vmatpush3.bf16.msra.mxu0 %v943_v1 }
  0xeb   :  { %3154 = vmatprep.subr.bf16.mxu0 %v945_v2 }
  0xed   :  { %3147 = vmatmul.mubr.msk.bf16.gmra.mrb[4].mxu0 %vm102_vm0, %v3517_v3 }
  0xee   :  { %3155 = vmatpush3.bf16.msra.mxu0 %v945_v2  ;;  %3158 = vmatprep.mubr.msk.bf16.mxu0 %vm102_vm0, %v3518_v4 }
  0xef   :  { %3156 = vmatprep.subr.bf16.mxu0 %v947_v5 }
  0xf2   :  { %3157 = vmatpush3.bf16.msra.mxu0 %v947_v5  ;;  %v3526_v5 = vld [vmem:[%s4246_s3 + $0x20] sm:$0xff]  }
  0xf3   :  { %3166 = vmatprep.subr.bf16.mxu0 %v1067_v6  ;;  %3190 = vmatprep.mubr.msk.bf16.mxu1 %vm102_vm0, %v3526_v5 }
  0xf5   :  { %3159 = vmatmul.mubr.msk.bf16.vlgmr.msra.gmra.mrb[0].mxu0 %vm102_vm0, %v3519_v7 }
  0xf6   :  { %3167 = vmatpush3.bf16.msra.mxu0 %v1067_v6  ;;  %3162 = vmatprep.mubr.msk.bf16.mxu0 %vm102_vm0, %v3520_v8  ;;  %v2385_v8 = vld [vmem:[%s4247_s4 + $0x8] sm:$0xff] }
  0xf7   :  { %3168 = vmatprep.subr.bf16.mxu0 %v1069_v9 }
  0xfa   :  { %3169 = vmatpush3.bf16.msra.mxu0 %v1069_v9  ;;  %v2384_v9 = vld [vmem:[%s4247_s4] sm:$0xff] }
  0xfb   :  { %3170 = vmatprep.subr.bf16.mxu0 %v1071_v10 }
  0xfd   :  { %3163 = vmatmul.mubr.msk.bf16.gmra.mrb[4].mxu0 %vm102_vm0, %v3521_v11  ;;  %v2386_v11 = vld [vmem:[%s4247_s4 + $0x10] sm:$0xff] }
  0xfe   :  { %3171 = vmatpush3.bf16.msra.mxu0 %v1071_v10  ;;  %3174 = vmatprep.mubr.msk.bf16.mxu0 %vm102_vm0, %v3522_v12  ;;  %v2387_v10 = vld [vmem:[%s4247_s4 + $0x18] sm:$0xff]  ;;  %v2389_v12 = vld [vmem:[%s4247_s4 + $0x28] sm:$0xff] }
  0xff   :  { %3172 = vmatprep.subr.bf16.mxu0 %v1073_v13 }
 0x102   :  { %3173 = vmatpush3.bf16.msra.mxu0 %v1073_v13  ;;  %v2388_v13 = vld [vmem:[%s4247_s4 + $0x20] sm:$0xff] }
 0x105   :  { %3175 = vmatmul.mubr.msk.bf16.vlgmr.msra.gmra.mrb[0].mxu0 %vm102_vm0, %v3523_v14  ;;  %v2391_v14 = vld [vmem:[%s4247_s4 + $0x38] sm:$0xff] }
 0x106   :  { %3178 = vmatprep.mubr.msk.bf16.mxu0 %vm102_vm0, %v3524_v16  ;;  %v2390_v16 = vld [vmem:[%s4247_s4 + $0x30] sm:$0xff] }
 0x10d   :  { %3179 = vmatmul.mubr.msk.bf16.gmra.mrb[4].mxu0 %vm102_vm0, %v3525_v17 }
 0x1d8   :  { %v3176_v22 = vpop.f32.mrb[0].mxu0 }
 0x1d9   :  { %v1213_v23 = vadd.f32 %v3176_v22, %v1184_v20  ;;  %v1124_v24 = vpop.f32.mrb[1].mxu0  ;;  %v3528_v22 = vld [vmem:[%s4246_s3 + $0x30] sm:$0xff]  }
 0x1da   :  { %v1211_v26 = vadd.f32 %v1174_v19, %v1124_v24  ;;  %v3177_v27 = vpop.f32.mrb[2].mxu0  ;;  %v3530_v24 = vld [vmem:[%s4246_s3] sm:$0xff]  }
 0x1db   :  { %v1221_v28 = vmax.f32 %v1213_v23, 0.0  ;;  %v1214_v29 = vadd.f32 %v3177_v27, %v1189_v21  ;;  %v1127_v30 = vpop.f32.mrb[3].mxu0  ;;  %v3527_v21 = vld [vmem:[%s4246_s3 + $0x28] sm:$0xff]   ;;  %v3529_v23 = vld [vmem:[%s4246_s3 + $0x38] sm:$0xff]  }
 0x1dc   :  { %v1219_v33 = vmax.f32 %v1211_v26, 0.0  ;;  %v1212_v34 = vadd.f32 %v1179_v18, %v1127_v30  ;;  %v2876_v26 = vld [vmem:[%s4242_s0] sm:$0xff]   ;;  %v2893_v27 = vld [vmem:[%s4242_s0 + $0x18] sm:$0xff]  }
 0x1dd   :  { %v1222_v35 = vmax.f32 %v1214_v29, 0.0  ;;  %v1235_v37 = vmul.f32 %v3884_v32, %v1221_v28  ;;  %v2877_v30 = vunpack.c.l.bf16 %v2876_v26 }
 0x1de   :  { %v1220_v36 = vmax.f32 %v1212_v34, 0.0  ;;  %v1233_v39 = vmul.f32 %v3884_v32, %v1219_v33  ;;  %v2892_v33 = vld [vmem:[%s4242_s0 + $0x10] sm:$0xff]   ;;  %v2889_v34 = vunpack.c.l.bf16 %v2893_v27 }
 0x1df   :  { %v1236_v38 = vmul.f32 %v3884_v32, %v1222_v35  ;;  %v2890_v35 = vunpack.c.h.bf16 %v2893_v27  ;;  %v3555_v27 = vld [vmem:[%s4246_s3 + $0xe8] sm:$0xff]  }
 0x1e0   :  { %v1234_v41 = vmul.f32 %v3884_v32, %v1220_v36  ;;  %v3180_v42 = vpop.f32.mrb[4].mxu0 }
 0x1e1   :  { %v1217_v43 = vadd.f32 %v3180_v42, %v1204_v40  ;;  %v1140_v44 = vpop.f32.mrb[5].mxu0  ;;  %v1247_v45 = vpack.c.bf16 %v1236_v38, %v1235_v37  ;;  %v2885_v38 = vunpack.c.l.bf16 %v2892_v33  ;;  %v3531_v40 = vld [vmem:[%s4246_s3 + $0x8] sm:$0xff]   ;;  %v3532_v42 = vld [vmem:[%s4246_s3 + $0x10] sm:$0xff]  }
 0x1e2   :  { %v1215_v47 = vadd.f32 %v1194_v25, %v1140_v44  ;;  %v3181_v48 = vpop.f32.mrb[6].mxu0  ;;  %v1246_v49 = vpack.c.bf16 %v1234_v41, %v1233_v39  ;;  %v2891_v25 = vld [vmem:[%s4242_s0 + $0x8] sm:$0xff]   ;;  %v2886_v39 = vunpack.c.h.bf16 %v2892_v33 }
 0x1e3   :  { %v1225_v50 = vmax.f32 %v1217_v43, 0.0  ;;  %v1218_v51 = vadd.f32 %v3181_v48, %v1209_v46  ;;  %v1143_v52 = vpop.f32.mrb[7].mxu0  ;;  %1256 = vrot.lane.b32.xlu0 %v1247_v45, %s3579_s5  ;;  %v2881_v28 = vunpack.c.l.bf16 %v2891_v25  ;;  %v2882_v29 = vunpack.c.h.bf16 %v2891_v25  ;;  %v3533_v46 = vld [vmem:[%s4246_s3 + $0x18] sm:$0xff]   ;;  %v3534_v48 = vld [vmem:[%s4246_s3 + $0x40] sm:$0xff]  }
 0x1e4   :  { %v1223_v53 = vmax.f32 %v1215_v47, 0.0  ;;  %v1216_v54 = vadd.f32 %v1199_v31, %v1143_v52  ;;  %1254 = vrot.lane.b32.xlu1 %v1246_v49, %s3579_s5  ;;  %v2878_v31 = vunpack.c.h.bf16 %v2876_v26  ;;  %v3481_v43 = vpack.i.bf16 %v2890_v35, %v2889_v34  ;;  %v3536_v52 = vld [vmem:[%s4246_s3 + $0x50] sm:$0xff]   ;;  %v3554_v25 = vld [vmem:[%s4246_s3 + $0xe0] sm:$0xff]  }
 0x1e5   :  { %v1226_v55 = vmax.f32 %v1218_v51, 0.0  ;;  %v1239_v57 = vmul.f32 %v3884_v32, %v1225_v50  ;;  %v3471_v36 = vpack.i.bf16 %v2882_v29, %v2881_v28  ;;  %v3476_v44 = vpack.i.bf16 %v2886_v39, %v2885_v38  ;;  %v3535_v50 = vld [vmem:[%s4246_s3 + $0x48] sm:$0xff]   ;;  %v3556_v29 = vld [vmem:[%s4246_s3 + $0xf0] sm:$0xff]   ;;  %v3558_v34 = vld [vmem:[%s4246_s3 + $0x100] sm:$0xff]  }
 0x1e6   :  { %v1224_v56 = vmax.f32 %v1216_v54, 0.0  ;;  %v1237_v59 = vmul.f32 %v3884_v32, %v1223_v53  ;;  %v3466_v37 = vpack.i.bf16 %v2878_v31, %v2877_v30  ;;  %v3537_v54 = vld [vmem:[%s4246_s3 + $0x58] sm:$0xff]  }
 0x1e7   :  { %v1240_v58 = vmul.f32 %v3884_v32, %v1226_v55  ;;  %v3557_v31 = vld [vmem:[%s4246_s3 + $0xf8] sm:$0xff]  }
 0x1e8   :  { %v1238_v60 = vmul.f32 %v3884_v32, %v1224_v56  ;;  %v3538_v56 = vld [vmem:[%s4246_s3 + $0x60] sm:$0xff]   ;;  %v3561_v38 = vld [vmem:[%s4246_s3 + $0x118] sm:$0xff]  }
 0x1e9   :  { %v1249_v61 = vpack.c.bf16 %v1240_v58, %v1239_v57  ;;  %v3539_v58 = vld [vmem:[%s4246_s3 + $0x68] sm:$0xff]  }
 0x1ea   :  { %v1248_v62 = vpack.c.bf16 %v1238_v60, %v1237_v59  ;;  %v3540_v60 = vld [vmem:[%s4246_s3 + $0x70] sm:$0xff]  }
 0x1eb   :  { %1260 = vrot.lane.b32.xlu0 %v1249_v61, %s3579_s5 }
 0x1ec   :  { %1258 = vrot.lane.b32.xlu1 %v1248_v62, %s3579_s5  ;;  %v3541_v62 = vld [vmem:[%s4246_s3 + $0x78] sm:$0xff]  }
 0x255   :  { %v1257_v63 = vpop.permute.xlu0 %1256 }
 0x256   :  { %1268 = vst.msk [vmem:[#allocation2 + $0x8] sm:$0xff] %vm1266_vm2, %v1257_v63  ;;  %v1255_v0 = vpop.permute.xlu1 %1254 }
 0x257   :  { %1267 = vst.msk [vmem:[#allocation2] sm:$0xff] %vm1266_vm2, %v1255_v0  ;;  %v3542_v0 = vld [vmem:[%s4246_s3 + $0x80] sm:$0xff]  }
 0x25d   :  { %v1261_v1 = vpop.permute.xlu0 %1260  ;;  %v3898_v2 = vld [vmem:[#allocation2 + $0x8] sm:$0xff] }
 0x25e   :  { %1270 = vst.msk [vmem:[#allocation2 + $0x18] sm:$0xff] %vm1266_vm2, %v1261_v1  ;;  %v1259_v3 = vpop.permute.xlu1 %1258  ;;  %1318 = vrot.lane.b32.xlu0 %v3898_v2, %s3570_s25  ;;  %v3902_v4 = vld [vmem:[#allocation2] sm:$0xff] }
 0x25f   :  { %1269 = vst.msk [vmem:[#allocation2 + $0x10] sm:$0xff] %vm1266_vm2, %v1259_v3  ;;  %1316 = vrot.lane.b32.xlu1 %v3902_v4, %s3570_s25 }
 0x265   :  { %v3910_v6 = vld [vmem:[#allocation2 + $0x18] sm:$0xff] }
 0x266   :  { %1322 = vrot.lane.b32.xlu0 %v3910_v6, %s3570_s25  ;;  %v3914_v7 = vld [vmem:[#allocation2 + $0x10] sm:$0xff] }
 0x267   :  { %1320 = vrot.lane.b32.xlu1 %v3914_v7, %s3570_s25 }
 0x26a   :  { %1533 = vrot.lane.b32.xlu0 %v3898_v2, %s3571_s8 }
 0x26b   :  { %1531 = vrot.lane.b32.xlu1 %v3902_v4, %s3571_s8 }
 0x26e   :  { %1537 = vrot.lane.b32.xlu0 %v3910_v6, %s3571_s8 }
 0x26f   :  { %1535 = vrot.lane.b32.xlu1 %v3914_v7, %s3571_s8 }
 0x272   :  { %1659 = vrot.lane.b32.xlu0 %v3898_v2, %s3572_s9 }
 0x273   :  { %1657 = vrot.lane.b32.xlu1 %v3902_v4, %s3572_s9 }
 0x276   :  { %1663 = vrot.lane.b32.xlu0 %v3910_v6, %s3572_s9 }
 0x277   :  { %1661 = vrot.lane.b32.xlu1 %v3914_v7, %s3572_s9 }
 0x27a   :  { %1785 = vrot.lane.b32.xlu0 %v3898_v2, %s3573_s10 }
 0x27b   :  { %1783 = vrot.lane.b32.xlu1 %v3902_v4, %s3573_s10 }
 0x27e   :  { %1789 = vrot.lane.b32.xlu0 %v3910_v6, %s3573_s10 }
 0x27f   :  { %1787 = vrot.lane.b32.xlu1 %v3914_v7, %s3573_s10 }
 0x282   :  { %1911 = vrot.lane.b32.xlu0 %v3898_v2, %s3574_s11 }
 0x283   :  { %1909 = vrot.lane.b32.xlu1 %v3902_v4, %s3574_s11 }
 0x286   :  { %1915 = vrot.lane.b32.xlu0 %v3910_v6, %s3574_s11 }
 0x287   :  { %1913 = vrot.lane.b32.xlu1 %v3914_v7, %s3574_s11 }
 0x28a   :  { %2037 = vrot.lane.b32.xlu0 %v3898_v2, %s3575_s12 }
 0x28b   :  { %2035 = vrot.lane.b32.xlu1 %v3902_v4, %s3575_s12 }
 0x28e   :  { %2041 = vrot.lane.b32.xlu0 %v3910_v6, %s3575_s12 }
 0x28f   :  { %2039 = vrot.lane.b32.xlu1 %v3914_v7, %s3575_s12 }
 0x292   :  { %2163 = vrot.lane.b32.xlu0 %v3898_v2, %s3576_s13 }
 0x293   :  { %2161 = vrot.lane.b32.xlu1 %v3902_v4, %s3576_s13 }
 0x296   :  { %2167 = vrot.lane.b32.xlu0 %v3910_v6, %s3576_s13 }
 0x297   :  { %2165 = vrot.lane.b32.xlu1 %v3914_v7, %s3576_s13 }
 0x29a   :  { %2289 = vrot.lane.b32.xlu0 %v3898_v2, %s3577_s14 }
 0x29b   :  { %2287 = vrot.lane.b32.xlu1 %v3902_v4, %s3577_s14 }
 0x29e   :  { %2293 = vrot.lane.b32.xlu0 %v3910_v6, %s3577_s14 }
 0x29f   :  { %2291 = vrot.lane.b32.xlu1 %v3914_v7, %s3577_s14 }
 0x2a2   :  { %2399 = vperm.xlu0 %3464, %v2385_v8   ;;  %v3546_v8 = vld [vmem:[%s4246_s3 + $0xa0] sm:$0xff]  }
 0x2a3   :  { %2394 = vperm.xlu1 %3465, %v2384_v9  }
 0x2a6   :  { %2409 = vperm.xlu0 %3464, %v2387_v10   ;;  %v3547_v10 = vld [vmem:[%s4246_s3 + $0xa8] sm:$0xff]  }
 0x2a7   :  { %2404 = vperm.xlu1 %3465, %v2386_v11  }
 0x2aa   :  { %2419 = vperm.xlu0 %3464, %v2389_v12   ;;  %v3548_v12 = vld [vmem:[%s4246_s3 + $0xb0] sm:$0xff]  }
 0x2ab   :  { %2414 = vperm.xlu1 %3465, %v2388_v13  }
 0x2ae   :  { %2429 = vperm.xlu0 %3464, %v2391_v14   ;;  %v3549_v14 = vld [vmem:[%s4246_s3 + $0xb8] sm:$0xff]  }
 0x2af   :  { %2424 = vperm.xlu1 %3465, %v2390_v16  }
 0x2b2   :  { %3472 = vrot.lane.b32.xlu0 %v3471_v36, %s3573_s10  ;;  %v3559_v36 = vld [vmem:[%s4246_s3 + $0x108] sm:$0xff]  }
 0x2b3   :  { %3467 = vrot.lane.b32.xlu1 %v3466_v37, %s3573_s10  ;;  %v3560_v37 = vld [vmem:[%s4246_s3 + $0x110] sm:$0xff]  }
 0x2b6   :  { %3482 = vrot.lane.b32.xlu0 %v3481_v43, %s3573_s10 }
 0x2b7   :  { %3477 = vrot.lane.b32.xlu1 %v3476_v44, %s3573_s10 }
 0x2d0   :  { %v1319_v18 = vpop.permute.xlu0 %1318 }
 0x2d1   :  { %v1317_v17 = vpop.permute.xlu1 %1316 }
 0x2d2   :  { %3182 = vmatprep.subr.bf16.mxu1 %v1317_v17 }
 0x2d3   :  { %3183 = vmatpush3.bf16.msra.mxu1 %v1317_v17  ;;  %v3550_v17 = vld [vmem:[%s4246_s3 + $0xc0] sm:$0xff]  }
 0x2d4   :  { %3184 = vmatprep.subr.bf16.mxu1 %v1319_v18 }
 0x2d7   :  { %3185 = vmatpush3.bf16.msra.mxu1 %v1319_v18 }
 0x2d8   :  { %v1323_v20 = vpop.permute.xlu0 %1322 }
 0x2d9   :  { %v1321_v19 = vpop.permute.xlu1 %1320 }
 0x2da   :  { %3186 = vmatprep.subr.bf16.mxu1 %v1321_v19 }
 0x2db   :  { %3187 = vmatpush3.bf16.msra.mxu1 %v1321_v19  ;;  %v3551_v19 = vld [vmem:[%s4246_s3 + $0xc8] sm:$0xff]  }
 0x2dc   :  { %3188 = vmatprep.subr.bf16.mxu1 %v1323_v20  ;;  %v1534_v45 = vpop.permute.xlu0 %1533 }
 0x2dd   :  { %v1532_v41 = vpop.permute.xlu1 %1531 }
 0x2df   :  { %3189 = vmatpush3.bf16.msra.mxu1 %v1323_v20 }
 0x2e0   :  { %3198 = vmatprep.subr.bf16.mxu1 %v3902_v4  ;;  %v1538_v49 = vpop.permute.xlu0 %1537 }
 0x2e1   :  { %v1536_v47 = vpop.permute.xlu1 %1535 }
 0x2e2   :  { %3191 = vmatmul.mubr.msk.bf16.vlgmr.msra.gmra.mrb[0].mxu1 %vm102_vm0, %v3527_v21  ;;  %v3552_v21 = vld [vmem:[%s4246_s3 + $0xd0] sm:$0xff]  }
 0x2e3   :  { %3199 = vmatpush3.bf16.msra.mxu1 %v3902_v4  ;;  %3194 = vmatprep.mubr.msk.bf16.mxu1 %vm102_vm0, %v3528_v22  ;;  %v3544_v4 = vld [vmem:[%s4246_s3 + $0x90] sm:$0xff]  }
 0x2e4   :  { %3200 = vmatprep.subr.bf16.mxu1 %v3898_v2  ;;  %v1660_v53 = vpop.permute.xlu0 %1659 }
 0x2e5   :  { %v1658_v51 = vpop.permute.xlu1 %1657 }
 0x2e7   :  { %3201 = vmatpush3.bf16.msra.mxu1 %v3898_v2  ;;  %v3543_v2 = vld [vmem:[%s4246_s3 + $0x88] sm:$0xff]  }
 0x2e8   :  { %3202 = vmatprep.subr.bf16.mxu1 %v3914_v7  ;;  %v1664_v57 = vpop.permute.xlu0 %1663 }
 0x2e9   :  { %v1662_v55 = vpop.permute.xlu1 %1661 }
 0x2ea   :  { %3195 = vmatmul.mubr.msk.bf16.gmra.mrb[4].mxu1 %vm102_vm0, %v3529_v23  ;;  %v3553_v23 = vld [vmem:[%s4246_s3 + $0xd8] sm:$0xff]  }
 0x2eb   :  { %3203 = vmatpush3.bf16.msra.mxu1 %v3914_v7  ;;  %3206 = vmatprep.mubr.msk.bf16.mxu1 %vm102_vm0, %v3530_v24 }
 0x2ec   :  { %3204 = vmatprep.subr.bf16.mxu1 %v3910_v6  ;;  %v1786_v61 = vpop.permute.xlu0 %1785 }
 0x2ed   :  { %v1784_v59 = vpop.permute.xlu1 %1783 }
 0x2ef   :  { %3205 = vmatpush3.bf16.msra.mxu1 %v3910_v6  ;;  %v3545_v6 = vld [vmem:[%s4246_s3 + $0x98] sm:$0xff]  }
 0x2f0   :  { %3214 = vmatprep.subr.bf16.mxu1 %v1532_v41  ;;  %v1790_v1 = vpop.permute.xlu0 %1789 }
 0x2f1   :  { %v1788_v63 = vpop.permute.xlu1 %1787 }
 0x2f2   :  { %3207 = vmatmul.mubr.msk.bf16.vlgmr.msra.gmra.mrb[0].mxu1 %vm102_vm0, %v3531_v40 }
 0x2f3   :  { %3215 = vmatpush3.bf16.msra.mxu1 %v1532_v41  ;;  %3210 = vmatprep.mubr.msk.bf16.mxu1 %vm102_vm0, %v3532_v42 }
 0x2f4   :  { %3216 = vmatprep.subr.bf16.mxu1 %v1534_v45  ;;  %v1912_v5 = vpop.permute.xlu0 %1911 }
 0x2f5   :  { %v1910_v3 = vpop.permute.xlu1 %1909 }
 0x2f7   :  { %3217 = vmatpush3.bf16.msra.mxu1 %v1534_v45 }
 0x2f8   :  { %3218 = vmatprep.subr.bf16.mxu1 %v1536_v47  ;;  %v1916_v9 = vpop.permute.xlu0 %1915 }
 0x2f9   :  { %v1914_v7 = vpop.permute.xlu1 %1913 }
 0x2fa   :  { %3211 = vmatmul.mubr.msk.bf16.gmra.mrb[4].mxu1 %vm102_vm0, %v3533_v46 }
 0x2fb   :  { %3219 = vmatpush3.bf16.msra.mxu1 %v1536_v47  ;;  %3222 = vmatprep.mubr.msk.bf16.mxu1 %vm102_vm0, %v3534_v48 }
 0x2fc   :  { %3220 = vmatprep.subr.bf16.mxu1 %v1538_v49  ;;  %v2038_v13 = vpop.permute.xlu0 %2037 }
 0x2fd   :  { %v2036_v11 = vpop.permute.xlu1 %2035 }
 0x2ff   :  { %3221 = vmatpush3.bf16.msra.mxu1 %v1538_v49 }
 0x300   :  { %3230 = vmatprep.subr.bf16.mxu1 %v1658_v51  ;;  %v2042_v18 = vpop.permute.xlu0 %2041 }
 0x301   :  { %v2040_v16 = vpop.permute.xlu1 %2039 }
 0x302   :  { %3223 = vmatmul.mubr.msk.bf16.vlgmr.msra.gmra.mrb[0].mxu1 %vm102_vm0, %v3535_v50 }
 0x303   :  { %3231 = vmatpush3.bf16.msra.mxu1 %v1658_v51  ;;  %3226 = vmatprep.mubr.msk.bf16.mxu1 %vm102_vm0, %v3536_v52 }
 0x304   :  { %3232 = vmatprep.subr.bf16.mxu1 %v1660_v53  ;;  %v2164_v22 = vpop.permute.xlu0 %2163 }
 0x305   :  { %v2162_v20 = vpop.permute.xlu1 %2161 }
 0x307   :  { %3233 = vmatpush3.bf16.msra.mxu1 %v1660_v53 }
 0x308   :  { %3234 = vmatprep.subr.bf16.mxu1 %v1662_v55  ;;  %v2168_v26 = vpop.permute.xlu0 %2167 }
 0x309   :  { %v2166_v24 = vpop.permute.xlu1 %2165 }
 0x30a   :  { %3227 = vmatmul.mubr.msk.bf16.gmra.mrb[4].mxu1 %vm102_vm0, %v3537_v54 }
 0x30b   :  { %3235 = vmatpush3.bf16.msra.mxu1 %v1662_v55  ;;  %3238 = vmatprep.mubr.msk.bf16.mxu1 %vm102_vm0, %v3538_v56 }
 0x30c   :  { %3236 = vmatprep.subr.bf16.mxu1 %v1664_v57  ;;  %v2290_v30 = vpop.permute.xlu0 %2289 }
 0x30d   :  { %v2288_v28 = vpop.permute.xlu1 %2287 }
 0x30f   :  { %3237 = vmatpush3.bf16.msra.mxu1 %v1664_v57 }
 0x310   :  { %3246 = vmatprep.subr.bf16.mxu1 %v1784_v59  ;;  %v2294_v35 = vpop.permute.xlu0 %2293 }
 0x311   :  { %v2292_v33 = vpop.permute.xlu1 %2291 }
 0x312   :  { %3239 = vmatmul.mubr.msk.bf16.vlgmr.msra.gmra.mrb[0].mxu1 %vm102_vm0, %v3539_v58 }
 0x313   :  { %3247 = vmatpush3.bf16.msra.mxu1 %v1784_v59  ;;  %3242 = vmatprep.mubr.msk.bf16.mxu1 %vm102_vm0, %v3540_v60 }
 0x314   :  { %3248 = vmatprep.subr.bf16.mxu1 %v1786_v61 }
 0x317   :  { %3249 = vmatpush3.bf16.msra.mxu1 %v1786_v61 }
 0x318   :  { %3250 = vmatprep.subr.bf16.mxu1 %v1788_v63 }
 0x31a   :  { %3243 = vmatmul.mubr.msk.bf16.gmra.mrb[4].mxu1 %vm102_vm0, %v3541_v62 }
 0x31b   :  { %3251 = vmatpush3.bf16.msra.mxu1 %v1788_v63  ;;  %3254 = vmatprep.mubr.msk.bf16.mxu1 %vm102_vm0, %v3542_v0 }
 0x31c   :  { %3252 = vmatprep.subr.bf16.mxu1 %v1790_v1 }
 0x31f   :  { %3253 = vmatpush3.bf16.msra.mxu1 %v1790_v1 }
 0x320   :  { %3262 = vmatprep.subr.bf16.mxu1 %v1910_v3 }
 0x321   :  { %v2400_v39 = vpop.permute.xlu0 %2399 }
 0x322   :  { %3255 = vmatmul.mubr.msk.bf16.vlgmr.msra.gmra.mrb[0].mxu1 %vm102_vm0, %v3543_v2  ;;  %v2395_v40 = vpop.permute.xlu1 %2394 }
 0x323   :  { %3263 = vmatpush3.bf16.msra.mxu1 %v1910_v3  ;;  %3258 = vmatprep.mubr.msk.bf16.mxu1 %vm102_vm0, %v3544_v4 }
 0x324   :  { %3264 = vmatprep.subr.bf16.mxu1 %v1912_v5 }
 0x325   :  { %v2410_v41 = vpop.permute.xlu0 %2409 }
 0x326   :  { %v2405_v42 = vpop.permute.xlu1 %2404 }
 0x327   :  { %3265 = vmatpush3.bf16.msra.mxu1 %v1912_v5 }
 0x328   :  { %3266 = vmatprep.subr.bf16.mxu1 %v1914_v7 }
 0x329   :  { %v2420_v43 = vpop.permute.xlu0 %2419 }
 0x32a   :  { %3259 = vmatmul.mubr.msk.bf16.gmra.mrb[4].mxu1 %vm102_vm0, %v3545_v6  ;;  %v2415_v44 = vpop.permute.xlu1 %2414 }
 0x32b   :  { %3267 = vmatpush3.bf16.msra.mxu1 %v1914_v7  ;;  %3270 = vmatprep.mubr.msk.bf16.mxu1 %vm102_vm0, %v3546_v8 }
 0x32c   :  { %3268 = vmatprep.subr.bf16.mxu1 %v1916_v9 }
 0x32d   :  { %v2430_v45 = vpop.permute.xlu0 %2429 }
 0x32e   :  { %v2425_v46 = vpop.permute.xlu1 %2424 }
 0x32f   :  { %3269 = vmatpush3.bf16.msra.mxu1 %v1916_v9 }
 0x330   :  { %3278 = vmatprep.subr.bf16.mxu1 %v2036_v11 }
 0x331   :  { %v3473_v47 = vpop.permute.xlu0 %3472 }
 0x332   :  { %3271 = vmatmul.mubr.msk.bf16.vlgmr.msra.gmra.mrb[0].mxu1 %vm102_vm0, %v3547_v10  ;;  %v3468_v48 = vpop.permute.xlu1 %3467 }
 0x333   :  { %3279 = vmatpush3.bf16.msra.mxu1 %v2036_v11  ;;  %3274 = vmatprep.mubr.msk.bf16.mxu1 %vm102_vm0, %v3548_v12 }
 0x334   :  { %3280 = vmatprep.subr.bf16.mxu1 %v2038_v13 }
 0x335   :  { %v3483_v58 = vpop.permute.xlu0 %3482 }
 0x336   :  { %v3478_v61 = vpop.permute.xlu1 %3477 }
 0x337   :  { %3281 = vmatpush3.bf16.msra.mxu1 %v2038_v13 }
 0x338   :  { %3282 = vmatprep.subr.bf16.mxu1 %v2040_v16 }
 0x33a   :  { %3275 = vmatmul.mubr.msk.bf16.gmra.mrb[4].mxu1 %vm102_vm0, %v3549_v14 }
 0x33b   :  { %3283 = vmatpush3.bf16.msra.mxu1 %v2040_v16  ;;  %3286 = vmatprep.mubr.msk.bf16.mxu1 %vm102_vm0, %v3550_v17 }
 0x33c   :  { %3284 = vmatprep.subr.bf16.mxu1 %v2042_v18 }
 0x33f   :  { %3285 = vmatpush3.bf16.msra.mxu1 %v2042_v18 }
 0x340   :  { %3294 = vmatprep.subr.bf16.mxu1 %v2162_v20 }
 0x342   :  { %3287 = vmatmul.mubr.msk.bf16.vlgmr.msra.gmra.mrb[0].mxu1 %vm102_vm0, %v3551_v19 }
 0x343   :  { %3295 = vmatpush3.bf16.msra.mxu1 %v2162_v20  ;;  %3290 = vmatprep.mubr.msk.bf16.mxu1 %vm102_vm0, %v3552_v21 }
 0x344   :  { %3296 = vmatprep.subr.bf16.mxu1 %v2164_v22 }
 0x347   :  { %3297 = vmatpush3.bf16.msra.mxu1 %v2164_v22 }
 0x348   :  { %3298 = vmatprep.subr.bf16.mxu1 %v2166_v24 }
 0x34a   :  { %3291 = vmatmul.mubr.msk.bf16.gmra.mrb[4].mxu1 %vm102_vm0, %v3553_v23 }
 0x34b   :  { %3299 = vmatpush3.bf16.msra.mxu1 %v2166_v24  ;;  %3302 = vmatprep.mubr.msk.bf16.mxu1 %vm102_vm0, %v3554_v25 }
 0x34c   :  { %3300 = vmatprep.subr.bf16.mxu1 %v2168_v26 }
 0x34f   :  { %3301 = vmatpush3.bf16.msra.mxu1 %v2168_v26 }
 0x350   :  { %3310 = vmatprep.subr.bf16.mxu1 %v2288_v28 }
 0x352   :  { %3303 = vmatmul.mubr.msk.bf16.vlgmr.msra.gmra.mrb[0].mxu1 %vm102_vm0, %v3555_v27 }
 0x353   :  { %3311 = vmatpush3.bf16.msra.mxu1 %v2288_v28  ;;  %3306 = vmatprep.mubr.msk.bf16.mxu1 %vm102_vm0, %v3556_v29 }
 0x354   :  { %3312 = vmatprep.subr.bf16.mxu1 %v2290_v30 }
 0x357   :  { %3313 = vmatpush3.bf16.msra.mxu1 %v2290_v30 }
 0x358   :  { %3314 = vmatprep.subr.bf16.mxu1 %v2292_v33 }
 0x35a   :  { %3307 = vmatmul.mubr.msk.bf16.gmra.mrb[4].mxu1 %vm102_vm0, %v3557_v31 }
 0x35b   :  { %3315 = vmatpush3.bf16.msra.mxu1 %v2292_v33  ;;  %3318 = vmatprep.mubr.msk.bf16.mxu1 %vm102_vm0, %v3558_v34 }
 0x35c   :  { %3316 = vmatprep.subr.bf16.mxu1 %v2294_v35 }
 0x35f   :  { %3317 = vmatpush3.bf16.msra.mxu1 %v2294_v35 }
 0x362   :  { %3319 = vmatmul.mubr.msk.bf16.vlgmr.msra.gmra.mrb[0].mxu1 %vm102_vm0, %v3559_v36 }
 0x363   :  { %3322 = vmatprep.mubr.msk.bf16.mxu1 %vm102_vm0, %v3560_v37 }
 0x36a   :  { %3323 = vmatmul.mubr.msk.bf16.gmra.mrb[4].mxu1 %vm102_vm0, %v3561_v38 }
 0x435   :  { %v3320_v49 = vpop.f32.mrb[0].mxu1 }
 0x436   :  { %v2434_v50 = vadd.f32 %v3320_v49, %v2405_v42  ;;  %v2345_v51 = vpop.f32.mrb[1].mxu1 }
 0x437   :  { %v2432_v52 = vadd.f32 %v2395_v40, %v2345_v51  ;;  %v3321_v53 = vpop.f32.mrb[2].mxu1 }
 0x438   :  { %v3562_v54 = vadd.low.f32.bf16 %v2434_v50, %v3473_v47  ;;  %v2435_v55 = vadd.f32 %v3321_v53, %v2410_v41  ;;  %v2348_v56 = vpop.f32.mrb[3].mxu1 }
 0x439   :  { %v3563_v57 = vadd.low.f32.bf16 %v2432_v52, %v3468_v48  ;;  %v2433_v15 = vadd.f32 %v2400_v39, %v2348_v56 }
 0x43a   :  { %v2498_v59 = vmax.f32 %v3562_v54, 0.0  ;;  %v3564_v60 = vadd.high.f32.bf16 %v2435_v55, %v3473_v47 }
 0x43b   :  { %v2496_v62 = vmax.f32 %v3563_v57, 0.0  ;;  %v3565_v63 = vadd.high.f32.bf16 %v2433_v15, %v3468_v48 }
 0x43c   :  { %v2499_v0 = vmax.f32 %v3564_v60, 0.0  ;;  %v2506_v1 = vmul.f32 %v3884_v32, %v2498_v59 }
 0x43d   :  { %v2497_v2 = vmax.f32 %v3565_v63, 0.0  ;;  %v3324_v3 = vpop.f32.mrb[4].mxu1  ;;  %v2504_v8 = vmul.f32 %v3884_v32, %v2496_v62 }
 0x43e   :  { %v2438_v4 = vadd.f32 %v3324_v3, %v2425_v46  ;;  %v2361_v5 = vpop.f32.mrb[5].mxu1  ;;  %v2869_v6 = vpack.c.bf16 %v2506_v1, %v2506_v1  ;;  %v2507_v7 = vmul.f32 %v3884_v32, %v2499_v0 }
 0x43f   :  { %v2436_v9 = vadd.f32 %v2415_v44, %v2361_v5  ;;  %v3325_v10 = vpop.f32.mrb[6].mxu1  ;;  %v2505_v16 = vmul.f32 %v3884_v32, %v2497_v2  ;;  %v2867_v20 = vpack.c.bf16 %v2504_v8, %v2504_v8 }
 0x440   :  { %v3566_v11 = vadd.low.f32.bf16 %v2438_v4, %v3483_v58  ;;  %v2439_v12 = vadd.f32 %v3325_v10, %v2430_v45  ;;  %v2364_v13 = vpop.f32.mrb[7].mxu1  ;;  %2549 = vrot.lane.b32.xlu1 %v2869_v6, %s3579_s5  ;;  %v2870_v14 = vpack.c.bf16 %v2507_v7, %v2507_v7 }
 0x441   :  { %v3567_v17 = vadd.low.f32.bf16 %v2436_v9, %v3478_v61  ;;  %v2437_v18 = vadd.f32 %v2420_v43, %v2364_v13  ;;  %v2868_v24 = vpack.c.bf16 %v2505_v16, %v2505_v16 }
 0x442   :  { %v3568_v19 = vadd.high.f32.bf16 %v2439_v12, %v3483_v58  ;;  %2551 = vrot.lane.b32.xlu0 %v2870_v14, %s3579_s5  ;;  %v2502_v21 = vmax.f32 %v3566_v11, 0.0 }
 0x443   :  { %v2500_v22 = vmax.f32 %v3567_v17, 0.0  ;;  %v3569_v23 = vadd.high.f32.bf16 %v2437_v18, %v3478_v61 }
 0x444   :  { %2545 = vrot.lane.b32.xlu1 %v2867_v20, %s3579_s5  ;;  %v2503_v25 = vmax.f32 %v3568_v19, 0.0  ;;  %v2510_v30 = vmul.f32 %v3884_v32, %v2502_v21 }
 0x445   :  { %v2501_v26 = vmax.f32 %v3569_v23, 0.0  ;;  %v2508_v27 = vmul.f32 %v3884_v32, %v2500_v22 }
 0x446   :  { %2547 = vrot.lane.b32.xlu0 %v2868_v24, %s3579_s5  ;;  %v2511_v33 = vmul.f32 %v3884_v32, %v2503_v25  ;;  %v2873_v34 = vpack.c.bf16 %v2510_v30, %v2510_v30 }
 0x447   :  { %v2871_v28 = vpack.c.bf16 %v2508_v27, %v2508_v27  ;;  %v2509_v29 = vmul.f32 %v3884_v32, %v2501_v26 }
 0x448   :  { %v2874_v35 = vpack.c.bf16 %v2511_v33, %v2511_v33 }
 0x449   :  { %2553 = vrot.lane.b32.xlu1 %v2871_v28, %s3579_s5  ;;  %v2872_v31 = vpack.c.bf16 %v2509_v29, %v2509_v29 }
 0x44b   :  { %2555 = vrot.lane.b32.xlu0 %v2872_v31, %s3579_s5 }
 0x44d   :  { %2557 = vrot.lane.b32.xlu1 %v2873_v34, %s3579_s5 }
 0x44f   :  { %2559 = vrot.lane.b32.xlu0 %v2874_v35, %s3579_s5 }
 0x4b2   :  { %v2550_v36 = vpop.permute.xlu1 %2549 }
 0x4b3   :  { %2572 = vst.msk [vmem:[%s4248_s6 + $0x8] sm:$0xf] %vm2569_vm4, %v2550_v36 }
 0x4b4   :  { %v2552_v37 = vpop.permute.xlu0 %2551 }
 0x4b5   :  { %2573 = vst.msk [vmem:[%s4248_s6 + $0xc] sm:$0xf] %vm2569_vm4, %v2552_v37 }
 0x4b6   :  { %v2546_v32 = vpop.permute.xlu1 %2545 }
 0x4b7   :  { %2570 = vst.msk [vmem:[%s4248_s6] sm:$0xf] %vm2569_vm4, %v2546_v32 }
 0x4b8   :  { %v2548_v38 = vpop.permute.xlu0 %2547 }
 0x4b9   :  { %2571 = vst.msk [vmem:[%s4248_s6 + $0x4] sm:$0xf] %vm2569_vm4, %v2548_v38 }
 0x4bb   :  { %v2554_v39 = vpop.permute.xlu1 %2553 }
 0x4bc   :  { %2574 = vst.msk [vmem:[%s4248_s6 + $0x10] sm:$0xf] %vm2569_vm4, %v2554_v39 }
 0x4bd   :  { %v2556_v40 = vpop.permute.xlu0 %2555 }
 0x4be   :  { %2575 = vst.msk [vmem:[%s4248_s6 + $0x14] sm:$0xf] %vm2569_vm4, %v2556_v40 }
 0x4bf   :  { %v2558_v41 = vpop.permute.xlu1 %2557 }
 0x4c0   :  { %2576 = vst.msk [vmem:[%s4248_s6 + $0x18] sm:$0xf] %vm2569_vm4, %v2558_v41 }
 0x4c1   :  { %v2560_v42 = vpop.permute.xlu0 %2559 }
 0x4c2   :  { %2577 = vst.msk [vmem:[%s4248_s6 + $0x1c] sm:$0xf] %vm2569_vm4, %v2560_v42 }

</bundles_post_ra>
